<compile_context>
chip_gen: v7x
topology: tpu7x:2x2x1
jax: 0.10.0
libtpu: 0.0.40
codegen_flags: <defaults>
</compile_context>

<pallas_src>
import functools

import jax
import jax.numpy as jnp
from jax.experimental import pallas as pl
from jax.experimental.pallas import tpu as pltpu


# ------------------------------ fused kernel ------------------------------- #

def _lenet_fused_kernel(x4_ref, f1_ref, b1_ref, g2_ref, b2_ref,
                        w3_ref, b3_ref, w4_ref, b4_ref,
                        o_ref, pad_ref):
    """Whole network for the whole (small) batch, fully VMEM-resident.

    x4_ref : (B, 4, 8, 30)  conv1 padded input, rows split by (padded row % 4)
    f1_ref : (3, 30, 448)   lifted conv1 weight per kh tap; cols = (wp, w/2, c16)
    b1_ref : (1, 448)       conv1 bias tiled to the same column layout
    g2_ref : (3, 288, 512)  lifted conv2 weight per kh tap; rows=(w_pad,ci),
                            cols = (wp, w/2, c32)
    b2_ref : (1, 512)
    w3_ref : (8, 256, 128)  fc1 weight, permuted to (h, w*32+c, out)
    b3_ref : (1, 128)
    w4_ref : (128, 10)
    b4_ref : (1, 10)
    o_ref  : (B, 10)
    pad_ref: (B, 2, 9, 288) VMEM scratch: zero-padded conv2 input, rows split
                            by (padded row % 2); cols = (w_pad, c16)
    """
    f32 = jnp.float32
    B = o_ref.shape[0]

    # Zero the padded conv2-input scratch once; borders stay zero (= padding=2).
    pad_ref[...] = jnp.zeros(pad_ref.shape, f32)

    for bi in range(B):
        # ---- Conv2d(1,16,3,pad=1): output rows h = 4s + r, s=0..6 ------------
        c1 = []
        for r in range(4):
            acc = jnp.zeros((7, 448), f32)
            for dh in range(3):
                q = r + dh                       # padded input row = 4s + q
                xblk = x4_ref[bi, q % 4, (q // 4):(q // 4) + 7, :]   # (7, 30)
                acc = acc + jnp.dot(xblk, f1_ref[dh],
                                    preferred_element_type=f32)      # (7, 448)
            c1.append(acc + b1_ref[...])

        # ---- MaxPool2x2 + ReLU (rows: pair (4s,4s+1)/(4s+2,4s+3); cols: wp) --
        m_ev = jnp.maximum(c1[0], c1[1])          # pooled rows h1 = 0,2,...,12
        m_od = jnp.maximum(c1[2], c1[3])          # pooled rows h1 = 1,3,...,13
        a1_ev = jnp.maximum(jnp.maximum(m_ev[:, :224], m_ev[:, 224:]), 0.0)
        a1_od = jnp.maximum(jnp.maximum(m_od[:, :224], m_od[:, 224:]), 0.0)

        # place into zero-padded (pad=2), row-parity-split conv2 input
        # padded row = h1 + 2  ->  parity h1 % 2, index h1 // 2 + 1
        # padded col = (w1 + 2)*16 + c  ->  lanes 32..255
        pad_ref[bi, 0, 1:8, 32:256] = a1_ev       # (7, 224)
        pad_ref[bi, 1, 1:8, 32:256] = a1_od

        # ---- Conv2d(16,32,3,pad=2): output rows h2 = 2*i2 + p, i2=0..7 -------
        c2 = []
        for p in range(2):
            acc = jnp.zeros((8, 512), f32)
            for dh in range(3):
                q = p + dh                        # padded input row = 2*i2 + q
                blk = pad_ref[bi, q % 2, (q // 2):(q // 2) + 8, :]   # (8, 288)
                acc = acc + jnp.dot(blk, g2_ref[dh],
                                    preferred_element_type=f32)       # (8, 512)
            c2.append(acc + b2_ref[...])

        # ---- MaxPool2x2 + ReLU ----------------------------------------------
        m2 = jnp.maximum(c2[0], c2[1])            # (8, 512), rows = pooled h
        a2 = jnp.maximum(jnp.maximum(m2[:, :256], m2[:, 256:]), 0.0)  # (8, 256)
        # a2[h, w*32 + c] == NCHW activation y[bi, c, h, w]

        # ---- Linear(2048,128) + ReLU (flatten folded into w3 at init) -------
        fc1 = jnp.zeros((1, 128), f32)
        for h in range(8):
            fc1 = fc1 + jnp.dot(a2[h:h + 1, :], w3_ref[h],
                                preferred_element_type=f32)           # (1, 128)
        hid = jnp.maximum(fc1 + b3_ref[...], 0.0)

        # ---- Dropout(0.5): identity (eval mode).  Linear(128,10) ------------
        logits = jnp.dot(hid, w4_ref[...],
                         preferred_element_type=f32) + b4_ref[...]    # (1, 10)
        o_ref[bi:bi + 1, :] = logits


# --------------------------- parameter preparation ------------------------- #

def prepare_params(raw):
    """Turn PyTorch-layout params into kernel-ready (lifted / permuted) params.

    raw: conv1_w (16,1,3,3), conv1_b (16,), conv2_w (32,16,3,3), conv2_b (32,),
         fc1_w (128,2048) [input index = c*64 + h*8 + w], fc1_b (128,),
         fc2_w (10,128), fc2_b (10,).
    """
    k1 = jnp.transpose(raw["conv1_w"], (2, 3, 1, 0))[:, :, 0, :]   # (3,3,16)
    k2 = jnp.transpose(raw["conv2_w"], (2, 3, 1, 0))               # (3,3,16,32)

    # conv1 lifted weight F1[dh, w_in(30), m(28), c(16)];  m = wp*14 + w//2
    w_in = jnp.arange(30)
    w_out = jnp.arange(28)
    d = w_in[:, None] - w_out[None, :]                             # (30, 28)
    F1 = jnp.where(((d >= 0) & (d <= 2))[None, :, :, None],
                   k1[:, jnp.clip(d, 0, 2), :], 0.0)               # (3,30,28,16)
    perm1 = jnp.concatenate([jnp.arange(0, 28, 2), jnp.arange(1, 28, 2)])
    F1 = F1[:, :, perm1, :].reshape(3, 30, 448)

    # conv2 lifted weight G[dh, (w_in(18), ci(16)), (m(16), co(32))]
    w_in2 = jnp.arange(18)
    w_out2 = jnp.arange(16)
    d2 = w_in2[:, None] - w_out2[None, :]                          # (18, 16)
    G = jnp.where(((d2 >= 0) & (d2 <= 2))[None, :, :, None, None],
                  k2[:, jnp.clip(d2, 0, 2), :, :], 0.0)            # (3,18,16,16,32)
    perm2 = jnp.concatenate([jnp.arange(0, 16, 2), jnp.arange(1, 16, 2)])
    G = G[:, :, perm2, :, :].transpose(0, 1, 3, 2, 4).reshape(3, 288, 512)

    # fc1 weight: permute PyTorch NCHW-flatten input order (c*64+h*8+w) into the
    # kernel's (h, w*32+c) consumption order, split by output row h.
    hh, ww, cc = jnp.meshgrid(jnp.arange(8), jnp.arange(8), jnp.arange(32),
                              indexing="ij")
    pt_idx = (cc * 64 + hh * 8 + ww).reshape(8, 256)               # (8, 256)
    w3p = raw["fc1_w"].T[pt_idx, :]                                # (8, 256, 128)

    return {
        "f1": F1,
        "b1": jnp.tile(raw["conv1_b"], 28)[None, :],               # (1, 448)
        "g2": G,
        "b2": jnp.tile(raw["conv2_b"], 16)[None, :],               # (1, 512)
        "w3": w3p,
        "b3": raw["fc1_b"][None, :],                               # (1, 128)
        "w4": raw["fc2_w"].T,                                      # (128, 10)
        "b4": raw["fc2_b"][None, :],                               # (1, 10)
    }


def init_params(key):
    """PyTorch-style uniform(-1/sqrt(fan_in), 1/sqrt(fan_in)) init, then lift."""
    ks = jax.random.split(key, 8)

    def u(k, shape, fan_in):
        bound = 1.0 / float(fan_in) ** 0.5
        return jax.random.uniform(k, shape, jnp.float32, -bound, bound)

    raw = {
        "conv1_w": u(ks[0], (16, 1, 3, 3), 9),
        "conv1_b": u(ks[1], (16,), 9),
        "conv2_w": u(ks[2], (32, 16, 3, 3), 144),
        "conv2_b": u(ks[3], (32,), 144),
        "fc1_w":   u(ks[4], (128, 2048), 2048),
        "fc1_b":   u(ks[5], (128,), 2048),
        "fc2_w":   u(ks[6], (10, 128), 128),
        "fc2_b":   u(ks[7], (10,), 128),
    }
    return prepare_params(raw)


# --------------------------------- forward --------------------------------- #

def forward(params, inp):
    B = inp.shape[0]
    x = inp.reshape(B, 28, 28)
    # pad=1 left/top/right, 3 bottom rows (so H=32 splits cleanly into mod-4)
    xp = jnp.pad(x, ((0, 0), (1, 3), (1, 1)))                      # (B, 32, 30)
    x4 = xp.reshape(B, 8, 4, 30).transpose(0, 2, 1, 3)             # (B, 4, 8, 30)

    args = (x4, params["f1"], params["b1"], params["g2"], params["b2"],
            params["w3"], params["b3"], params["w4"], params["b4"])

    in_specs = []
    for a in args:
        nd = a.ndim
        in_specs.append(pl.BlockSpec(a.shape, (lambda i, nd=nd: (0,) * nd)))

    return pl.pallas_call(
        _lenet_fused_kernel,
        out_shape=jax.ShapeDtypeStruct((B, 10), jnp.float32),
        grid=(1,),
        in_specs=in_specs,
        out_specs=pl.BlockSpec((B, 10), lambda i: (0, 0)),
        scratch_shapes=[pltpu.VMEM((B, 2, 9, 288), jnp.float32)],
    )(*args)


if __name__ == "__main__":
    key = jax.random.PRNGKey(0)
    pkey, xkey = jax.random.split(key)
    params = init_params(pkey)
    inp = jax.random.normal(xkey, (2, 784), jnp.float32)   # batch=2, 28*28 flat

    out = jax.jit(functools.partial(forward, params))(inp)
    out = jax.block_until_ready(out)
    assert out.shape == (2, 10) and out.dtype == jnp.float32
    print("KERNEL_OK")
</pallas_src>

<mosaic_0001>
module attributes {stable_mosaic.version = 11 : i64} {
  func.func @_lenet_fused_kernel(%arg0: i32, %arg1: memref<2x4x8x30xf32, #tpu.memory_space<vmem>>, %arg2: memref<3x30x448xf32, #tpu.memory_space<vmem>>, %arg3: memref<1x448xf32, #tpu.memory_space<vmem>>, %arg4: memref<3x288x512xf32, #tpu.memory_space<vmem>>, %arg5: memref<1x512xf32, #tpu.memory_space<vmem>>, %arg6: memref<8x256x128xf32, #tpu.memory_space<vmem>>, %arg7: memref<1x128xf32, #tpu.memory_space<vmem>>, %arg8: memref<128x10xf32, #tpu.memory_space<vmem>>, %arg9: memref<1x10xf32, #tpu.memory_space<vmem>>, %arg10: memref<2x10xf32, #tpu.memory_space<vmem>>, %arg11: memref<2x2x9x288xf32, #tpu.memory_space<vmem>>) attributes {dimension_semantics = [#tpu.dimension_semantics<arbitrary>], iteration_bounds = array<i64: 1>, scalar_prefetch = 0 : i64, scratch_operands = 1 : i64, tpu.core_type = #tpu.core_type<tc>, window_params = [{pipeline_mode = #tpu.pipeline_mode<synchronous>, transform_indices = @transform_0, window_bounds = array<i64: 2, 4, 8, 30>}, {pipeline_mode = #tpu.pipeline_mode<synchronous>, transform_indices = @transform_1, window_bounds = array<i64: 3, 30, 448>}, {pipeline_mode = #tpu.pipeline_mode<synchronous>, transform_indices = @transform_2, window_bounds = array<i64: 1, 448>}, {pipeline_mode = #tpu.pipeline_mode<synchronous>, transform_indices = @transform_3, window_bounds = array<i64: 3, 288, 512>}, {pipeline_mode = #tpu.pipeline_mode<synchronous>, transform_indices = @transform_4, window_bounds = array<i64: 1, 512>}, {pipeline_mode = #tpu.pipeline_mode<synchronous>, transform_indices = @transform_5, window_bounds = array<i64: 8, 256, 128>}, {pipeline_mode = #tpu.pipeline_mode<synchronous>, transform_indices = @transform_6, window_bounds = array<i64: 1, 128>}, {pipeline_mode = #tpu.pipeline_mode<synchronous>, transform_indices = @transform_7, window_bounds = array<i64: 128, 10>}, {pipeline_mode = #tpu.pipeline_mode<synchronous>, transform_indices = @transform_8, window_bounds = array<i64: 1, 10>}, {pipeline_mode = #tpu.pipeline_mode<synchronous>, transform_indices = @transform_9, window_bounds = array<i64: 2, 10>}]} {
    %cst = arith.constant 0.000000e+00 : f32
    %0 = vector.broadcast %cst : f32 to vector<2x2x9x288xf32>
    %c0 = arith.constant 0 : index
    %c0_0 = arith.constant 0 : index
    %c0_1 = arith.constant 0 : index
    %c0_2 = arith.constant 0 : index
    %1 = vector.load %arg11[%c0, %c0_0, %c0_1, %c0_2] : memref<2x2x9x288xf32, #tpu.memory_space<vmem>>, vector<2x2x9x288xf32>
    tpu.vector_store %arg11[%c0, %c0_0, %c0_1, %c0_2], %0 {strides = array<i32>} : memref<2x2x9x288xf32, #tpu.memory_space<vmem>>, vector<2x2x9x288xf32>,
    %cst_3 = arith.constant 0.000000e+00 : f32
    %2 = vector.broadcast %cst_3 : f32 to vector<7x448xf32>
    %c0_4 = arith.constant 0 : index
    %c0_5 = arith.constant 0 : index
    %c0_6 = arith.constant 0 : index
    %c0_7 = arith.constant 0 : index
    %3 = vector.load %arg1[%c0_4, %c0_5, %c0_6, %c0_7] : memref<2x4x8x30xf32, #tpu.memory_space<vmem>>, vector<1x1x7x30xf32>
    %4 = vector.shape_cast %3 : vector<1x1x7x30xf32> to vector<7x30xf32>
    %c0_8 = arith.constant 0 : index
    %c0_9 = arith.constant 0 : index
    %c0_10 = arith.constant 0 : index
    %5 = vector.load %arg2[%c0_8, %c0_9, %c0_10] : memref<3x30x448xf32, #tpu.memory_space<vmem>>, vector<1x30x448xf32>
    %6 = vector.shape_cast %5 : vector<1x30x448xf32> to vector<30x448xf32>
    %cst_11 = arith.constant dense<0.000000e+00> : vector<7x448xf32>
    %7 = tpu.matmul %4, %6, %cst_11 {dimension_numbers = #tpu.dot_dimension_numbers<[1], [0], [0], [1], [0, 0, 1, 1], [], []>} : vector<7x30xf32>, vector<30x448xf32>, vector<7x448xf32> -> vector<7x448xf32>
    %8 = arith.addf %2, %7 : vector<7x448xf32>
    %c0_12 = arith.constant 0 : index
    %c1 = arith.constant 1 : index
    %c0_13 = arith.constant 0 : index
    %c0_14 = arith.constant 0 : index
    %9 = vector.load %arg1[%c0_12, %c1, %c0_13, %c0_14] : memref<2x4x8x30xf32, #tpu.memory_space<vmem>>, vector<1x1x7x30xf32>
    %10 = vector.shape_cast %9 : vector<1x1x7x30xf32> to vector<7x30xf32>
    %c1_15 = arith.constant 1 : index
    %c0_16 = arith.constant 0 : index
    %c0_17 = arith.constant 0 : index
    %11 = vector.load %arg2[%c1_15, %c0_16, %c0_17] : memref<3x30x448xf32, #tpu.memory_space<vmem>>, vector<1x30x448xf32>
    %12 = vector.shape_cast %11 : vector<1x30x448xf32> to vector<30x448xf32>
    %cst_18 = arith.constant dense<0.000000e+00> : vector<7x448xf32>
    %13 = tpu.matmul %10, %12, %cst_18 {dimension_numbers = #tpu.dot_dimension_numbers<[1], [0], [0], [1], [0, 0, 1, 1], [], []>} : vector<7x30xf32>, vector<30x448xf32>, vector<7x448xf32> -> vector<7x448xf32>
    %14 = arith.addf %8, %13 : vector<7x448xf32>
    %c0_19 = arith.constant 0 : index
    %c2 = arith.constant 2 : index
    %c0_20 = arith.constant 0 : index
    %c0_21 = arith.constant 0 : index
    %15 = vector.load %arg1[%c0_19, %c2, %c0_20, %c0_21] : memref<2x4x8x30xf32, #tpu.memory_space<vmem>>, vector<1x1x7x30xf32>
    %16 = vector.shape_cast %15 : vector<1x1x7x30xf32> to vector<7x30xf32>
    %c2_22 = arith.constant 2 : index
    %c0_23 = arith.constant 0 : index
    %c0_24 = arith.constant 0 : index
    %17 = vector.load %arg2[%c2_22, %c0_23, %c0_24] : memref<3x30x448xf32, #tpu.memory_space<vmem>>, vector<1x30x448xf32>
    %18 = vector.shape_cast %17 : vector<1x30x448xf32> to vector<30x448xf32>
    %cst_25 = arith.constant dense<0.000000e+00> : vector<7x448xf32>
    %19 = tpu.matmul %16, %18, %cst_25 {dimension_numbers = #tpu.dot_dimension_numbers<[1], [0], [0], [1], [0, 0, 1, 1], [], []>} : vector<7x30xf32>, vector<30x448xf32>, vector<7x448xf32> -> vector<7x448xf32>
    %20 = arith.addf %14, %19 : vector<7x448xf32>
    %c0_26 = arith.constant 0 : index
    %c0_27 = arith.constant 0 : index
    %21 = vector.load %arg3[%c0_26, %c0_27] : memref<1x448xf32, #tpu.memory_space<vmem>>, vector<1x448xf32>
    %22 = vector.broadcast %21 : vector<1x448xf32> to vector<7x448xf32>
    %23 = arith.addf %20, %22 : vector<7x448xf32>
    %cst_28 = arith.constant 0.000000e+00 : f32
    %24 = vector.broadcast %cst_28 : f32 to vector<7x448xf32>
    %c0_29 = arith.constant 0 : index
    %c1_30 = arith.constant 1 : index
    %c0_31 = arith.constant 0 : index
    %c0_32 = arith.constant 0 : index
    %25 = vector.load %arg1[%c0_29, %c1_30, %c0_31, %c0_32] : memref<2x4x8x30xf32, #tpu.memory_space<vmem>>, vector<1x1x7x30xf32>
    %26 = vector.shape_cast %25 : vector<1x1x7x30xf32> to vector<7x30xf32>
    %c0_33 = arith.constant 0 : index
    %c0_34 = arith.constant 0 : index
    %c0_35 = arith.constant 0 : index
    %27 = vector.load %arg2[%c0_33, %c0_34, %c0_35] : memref<3x30x448xf32, #tpu.memory_space<vmem>>, vector<1x30x448xf32>
    %28 = vector.shape_cast %27 : vector<1x30x448xf32> to vector<30x448xf32>
    %cst_36 = arith.constant dense<0.000000e+00> : vector<7x448xf32>
    %29 = tpu.matmul %26, %28, %cst_36 {dimension_numbers = #tpu.dot_dimension_numbers<[1], [0], [0], [1], [0, 0, 1, 1], [], []>} : vector<7x30xf32>, vector<30x448xf32>, vector<7x448xf32> -> vector<7x448xf32>
    %30 = arith.addf %24, %29 : vector<7x448xf32>
    %c0_37 = arith.constant 0 : index
    %c2_38 = arith.constant 2 : index
    %c0_39 = arith.constant 0 : index
    %c0_40 = arith.constant 0 : index
    %31 = vector.load %arg1[%c0_37, %c2_38, %c0_39, %c0_40] : memref<2x4x8x30xf32, #tpu.memory_space<vmem>>, vector<1x1x7x30xf32>
    %32 = vector.shape_cast %31 : vector<1x1x7x30xf32> to vector<7x30xf32>
    %c1_41 = arith.constant 1 : index
    %c0_42 = arith.constant 0 : index
    %c0_43 = arith.constant 0 : index
    %33 = vector.load %arg2[%c1_41, %c0_42, %c0_43] : memref<3x30x448xf32, #tpu.memory_space<vmem>>, vector<1x30x448xf32>
    %34 = vector.shape_cast %33 : vector<1x30x448xf32> to vector<30x448xf32>
    %cst_44 = arith.constant dense<0.000000e+00> : vector<7x448xf32>
    %35 = tpu.matmul %32, %34, %cst_44 {dimension_numbers = #tpu.dot_dimension_numbers<[1], [0], [0], [1], [0, 0, 1, 1], [], []>} : vector<7x30xf32>, vector<30x448xf32>, vector<7x448xf32> -> vector<7x448xf32>
    %36 = arith.addf %30, %35 : vector<7x448xf32>
    %c0_45 = arith.constant 0 : index
    %c3 = arith.constant 3 : index
    %c0_46 = arith.constant 0 : index
    %c0_47 = arith.constant 0 : index
    %37 = vector.load %arg1[%c0_45, %c3, %c0_46, %c0_47] : memref<2x4x8x30xf32, #tpu.memory_space<vmem>>, vector<1x1x7x30xf32>
    %38 = vector.shape_cast %37 : vector<1x1x7x30xf32> to vector<7x30xf32>
    %c2_48 = arith.constant 2 : index
    %c0_49 = arith.constant 0 : index
    %c0_50 = arith.constant 0 : index
    %39 = vector.load %arg2[%c2_48, %c0_49, %c0_50] : memref<3x30x448xf32, #tpu.memory_space<vmem>>, vector<1x30x448xf32>
    %40 = vector.shape_cast %39 : vector<1x30x448xf32> to vector<30x448xf32>
    %cst_51 = arith.constant dense<0.000000e+00> : vector<7x448xf32>
    %41 = tpu.matmul %38, %40, %cst_51 {dimension_numbers = #tpu.dot_dimension_numbers<[1], [0], [0], [1], [0, 0, 1, 1], [], []>} : vector<7x30xf32>, vector<30x448xf32>, vector<7x448xf32> -> vector<7x448xf32>
    %42 = arith.addf %36, %41 : vector<7x448xf32>
    %c0_52 = arith.constant 0 : index
    %c0_53 = arith.constant 0 : index
    %43 = vector.load %arg3[%c0_52, %c0_53] : memref<1x448xf32, #tpu.memory_space<vmem>>, vector<1x448xf32>
    %44 = vector.broadcast %43 : vector<1x448xf32> to vector<7x448xf32>
    %45 = arith.addf %42, %44 : vector<7x448xf32>
    %cst_54 = arith.constant 0.000000e+00 : f32
    %46 = vector.broadcast %cst_54 : f32 to vector<7x448xf32>
    %c0_55 = arith.constant 0 : index
    %c2_56 = arith.constant 2 : index
    %c0_57 = arith.constant 0 : index
    %c0_58 = arith.constant 0 : index
    %47 = vector.load %arg1[%c0_55, %c2_56, %c0_57, %c0_58] : memref<2x4x8x30xf32, #tpu.memory_space<vmem>>, vector<1x1x7x30xf32>
    %48 = vector.shape_cast %47 : vector<1x1x7x30xf32> to vector<7x30xf32>
    %c0_59 = arith.constant 0 : index
    %c0_60 = arith.constant 0 : index
    %c0_61 = arith.constant 0 : index
    %49 = vector.load %arg2[%c0_59, %c0_60, %c0_61] : memref<3x30x448xf32, #tpu.memory_space<vmem>>, vector<1x30x448xf32>
    %50 = vector.shape_cast %49 : vector<1x30x448xf32> to vector<30x448xf32>
    %cst_62 = arith.constant dense<0.000000e+00> : vector<7x448xf32>
    %51 = tpu.matmul %48, %50, %cst_62 {dimension_numbers = #tpu.dot_dimension_numbers<[1], [0], [0], [1], [0, 0, 1, 1], [], []>} : vector<7x30xf32>, vector<30x448xf32>, vector<7x448xf32> -> vector<7x448xf32>
    %52 = arith.addf %46, %51 : vector<7x448xf32>
    %c0_63 = arith.constant 0 : index
    %c3_64 = arith.constant 3 : index
    %c0_65 = arith.constant 0 : index
    %c0_66 = arith.constant 0 : index
    %53 = vector.load %arg1[%c0_63, %c3_64, %c0_65, %c0_66] : memref<2x4x8x30xf32, #tpu.memory_space<vmem>>, vector<1x1x7x30xf32>
    %54 = vector.shape_cast %53 : vector<1x1x7x30xf32> to vector<7x30xf32>
    %c1_67 = arith.constant 1 : index
    %c0_68 = arith.constant 0 : index
    %c0_69 = arith.constant 0 : index
    %55 = vector.load %arg2[%c1_67, %c0_68, %c0_69] : memref<3x30x448xf32, #tpu.memory_space<vmem>>, vector<1x30x448xf32>
    %56 = vector.shape_cast %55 : vector<1x30x448xf32> to vector<30x448xf32>
    %cst_70 = arith.constant dense<0.000000e+00> : vector<7x448xf32>
    %57 = tpu.matmul %54, %56, %cst_70 {dimension_numbers = #tpu.dot_dimension_numbers<[1], [0], [0], [1], [0, 0, 1, 1], [], []>} : vector<7x30xf32>, vector<30x448xf32>, vector<7x448xf32> -> vector<7x448xf32>
    %58 = arith.addf %52, %57 : vector<7x448xf32>
    %c0_71 = arith.constant 0 : index
    %c0_72 = arith.constant 0 : index
    %c1_73 = arith.constant 1 : index
    %c0_74 = arith.constant 0 : index
    %59 = vector.load %arg1[%c0_71, %c0_72, %c1_73, %c0_74] : memref<2x4x8x30xf32, #tpu.memory_space<vmem>>, vector<1x1x7x30xf32>
    %60 = vector.shape_cast %59 : vector<1x1x7x30xf32> to vector<7x30xf32>
    %c2_75 = arith.constant 2 : index
    %c0_76 = arith.constant 0 : index
    %c0_77 = arith.constant 0 : index
    %61 = vector.load %arg2[%c2_75, %c0_76, %c0_77] : memref<3x30x448xf32, #tpu.memory_space<vmem>>, vector<1x30x448xf32>
    %62 = vector.shape_cast %61 : vector<1x30x448xf32> to vector<30x448xf32>
    %cst_78 = arith.constant dense<0.000000e+00> : vector<7x448xf32>
    %63 = tpu.matmul %60, %62, %cst_78 {dimension_numbers = #tpu.dot_dimension_numbers<[1], [0], [0], [1], [0, 0, 1, 1], [], []>} : vector<7x30xf32>, vector<30x448xf32>, vector<7x448xf32> -> vector<7x448xf32>
    %64 = arith.addf %58, %63 : vector<7x448xf32>
    %c0_79 = arith.constant 0 : index
    %c0_80 = arith.constant 0 : index
    %65 = vector.load %arg3[%c0_79, %c0_80] : memref<1x448xf32, #tpu.memory_space<vmem>>, vector<1x448xf32>
    %66 = vector.broadcast %65 : vector<1x448xf32> to vector<7x448xf32>
    %67 = arith.addf %64, %66 : vector<7x448xf32>
    %cst_81 = arith.constant 0.000000e+00 : f32
    %68 = vector.broadcast %cst_81 : f32 to vector<7x448xf32>
    %c0_82 = arith.constant 0 : index
    %c3_83 = arith.constant 3 : index
    %c0_84 = arith.constant 0 : index
    %c0_85 = arith.constant 0 : index
    %69 = vector.load %arg1[%c0_82, %c3_83, %c0_84, %c0_85] : memref<2x4x8x30xf32, #tpu.memory_space<vmem>>, vector<1x1x7x30xf32>
    %70 = vector.shape_cast %69 : vector<1x1x7x30xf32> to vector<7x30xf32>
    %c0_86 = arith.constant 0 : index
    %c0_87 = arith.constant 0 : index
    %c0_88 = arith.constant 0 : index
    %71 = vector.load %arg2[%c0_86, %c0_87, %c0_88] : memref<3x30x448xf32, #tpu.memory_space<vmem>>, vector<1x30x448xf32>
    %72 = vector.shape_cast %71 : vector<1x30x448xf32> to vector<30x448xf32>
    %cst_89 = arith.constant dense<0.000000e+00> : vector<7x448xf32>
    %73 = tpu.matmul %70, %72, %cst_89 {dimension_numbers = #tpu.dot_dimension_numbers<[1], [0], [0], [1], [0, 0, 1, 1], [], []>} : vector<7x30xf32>, vector<30x448xf32>, vector<7x448xf32> -> vector<7x448xf32>
    %74 = arith.addf %68, %73 : vector<7x448xf32>
    %c0_90 = arith.constant 0 : index
    %c0_91 = arith.constant 0 : index
    %c1_92 = arith.constant 1 : index
    %c0_93 = arith.constant 0 : index
    %75 = vector.load %arg1[%c0_90, %c0_91, %c1_92, %c0_93] : memref<2x4x8x30xf32, #tpu.memory_space<vmem>>, vector<1x1x7x30xf32>
    %76 = vector.shape_cast %75 : vector<1x1x7x30xf32> to vector<7x30xf32>
    %c1_94 = arith.constant 1 : index
    %c0_95 = arith.constant 0 : index
    %c0_96 = arith.constant 0 : index
    %77 = vector.load %arg2[%c1_94, %c0_95, %c0_96] : memref<3x30x448xf32, #tpu.memory_space<vmem>>, vector<1x30x448xf32>
    %78 = vector.shape_cast %77 : vector<1x30x448xf32> to vector<30x448xf32>
    %cst_97 = arith.constant dense<0.000000e+00> : vector<7x448xf32>
    %79 = tpu.matmul %76, %78, %cst_97 {dimension_numbers = #tpu.dot_dimension_numbers<[1], [0], [0], [1], [0, 0, 1, 1], [], []>} : vector<7x30xf32>, vector<30x448xf32>, vector<7x448xf32> -> vector<7x448xf32>
    %80 = arith.addf %74, %79 : vector<7x448xf32>
    %c0_98 = arith.constant 0 : index
    %c1_99 = arith.constant 1 : index
    %c1_100 = arith.constant 1 : index
    %c0_101 = arith.constant 0 : index
    %81 = vector.load %arg1[%c0_98, %c1_99, %c1_100, %c0_101] : memref<2x4x8x30xf32, #tpu.memory_space<vmem>>, vector<1x1x7x30xf32>
    %82 = vector.shape_cast %81 : vector<1x1x7x30xf32> to vector<7x30xf32>
    %c2_102 = arith.constant 2 : index
    %c0_103 = arith.constant 0 : index
    %c0_104 = arith.constant 0 : index
    %83 = vector.load %arg2[%c2_102, %c0_103, %c0_104] : memref<3x30x448xf32, #tpu.memory_space<vmem>>, vector<1x30x448xf32>
    %84 = vector.shape_cast %83 : vector<1x30x448xf32> to vector<30x448xf32>
    %cst_105 = arith.constant dense<0.000000e+00> : vector<7x448xf32>
    %85 = tpu.matmul %82, %84, %cst_105 {dimension_numbers = #tpu.dot_dimension_numbers<[1], [0], [0], [1], [0, 0, 1, 1], [], []>} : vector<7x30xf32>, vector<30x448xf32>, vector<7x448xf32> -> vector<7x448xf32>
    %86 = arith.addf %80, %85 : vector<7x448xf32>
    %c0_106 = arith.constant 0 : index
    %c0_107 = arith.constant 0 : index
    %87 = vector.load %arg3[%c0_106, %c0_107] : memref<1x448xf32, #tpu.memory_space<vmem>>, vector<1x448xf32>
    %88 = vector.broadcast %87 : vector<1x448xf32> to vector<7x448xf32>
    %89 = arith.addf %86, %88 : vector<7x448xf32>
    %90 = arith.maximumf %23, %45 : vector<7x448xf32>
    %91 = arith.maximumf %67, %89 : vector<7x448xf32>
    %92 = vector.extract_strided_slice %90 {offsets = [0, 0], sizes = [7, 224], strides = [1, 1]} : vector<7x448xf32> to vector<7x224xf32>
    %93 = vector.extract_strided_slice %90 {offsets = [0, 224], sizes = [7, 224], strides = [1, 1]} : vector<7x448xf32> to vector<7x224xf32>
    %94 = arith.maximumf %92, %93 : vector<7x224xf32>
    %cst_108 = arith.constant 0.000000e+00 : f32
    %95 = vector.broadcast %cst_108 : f32 to vector<7x224xf32>
    %96 = arith.maximumf %94, %95 : vector<7x224xf32>
    %97 = vector.extract_strided_slice %91 {offsets = [0, 0], sizes = [7, 224], strides = [1, 1]} : vector<7x448xf32> to vector<7x224xf32>
    %98 = vector.extract_strided_slice %91 {offsets = [0, 224], sizes = [7, 224], strides = [1, 1]} : vector<7x448xf32> to vector<7x224xf32>
    %99 = arith.maximumf %97, %98 : vector<7x224xf32>
    %cst_109 = arith.constant 0.000000e+00 : f32
    %100 = vector.broadcast %cst_109 : f32 to vector<7x224xf32>
    %101 = arith.maximumf %99, %100 : vector<7x224xf32>
    %c0_110 = arith.constant 0 : index
    %c0_111 = arith.constant 0 : index
    %c1_112 = arith.constant 1 : index
    %c32 = arith.constant 32 : index
    %102 = vector.load %arg11[%c0_110, %c0_111, %c1_112, %c32] : memref<2x2x9x288xf32, #tpu.memory_space<vmem>>, vector<1x1x7x224xf32>
    %103 = vector.shape_cast %102 : vector<1x1x7x224xf32> to vector<7x224xf32>
    %104 = vector.shape_cast %96 : vector<7x224xf32> to vector<1x1x7x224xf32>
    tpu.vector_store %arg11[%c0_110, %c0_111, %c1_112, %c32], %104 {strides = array<i32>} : memref<2x2x9x288xf32, #tpu.memory_space<vmem>>, vector<1x1x7x224xf32>,
    %c0_113 = arith.constant 0 : index
    %c1_114 = arith.constant 1 : index
    %c1_115 = arith.constant 1 : index
    %c32_116 = arith.constant 32 : index
    %105 = vector.load %arg11[%c0_113, %c1_114, %c1_115, %c32_116] : memref<2x2x9x288xf32, #tpu.memory_space<vmem>>, vector<1x1x7x224xf32>
    %106 = vector.shape_cast %105 : vector<1x1x7x224xf32> to vector<7x224xf32>
    %107 = vector.shape_cast %101 : vector<7x224xf32> to vector<1x1x7x224xf32>
    tpu.vector_store %arg11[%c0_113, %c1_114, %c1_115, %c32_116], %107 {strides = array<i32>} : memref<2x2x9x288xf32, #tpu.memory_space<vmem>>, vector<1x1x7x224xf32>,
    %cst_117 = arith.constant 0.000000e+00 : f32
    %108 = vector.broadcast %cst_117 : f32 to vector<8x512xf32>
    %c0_118 = arith.constant 0 : index
    %c0_119 = arith.constant 0 : index
    %c0_120 = arith.constant 0 : index
    %c0_121 = arith.constant 0 : index
    %109 = vector.load %arg11[%c0_118, %c0_119, %c0_120, %c0_121] : memref<2x2x9x288xf32, #tpu.memory_space<vmem>>, vector<1x1x8x288xf32>
    %110 = vector.shape_cast %109 : vector<1x1x8x288xf32> to vector<8x288xf32>
    %c0_122 = arith.constant 0 : index
    %c0_123 = arith.constant 0 : index
    %c0_124 = arith.constant 0 : index
    %111 = vector.load %arg4[%c0_122, %c0_123, %c0_124] : memref<3x288x512xf32, #tpu.memory_space<vmem>>, vector<1x288x512xf32>
    %112 = vector.shape_cast %111 : vector<1x288x512xf32> to vector<288x512xf32>
    %cst_125 = arith.constant dense<0.000000e+00> : vector<8x512xf32>
    %113 = tpu.matmul %110, %112, %cst_125 {dimension_numbers = #tpu.dot_dimension_numbers<[1], [0], [0], [1], [0, 0, 1, 1], [], []>} : vector<8x288xf32>, vector<288x512xf32>, vector<8x512xf32> -> vector<8x512xf32>
    %114 = arith.addf %108, %113 : vector<8x512xf32>
    %c0_126 = arith.constant 0 : index
    %c1_127 = arith.constant 1 : index
    %c0_128 = arith.constant 0 : index
    %c0_129 = arith.constant 0 : index
    %115 = vector.load %arg11[%c0_126, %c1_127, %c0_128, %c0_129] : memref<2x2x9x288xf32, #tpu.memory_space<vmem>>, vector<1x1x8x288xf32>
    %116 = vector.shape_cast %115 : vector<1x1x8x288xf32> to vector<8x288xf32>
    %c1_130 = arith.constant 1 : index
    %c0_131 = arith.constant 0 : index
    %c0_132 = arith.constant 0 : index
    %117 = vector.load %arg4[%c1_130, %c0_131, %c0_132] : memref<3x288x512xf32, #tpu.memory_space<vmem>>, vector<1x288x512xf32>
    %118 = vector.shape_cast %117 : vector<1x288x512xf32> to vector<288x512xf32>
    %cst_133 = arith.constant dense<0.000000e+00> : vector<8x512xf32>
    %119 = tpu.matmul %116, %118, %cst_133 {dimension_numbers = #tpu.dot_dimension_numbers<[1], [0], [0], [1], [0, 0, 1, 1], [], []>} : vector<8x288xf32>, vector<288x512xf32>, vector<8x512xf32> -> vector<8x512xf32>
    %120 = arith.addf %114, %119 : vector<8x512xf32>
    %c0_134 = arith.constant 0 : index
    %c0_135 = arith.constant 0 : index
    %c1_136 = arith.constant 1 : index
    %c0_137 = arith.constant 0 : index
    %121 = vector.load %arg11[%c0_134, %c0_135, %c1_136, %c0_137] : memref<2x2x9x288xf32, #tpu.memory_space<vmem>>, vector<1x1x8x288xf32>
    %122 = vector.shape_cast %121 : vector<1x1x8x288xf32> to vector<8x288xf32>
    %c2_138 = arith.constant 2 : index
    %c0_139 = arith.constant 0 : index
    %c0_140 = arith.constant 0 : index
    %123 = vector.load %arg4[%c2_138, %c0_139, %c0_140] : memref<3x288x512xf32, #tpu.memory_space<vmem>>, vector<1x288x512xf32>
    %124 = vector.shape_cast %123 : vector<1x288x512xf32> to vector<288x512xf32>
    %cst_141 = arith.constant dense<0.000000e+00> : vector<8x512xf32>
    %125 = tpu.matmul %122, %124, %cst_141 {dimension_numbers = #tpu.dot_dimension_numbers<[1], [0], [0], [1], [0, 0, 1, 1], [], []>} : vector<8x288xf32>, vector<288x512xf32>, vector<8x512xf32> -> vector<8x512xf32>
    %126 = arith.addf %120, %125 : vector<8x512xf32>
    %c0_142 = arith.constant 0 : index
    %c0_143 = arith.constant 0 : index
    %127 = vector.load %arg5[%c0_142, %c0_143] : memref<1x512xf32, #tpu.memory_space<vmem>>, vector<1x512xf32>
    %128 = vector.broadcast %127 : vector<1x512xf32> to vector<8x512xf32>
    %129 = arith.addf %126, %128 : vector<8x512xf32>
    %cst_144 = arith.constant 0.000000e+00 : f32
    %130 = vector.broadcast %cst_144 : f32 to vector<8x512xf32>
    %c0_145 = arith.constant 0 : index
    %c1_146 = arith.constant 1 : index
    %c0_147 = arith.constant 0 : index
    %c0_148 = arith.constant 0 : index
    %131 = vector.load %arg11[%c0_145, %c1_146, %c0_147, %c0_148] : memref<2x2x9x288xf32, #tpu.memory_space<vmem>>, vector<1x1x8x288xf32>
    %132 = vector.shape_cast %131 : vector<1x1x8x288xf32> to vector<8x288xf32>
    %c0_149 = arith.constant 0 : index
    %c0_150 = arith.constant 0 : index
    %c0_151 = arith.constant 0 : index
    %133 = vector.load %arg4[%c0_149, %c0_150, %c0_151] : memref<3x288x512xf32, #tpu.memory_space<vmem>>, vector<1x288x512xf32>
    %134 = vector.shape_cast %133 : vector<1x288x512xf32> to vector<288x512xf32>
    %cst_152 = arith.constant dense<0.000000e+00> : vector<8x512xf32>
    %135 = tpu.matmul %132, %134, %cst_152 {dimension_numbers = #tpu.dot_dimension_numbers<[1], [0], [0], [1], [0, 0, 1, 1], [], []>} : vector<8x288xf32>, vector<288x512xf32>, vector<8x512xf32> -> vector<8x512xf32>
    %136 = arith.addf %130, %135 : vector<8x512xf32>
    %c0_153 = arith.constant 0 : index
    %c0_154 = arith.constant 0 : index
    %c1_155 = arith.constant 1 : index
    %c0_156 = arith.constant 0 : index
    %137 = vector.load %arg11[%c0_153, %c0_154, %c1_155, %c0_156] : memref<2x2x9x288xf32, #tpu.memory_space<vmem>>, vector<1x1x8x288xf32>
    %138 = vector.shape_cast %137 : vector<1x1x8x288xf32> to vector<8x288xf32>
    %c1_157 = arith.constant 1 : index
    %c0_158 = arith.constant 0 : index
    %c0_159 = arith.constant 0 : index
    %139 = vector.load %arg4[%c1_157, %c0_158, %c0_159] : memref<3x288x512xf32, #tpu.memory_space<vmem>>, vector<1x288x512xf32>
    %140 = vector.shape_cast %139 : vector<1x288x512xf32> to vector<288x512xf32>
    %cst_160 = arith.constant dense<0.000000e+00> : vector<8x512xf32>
    %141 = tpu.matmul %138, %140, %cst_160 {dimension_numbers = #tpu.dot_dimension_numbers<[1], [0], [0], [1], [0, 0, 1, 1], [], []>} : vector<8x288xf32>, vector<288x512xf32>, vector<8x512xf32> -> vector<8x512xf32>
    %142 = arith.addf %136, %141 : vector<8x512xf32>
    %c0_161 = arith.constant 0 : index
    %c1_162 = arith.constant 1 : index
    %c1_163 = arith.constant 1 : index
    %c0_164 = arith.constant 0 : index
    %143 = vector.load %arg11[%c0_161, %c1_162, %c1_163, %c0_164] : memref<2x2x9x288xf32, #tpu.memory_space<vmem>>, vector<1x1x8x288xf32>
    %144 = vector.shape_cast %143 : vector<1x1x8x288xf32> to vector<8x288xf32>
    %c2_165 = arith.constant 2 : index
    %c0_166 = arith.constant 0 : index
    %c0_167 = arith.constant 0 : index
    %145 = vector.load %arg4[%c2_165, %c0_166, %c0_167] : memref<3x288x512xf32, #tpu.memory_space<vmem>>, vector<1x288x512xf32>
    %146 = vector.shape_cast %145 : vector<1x288x512xf32> to vector<288x512xf32>
    %cst_168 = arith.constant dense<0.000000e+00> : vector<8x512xf32>
    %147 = tpu.matmul %144, %146, %cst_168 {dimension_numbers = #tpu.dot_dimension_numbers<[1], [0], [0], [1], [0, 0, 1, 1], [], []>} : vector<8x288xf32>, vector<288x512xf32>, vector<8x512xf32> -> vector<8x512xf32>
    %148 = arith.addf %142, %147 : vector<8x512xf32>
    %c0_169 = arith.constant 0 : index
    %c0_170 = arith.constant 0 : index
    %149 = vector.load %arg5[%c0_169, %c0_170] : memref<1x512xf32, #tpu.memory_space<vmem>>, vector<1x512xf32>
    %150 = vector.broadcast %149 : vector<1x512xf32> to vector<8x512xf32>
    %151 = arith.addf %148, %150 : vector<8x512xf32>
    %152 = arith.maximumf %129, %151 : vector<8x512xf32>
    %153 = vector.extract_strided_slice %152 {offsets = [0, 0], sizes = [8, 256], strides = [1, 1]} : vector<8x512xf32> to vector<8x256xf32>
    %154 = vector.extract_strided_slice %152 {offsets = [0, 256], sizes = [8, 256], strides = [1, 1]} : vector<8x512xf32> to vector<8x256xf32>
    %155 = arith.maximumf %153, %154 : vector<8x256xf32>
    %cst_171 = arith.constant 0.000000e+00 : f32
    %156 = vector.broadcast %cst_171 : f32 to vector<8x256xf32>
    %157 = arith.maximumf %155, %156 : vector<8x256xf32>
    %cst_172 = arith.constant 0.000000e+00 : f32
    %158 = vector.broadcast %cst_172 : f32 to vector<1x128xf32>
    %159 = vector.extract_strided_slice %157 {offsets = [0, 0], sizes = [1, 256], strides = [1, 1]} : vector<8x256xf32> to vector<1x256xf32>
    %c0_173 = arith.constant 0 : index
    %c0_174 = arith.constant 0 : index
    %c0_175 = arith.constant 0 : index
    %160 = vector.load %arg6[%c0_173, %c0_174, %c0_175] : memref<8x256x128xf32, #tpu.memory_space<vmem>>, vector<1x256x128xf32>
    %161 = vector.shape_cast %160 : vector<1x256x128xf32> to vector<256x128xf32>
    %cst_176 = arith.constant dense<0.000000e+00> : vector<1x128xf32>
    %162 = tpu.matmul %159, %161, %cst_176 {dimension_numbers = #tpu.dot_dimension_numbers<[1], [0], [0], [1], [0, 0, 1, 1], [], []>} : vector<1x256xf32>, vector<256x128xf32>, vector<1x128xf32> -> vector<1x128xf32>
    %163 = arith.addf %158, %162 : vector<1x128xf32>
    %164 = vector.extract_strided_slice %157 {offsets = [1, 0], sizes = [1, 256], strides = [1, 1]} : vector<8x256xf32> to vector<1x256xf32>
    %c1_177 = arith.constant 1 : index
    %c0_178 = arith.constant 0 : index
    %c0_179 = arith.constant 0 : index
    %165 = vector.load %arg6[%c1_177, %c0_178, %c0_179] : memref<8x256x128xf32, #tpu.memory_space<vmem>>, vector<1x256x128xf32>
    %166 = vector.shape_cast %165 : vector<1x256x128xf32> to vector<256x128xf32>
    %cst_180 = arith.constant dense<0.000000e+00> : vector<1x128xf32>
    %167 = tpu.matmul %164, %166, %cst_180 {dimension_numbers = #tpu.dot_dimension_numbers<[1], [0], [0], [1], [0, 0, 1, 1], [], []>} : vector<1x256xf32>, vector<256x128xf32>, vector<1x128xf32> -> vector<1x128xf32>
    %168 = arith.addf %163, %167 : vector<1x128xf32>
    %169 = vector.extract_strided_slice %157 {offsets = [2, 0], sizes = [1, 256], strides = [1, 1]} : vector<8x256xf32> to vector<1x256xf32>
    %c2_181 = arith.constant 2 : index
    %c0_182 = arith.constant 0 : index
    %c0_183 = arith.constant 0 : index
    %170 = vector.load %arg6[%c2_181, %c0_182, %c0_183] : memref<8x256x128xf32, #tpu.memory_space<vmem>>, vector<1x256x128xf32>
    %171 = vector.shape_cast %170 : vector<1x256x128xf32> to vector<256x128xf32>
    %cst_184 = arith.constant dense<0.000000e+00> : vector<1x128xf32>
    %172 = tpu.matmul %169, %171, %cst_184 {dimension_numbers = #tpu.dot_dimension_numbers<[1], [0], [0], [1], [0, 0, 1, 1], [], []>} : vector<1x256xf32>, vector<256x128xf32>, vector<1x128xf32> -> vector<1x128xf32>
    %173 = arith.addf %168, %172 : vector<1x128xf32>
    %174 = vector.extract_strided_slice %157 {offsets = [3, 0], sizes = [1, 256], strides = [1, 1]} : vector<8x256xf32> to vector<1x256xf32>
    %c3_185 = arith.constant 3 : index
    %c0_186 = arith.constant 0 : index
    %c0_187 = arith.constant 0 : index
    %175 = vector.load %arg6[%c3_185, %c0_186, %c0_187] : memref<8x256x128xf32, #tpu.memory_space<vmem>>, vector<1x256x128xf32>
    %176 = vector.shape_cast %175 : vector<1x256x128xf32> to vector<256x128xf32>
    %cst_188 = arith.constant dense<0.000000e+00> : vector<1x128xf32>
    %177 = tpu.matmul %174, %176, %cst_188 {dimension_numbers = #tpu.dot_dimension_numbers<[1], [0], [0], [1], [0, 0, 1, 1], [], []>} : vector<1x256xf32>, vector<256x128xf32>, vector<1x128xf32> -> vector<1x128xf32>
    %178 = arith.addf %173, %177 : vector<1x128xf32>
    %179 = vector.extract_strided_slice %157 {offsets = [4, 0], sizes = [1, 256], strides = [1, 1]} : vector<8x256xf32> to vector<1x256xf32>
    %c4 = arith.constant 4 : index
    %c0_189 = arith.constant 0 : index
    %c0_190 = arith.constant 0 : index
    %180 = vector.load %arg6[%c4, %c0_189, %c0_190] : memref<8x256x128xf32, #tpu.memory_space<vmem>>, vector<1x256x128xf32>
    %181 = vector.shape_cast %180 : vector<1x256x128xf32> to vector<256x128xf32>
    %cst_191 = arith.constant dense<0.000000e+00> : vector<1x128xf32>
    %182 = tpu.matmul %179, %181, %cst_191 {dimension_numbers = #tpu.dot_dimension_numbers<[1], [0], [0], [1], [0, 0, 1, 1], [], []>} : vector<1x256xf32>, vector<256x128xf32>, vector<1x128xf32> -> vector<1x128xf32>
    %183 = arith.addf %178, %182 : vector<1x128xf32>
    %184 = vector.extract_strided_slice %157 {offsets = [5, 0], sizes = [1, 256], strides = [1, 1]} : vector<8x256xf32> to vector<1x256xf32>
    %c5 = arith.constant 5 : index
    %c0_192 = arith.constant 0 : index
    %c0_193 = arith.constant 0 : index
    %185 = vector.load %arg6[%c5, %c0_192, %c0_193] : memref<8x256x128xf32, #tpu.memory_space<vmem>>, vector<1x256x128xf32>
    %186 = vector.shape_cast %185 : vector<1x256x128xf32> to vector<256x128xf32>
    %cst_194 = arith.constant dense<0.000000e+00> : vector<1x128xf32>
    %187 = tpu.matmul %184, %186, %cst_194 {dimension_numbers = #tpu.dot_dimension_numbers<[1], [0], [0], [1], [0, 0, 1, 1], [], []>} : vector<1x256xf32>, vector<256x128xf32>, vector<1x128xf32> -> vector<1x128xf32>
    %188 = arith.addf %183, %187 : vector<1x128xf32>
    %189 = vector.extract_strided_slice %157 {offsets = [6, 0], sizes = [1, 256], strides = [1, 1]} : vector<8x256xf32> to vector<1x256xf32>
    %c6 = arith.constant 6 : index
    %c0_195 = arith.constant 0 : index
    %c0_196 = arith.constant 0 : index
    %190 = vector.load %arg6[%c6, %c0_195, %c0_196] : memref<8x256x128xf32, #tpu.memory_space<vmem>>, vector<1x256x128xf32>
    %191 = vector.shape_cast %190 : vector<1x256x128xf32> to vector<256x128xf32>
    %cst_197 = arith.constant dense<0.000000e+00> : vector<1x128xf32>
    %192 = tpu.matmul %189, %191, %cst_197 {dimension_numbers = #tpu.dot_dimension_numbers<[1], [0], [0], [1], [0, 0, 1, 1], [], []>} : vector<1x256xf32>, vector<256x128xf32>, vector<1x128xf32> -> vector<1x128xf32>
    %193 = arith.addf %188, %192 : vector<1x128xf32>
    %194 = vector.extract_strided_slice %157 {offsets = [7, 0], sizes = [1, 256], strides = [1, 1]} : vector<8x256xf32> to vector<1x256xf32>
    %c7 = arith.constant 7 : index
    %c0_198 = arith.constant 0 : index
    %c0_199 = arith.constant 0 : index
    %195 = vector.load %arg6[%c7, %c0_198, %c0_199] : memref<8x256x128xf32, #tpu.memory_space<vmem>>, vector<1x256x128xf32>
    %196 = vector.shape_cast %195 : vector<1x256x128xf32> to vector<256x128xf32>
    %cst_200 = arith.constant dense<0.000000e+00> : vector<1x128xf32>
    %197 = tpu.matmul %194, %196, %cst_200 {dimension_numbers = #tpu.dot_dimension_numbers<[1], [0], [0], [1], [0, 0, 1, 1], [], []>} : vector<1x256xf32>, vector<256x128xf32>, vector<1x128xf32> -> vector<1x128xf32>
    %198 = arith.addf %193, %197 : vector<1x128xf32>
    %c0_201 = arith.constant 0 : index
    %c0_202 = arith.constant 0 : index
    %199 = vector.load %arg7[%c0_201, %c0_202] : memref<1x128xf32, #tpu.memory_space<vmem>>, vector<1x128xf32>
    %200 = arith.addf %198, %199 : vector<1x128xf32>
    %cst_203 = arith.constant 0.000000e+00 : f32
    %201 = vector.broadcast %cst_203 : f32 to vector<1x128xf32>
    %202 = arith.maximumf %200, %201 : vector<1x128xf32>
    %c0_204 = arith.constant 0 : index
    %c0_205 = arith.constant 0 : index
    %203 = vector.load %arg8[%c0_204, %c0_205] : memref<128x10xf32, #tpu.memory_space<vmem>>, vector<128x10xf32>
    %cst_206 = arith.constant dense<0.000000e+00> : vector<1x10xf32>
    %204 = tpu.matmul %202, %203, %cst_206 {dimension_numbers = #tpu.dot_dimension_numbers<[1], [0], [0], [1], [0, 0, 1, 1], [], []>} : vector<1x128xf32>, vector<128x10xf32>, vector<1x10xf32> -> vector<1x10xf32>
    %c0_207 = arith.constant 0 : index
    %c0_208 = arith.constant 0 : index
    %205 = vector.load %arg9[%c0_207, %c0_208] : memref<1x10xf32, #tpu.memory_space<vmem>>, vector<1x10xf32>
    %206 = arith.addf %204, %205 : vector<1x10xf32>
    %c0_209 = arith.constant 0 : index
    %c0_210 = arith.constant 0 : index
    %207 = vector.load %arg10[%c0_209, %c0_210] : memref<2x10xf32, #tpu.memory_space<vmem>>, vector<1x10xf32>
    tpu.vector_store %arg10[%c0_209, %c0_210], %206 {strides = array<i32>} : memref<2x10xf32, #tpu.memory_space<vmem>>, vector<1x10xf32>,
    %cst_211 = arith.constant 0.000000e+00 : f32
    %208 = vector.broadcast %cst_211 : f32 to vector<7x448xf32>
    %c1_212 = arith.constant 1 : index
    %c0_213 = arith.constant 0 : index
    %c0_214 = arith.constant 0 : index
    %c0_215 = arith.constant 0 : index
    %209 = vector.load %arg1[%c1_212, %c0_213, %c0_214, %c0_215] : memref<2x4x8x30xf32, #tpu.memory_space<vmem>>, vector<1x1x7x30xf32>
    %210 = vector.shape_cast %209 : vector<1x1x7x30xf32> to vector<7x30xf32>
    %c0_216 = arith.constant 0 : index
    %c0_217 = arith.constant 0 : index
    %c0_218 = arith.constant 0 : index
    %211 = vector.load %arg2[%c0_216, %c0_217, %c0_218] : memref<3x30x448xf32, #tpu.memory_space<vmem>>, vector<1x30x448xf32>
    %212 = vector.shape_cast %211 : vector<1x30x448xf32> to vector<30x448xf32>
    %cst_219 = arith.constant dense<0.000000e+00> : vector<7x448xf32>
    %213 = tpu.matmul %210, %212, %cst_219 {dimension_numbers = #tpu.dot_dimension_numbers<[1], [0], [0], [1], [0, 0, 1, 1], [], []>} : vector<7x30xf32>, vector<30x448xf32>, vector<7x448xf32> -> vector<7x448xf32>
    %214 = arith.addf %208, %213 : vector<7x448xf32>
    %c1_220 = arith.constant 1 : index
    %c1_221 = arith.constant 1 : index
    %c0_222 = arith.constant 0 : index
    %c0_223 = arith.constant 0 : index
    %215 = vector.load %arg1[%c1_220, %c1_221, %c0_222, %c0_223] : memref<2x4x8x30xf32, #tpu.memory_space<vmem>>, vector<1x1x7x30xf32>
    %216 = vector.shape_cast %215 : vector<1x1x7x30xf32> to vector<7x30xf32>
    %c1_224 = arith.constant 1 : index
    %c0_225 = arith.constant 0 : index
    %c0_226 = arith.constant 0 : index
    %217 = vector.load %arg2[%c1_224, %c0_225, %c0_226] : memref<3x30x448xf32, #tpu.memory_space<vmem>>, vector<1x30x448xf32>
    %218 = vector.shape_cast %217 : vector<1x30x448xf32> to vector<30x448xf32>
    %cst_227 = arith.constant dense<0.000000e+00> : vector<7x448xf32>
    %219 = tpu.matmul %216, %218, %cst_227 {dimension_numbers = #tpu.dot_dimension_numbers<[1], [0], [0], [1], [0, 0, 1, 1], [], []>} : vector<7x30xf32>, vector<30x448xf32>, vector<7x448xf32> -> vector<7x448xf32>
    %220 = arith.addf %214, %219 : vector<7x448xf32>
    %c1_228 = arith.constant 1 : index
    %c2_229 = arith.constant 2 : index
    %c0_230 = arith.constant 0 : index
    %c0_231 = arith.constant 0 : index
    %221 = vector.load %arg1[%c1_228, %c2_229, %c0_230, %c0_231] : memref<2x4x8x30xf32, #tpu.memory_space<vmem>>, vector<1x1x7x30xf32>
    %222 = vector.shape_cast %221 : vector<1x1x7x30xf32> to vector<7x30xf32>
    %c2_232 = arith.constant 2 : index
    %c0_233 = arith.constant 0 : index
    %c0_234 = arith.constant 0 : index
    %223 = vector.load %arg2[%c2_232, %c0_233, %c0_234] : memref<3x30x448xf32, #tpu.memory_space<vmem>>, vector<1x30x448xf32>
    %224 = vector.shape_cast %223 : vector<1x30x448xf32> to vector<30x448xf32>
    %cst_235 = arith.constant dense<0.000000e+00> : vector<7x448xf32>
    %225 = tpu.matmul %222, %224, %cst_235 {dimension_numbers = #tpu.dot_dimension_numbers<[1], [0], [0], [1], [0, 0, 1, 1], [], []>} : vector<7x30xf32>, vector<30x448xf32>, vector<7x448xf32> -> vector<7x448xf32>
    %226 = arith.addf %220, %225 : vector<7x448xf32>
    %c0_236 = arith.constant 0 : index
    %c0_237 = arith.constant 0 : index
    %227 = vector.load %arg3[%c0_236, %c0_237] : memref<1x448xf32, #tpu.memory_space<vmem>>, vector<1x448xf32>
    %228 = vector.broadcast %227 : vector<1x448xf32> to vector<7x448xf32>
    %229 = arith.addf %226, %228 : vector<7x448xf32>
    %cst_238 = arith.constant 0.000000e+00 : f32
    %230 = vector.broadcast %cst_238 : f32 to vector<7x448xf32>
    %c1_239 = arith.constant 1 : index
    %c1_240 = arith.constant 1 : index
    %c0_241 = arith.constant 0 : index
    %c0_242 = arith.constant 0 : index
    %231 = vector.load %arg1[%c1_239, %c1_240, %c0_241, %c0_242] : memref<2x4x8x30xf32, #tpu.memory_space<vmem>>, vector<1x1x7x30xf32>
    %232 = vector.shape_cast %231 : vector<1x1x7x30xf32> to vector<7x30xf32>
    %c0_243 = arith.constant 0 : index
    %c0_244 = arith.constant 0 : index
    %c0_245 = arith.constant 0 : index
    %233 = vector.load %arg2[%c0_243, %c0_244, %c0_245] : memref<3x30x448xf32, #tpu.memory_space<vmem>>, vector<1x30x448xf32>
    %234 = vector.shape_cast %233 : vector<1x30x448xf32> to vector<30x448xf32>
    %cst_246 = arith.constant dense<0.000000e+00> : vector<7x448xf32>
    %235 = tpu.matmul %232, %234, %cst_246 {dimension_numbers = #tpu.dot_dimension_numbers<[1], [0], [0], [1], [0, 0, 1, 1], [], []>} : vector<7x30xf32>, vector<30x448xf32>, vector<7x448xf32> -> vector<7x448xf32>
    %236 = arith.addf %230, %235 : vector<7x448xf32>
    %c1_247 = arith.constant 1 : index
    %c2_248 = arith.constant 2 : index
    %c0_249 = arith.constant 0 : index
    %c0_250 = arith.constant 0 : index
    %237 = vector.load %arg1[%c1_247, %c2_248, %c0_249, %c0_250] : memref<2x4x8x30xf32, #tpu.memory_space<vmem>>, vector<1x1x7x30xf32>
    %238 = vector.shape_cast %237 : vector<1x1x7x30xf32> to vector<7x30xf32>
    %c1_251 = arith.constant 1 : index
    %c0_252 = arith.constant 0 : index
    %c0_253 = arith.constant 0 : index
    %239 = vector.load %arg2[%c1_251, %c0_252, %c0_253] : memref<3x30x448xf32, #tpu.memory_space<vmem>>, vector<1x30x448xf32>
    %240 = vector.shape_cast %239 : vector<1x30x448xf32> to vector<30x448xf32>
    %cst_254 = arith.constant dense<0.000000e+00> : vector<7x448xf32>
    %241 = tpu.matmul %238, %240, %cst_254 {dimension_numbers = #tpu.dot_dimension_numbers<[1], [0], [0], [1], [0, 0, 1, 1], [], []>} : vector<7x30xf32>, vector<30x448xf32>, vector<7x448xf32> -> vector<7x448xf32>
    %242 = arith.addf %236, %241 : vector<7x448xf32>
    %c1_255 = arith.constant 1 : index
    %c3_256 = arith.constant 3 : index
    %c0_257 = arith.constant 0 : index
    %c0_258 = arith.constant 0 : index
    %243 = vector.load %arg1[%c1_255, %c3_256, %c0_257, %c0_258] : memref<2x4x8x30xf32, #tpu.memory_space<vmem>>, vector<1x1x7x30xf32>
    %244 = vector.shape_cast %243 : vector<1x1x7x30xf32> to vector<7x30xf32>
    %c2_259 = arith.constant 2 : index
    %c0_260 = arith.constant 0 : index
    %c0_261 = arith.constant 0 : index
    %245 = vector.load %arg2[%c2_259, %c0_260, %c0_261] : memref<3x30x448xf32, #tpu.memory_space<vmem>>, vector<1x30x448xf32>
    %246 = vector.shape_cast %245 : vector<1x30x448xf32> to vector<30x448xf32>
    %cst_262 = arith.constant dense<0.000000e+00> : vector<7x448xf32>
    %247 = tpu.matmul %244, %246, %cst_262 {dimension_numbers = #tpu.dot_dimension_numbers<[1], [0], [0], [1], [0, 0, 1, 1], [], []>} : vector<7x30xf32>, vector<30x448xf32>, vector<7x448xf32> -> vector<7x448xf32>
    %248 = arith.addf %242, %247 : vector<7x448xf32>
    %c0_263 = arith.constant 0 : index
    %c0_264 = arith.constant 0 : index
    %249 = vector.load %arg3[%c0_263, %c0_264] : memref<1x448xf32, #tpu.memory_space<vmem>>, vector<1x448xf32>
    %250 = vector.broadcast %249 : vector<1x448xf32> to vector<7x448xf32>
    %251 = arith.addf %248, %250 : vector<7x448xf32>
    %cst_265 = arith.constant 0.000000e+00 : f32
    %252 = vector.broadcast %cst_265 : f32 to vector<7x448xf32>
    %c1_266 = arith.constant 1 : index
    %c2_267 = arith.constant 2 : index
    %c0_268 = arith.constant 0 : index
    %c0_269 = arith.constant 0 : index
    %253 = vector.load %arg1[%c1_266, %c2_267, %c0_268, %c0_269] : memref<2x4x8x30xf32, #tpu.memory_space<vmem>>, vector<1x1x7x30xf32>
    %254 = vector.shape_cast %253 : vector<1x1x7x30xf32> to vector<7x30xf32>
    %c0_270 = arith.constant 0 : index
    %c0_271 = arith.constant 0 : index
    %c0_272 = arith.constant 0 : index
    %255 = vector.load %arg2[%c0_270, %c0_271, %c0_272] : memref<3x30x448xf32, #tpu.memory_space<vmem>>, vector<1x30x448xf32>
    %256 = vector.shape_cast %255 : vector<1x30x448xf32> to vector<30x448xf32>
    %cst_273 = arith.constant dense<0.000000e+00> : vector<7x448xf32>
    %257 = tpu.matmul %254, %256, %cst_273 {dimension_numbers = #tpu.dot_dimension_numbers<[1], [0], [0], [1], [0, 0, 1, 1], [], []>} : vector<7x30xf32>, vector<30x448xf32>, vector<7x448xf32> -> vector<7x448xf32>
    %258 = arith.addf %252, %257 : vector<7x448xf32>
    %c1_274 = arith.constant 1 : index
    %c3_275 = arith.constant 3 : index
    %c0_276 = arith.constant 0 : index
    %c0_277 = arith.constant 0 : index
    %259 = vector.load %arg1[%c1_274, %c3_275, %c0_276, %c0_277] : memref<2x4x8x30xf32, #tpu.memory_space<vmem>>, vector<1x1x7x30xf32>
    %260 = vector.shape_cast %259 : vector<1x1x7x30xf32> to vector<7x30xf32>
    %c1_278 = arith.constant 1 : index
    %c0_279 = arith.constant 0 : index
    %c0_280 = arith.constant 0 : index
    %261 = vector.load %arg2[%c1_278, %c0_279, %c0_280] : memref<3x30x448xf32, #tpu.memory_space<vmem>>, vector<1x30x448xf32>
    %262 = vector.shape_cast %261 : vector<1x30x448xf32> to vector<30x448xf32>
    %cst_281 = arith.constant dense<0.000000e+00> : vector<7x448xf32>
    %263 = tpu.matmul %260, %262, %cst_281 {dimension_numbers = #tpu.dot_dimension_numbers<[1], [0], [0], [1], [0, 0, 1, 1], [], []>} : vector<7x30xf32>, vector<30x448xf32>, vector<7x448xf32> -> vector<7x448xf32>
    %264 = arith.addf %258, %263 : vector<7x448xf32>
    %c1_282 = arith.constant 1 : index
    %c0_283 = arith.constant 0 : index
    %c1_284 = arith.constant 1 : index
    %c0_285 = arith.constant 0 : index
    %265 = vector.load %arg1[%c1_282, %c0_283, %c1_284, %c0_285] : memref<2x4x8x30xf32, #tpu.memory_space<vmem>>, vector<1x1x7x30xf32>
    %266 = vector.shape_cast %265 : vector<1x1x7x30xf32> to vector<7x30xf32>
    %c2_286 = arith.constant 2 : index
    %c0_287 = arith.constant 0 : index
    %c0_288 = arith.constant 0 : index
    %267 = vector.load %arg2[%c2_286, %c0_287, %c0_288] : memref<3x30x448xf32, #tpu.memory_space<vmem>>, vector<1x30x448xf32>
    %268 = vector.shape_cast %267 : vector<1x30x448xf32> to vector<30x448xf32>
    %cst_289 = arith.constant dense<0.000000e+00> : vector<7x448xf32>
    %269 = tpu.matmul %266, %268, %cst_289 {dimension_numbers = #tpu.dot_dimension_numbers<[1], [0], [0], [1], [0, 0, 1, 1], [], []>} : vector<7x30xf32>, vector<30x448xf32>, vector<7x448xf32> -> vector<7x448xf32>
    %270 = arith.addf %264, %269 : vector<7x448xf32>
    %c0_290 = arith.constant 0 : index
    %c0_291 = arith.constant 0 : index
    %271 = vector.load %arg3[%c0_290, %c0_291] : memref<1x448xf32, #tpu.memory_space<vmem>>, vector<1x448xf32>
    %272 = vector.broadcast %271 : vector<1x448xf32> to vector<7x448xf32>
    %273 = arith.addf %270, %272 : vector<7x448xf32>
    %cst_292 = arith.constant 0.000000e+00 : f32
    %274 = vector.broadcast %cst_292 : f32 to vector<7x448xf32>
    %c1_293 = arith.constant 1 : index
    %c3_294 = arith.constant 3 : index
    %c0_295 = arith.constant 0 : index
    %c0_296 = arith.constant 0 : index
    %275 = vector.load %arg1[%c1_293, %c3_294, %c0_295, %c0_296] : memref<2x4x8x30xf32, #tpu.memory_space<vmem>>, vector<1x1x7x30xf32>
    %276 = vector.shape_cast %275 : vector<1x1x7x30xf32> to vector<7x30xf32>
    %c0_297 = arith.constant 0 : index
    %c0_298 = arith.constant 0 : index
    %c0_299 = arith.constant 0 : index
    %277 = vector.load %arg2[%c0_297, %c0_298, %c0_299] : memref<3x30x448xf32, #tpu.memory_space<vmem>>, vector<1x30x448xf32>
    %278 = vector.shape_cast %277 : vector<1x30x448xf32> to vector<30x448xf32>
    %cst_300 = arith.constant dense<0.000000e+00> : vector<7x448xf32>
    %279 = tpu.matmul %276, %278, %cst_300 {dimension_numbers = #tpu.dot_dimension_numbers<[1], [0], [0], [1], [0, 0, 1, 1], [], []>} : vector<7x30xf32>, vector<30x448xf32>, vector<7x448xf32> -> vector<7x448xf32>
    %280 = arith.addf %274, %279 : vector<7x448xf32>
    %c1_301 = arith.constant 1 : index
    %c0_302 = arith.constant 0 : index
    %c1_303 = arith.constant 1 : index
    %c0_304 = arith.constant 0 : index
    %281 = vector.load %arg1[%c1_301, %c0_302, %c1_303, %c0_304] : memref<2x4x8x30xf32, #tpu.memory_space<vmem>>, vector<1x1x7x30xf32>
    %282 = vector.shape_cast %281 : vector<1x1x7x30xf32> to vector<7x30xf32>
    %c1_305 = arith.constant 1 : index
    %c0_306 = arith.constant 0 : index
    %c0_307 = arith.constant 0 : index
    %283 = vector.load %arg2[%c1_305, %c0_306, %c0_307] : memref<3x30x448xf32, #tpu.memory_space<vmem>>, vector<1x30x448xf32>
    %284 = vector.shape_cast %283 : vector<1x30x448xf32> to vector<30x448xf32>
    %cst_308 = arith.constant dense<0.000000e+00> : vector<7x448xf32>
    %285 = tpu.matmul %282, %284, %cst_308 {dimension_numbers = #tpu.dot_dimension_numbers<[1], [0], [0], [1], [0, 0, 1, 1], [], []>} : vector<7x30xf32>, vector<30x448xf32>, vector<7x448xf32> -> vector<7x448xf32>
    %286 = arith.addf %280, %285 : vector<7x448xf32>
    %c1_309 = arith.constant 1 : index
    %c1_310 = arith.constant 1 : index
    %c1_311 = arith.constant 1 : index
    %c0_312 = arith.constant 0 : index
    %287 = vector.load %arg1[%c1_309, %c1_310, %c1_311, %c0_312] : memref<2x4x8x30xf32, #tpu.memory_space<vmem>>, vector<1x1x7x30xf32>
    %288 = vector.shape_cast %287 : vector<1x1x7x30xf32> to vector<7x30xf32>
    %c2_313 = arith.constant 2 : index
    %c0_314 = arith.constant 0 : index
    %c0_315 = arith.constant 0 : index
    %289 = vector.load %arg2[%c2_313, %c0_314, %c0_315] : memref<3x30x448xf32, #tpu.memory_space<vmem>>, vector<1x30x448xf32>
    %290 = vector.shape_cast %289 : vector<1x30x448xf32> to vector<30x448xf32>
    %cst_316 = arith.constant dense<0.000000e+00> : vector<7x448xf32>
    %291 = tpu.matmul %288, %290, %cst_316 {dimension_numbers = #tpu.dot_dimension_numbers<[1], [0], [0], [1], [0, 0, 1, 1], [], []>} : vector<7x30xf32>, vector<30x448xf32>, vector<7x448xf32> -> vector<7x448xf32>
    %292 = arith.addf %286, %291 : vector<7x448xf32>
    %c0_317 = arith.constant 0 : index
    %c0_318 = arith.constant 0 : index
    %293 = vector.load %arg3[%c0_317, %c0_318] : memref<1x448xf32, #tpu.memory_space<vmem>>, vector<1x448xf32>
    %294 = vector.broadcast %293 : vector<1x448xf32> to vector<7x448xf32>
    %295 = arith.addf %292, %294 : vector<7x448xf32>
    %296 = arith.maximumf %229, %251 : vector<7x448xf32>
    %297 = arith.maximumf %273, %295 : vector<7x448xf32>
    %298 = vector.extract_strided_slice %296 {offsets = [0, 0], sizes = [7, 224], strides = [1, 1]} : vector<7x448xf32> to vector<7x224xf32>
    %299 = vector.extract_strided_slice %296 {offsets = [0, 224], sizes = [7, 224], strides = [1, 1]} : vector<7x448xf32> to vector<7x224xf32>
    %300 = arith.maximumf %298, %299 : vector<7x224xf32>
    %cst_319 = arith.constant 0.000000e+00 : f32
    %301 = vector.broadcast %cst_319 : f32 to vector<7x224xf32>
    %302 = arith.maximumf %300, %301 : vector<7x224xf32>
    %303 = vector.extract_strided_slice %297 {offsets = [0, 0], sizes = [7, 224], strides = [1, 1]} : vector<7x448xf32> to vector<7x224xf32>
    %304 = vector.extract_strided_slice %297 {offsets = [0, 224], sizes = [7, 224], strides = [1, 1]} : vector<7x448xf32> to vector<7x224xf32>
    %305 = arith.maximumf %303, %304 : vector<7x224xf32>
    %cst_320 = arith.constant 0.000000e+00 : f32
    %306 = vector.broadcast %cst_320 : f32 to vector<7x224xf32>
    %307 = arith.maximumf %305, %306 : vector<7x224xf32>
    %c1_321 = arith.constant 1 : index
    %c0_322 = arith.constant 0 : index
    %c1_323 = arith.constant 1 : index
    %c32_324 = arith.constant 32 : index
    %308 = vector.load %arg11[%c1_321, %c0_322, %c1_323, %c32_324] : memref<2x2x9x288xf32, #tpu.memory_space<vmem>>, vector<1x1x7x224xf32>
    %309 = vector.shape_cast %308 : vector<1x1x7x224xf32> to vector<7x224xf32>
    %310 = vector.shape_cast %302 : vector<7x224xf32> to vector<1x1x7x224xf32>
    tpu.vector_store %arg11[%c1_321, %c0_322, %c1_323, %c32_324], %310 {strides = array<i32>} : memref<2x2x9x288xf32, #tpu.memory_space<vmem>>, vector<1x1x7x224xf32>,
    %c1_325 = arith.constant 1 : index
    %c1_326 = arith.constant 1 : index
    %c1_327 = arith.constant 1 : index
    %c32_328 = arith.constant 32 : index
    %311 = vector.load %arg11[%c1_325, %c1_326, %c1_327, %c32_328] : memref<2x2x9x288xf32, #tpu.memory_space<vmem>>, vector<1x1x7x224xf32>
    %312 = vector.shape_cast %311 : vector<1x1x7x224xf32> to vector<7x224xf32>
    %313 = vector.shape_cast %307 : vector<7x224xf32> to vector<1x1x7x224xf32>
    tpu.vector_store %arg11[%c1_325, %c1_326, %c1_327, %c32_328], %313 {strides = array<i32>} : memref<2x2x9x288xf32, #tpu.memory_space<vmem>>, vector<1x1x7x224xf32>,
    %cst_329 = arith.constant 0.000000e+00 : f32
    %314 = vector.broadcast %cst_329 : f32 to vector<8x512xf32>
    %c1_330 = arith.constant 1 : index
    %c0_331 = arith.constant 0 : index
    %c0_332 = arith.constant 0 : index
    %c0_333 = arith.constant 0 : index
    %315 = vector.load %arg11[%c1_330, %c0_331, %c0_332, %c0_333] : memref<2x2x9x288xf32, #tpu.memory_space<vmem>>, vector<1x1x8x288xf32>
    %316 = vector.shape_cast %315 : vector<1x1x8x288xf32> to vector<8x288xf32>
    %c0_334 = arith.constant 0 : index
    %c0_335 = arith.constant 0 : index
    %c0_336 = arith.constant 0 : index
    %317 = vector.load %arg4[%c0_334, %c0_335, %c0_336] : memref<3x288x512xf32, #tpu.memory_space<vmem>>, vector<1x288x512xf32>
    %318 = vector.shape_cast %317 : vector<1x288x512xf32> to vector<288x512xf32>
    %cst_337 = arith.constant dense<0.000000e+00> : vector<8x512xf32>
    %319 = tpu.matmul %316, %318, %cst_337 {dimension_numbers = #tpu.dot_dimension_numbers<[1], [0], [0], [1], [0, 0, 1, 1], [], []>} : vector<8x288xf32>, vector<288x512xf32>, vector<8x512xf32> -> vector<8x512xf32>
    %320 = arith.addf %314, %319 : vector<8x512xf32>
    %c1_338 = arith.constant 1 : index
    %c1_339 = arith.constant 1 : index
    %c0_340 = arith.constant 0 : index
    %c0_341 = arith.constant 0 : index
    %321 = vector.load %arg11[%c1_338, %c1_339, %c0_340, %c0_341] : memref<2x2x9x288xf32, #tpu.memory_space<vmem>>, vector<1x1x8x288xf32>
    %322 = vector.shape_cast %321 : vector<1x1x8x288xf32> to vector<8x288xf32>
    %c1_342 = arith.constant 1 : index
    %c0_343 = arith.constant 0 : index
    %c0_344 = arith.constant 0 : index
    %323 = vector.load %arg4[%c1_342, %c0_343, %c0_344] : memref<3x288x512xf32, #tpu.memory_space<vmem>>, vector<1x288x512xf32>
    %324 = vector.shape_cast %323 : vector<1x288x512xf32> to vector<288x512xf32>
    %cst_345 = arith.constant dense<0.000000e+00> : vector<8x512xf32>
    %325 = tpu.matmul %322, %324, %cst_345 {dimension_numbers = #tpu.dot_dimension_numbers<[1], [0], [0], [1], [0, 0, 1, 1], [], []>} : vector<8x288xf32>, vector<288x512xf32>, vector<8x512xf32> -> vector<8x512xf32>
    %326 = arith.addf %320, %325 : vector<8x512xf32>
    %c1_346 = arith.constant 1 : index
    %c0_347 = arith.constant 0 : index
    %c1_348 = arith.constant 1 : index
    %c0_349 = arith.constant 0 : index
    %327 = vector.load %arg11[%c1_346, %c0_347, %c1_348, %c0_349] : memref<2x2x9x288xf32, #tpu.memory_space<vmem>>, vector<1x1x8x288xf32>
    %328 = vector.shape_cast %327 : vector<1x1x8x288xf32> to vector<8x288xf32>
    %c2_350 = arith.constant 2 : index
    %c0_351 = arith.constant 0 : index
    %c0_352 = arith.constant 0 : index
    %329 = vector.load %arg4[%c2_350, %c0_351, %c0_352] : memref<3x288x512xf32, #tpu.memory_space<vmem>>, vector<1x288x512xf32>
    %330 = vector.shape_cast %329 : vector<1x288x512xf32> to vector<288x512xf32>
    %cst_353 = arith.constant dense<0.000000e+00> : vector<8x512xf32>
    %331 = tpu.matmul %328, %330, %cst_353 {dimension_numbers = #tpu.dot_dimension_numbers<[1], [0], [0], [1], [0, 0, 1, 1], [], []>} : vector<8x288xf32>, vector<288x512xf32>, vector<8x512xf32> -> vector<8x512xf32>
    %332 = arith.addf %326, %331 : vector<8x512xf32>
    %c0_354 = arith.constant 0 : index
    %c0_355 = arith.constant 0 : index
    %333 = vector.load %arg5[%c0_354, %c0_355] : memref<1x512xf32, #tpu.memory_space<vmem>>, vector<1x512xf32>
    %334 = vector.broadcast %333 : vector<1x512xf32> to vector<8x512xf32>
    %335 = arith.addf %332, %334 : vector<8x512xf32>
    %cst_356 = arith.constant 0.000000e+00 : f32
    %336 = vector.broadcast %cst_356 : f32 to vector<8x512xf32>
    %c1_357 = arith.constant 1 : index
    %c1_358 = arith.constant 1 : index
    %c0_359 = arith.constant 0 : index
    %c0_360 = arith.constant 0 : index
    %337 = vector.load %arg11[%c1_357, %c1_358, %c0_359, %c0_360] : memref<2x2x9x288xf32, #tpu.memory_space<vmem>>, vector<1x1x8x288xf32>
    %338 = vector.shape_cast %337 : vector<1x1x8x288xf32> to vector<8x288xf32>
    %c0_361 = arith.constant 0 : index
    %c0_362 = arith.constant 0 : index
    %c0_363 = arith.constant 0 : index
    %339 = vector.load %arg4[%c0_361, %c0_362, %c0_363] : memref<3x288x512xf32, #tpu.memory_space<vmem>>, vector<1x288x512xf32>
    %340 = vector.shape_cast %339 : vector<1x288x512xf32> to vector<288x512xf32>
    %cst_364 = arith.constant dense<0.000000e+00> : vector<8x512xf32>
    %341 = tpu.matmul %338, %340, %cst_364 {dimension_numbers = #tpu.dot_dimension_numbers<[1], [0], [0], [1], [0, 0, 1, 1], [], []>} : vector<8x288xf32>, vector<288x512xf32>, vector<8x512xf32> -> vector<8x512xf32>
    %342 = arith.addf %336, %341 : vector<8x512xf32>
    %c1_365 = arith.constant 1 : index
    %c0_366 = arith.constant 0 : index
    %c1_367 = arith.constant 1 : index
    %c0_368 = arith.constant 0 : index
    %343 = vector.load %arg11[%c1_365, %c0_366, %c1_367, %c0_368] : memref<2x2x9x288xf32, #tpu.memory_space<vmem>>, vector<1x1x8x288xf32>
    %344 = vector.shape_cast %343 : vector<1x1x8x288xf32> to vector<8x288xf32>
    %c1_369 = arith.constant 1 : index
    %c0_370 = arith.constant 0 : index
    %c0_371 = arith.constant 0 : index
    %345 = vector.load %arg4[%c1_369, %c0_370, %c0_371] : memref<3x288x512xf32, #tpu.memory_space<vmem>>, vector<1x288x512xf32>
    %346 = vector.shape_cast %345 : vector<1x288x512xf32> to vector<288x512xf32>
    %cst_372 = arith.constant dense<0.000000e+00> : vector<8x512xf32>
    %347 = tpu.matmul %344, %346, %cst_372 {dimension_numbers = #tpu.dot_dimension_numbers<[1], [0], [0], [1], [0, 0, 1, 1], [], []>} : vector<8x288xf32>, vector<288x512xf32>, vector<8x512xf32> -> vector<8x512xf32>
    %348 = arith.addf %342, %347 : vector<8x512xf32>
    %c1_373 = arith.constant 1 : index
    %c1_374 = arith.constant 1 : index
    %c1_375 = arith.constant 1 : index
    %c0_376 = arith.constant 0 : index
    %349 = vector.load %arg11[%c1_373, %c1_374, %c1_375, %c0_376] : memref<2x2x9x288xf32, #tpu.memory_space<vmem>>, vector<1x1x8x288xf32>
    %350 = vector.shape_cast %349 : vector<1x1x8x288xf32> to vector<8x288xf32>
    %c2_377 = arith.constant 2 : index
    %c0_378 = arith.constant 0 : index
    %c0_379 = arith.constant 0 : index
    %351 = vector.load %arg4[%c2_377, %c0_378, %c0_379] : memref<3x288x512xf32, #tpu.memory_space<vmem>>, vector<1x288x512xf32>
    %352 = vector.shape_cast %351 : vector<1x288x512xf32> to vector<288x512xf32>
    %cst_380 = arith.constant dense<0.000000e+00> : vector<8x512xf32>
    %353 = tpu.matmul %350, %352, %cst_380 {dimension_numbers = #tpu.dot_dimension_numbers<[1], [0], [0], [1], [0, 0, 1, 1], [], []>} : vector<8x288xf32>, vector<288x512xf32>, vector<8x512xf32> -> vector<8x512xf32>
    %354 = arith.addf %348, %353 : vector<8x512xf32>
    %c0_381 = arith.constant 0 : index
    %c0_382 = arith.constant 0 : index
    %355 = vector.load %arg5[%c0_381, %c0_382] : memref<1x512xf32, #tpu.memory_space<vmem>>, vector<1x512xf32>
    %356 = vector.broadcast %355 : vector<1x512xf32> to vector<8x512xf32>
    %357 = arith.addf %354, %356 : vector<8x512xf32>
    %358 = arith.maximumf %335, %357 : vector<8x512xf32>
    %359 = vector.extract_strided_slice %358 {offsets = [0, 0], sizes = [8, 256], strides = [1, 1]} : vector<8x512xf32> to vector<8x256xf32>
    %360 = vector.extract_strided_slice %358 {offsets = [0, 256], sizes = [8, 256], strides = [1, 1]} : vector<8x512xf32> to vector<8x256xf32>
    %361 = arith.maximumf %359, %360 : vector<8x256xf32>
    %cst_383 = arith.constant 0.000000e+00 : f32
    %362 = vector.broadcast %cst_383 : f32 to vector<8x256xf32>
    %363 = arith.maximumf %361, %362 : vector<8x256xf32>
    %cst_384 = arith.constant 0.000000e+00 : f32
    %364 = vector.broadcast %cst_384 : f32 to vector<1x128xf32>
    %365 = vector.extract_strided_slice %363 {offsets = [0, 0], sizes = [1, 256], strides = [1, 1]} : vector<8x256xf32> to vector<1x256xf32>
    %c0_385 = arith.constant 0 : index
    %c0_386 = arith.constant 0 : index
    %c0_387 = arith.constant 0 : index
    %366 = vector.load %arg6[%c0_385, %c0_386, %c0_387] : memref<8x256x128xf32, #tpu.memory_space<vmem>>, vector<1x256x128xf32>
    %367 = vector.shape_cast %366 : vector<1x256x128xf32> to vector<256x128xf32>
    %cst_388 = arith.constant dense<0.000000e+00> : vector<1x128xf32>
    %368 = tpu.matmul %365, %367, %cst_388 {dimension_numbers = #tpu.dot_dimension_numbers<[1], [0], [0], [1], [0, 0, 1, 1], [], []>} : vector<1x256xf32>, vector<256x128xf32>, vector<1x128xf32> -> vector<1x128xf32>
    %369 = arith.addf %364, %368 : vector<1x128xf32>
    %370 = vector.extract_strided_slice %363 {offsets = [1, 0], sizes = [1, 256], strides = [1, 1]} : vector<8x256xf32> to vector<1x256xf32>
    %c1_389 = arith.constant 1 : index
    %c0_390 = arith.constant 0 : index
    %c0_391 = arith.constant 0 : index
    %371 = vector.load %arg6[%c1_389, %c0_390, %c0_391] : memref<8x256x128xf32, #tpu.memory_space<vmem>>, vector<1x256x128xf32>
    %372 = vector.shape_cast %371 : vector<1x256x128xf32> to vector<256x128xf32>
    %cst_392 = arith.constant dense<0.000000e+00> : vector<1x128xf32>
    %373 = tpu.matmul %370, %372, %cst_392 {dimension_numbers = #tpu.dot_dimension_numbers<[1], [0], [0], [1], [0, 0, 1, 1], [], []>} : vector<1x256xf32>, vector<256x128xf32>, vector<1x128xf32> -> vector<1x128xf32>
    %374 = arith.addf %369, %373 : vector<1x128xf32>
    %375 = vector.extract_strided_slice %363 {offsets = [2, 0], sizes = [1, 256], strides = [1, 1]} : vector<8x256xf32> to vector<1x256xf32>
    %c2_393 = arith.constant 2 : index
    %c0_394 = arith.constant 0 : index
    %c0_395 = arith.constant 0 : index
    %376 = vector.load %arg6[%c2_393, %c0_394, %c0_395] : memref<8x256x128xf32, #tpu.memory_space<vmem>>, vector<1x256x128xf32>
    %377 = vector.shape_cast %376 : vector<1x256x128xf32> to vector<256x128xf32>
    %cst_396 = arith.constant dense<0.000000e+00> : vector<1x128xf32>
    %378 = tpu.matmul %375, %377, %cst_396 {dimension_numbers = #tpu.dot_dimension_numbers<[1], [0], [0], [1], [0, 0, 1, 1], [], []>} : vector<1x256xf32>, vector<256x128xf32>, vector<1x128xf32> -> vector<1x128xf32>
    %379 = arith.addf %374, %378 : vector<1x128xf32>
    %380 = vector.extract_strided_slice %363 {offsets = [3, 0], sizes = [1, 256], strides = [1, 1]} : vector<8x256xf32> to vector<1x256xf32>
    %c3_397 = arith.constant 3 : index
    %c0_398 = arith.constant 0 : index
    %c0_399 = arith.constant 0 : index
    %381 = vector.load %arg6[%c3_397, %c0_398, %c0_399] : memref<8x256x128xf32, #tpu.memory_space<vmem>>, vector<1x256x128xf32>
    %382 = vector.shape_cast %381 : vector<1x256x128xf32> to vector<256x128xf32>
    %cst_400 = arith.constant dense<0.000000e+00> : vector<1x128xf32>
    %383 = tpu.matmul %380, %382, %cst_400 {dimension_numbers = #tpu.dot_dimension_numbers<[1], [0], [0], [1], [0, 0, 1, 1], [], []>} : vector<1x256xf32>, vector<256x128xf32>, vector<1x128xf32> -> vector<1x128xf32>
    %384 = arith.addf %379, %383 : vector<1x128xf32>
    %385 = vector.extract_strided_slice %363 {offsets = [4, 0], sizes = [1, 256], strides = [1, 1]} : vector<8x256xf32> to vector<1x256xf32>
    %c4_401 = arith.constant 4 : index
    %c0_402 = arith.constant 0 : index
    %c0_403 = arith.constant 0 : index
    %386 = vector.load %arg6[%c4_401, %c0_402, %c0_403] : memref<8x256x128xf32, #tpu.memory_space<vmem>>, vector<1x256x128xf32>
    %387 = vector.shape_cast %386 : vector<1x256x128xf32> to vector<256x128xf32>
    %cst_404 = arith.constant dense<0.000000e+00> : vector<1x128xf32>
    %388 = tpu.matmul %385, %387, %cst_404 {dimension_numbers = #tpu.dot_dimension_numbers<[1], [0], [0], [1], [0, 0, 1, 1], [], []>} : vector<1x256xf32>, vector<256x128xf32>, vector<1x128xf32> -> vector<1x128xf32>
    %389 = arith.addf %384, %388 : vector<1x128xf32>
    %390 = vector.extract_strided_slice %363 {offsets = [5, 0], sizes = [1, 256], strides = [1, 1]} : vector<8x256xf32> to vector<1x256xf32>
    %c5_405 = arith.constant 5 : index
    %c0_406 = arith.constant 0 : index
    %c0_407 = arith.constant 0 : index
    %391 = vector.load %arg6[%c5_405, %c0_406, %c0_407] : memref<8x256x128xf32, #tpu.memory_space<vmem>>, vector<1x256x128xf32>
    %392 = vector.shape_cast %391 : vector<1x256x128xf32> to vector<256x128xf32>
    %cst_408 = arith.constant dense<0.000000e+00> : vector<1x128xf32>
    %393 = tpu.matmul %390, %392, %cst_408 {dimension_numbers = #tpu.dot_dimension_numbers<[1], [0], [0], [1], [0, 0, 1, 1], [], []>} : vector<1x256xf32>, vector<256x128xf32>, vector<1x128xf32> -> vector<1x128xf32>
    %394 = arith.addf %389, %393 : vector<1x128xf32>
    %395 = vector.extract_strided_slice %363 {offsets = [6, 0], sizes = [1, 256], strides = [1, 1]} : vector<8x256xf32> to vector<1x256xf32>
    %c6_409 = arith.constant 6 : index
    %c0_410 = arith.constant 0 : index
    %c0_411 = arith.constant 0 : index
    %396 = vector.load %arg6[%c6_409, %c0_410, %c0_411] : memref<8x256x128xf32, #tpu.memory_space<vmem>>, vector<1x256x128xf32>
    %397 = vector.shape_cast %396 : vector<1x256x128xf32> to vector<256x128xf32>
    %cst_412 = arith.constant dense<0.000000e+00> : vector<1x128xf32>
    %398 = tpu.matmul %395, %397, %cst_412 {dimension_numbers = #tpu.dot_dimension_numbers<[1], [0], [0], [1], [0, 0, 1, 1], [], []>} : vector<1x256xf32>, vector<256x128xf32>, vector<1x128xf32> -> vector<1x128xf32>
    %399 = arith.addf %394, %398 : vector<1x128xf32>
    %400 = vector.extract_strided_slice %363 {offsets = [7, 0], sizes = [1, 256], strides = [1, 1]} : vector<8x256xf32> to vector<1x256xf32>
    %c7_413 = arith.constant 7 : index
    %c0_414 = arith.constant 0 : index
    %c0_415 = arith.constant 0 : index
    %401 = vector.load %arg6[%c7_413, %c0_414, %c0_415] : memref<8x256x128xf32, #tpu.memory_space<vmem>>, vector<1x256x128xf32>
    %402 = vector.shape_cast %401 : vector<1x256x128xf32> to vector<256x128xf32>
    %cst_416 = arith.constant dense<0.000000e+00> : vector<1x128xf32>
    %403 = tpu.matmul %400, %402, %cst_416 {dimension_numbers = #tpu.dot_dimension_numbers<[1], [0], [0], [1], [0, 0, 1, 1], [], []>} : vector<1x256xf32>, vector<256x128xf32>, vector<1x128xf32> -> vector<1x128xf32>
    %404 = arith.addf %399, %403 : vector<1x128xf32>
    %c0_417 = arith.constant 0 : index
    %c0_418 = arith.constant 0 : index
    %405 = vector.load %arg7[%c0_417, %c0_418] : memref<1x128xf32, #tpu.memory_space<vmem>>, vector<1x128xf32>
    %406 = arith.addf %404, %405 : vector<1x128xf32>
    %cst_419 = arith.constant 0.000000e+00 : f32
    %407 = vector.broadcast %cst_419 : f32 to vector<1x128xf32>
    %408 = arith.maximumf %406, %407 : vector<1x128xf32>
    %c0_420 = arith.constant 0 : index
    %c0_421 = arith.constant 0 : index
    %409 = vector.load %arg8[%c0_420, %c0_421] : memref<128x10xf32, #tpu.memory_space<vmem>>, vector<128x10xf32>
    %cst_422 = arith.constant dense<0.000000e+00> : vector<1x10xf32>
    %410 = tpu.matmul %408, %409, %cst_422 {dimension_numbers = #tpu.dot_dimension_numbers<[1], [0], [0], [1], [0, 0, 1, 1], [], []>} : vector<1x128xf32>, vector<128x10xf32>, vector<1x10xf32> -> vector<1x10xf32>
    %c0_423 = arith.constant 0 : index
    %c0_424 = arith.constant 0 : index
    %411 = vector.load %arg9[%c0_423, %c0_424] : memref<1x10xf32, #tpu.memory_space<vmem>>, vector<1x10xf32>
    %412 = arith.addf %410, %411 : vector<1x10xf32>
    %c1_425 = arith.constant 1 : index
    %c0_426 = arith.constant 0 : index
    %413 = vector.load %arg10[%c1_425, %c0_426] : memref<2x10xf32, #tpu.memory_space<vmem>>, vector<1x10xf32>
    tpu.vector_store %arg10[%c1_425, %c0_426], %412 {strides = array<i32>} : memref<2x10xf32, #tpu.memory_space<vmem>>, vector<1x10xf32>,
    return
  }
  func.func @transform_0(%arg0: i32) -> (i32, i32, i32, i32) {
    %c0_i32 = arith.constant 0 : i32
    %c0_i32_0 = arith.constant 0 : i32
    %c0_i32_1 = arith.constant 0 : i32
    %c0_i32_2 = arith.constant 0 : i32
    %c0_i32_3 = arith.constant 0 : i32
    return %c0_i32, %c0_i32_0, %c0_i32_1, %c0_i32_2 : i32, i32, i32, i32
  }
  func.func @transform_1(%arg0: i32) -> (i32, i32, i32) {
    %c0_i32 = arith.constant 0 : i32
    %c0_i32_0 = arith.constant 0 : i32
    %c0_i32_1 = arith.constant 0 : i32
    %c0_i32_2 = arith.constant 0 : i32
    return %c0_i32, %c0_i32_0, %c0_i32_1 : i32, i32, i32
  }
  func.func @transform_2(%arg0: i32) -> (i32, i32) {
    %c0_i32 = arith.constant 0 : i32
    %c0_i32_0 = arith.constant 0 : i32
    %c0_i32_1 = arith.constant 0 : i32
    return %c0_i32, %c0_i32_0 : i32, i32
  }
  func.func @transform_3(%arg0: i32) -> (i32, i32, i32) {
    %c0_i32 = arith.constant 0 : i32
    %c0_i32_0 = arith.constant 0 : i32
    %c0_i32_1 = arith.constant 0 : i32
    %c0_i32_2 = arith.constant 0 : i32
    return %c0_i32, %c0_i32_0, %c0_i32_1 : i32, i32, i32
  }
  func.func @transform_4(%arg0: i32) -> (i32, i32) {
    %c0_i32 = arith.constant 0 : i32
    %c0_i32_0 = arith.constant 0 : i32
    %c0_i32_1 = arith.constant 0 : i32
    return %c0_i32, %c0_i32_0 : i32, i32
  }
  func.func @transform_5(%arg0: i32) -> (i32, i32, i32) {
    %c0_i32 = arith.constant 0 : i32
    %c0_i32_0 = arith.constant 0 : i32
    %c0_i32_1 = arith.constant 0 : i32
    %c0_i32_2 = arith.constant 0 : i32
    return %c0_i32, %c0_i32_0, %c0_i32_1 : i32, i32, i32
  }
  func.func @transform_6(%arg0: i32) -> (i32, i32) {
    %c0_i32 = arith.constant 0 : i32
    %c0_i32_0 = arith.constant 0 : i32
    %c0_i32_1 = arith.constant 0 : i32
    return %c0_i32, %c0_i32_0 : i32, i32
  }
  func.func @transform_7(%arg0: i32) -> (i32, i32) {
    %c0_i32 = arith.constant 0 : i32
    %c0_i32_0 = arith.constant 0 : i32
    %c0_i32_1 = arith.constant 0 : i32
    return %c0_i32, %c0_i32_0 : i32, i32
  }
  func.func @transform_8(%arg0: i32) -> (i32, i32) {
    %c0_i32 = arith.constant 0 : i32
    %c0_i32_0 = arith.constant 0 : i32
    %c0_i32_1 = arith.constant 0 : i32
    return %c0_i32, %c0_i32_0 : i32, i32
  }
  func.func @transform_9(%arg0: i32) -> (i32, i32) {
    %c0_i32 = arith.constant 0 : i32
    %c0_i32_0 = arith.constant 0 : i32
    %c0_i32_1 = arith.constant 0 : i32
    return %c0_i32, %c0_i32_0 : i32, i32
  }
}

</mosaic_0001>

<bundles_post_ra>
// kernel: forward.1
= control target key start
LH: loop header
LB: loop body
LE: loop exit
PB: predicated region body
PF: predicated region fallthrough
CT: control target
= control target key end

     0   :  { %14 = vsyncpa [#allocation4], 0  ;;  %s17389_s0 = inlined_call_operand.vmem [shape: f32[2,4,8,30], index: 0, kind: input, shape index: {}]   ;;  %s17390_s1 = inlined_call_operand.hbm [shape: f32[3,30,448], index: 1, kind: input, shape index: {}]   ;;  %s17391_s2 = inlined_call_operand.hbm [shape: f32[1,448], index: 2, kind: input, shape index: {}]   ;;  %s17392_s3 = inlined_call_operand.hbm [shape: f32[3,288,512], index: 3, kind: input, shape index: {}]   ;;  %s17393_s4 = inlined_call_operand.hbm [shape: f32[1,512], index: 4, kind: input, shape index: {}]   ;;  %s17394_s5 = inlined_call_operand.hbm [shape: f32[8,256,128], index: 5, kind: input, shape index: {}]   ;;  %s17395_s6 = inlined_call_operand.hbm [shape: f32[1,128], index: 6, kind: input, shape index: {}]   ;;  %s17396_s7 = inlined_call_operand.hbm [shape: f32[128,10], index: 7, kind: input, shape index: {}]   ;;  %s17397_s8 = inlined_call_operand.hbm [shape: f32[1,10], index: 8, kind: input, shape index: {}]   ;;  %s17398_s9 = inlined_call_operand.hbm [shape: f32[2,10], index: 9, kind: output, shape index: {}]  }
   0x1   :  { %15 = vsyncpa [#allocation7], 0 }
   0x2   :  { %16 = vsyncpa [#allocation10], 0 }
   0x3   :  { %17 = vsyncpa [#allocation13], 0 }
   0x4   :  { %18 = vsyncpa [#allocation16], 0 }
   0x5   :  { %19 = vsyncpa [#allocation5], 0  ;;  %s14438_s30 = smov [#allocation6]   ;;  %s14439_s11 = smov [#allocation9]  }
   0x6   :  { %s40_s10 = sshll.u32 %s14438_s30, 4  ;;  %s62_s12 = sshll.u32 %s14439_s11, 4  ;;  %s41_s10 = int_to_ptr.vmem [resolvable:$true] %s40_s10  ;;  %s63_s12 = int_to_ptr.vmem [resolvable:$true] %s62_s12 }
   0x7   :  { %s14228_s15 = scalar_lea.hbm %s17391_s2, 64 }
   0x8   :  { %p14229_p0 = scmp.ne.s32.totalorder %s17391_s2, %s14228_s15  ;;  %p14232_p1 = scmp.lt.u32.totalorder %s14228_s15, %s17391_s2 }
   0xa   :  { %p14234_p2 = pnand %p14232_p1, %p14229_p0 }
   0xc   :  { %14237 = shalt.err (!%p14234_p2)
}
   0xd   :  { %s14238_s20 = scalar_lea.vmem %s41_s10, 64  ;;  %p14243_p4 = scmp.lt.s32.totalorder %s41_s10, %s41_s10 }
   0xe   :  { %p14239_p3 = scmp.ne.s32.totalorder %s41_s10, %s14238_s20  ;;  %p14244_p5 = scmp.lt.s32.totalorder %s14238_s20, %s14238_s20 }
  0x10   :  { %p14245_p6 = por %p14244_p5, %p14243_p4 }
  0x12   :  { %p14246_p7 = pnand %p14245_p6, %p14239_p3 }
  0x14   :  { %14249 = shalt.err (!%p14246_p7)
}
  0x15   :  { %43 = dma.hbm_to_vmem [thread:$0]  %s17391_s2, 64, %s41_s10, [#allocation7]  }
  0x16   :  { %s14250_s25 = scalar_lea.hbm %s17393_s4, 64 }
  0x17   :  { %p14251_p8 = scmp.ne.s32.totalorder %s17393_s4, %s14250_s25  ;;  %p14254_p9 = scmp.lt.u32.totalorder %s14250_s25, %s17393_s4 }
  0x19   :  { %p14256_p10 = pnand %p14254_p9, %p14251_p8 }
  0x1b   :  { %14259 = shalt.err (!%p14256_p10)
}
  0x1c   :  { %s14260_s30 = scalar_lea.vmem %s63_s12, 64  ;;  %p14265_p12 = scmp.lt.s32.totalorder %s63_s12, %s63_s12 }
  0x1d   :  { %p14261_p11 = scmp.ne.s32.totalorder %s63_s12, %s14260_s30  ;;  %p14266_p13 = scmp.lt.s32.totalorder %s14260_s30, %s14260_s30 }
  0x1f   :  { %p14267_p0 = por %p14266_p13, %p14265_p12 }
  0x21   :  { %p14268_p1 = pnand %p14267_p0, %p14261_p11 }
  0x23   :  { %14271 = shalt.err (!%p14268_p1)
}
  0x24   :  { %65 = dma.hbm_to_vmem [thread:$0]  %s17393_s4, 64, %s63_s12, [#allocation10]  }
  0x25   :  { %s14440_s11 = smov [#allocation12]   ;;  %s14441_s14 = smov [#allocation3]  }
  0x26   :  { %s84_s13 = sshll.u32 %s14440_s11, 4  ;;  %s27_s15 = sshll.u32 %s14441_s14, 4  ;;  %s85_s13 = int_to_ptr.vmem [resolvable:$true] %s84_s13  ;;  %s14529_s15 = int_to_ptr.vmem [resolvable:$true] %s27_s15 }
  0x27   :  { %s14272_s18 = scalar_lea.hbm %s17395_s6, 16 }
  0x28   :  { %p14273_p2 = scmp.ne.s32.totalorder %s17395_s6, %s14272_s18  ;;  %p14276_p3 = scmp.lt.u32.totalorder %s14272_s18, %s17395_s6 }
  0x2a   :  { %p14278_p4 = pnand %p14276_p3, %p14273_p2 }
  0x2c   :  { %14281 = shalt.err (!%p14278_p4)
}
  0x2d   :  { %s14282_s4 = scalar_lea.vmem %s85_s13, 16  ;;  %s14286_s12 = scalar_lea.vmem %s85_s13, 32 }
  0x2e   :  { %p14283_p5 = scmp.ne.s32.totalorder %s85_s13, %s14282_s4  ;;  %p14287_p6 = scmp.lt.s32.totalorder %s85_s13, %s85_s13 }
  0x2f   :  { %p14288_p7 = scmp.lt.s32.totalorder %s14286_s12, %s14282_s4 }
  0x31   :  { %p14289_p8 = por %p14288_p7, %p14287_p6 }
  0x33   :  { %p14290_p9 = pnand %p14289_p8, %p14283_p5 }
  0x35   :  { %14293 = shalt.err (!%p14290_p9)
}
  0x36   :  { %87 = dma.hbm_to_vmem [thread:$0]  %s17395_s6, 16, %s85_s13, [#allocation13]  }
  0x37   :  { %s14294_s27 = scalar_lea.hbm %s17390_s1, 6144 }
  0x38   :  { %p14295_p10 = scmp.ne.s32.totalorder %s17390_s1, %s14294_s27  ;;  %p14298_p11 = scmp.lt.u32.totalorder %s14294_s27, %s17390_s1 }
  0x3a   :  { %p14300_p12 = pnand %p14298_p11, %p14295_p10 }
  0x3c   :  { %14303 = shalt.err (!%p14300_p12)
}
  0x3d   :  { %s14304_s10 = scalar_lea.vmem %s14529_s15, 6144  ;;  %p14309_p0 = scmp.lt.s32.totalorder %s14529_s15, %s14529_s15 }
  0x3e   :  { %p14305_p13 = scmp.ne.s32.totalorder %s14529_s15, %s14304_s10  ;;  %p14310_p1 = scmp.lt.s32.totalorder %s14304_s10, %s14304_s10 }
  0x40   :  { %p14311_p2 = por %p14310_p1, %p14309_p0 }
  0x42   :  { %p14312_p3 = pnand %p14311_p2, %p14305_p13 }
  0x44   :  { %14315 = shalt.err (!%p14312_p3)
}
  0x45   :  { %s14442_s6 = smov 512   ;;  %s14443_s11 = smov 32  }
  0x46   :  { %33 = dma.hbm_to_vmem [thread:$0]  %s17390_s1, 6144, %s14529_s15, [#allocation4], %s14442_s6, %s14442_s6, %s14443_s11  }
  0x47   :  { %s14444_s16 = smov [#allocation8]   ;;  %s14445_s18 = smov [#allocation11]  }
  0x48   :  { %s49_s17 = sshll.u32 %s14444_s16, 4  ;;  %s71_s19 = sshll.u32 %s14445_s18, 4  ;;  %s50_s17 = int_to_ptr.vmem [resolvable:$true] %s49_s17  ;;  %s14561_s19 = int_to_ptr.vmem [resolvable:$true] %s71_s19 }
  0x49   :  { %s14316_s22 = scalar_lea.hbm %s17392_s3, 55296 }
  0x4a   :  { %p14317_p4 = scmp.ne.s32.totalorder %s17392_s3, %s14316_s22  ;;  %p14320_p5 = scmp.lt.u32.totalorder %s14316_s22, %s17392_s3 }
  0x4c   :  { %p14322_p6 = pnand %p14320_p5, %p14317_p4 }
  0x4e   :  { %14325 = shalt.err (!%p14322_p6)
}
  0x4f   :  { %s14326_s1 = scalar_lea.vmem %s50_s17, 55296  ;;  %p14331_p8 = scmp.lt.s32.totalorder %s50_s17, %s50_s17 }
  0x50   :  { %p14327_p7 = scmp.ne.s32.totalorder %s50_s17, %s14326_s1  ;;  %p14332_p9 = scmp.lt.s32.totalorder %s14326_s1, %s14326_s1 }
  0x52   :  { %p14333_p10 = por %p14332_p9, %p14331_p8 }
  0x54   :  { %p14334_p11 = pnand %p14333_p10, %p14327_p7 }
  0x56   :  { %14337 = shalt.err (!%p14334_p11)
}
  0x57   :  { %55 = dma.hbm_to_vmem [thread:$0]  %s17392_s3, 55296, %s50_s17, [#allocation7], %s14442_s6, %s14442_s6, %s14443_s11  }
  0x58   :  { %s14338_s28 = scalar_lea.hbm %s17394_s5, 32768 }
  0x59   :  { %p14339_p12 = scmp.ne.s32.totalorder %s17394_s5, %s14338_s28  ;;  %p14342_p13 = scmp.lt.u32.totalorder %s14338_s28, %s17394_s5 }
  0x5b   :  { %p14344_p0 = pnand %p14342_p13, %p14339_p12 }
  0x5d   :  { %14347 = shalt.err (!%p14344_p0)
}
  0x5e   :  { %s14348_s13 = scalar_lea.vmem %s14561_s19, 32768  ;;  %p14353_p2 = scmp.lt.s32.totalorder %s14561_s19, %s14561_s19 }
  0x5f   :  { %p14349_p1 = scmp.ne.s32.totalorder %s14561_s19, %s14348_s13  ;;  %p14354_p3 = scmp.lt.s32.totalorder %s14348_s13, %s14348_s13 }
  0x61   :  { %p14355_p4 = por %p14354_p3, %p14353_p2 }
  0x63   :  { %p14356_p5 = pnand %p14355_p4, %p14349_p1 }
  0x65   :  { %14359 = shalt.err (!%p14356_p5)
}
  0x66   :  { %s14446_s3 = smov 128   ;;  %s14447_s6 = smov 8  }
  0x67   :  { %77 = dma.hbm_to_vmem [thread:$0]  %s17394_s5, 32768, %s14561_s19, [#allocation10], %s14446_s3, %s14446_s3, %s14447_s6  }
  0x68   :  { %s14448_s17 = smov [#allocation14]   ;;  %s14449_s20 = smov [#allocation15]  }
  0x69   :  { %s93_s18 = sshll.u32 %s14448_s17, 4  ;;  %s106_s21 = sshll.u32 %s14449_s20, 4  ;;  %s94_s18 = int_to_ptr.vmem [resolvable:$true] %s93_s18  ;;  %s107_s21 = int_to_ptr.vmem [resolvable:$true] %s106_s21 }
  0x6a   :  { %s14360_s12 = scalar_lea.hbm %s17396_s7, 2048 }
  0x6b   :  { %p14361_p6 = scmp.ne.s32.totalorder %s17396_s7, %s14360_s12  ;;  %p14364_p7 = scmp.lt.u32.totalorder %s14360_s12, %s17396_s7 }
  0x6d   :  { %p14366_p8 = pnand %p14364_p7, %p14361_p6 }
  0x6f   :  { %14369 = shalt.err (!%p14366_p8)
}
  0x70   :  { %s14370_s5 = scalar_lea.vmem %s94_s18, 2048  ;;  %p14375_p10 = scmp.lt.s32.totalorder %s94_s18, %s94_s18 }
  0x71   :  { %p14371_p9 = scmp.ne.s32.totalorder %s94_s18, %s14370_s5  ;;  %p14376_p11 = scmp.lt.s32.totalorder %s14370_s5, %s14370_s5 }
  0x73   :  { %p14377_p12 = por %p14376_p11, %p14375_p10 }
  0x75   :  { %p14378_p13 = pnand %p14377_p12, %p14371_p9 }
  0x77   :  { %14381 = shalt.err (!%p14378_p13)
}
  0x78   :  { %99 = dma.hbm_to_vmem [thread:$0]  %s17396_s7, 2048, %s94_s18, [#allocation13], %s14446_s3, %s14446_s3, %s14447_s6  }
  0x79   :  { %s14382_s28 = scalar_lea.hbm %s17397_s8, 16 }
  0x7a   :  { %p14383_p0 = scmp.ne.s32.totalorder %s17397_s8, %s14382_s28  ;;  %p14386_p1 = scmp.lt.u32.totalorder %s14382_s28, %s17397_s8 }
  0x7c   :  { %p14388_p2 = pnand %p14386_p1, %p14383_p0 }
  0x7e   :  { %14391 = shalt.err (!%p14388_p2)
}
  0x7f   :  { %s14392_s13 = scalar_lea.vmem %s107_s21, 16  ;;  %s14396_s14 = scalar_lea.vmem %s107_s21, 32 }
  0x80   :  { %p14393_p3 = scmp.ne.s32.totalorder %s107_s21, %s14392_s13  ;;  %p14397_p4 = scmp.lt.s32.totalorder %s107_s21, %s107_s21 }
  0x81   :  { %p14398_p5 = scmp.lt.s32.totalorder %s14396_s14, %s14392_s13 }
  0x83   :  { %p14399_p6 = por %p14398_p5, %p14397_p4 }
  0x85   :  { %p14400_p7 = pnand %p14399_p6, %p14393_p3 }
  0x87   :  { %14403 = shalt.err (!%p14400_p7)
}
  0x88   :  { %109 = dma.hbm_to_vmem [thread:$0]  %s17397_s8, 16, %s107_s21, [#allocation16]  }
  0x89   :  { %14426 = dma.done.wait [#allocation4], 6144  }
  0x8a   :  { %14427 = vsyncadd [#allocation4], 4294961152 }
  0x8b   :  { %14428 = dma.done.wait [#allocation7], 55360  }
  0x8c   :  { %14429 = vsyncadd [#allocation7], 4294911936 }
  0x8d   :  { %14430 = dma.done.wait [#allocation10], 32832  }
  0x8e   :  { %14431 = vsyncadd [#allocation10], 4294934464 }
  0x8f   :  { %14432 = dma.done.wait [#allocation13], 2064  }
  0x90   :  { %14433 = vsyncadd [#allocation13], 4294965232 }
  0x91   :  { %14434 = dma.done.wait [#allocation16], 16  }
  0x92   :  { %14435 = vsyncadd [#allocation16], 4294967280  ;;  %v14450_v0 = vmov 0.0   ;;  %vm200_vm0 = vcmask 1045504   ;;  %vm14451_vm1 = vmmov 1   ;;  %v17752_v1 = vmov 0 }
  0x93   :  { %277 = vmatprep.mubr.f32.mxu0 %v14450_v0  ;;  %134 = vst [vmem:[#allocation2] sm:$0xff] %v14450_v0  ;;  %135 = vst [vmem:[#allocation2 + $0x8] sm:$0xff] %v14450_v0  ;;  %348 = vmatprep.mubr.f32.mxu1 %v14450_v0  ;;  %v181_v2 = vld [vmem:[#allocation3 + $0x88] sm:$0xff]  ;;  %v183_v4 = vld [vmem:[#allocation3 + $0x98] sm:$0xff]  ;;  %vm196_vm3 = vcmask 244736   ;;  %vm136_vm4 = vcmask 261120  }
  0x94   :  { %138 = vst [vmem:[#allocation2 + $0x18] sm:$0x1] %v14450_v0  ;;  %139 = vst [vmem:[#allocation2 + $0x20] sm:$0x1] %v14450_v0  ;;  %v185_v3 = vld [vmem:[#allocation3 + $0xa8] sm:$0xff]  ;;  %v187_v6 = vld [vmem:[#allocation3 + $0xb8] sm:$0xff] }
  0x95   :  { %142 = vst [vmem:[#allocation2 + $0x30] sm:$0xff] %v14450_v0  ;;  %143 = vst [vmem:[#allocation2 + $0x38] sm:$0xff] %v14450_v0  ;;  %v14639_v5 = vpack.c.bf16 %v185_v3, %v181_v2  ;;  %v180_v7 = vld [vmem:[#allocation3 + $0x80] sm:$0xff]  ;;  %v14641_v9 = vpack.c.bf16 %v187_v6, %v183_v4  ;;  %v182_v11 = vld [vmem:[#allocation3 + $0x90] sm:$0xff]  ;;  %vm2086_vm5 = vcmask 1047809   ;;  %vm140_vm6 = vcmask 253952  }
  0x96   :  { %145 = vst [vmem:[#allocation2 + $0x48] sm:$0x1] %v14450_v0  ;;  %146 = vst [vmem:[#allocation2 + $0x50] sm:$0x1] %v14450_v0  ;;  %v184_v8 = vld [vmem:[#allocation3 + $0xa0] sm:$0xff]  ;;  %v186_v12 = vld [vmem:[#allocation3 + $0xb0] sm:$0xff] }
  0x97   :  { %148 = vst [vmem:[#allocation2 + $0x60] sm:$0xff] %v14450_v0  ;;  %149 = vst [vmem:[#allocation2 + $0x68] sm:$0xff] %v14450_v0  ;;  %v14643_v10 = vpack.c.bf16 %v184_v8, %v180_v7  ;;  %v189_v13 = vld [vmem:[#allocation3 + $0xc8] sm:$0xff]  ;;  %11290 = vmatprep.subr.bf16.mxu0 %v14639_v5  ;;  %v14646_v14 = vpack.c.bf16 %v186_v12, %v182_v11  ;;  %v191_v16 = vld [vmem:[#allocation3 + $0xd8] sm:$0xff]  ;;  %11300 = vmatprep.subr.bf16.mxu1 %v14641_v9  ;;  %vm3129_vm7 = vcmask 1046528   ;;  %vm14453_vm8 = vmmov 0  }
  0x98   :  { %151 = vst [vmem:[#allocation2 + $0x78] sm:$0x1] %v14450_v0  ;;  %152 = vst [vmem:[#allocation2 + $0x80] sm:$0x1] %v14450_v0  ;;  %v193_v15 = vld [vmem:[#allocation3 + $0xe8] sm:$0x3f] }
  0x99   :  { %154 = vst [vmem:[#allocation2 + $0x90] sm:$0xff] %v14450_v0  ;;  %155 = vst [vmem:[#allocation2 + $0x98] sm:$0xff] %v14450_v0  ;;  %v195_v17 = vld [vmem:[#allocation3 + $0xf8] sm:$0x3f]  ;;  %11292 = vmatpush1.bf16.msra.mxu0 %v14643_v10  ;;  %v14650_v18 = vpack.c.bf16 %v193_v15, %v189_v13  ;;  %v188_v20 = vld [vmem:[#allocation3 + $0xc0] sm:$0xff]  ;;  %11302 = vmatpush1.bf16.msra.mxu1 %v14646_v14  ;;  %vm5299_vm9 = vcmask 73728  }
  0x9a   :  { %157 = vst [vmem:[#allocation2 + $0xa8] sm:$0x1] %v14450_v0  ;;  %158 = vst [vmem:[#allocation2 + $0xb0] sm:$0x1] %v14450_v0  ;;  %v14652_v19 = vpack.c.bf16 %v195_v17, %v191_v16  ;;  %v192_v21 = vld [vmem:[#allocation3 + $0xe0] sm:$0x3f] }
  0x9b   :  { %vm14635_vm2 = vmpackc.low %vm200_vm0, %vm14451_vm1  ;;  %v190_v22 = vld [vmem:[#allocation3 + $0xd0] sm:$0xff]  ;;  %v14655_v23 = vpack.c.bf16 %v192_v21, %v188_v20  ;;  %v162_v25 = vld [vmem:[#allocation3 + $0x8] sm:$0xff]  ;;  %137 = vst.msk [vmem:[#allocation2 + $0x10] sm:$0xff] %vm136_vm4, %v14450_v0 }
  0x9c   :  { %v17753_v1 = vsel %vm14635_vm2, 4294967295, %v17752_v1  ;;  %v194_v24 = vld [vmem:[#allocation3 + $0xf0] sm:$0x3f]  ;;  %11295 = vmatprep.subr.msk.bf16.mxu0 %vm14635_vm2, %v14650_v18  ;;  %11305 = vmatprep.subr.msk.bf16.mxu1 %vm14635_vm2, %v14652_v19  ;;  %v14668_v27 = vld [vmem:[%s17389_s0 + $0x8] sm:$0x7f]  ;;  %v164_v29 = vld [vmem:[#allocation3 + $0x18] sm:$0xff] }
  0x9d   :  { %17754 = vst [vmem:[#allocation24_spill] sm:$0xff] %v17753_v1  ;;  %v14663_v26 = vpack.c.bf16 %v194_v24, %v190_v22  ;;  %v166_v28 = vld [vmem:[#allocation3 + $0x28] sm:$0xff]  ;;  %v168_v30 = vld [vmem:[#allocation3 + $0x38] sm:$0xff]  ;;  %v161_v33 = vld [vmem:[#allocation3] sm:$0xff]  ;;  %11298 = vmatpush1.bf16.msk.msra.mxu0 %vm14635_vm2, %v14655_v23 }
  0x9e   :  { %v14670_v31 = vpack.c.bf16 %v166_v28, %v162_v25  ;;  %v14672_v32 = vpack.c.bf16 %v168_v30, %v164_v29  ;;  %v165_v34 = vld [vmem:[#allocation3 + $0x20] sm:$0xff]  ;;  %v163_v35 = vld [vmem:[#allocation3 + $0x10] sm:$0xff]  ;;  %v170_v38 = vld [vmem:[#allocation3 + $0x48] sm:$0xff]  ;;  %144 = vst.msk [vmem:[#allocation2 + $0x40] sm:$0xff] %vm136_vm4, %v14450_v0 }
  0x9f   :  { %v14677_v36 = vpack.c.bf16 %v165_v34, %v161_v33  ;;  %v167_v37 = vld [vmem:[#allocation3 + $0x30] sm:$0xff]  ;;  %v174_v39 = vld [vmem:[#allocation3 + $0x68] sm:$0x3f]  ;;  %11308 = vmatpush1.bf16.msk.msra.mxu1 %vm14635_vm2, %v14663_v26  ;;  %v172_v42 = vld [vmem:[#allocation3 + $0x58] sm:$0xff]  ;;  %150 = vst.msk [vmem:[#allocation2 + $0x70] sm:$0xff] %vm136_vm4, %v14450_v0 }
  0xa0   :  { %11310 = vmatprep.subr.bf16.mxu0 %v14670_v31  ;;  %v14683_v40 = vpack.c.bf16 %v167_v37, %v163_v35  ;;  %v14685_v41 = vpack.c.bf16 %v174_v39, %v170_v38  ;;  %v176_v43 = vld [vmem:[#allocation3 + $0x78] sm:$0x3f]  ;;  %v169_v44 = vld [vmem:[#allocation3 + $0x40] sm:$0xff]  ;;  %11320 = vmatprep.subr.bf16.mxu1 %v14672_v32  ;;  %v171_v47 = vld [vmem:[#allocation3 + $0x50] sm:$0xff]  ;;  %156 = vst.msk [vmem:[#allocation2 + $0xa0] sm:$0xff] %vm136_vm4, %v14450_v0 }
  0xa1   :  { %v14688_v45 = vpack.c.bf16 %v176_v43, %v172_v42  ;;  %v173_v46 = vld [vmem:[#allocation3 + $0x60] sm:$0x3f]  ;;  %v175_v48 = vld [vmem:[#allocation3 + $0x70] sm:$0x3f]  ;;  %10450 = vmatmul.mubr.msk.f32.vlgmr.msra.gmra.mrb[0].mxu0 %vm196_vm3, %v14668_v27  ;;  %v516_v49 = vld [vmem:[#allocation3 + $0x108] sm:$0xff] }
  0xa2   :  { %v520_v50 = vld [vmem:[#allocation3 + $0x128] sm:$0xff]  ;;  %10453 = vmatmul.mubr.msk.f32.vlgmr.msra.gmra.mrb[0].mxu1 %vm196_vm3, %v14668_v27  ;;  %11312 = vmatpush1.bf16.msra.mxu0 %v14677_v36  ;;  %v14695_v51 = vpack.c.bf16 %v173_v46, %v169_v44  ;;  %v518_v52 = vld [vmem:[#allocation3 + $0x118] sm:$0xff]  ;;  %v14701_v54 = vpack.c.bf16 %v175_v48, %v171_v47  ;;  %v515_v56 = vld [vmem:[#allocation3 + $0x100] sm:$0xff] }
  0xa3   :  { %v522_v53 = vld [vmem:[#allocation3 + $0x138] sm:$0xff]  ;;  %11322 = vmatpush1.bf16.msra.mxu1 %v14683_v40  ;;  %11315 = vmatprep.subr.msk.bf16.mxu0 %vm14635_vm2, %v14685_v41  ;;  %v14703_v55 = vpack.c.bf16 %v520_v50, %v516_v49  ;;  %v519_v57 = vld [vmem:[#allocation3 + $0x120] sm:$0xff]  ;;  %v517_v58 = vld [vmem:[#allocation3 + $0x110] sm:$0xff] }
  0xa4   :  { %11325 = vmatprep.subr.msk.bf16.mxu1 %vm14635_vm2, %v14688_v45  ;;  %434 = vmatprep.mubr.f32.mxu0 %v14450_v0  ;;  %v14709_v59 = vpack.c.bf16 %v522_v53, %v518_v52  ;;  %v521_v60 = vld [vmem:[#allocation3 + $0x130] sm:$0xff]  ;;  %v524_v61 = vld [vmem:[#allocation3 + $0x148] sm:$0xff]  ;;  %v526_v63 = vld [vmem:[#allocation3 + $0x158] sm:$0xff]  ;;  %v14718_v4 = vpack.c.bf16 %v519_v57, %v515_v56 }
  0xa5   :  { %v528_v62 = vld [vmem:[#allocation3 + $0x168] sm:$0x3f]  ;;  %505 = vmatprep.mubr.f32.mxu1 %v14450_v0  ;;  %v530_v2 = vld [vmem:[#allocation3 + $0x178] sm:$0x3f]  ;;  %v160_v3 = vld [vmem:[%s17389_s0] sm:$0x7f]  ;;  %v14724_v6 = vpack.c.bf16 %v521_v60, %v517_v58 }
  0xa6   :  { %11318 = vmatpush1.bf16.msk.msra.mxu0 %vm14635_vm2, %v14695_v51  ;;  %v14726_v7 = vpack.c.bf16 %v528_v62, %v524_v61  ;;  %v523_v8 = vld [vmem:[#allocation3 + $0x140] sm:$0xff]  ;;  %v14729_v12 = vpack.c.bf16 %v530_v2, %v526_v63  ;;  %v525_v13 = vld [vmem:[#allocation3 + $0x150] sm:$0xff]  ;;  %v14824_v21 = vld [vmem:[%s17389_s0 + $0x18] sm:$0x7f] }
  0xa7   :  { %11328 = vmatpush1.bf16.msk.msra.mxu1 %vm14635_vm2, %v14701_v54  ;;  %11330 = vmatprep.subr.bf16.mxu0 %v14703_v55  ;;  %v527_v11 = vld [vmem:[#allocation3 + $0x160] sm:$0x3f]  ;;  %v529_v15 = vld [vmem:[#allocation3 + $0x170] sm:$0x3f] }
  0xa8   :  { %11340 = vmatprep.subr.bf16.mxu1 %v14709_v59  ;;  %v14734_v16 = vpack.c.bf16 %v527_v11, %v523_v8  ;;  %v14740_v17 = vpack.c.bf16 %v529_v15, %v525_v13  ;;  %v14753_v20 = vld [vmem:[%s17389_s0 + $0x10] sm:$0x7f]  ;;  %v1441_v22 = vld [vmem:[%s17389_s0 + $0x1] sm:$0x7f] }
  0xa9   :  { %10456 = vmatmul.mubr.msk.f32.vlgmr.msra.gmra.mrb[0].mxu0 %vm196_vm3, %v160_v3  ;;  %v692_v25 = vld [vmem:[#allocation6] sm:$0xf]  ;;  %v2259_v8 = vld [vmem:[#allocation8 + $0x4a8] sm:$0xff]  ;;  %v2254_v15 = vld [vmem:[#allocation8 + $0x480] sm:$0xff] }
  0xaa   :  { %10459 = vmatmul.mubr.msk.f32.vlgmr.msra.gmra.mrb[0].mxu1 %vm196_vm3, %v160_v3  ;;  %11332 = vmatpush1.bf16.msra.mxu0 %v14718_v4  ;;  %v2257_v11 = vld [vmem:[#allocation8 + $0x498] sm:$0xff]  ;;  %v2324_v44 = vld [vmem:[#allocation8 + $0x6b0] sm:$0xff]  ;;  %v2327_v48 = vld [vmem:[#allocation8 + $0x6c8] sm:$0xff] }
  0xab   :  { %11342 = vmatpush1.bf16.msra.mxu1 %v14724_v6  ;;  %11335 = vmatprep.subr.msk.bf16.mxu0 %vm14635_vm2, %v14726_v7  ;;  %v2261_v13 = vld [vmem:[#allocation8 + $0x4b8] sm:$0xff]  ;;  %v2331_v46 = vld [vmem:[#allocation8 + $0x6e8] sm:$0xff]  ;;  %v2332_v1 = vld [vmem:[#allocation8 + $0x6f0] sm:$0xff] }
  0xac   :  { %11345 = vmatprep.subr.msk.bf16.mxu1 %vm14635_vm2, %v14729_v12  ;;  %610 = vmatprep.mubr.f32.mxu0 %v14450_v0 }
  0xad   :  { %681 = vmatprep.mubr.f32.mxu1 %v14450_v0 }
  0xae   :  { %11338 = vmatpush1.bf16.msk.msra.mxu0 %vm14635_vm2, %v14734_v16 }
  0xaf   :  { %11348 = vmatpush1.bf16.msk.msra.mxu1 %vm14635_vm2, %v14740_v17  ;;  %11350 = vmatprep.subr.bf16.mxu0 %v14639_v5 }
  0xb0   :  { %11360 = vmatprep.subr.bf16.mxu1 %v14641_v9 }
  0xb1   :  { %10463 = vmatmul.mubr.msk.f32.vlgmr.msra.gmra.mrb[0].mxu0 %vm196_vm3, %v14753_v20 }
  0xb2   :  { %10466 = vmatmul.mubr.msk.f32.vlgmr.msra.gmra.mrb[0].mxu1 %vm196_vm3, %v14753_v20  ;;  %11352 = vmatpush1.bf16.msra.mxu0 %v14643_v10 }
  0xb3   :  { %11362 = vmatpush1.bf16.msra.mxu1 %v14646_v14  ;;  %11355 = vmatprep.subr.msk.bf16.mxu0 %vm14635_vm2, %v14650_v18 }
  0xb4   :  { %11365 = vmatprep.subr.msk.bf16.mxu1 %vm14635_vm2, %v14652_v19  ;;  %782 = vmatprep.mubr.f32.mxu0 %v14450_v0 }
  0xb5   :  { %853 = vmatprep.mubr.f32.mxu1 %v14450_v0 }
  0xb6   :  { %11358 = vmatpush1.bf16.msk.msra.mxu0 %vm14635_vm2, %v14655_v23 }
  0xb7   :  { %11368 = vmatpush1.bf16.msk.msra.mxu1 %vm14635_vm2, %v14663_v26  ;;  %11370 = vmatprep.subr.bf16.mxu0 %v14670_v31 }
  0xb8   :  { %11380 = vmatprep.subr.bf16.mxu1 %v14672_v32 }
  0xb9   :  { %10469 = vmatmul.mubr.msk.f32.vlgmr.msra.gmra.mrb[2].mxu0 %vm196_vm3, %v14753_v20 }
  0xba   :  { %10472 = vmatmul.mubr.msk.f32.vlgmr.msra.gmra.mrb[2].mxu1 %vm196_vm3, %v14753_v20  ;;  %11372 = vmatpush1.bf16.msra.mxu0 %v14677_v36 }
  0xbb   :  { %11382 = vmatpush1.bf16.msra.mxu1 %v14683_v40  ;;  %11375 = vmatprep.subr.msk.bf16.mxu0 %vm14635_vm2, %v14685_v41 }
  0xbc   :  { %11385 = vmatprep.subr.msk.bf16.mxu1 %vm14635_vm2, %v14688_v45  ;;  %924 = vmatprep.mubr.f32.mxu0 %v14450_v0 }
  0xbd   :  { %995 = vmatprep.mubr.f32.mxu1 %v14450_v0 }
  0xbe   :  { %11378 = vmatpush1.bf16.msk.msra.mxu0 %vm14635_vm2, %v14695_v51 }
  0xbf   :  { %11388 = vmatpush1.bf16.msk.msra.mxu1 %vm14635_vm2, %v14701_v54  ;;  %11390 = vmatprep.subr.bf16.mxu0 %v14703_v55 }
  0xc0   :  { %11400 = vmatprep.subr.bf16.mxu1 %v14709_v59 }
  0xc1   :  { %10475 = vmatmul.mubr.msk.f32.vlgmr.msra.gmra.mrb[2].mxu0 %vm196_vm3, %v14668_v27 }
  0xc2   :  { %10478 = vmatmul.mubr.msk.f32.vlgmr.msra.gmra.mrb[2].mxu1 %vm196_vm3, %v14668_v27  ;;  %11392 = vmatpush1.bf16.msra.mxu0 %v14718_v4 }
  0xc3   :  { %11402 = vmatpush1.bf16.msra.mxu1 %v14724_v6  ;;  %11395 = vmatprep.subr.msk.bf16.mxu0 %vm14635_vm2, %v14726_v7 }
  0xc4   :  { %11405 = vmatprep.subr.msk.bf16.mxu1 %vm14635_vm2, %v14729_v12  ;;  %1071 = vmatprep.mubr.f32.mxu0 %v14450_v0 }
  0xc5   :  { %1142 = vmatprep.mubr.f32.mxu1 %v14450_v0 }
  0xc6   :  { %11398 = vmatpush1.bf16.msk.msra.mxu0 %vm14635_vm2, %v14734_v16 }
  0xc7   :  { %11408 = vmatpush1.bf16.msk.msra.mxu1 %vm14635_vm2, %v14740_v17  ;;  %11410 = vmatprep.subr.bf16.mxu0 %v14639_v5 }
  0xc8   :  { %11420 = vmatprep.subr.bf16.mxu1 %v14641_v9 }
  0xc9   :  { %10482 = vmatmul.mubr.msk.f32.vlgmr.msra.gmra.mrb[2].mxu0 %vm196_vm3, %v14824_v21 }
  0xca   :  { %10485 = vmatmul.mubr.msk.f32.vlgmr.msra.gmra.mrb[2].mxu1 %vm196_vm3, %v14824_v21  ;;  %11412 = vmatpush1.bf16.msra.mxu0 %v14643_v10 }
  0xcb   :  { %11422 = vmatpush1.bf16.msra.mxu1 %v14646_v14  ;;  %11415 = vmatprep.subr.msk.bf16.mxu0 %vm14635_vm2, %v14650_v18 }
  0xcc   :  { %11425 = vmatprep.subr.msk.bf16.mxu1 %vm14635_vm2, %v14652_v19  ;;  %1221 = vmatprep.mubr.f32.mxu0 %v14450_v0 }
  0xcd   :  { %1292 = vmatprep.mubr.f32.mxu1 %v14450_v0 }
  0xce   :  { %11418 = vmatpush1.bf16.msk.msra.mxu0 %vm14635_vm2, %v14655_v23 }
  0xcf   :  { %11428 = vmatpush1.bf16.msk.msra.mxu1 %vm14635_vm2, %v14663_v26  ;;  %11430 = vmatprep.subr.bf16.mxu0 %v14670_v31 }
  0xd0   :  { %11440 = vmatprep.subr.bf16.mxu1 %v14672_v32 }
  0xd1   :  { %10488 = vmatmul.mubr.msk.f32.vlgmr.msra.gmra.mrb[4].mxu0 %vm196_vm3, %v14824_v21 }
  0xd2   :  { %10491 = vmatmul.mubr.msk.f32.vlgmr.msra.gmra.mrb[4].mxu1 %vm196_vm3, %v14824_v21  ;;  %11432 = vmatpush1.bf16.msra.mxu0 %v14677_v36 }
  0xd3   :  { %11442 = vmatpush1.bf16.msra.mxu1 %v14683_v40  ;;  %11435 = vmatprep.subr.msk.bf16.mxu0 %vm14635_vm2, %v14685_v41 }
  0xd4   :  { %11445 = vmatprep.subr.msk.bf16.mxu1 %vm14635_vm2, %v14688_v45  ;;  %1363 = vmatprep.mubr.f32.mxu0 %v14450_v0 }
  0xd5   :  { %1434 = vmatprep.mubr.f32.mxu1 %v14450_v0 }
  0xd6   :  { %11438 = vmatpush1.bf16.msk.msra.mxu0 %vm14635_vm2, %v14695_v51 }
  0xd7   :  { %11448 = vmatpush1.bf16.msk.msra.mxu1 %vm14635_vm2, %v14701_v54  ;;  %11450 = vmatprep.subr.bf16.mxu0 %v14703_v55 }
  0xd8   :  { %11460 = vmatprep.subr.bf16.mxu1 %v14709_v59 }
  0xd9   :  { %10494 = vmatmul.mubr.msk.f32.vlgmr.msra.gmra.mrb[4].mxu0 %vm196_vm3, %v14753_v20 }
  0xda   :  { %10497 = vmatmul.mubr.msk.f32.vlgmr.msra.gmra.mrb[4].mxu1 %vm196_vm3, %v14753_v20  ;;  %11452 = vmatpush1.bf16.msra.mxu0 %v14718_v4 }
  0xdb   :  { %11462 = vmatpush1.bf16.msra.mxu1 %v14724_v6  ;;  %11455 = vmatprep.subr.msk.bf16.mxu0 %vm14635_vm2, %v14726_v7 }
  0xdc   :  { %11465 = vmatprep.subr.msk.bf16.mxu1 %vm14635_vm2, %v14729_v12  ;;  %1509 = vmatprep.mubr.f32.mxu0 %v14450_v0 }
  0xdd   :  { %1580 = vmatprep.mubr.f32.mxu1 %v14450_v0 }
  0xde   :  { %11458 = vmatpush1.bf16.msk.msra.mxu0 %vm14635_vm2, %v14734_v16 }
  0xdf   :  { %11468 = vmatpush1.bf16.msk.msra.mxu1 %vm14635_vm2, %v14740_v17  ;;  %11470 = vmatprep.subr.bf16.mxu0 %v14639_v5  ;;  %v10516_v5 = vld [vmem:[%s17389_s0 + $0x9] sm:$0x7f] }
  0xe0   :  { %11480 = vmatprep.subr.bf16.mxu1 %v14641_v9 }
  0xe1   :  { %10500 = vmatmul.mubr.msk.f32.vlgmr.msra.gmra.mrb[4].mxu0 %vm196_vm3, %v1441_v22 }
  0xe2   :  { %10503 = vmatmul.mubr.msk.f32.vlgmr.msra.gmra.mrb[4].mxu1 %vm196_vm3, %v1441_v22  ;;  %11472 = vmatpush1.bf16.msra.mxu0 %v14643_v10 }
  0xe3   :  { %11482 = vmatpush1.bf16.msra.mxu1 %v14646_v14  ;;  %11475 = vmatprep.subr.msk.bf16.mxu0 %vm14635_vm2, %v14650_v18 }
  0xe4   :  { %11485 = vmatprep.subr.msk.bf16.mxu1 %vm14635_vm2, %v14652_v19  ;;  %1659 = vmatprep.mubr.f32.mxu0 %v14450_v0  ;;  %v694_v19 = vlaneseq }
  0xe5   :  { %1730 = vmatprep.mubr.f32.mxu1 %v14450_v0 }
  0xe6   :  { %11478 = vmatpush1.bf16.msk.msra.mxu0 %vm14635_vm2, %v14655_v23  ;;  %v695_v23 = vshrl.u32 %v694_v19, 7 }
  0xe7   :  { %11488 = vmatpush1.bf16.msk.msra.mxu1 %vm14635_vm2, %v14663_v26  ;;  %11490 = vmatprep.subr.bf16.mxu0 %v14670_v31 }
  0xe8   :  { %11500 = vmatprep.subr.bf16.mxu1 %v14672_v32  ;;  %v14965_v24 = vsub.s32 0, %v695_v23  ;;  %v14967_v26 = vsub.s32 2, %v695_v23  ;;  %v14969_v27 = vsub.s32 1, %v695_v23  ;;  %v14971_v28 = vsub.s32 3, %v695_v23 }
  0xe9   :  { %10506 = vmatmul.mubr.msk.f32.vlgmr.msra.gmra.mrb[6].mxu0 %vm196_vm3, %v1441_v22 }
  0xea   :  { %10509 = vmatmul.mubr.msk.f32.vlgmr.msra.gmra.mrb[6].mxu1 %vm196_vm3, %v1441_v22  ;;  %11492 = vmatpush1.bf16.msra.mxu0 %v14677_v36  ;;  %17755 = vst [vmem:[#allocation25_spill] sm:$0xff] %v14965_v24  ;;  %17756 = vst [vmem:[#allocation26_spill] sm:$0xff] %v14967_v26  ;;  %v697_v29 = vrot.slane %v692_v25, %v14965_v24  ;;  %v705_v30 = vrot.slane %v692_v25, %v14967_v26  ;;  %v2260_v22 = vld [vmem:[#allocation8 + $0x4b0] sm:$0xff] }
  0xeb   :  { %11502 = vmatpush1.bf16.msra.mxu1 %v14683_v40  ;;  %11495 = vmatprep.subr.msk.bf16.mxu0 %vm14635_vm2, %v14685_v41  ;;  %17757 = vst [vmem:[#allocation27_spill] sm:$0xff] %v14969_v27  ;;  %17758 = vst [vmem:[#allocation28_spill] sm:$0xff] %v14971_v28  ;;  %v701_v31 = vrot.slane %v692_v25, %v14969_v27  ;;  %v709_v32 = vrot.slane %v692_v25, %v14971_v28  ;;  %v2262_v25 = vld [vmem:[#allocation8 + $0x4c0] sm:$0xff]  ;;  %v2335_v28 = vld [vmem:[#allocation8 + $0x708] sm:$0xff] }
  0xec   :  { %11505 = vmatprep.subr.msk.bf16.mxu1 %vm14635_vm2, %v14688_v45  ;;  %1801 = vmatprep.mubr.f32.mxu0 %v14450_v0  ;;  %v2339_v27 = vld [vmem:[#allocation8 + $0x728] sm:$0xff]  ;;  %v2340_v24 = vld [vmem:[#allocation8 + $0x730] sm:$0xff] }
  0xed   :  { %1872 = vmatprep.mubr.f32.mxu1 %v14450_v0 }
  0xee   :  { %11498 = vmatpush1.bf16.msk.msra.mxu0 %vm14635_vm2, %v14695_v51 }
  0xef   :  { %11508 = vmatpush1.bf16.msk.msra.mxu1 %vm14635_vm2, %v14701_v54  ;;  %11510 = vmatprep.subr.bf16.mxu0 %v14703_v55 }
  0xf0   :  { %11520 = vmatprep.subr.bf16.mxu1 %v14709_v59 }
  0xf1   :  { %10512 = vmatmul.mubr.msk.f32.vlgmr.msra.gmra.mrb[6].mxu0 %vm196_vm3, %v14824_v21 }
  0xf2   :  { %10515 = vmatmul.mubr.msk.f32.vlgmr.msra.gmra.mrb[6].mxu1 %vm196_vm3, %v14824_v21  ;;  %11512 = vmatpush1.bf16.msra.mxu0 %v14718_v4  ;;  %v2256_v21 = vld [vmem:[#allocation8 + $0x490] sm:$0xff] }
  0xf3   :  { %11522 = vmatpush1.bf16.msra.mxu1 %v14724_v6  ;;  %11515 = vmatprep.subr.msk.bf16.mxu0 %vm14635_vm2, %v14726_v7  ;;  %v2255_v7 = vld [vmem:[#allocation8 + $0x488] sm:$0xff] }
  0xf4   :  { %11525 = vmatprep.subr.msk.bf16.mxu1 %vm14635_vm2, %v14729_v12  ;;  %1947 = vmatprep.mubr.f32.mxu0 %v14450_v0  ;;  %v15017_v12 = vpack.c.bf16 %v2259_v8, %v2255_v7  ;;  %v2284_v7 = vld [vmem:[#allocation8 + $0x570] sm:$0xff]  ;;  %v2287_v8 = vld [vmem:[#allocation8 + $0x588] sm:$0xff] }
  0xf5   :  { %2018 = vmatprep.mubr.f32.mxu1 %v14450_v0 }
  0xf6   :  { %11518 = vmatpush1.bf16.msk.msra.mxu0 %vm14635_vm2, %v14734_v16  ;;  %v2258_v16 = vld [vmem:[#allocation8 + $0x4a0] sm:$0xff] }
  0xf7   :  { %11528 = vmatpush1.bf16.msk.msra.mxu1 %vm14635_vm2, %v14740_v17  ;;  %v15019_v17 = vpack.c.bf16 %v2261_v13, %v2257_v11  ;;  %v15021_v20 = vpack.c.bf16 %v2258_v16, %v2254_v15  ;;  %11530 = vmatprep.subr.bf16.mxu0 %v15017_v12  ;;  %v2291_v11 = vld [vmem:[#allocation8 + $0x5a8] sm:$0xff]  ;;  %v2289_v13 = vld [vmem:[#allocation8 + $0x598] sm:$0xff] }
  0xf8   :  { %v2293_v15 = vld [vmem:[#allocation8 + $0x5b8] sm:$0xff] }
  0xf9   :  { %10519 = vmatmul.mubr.msk.f32.vlgmr.msra.gmra.mrb[6].mxu0 %vm196_vm3, %v10516_v5  ;;  %11602 = vmatprep.subr.bf16.mxu1 %v15019_v17 }
  0xfa   :  { %10522 = vmatmul.mubr.msk.f32.vlgmr.msra.gmra.mrb[6].mxu1 %vm196_vm3, %v10516_v5  ;;  %v2263_v5 = vld [vmem:[#allocation8 + $0x4c8] sm:$0xff]  ;;  %11532 = vmatpush1.bf16.msra.mxu0 %v15021_v20 }
 0x184   :  { %v612_v9 = vpop.f32.mrb[0].mxu0 }
 0x185   :  { %v683_v10 = vpop.f32.mrb[0].mxu1  ;;  %v614_v14 = vpop.f32.mrb[1].mxu0  ;;  %v14977_v34 = vadd.f32 %v697_v29, %v612_v9  ;;  %v15024_v9 = vpack.c.bf16 %v2260_v22, %v2256_v21  ;;  %v15062_v22 = vpack.c.bf16 %v2291_v11, %v2287_v8  ;;  %v2302_v8 = vld [vmem:[#allocation8 + $0x600] sm:$0xff] }
 0x186   :  { %v685_v18 = vpop.f32.mrb[1].mxu1  ;;  %v14981_v38 = vadd.f32 %v705_v30, %v683_v10  ;;  %v715_v39 = vadd.f32 %v701_v31, %v614_v14  ;;  %v2267_v10 = vld [vmem:[#allocation8 + $0x4e8] sm:$0xff]  ;;  %v2265_v14 = vld [vmem:[#allocation8 + $0x4d8] sm:$0xff]  ;;  %v2306_v11 = vld [vmem:[#allocation8 + $0x620] sm:$0xff] }
 0x187   :  { %v14985_v43 = vadd.f32 %v709_v32, %v685_v18  ;;  %v2269_v18 = vld [vmem:[#allocation8 + $0x4f8] sm:$0xff]  ;;  %v15028_v19 = vpack.c.bf16 %v2267_v10, %v2263_v5  ;;  %11604 = vmatpush1.bf16.msra.mxu1 %v15024_v9  ;;  %v2286_v5 = vld [vmem:[#allocation8 + $0x580] sm:$0xff] }
 0x188   :  { %v15030_v23 = vpack.c.bf16 %v2269_v18, %v2265_v14  ;;  %v2290_v10 = vld [vmem:[#allocation8 + $0x5a0] sm:$0xff]  ;;  %v2288_v14 = vld [vmem:[#allocation8 + $0x590] sm:$0xff]  ;;  %v15065_v18 = vpack.c.bf16 %v2293_v15, %v2289_v13 }
 0x189   :  { %11534 = vmatprep.subr.bf16.mxu0 %v15028_v19  ;;  %v2304_v13 = vld [vmem:[#allocation8 + $0x610] sm:$0xff] }
 0x18a   :  { %11606 = vmatprep.subr.bf16.mxu1 %v15030_v23 }
 0x19c   :  { %v1073_v33 = vpop.f32.mrb[2].mxu0 }
 0x19d   :  { %v14979_v35 = vadd.f32 %v1073_v33, %v697_v29  ;;  %v1144_v36 = vpop.f32.mrb[2].mxu1  ;;  %v1075_v37 = vpop.f32.mrb[3].mxu0  ;;  %v2271_v33 = vld [vmem:[#allocation8 + $0x508] sm:$0xff] }
 0x19e   :  { %v14983_v40 = vadd.f32 %v1144_v36, %v705_v30  ;;  %v1154_v41 = vadd.f32 %v1075_v37, %v701_v31  ;;  %v1146_v42 = vpop.f32.mrb[3].mxu1  ;;  %v2275_v36 = vld [vmem:[#allocation8 + $0x528] sm:$0xff] }
 0x19f   :  { %v14989_v45 = vadd.f32 %v1146_v42, %v709_v32  ;;  %v2277_v42 = vld [vmem:[#allocation8 + $0x538] sm:$0xff] }
 0x1a0   :  { %v14993_v47 = vmax.f32 %v715_v39, %v1154_v41  ;;  %v15039_v39 = vpack.c.bf16 %v2275_v36, %v2271_v33  ;;  %v2273_v41 = vld [vmem:[#allocation8 + $0x518] sm:$0xff]  ;;  %v15068_v36 = vpack.c.bf16 %v2290_v10, %v2286_v5  ;;  %v2308_v5 = vld [vmem:[#allocation8 + $0x630] sm:$0xff]  ;;  %v2311_v10 = vld [vmem:[#allocation8 + $0x648] sm:$0xff] }
 0x1a1   :  { %v2301_v33 = vld [vmem:[#allocation8 + $0x5f8] sm:$0xff] }
 0x1b4   :  { %v1511_v49 = vpop.f32.mrb[4].mxu0 }
 0x1b5   :  { %v1582_v50 = vpop.f32.mrb[4].mxu1  ;;  %v1513_v51 = vpop.f32.mrb[5].mxu0  ;;  %v15005_v54 = vadd.f32 %v1511_v49, %v697_v29  ;;  %v2270_v49 = vld [vmem:[#allocation8 + $0x500] sm:$0xff] }
 0x1b6   :  { %v1584_v52 = vpop.f32.mrb[5].mxu1  ;;  %v1593_v58 = vadd.f32 %v1582_v50, %v705_v30  ;;  %v1592_v59 = vadd.f32 %v1513_v51, %v701_v31  ;;  %v15041_v50 = vpack.c.bf16 %v2277_v42, %v2273_v41  ;;  %v2274_v51 = vld [vmem:[#allocation8 + $0x520] sm:$0xff] }
 0x1b7   :  { %v1594_v63 = vadd.f32 %v1584_v52, %v709_v32  ;;  %v2272_v52 = vld [vmem:[#allocation8 + $0x510] sm:$0xff] }
 0x1cc   :  { %v1949_v53 = vpop.f32.mrb[6].mxu0 }
 0x1cd   :  { %v15007_v55 = vadd.f32 %v1949_v53, %v697_v29  ;;  %v2020_v56 = vpop.f32.mrb[6].mxu1  ;;  %v1951_v57 = vpop.f32.mrb[7].mxu0  ;;  %v2266_v29 = vld [vmem:[#allocation8 + $0x4e0] sm:$0xff]  ;;  %v2276_v53 = vld [vmem:[#allocation8 + $0x530] sm:$0xff] }
 0x1ce   :  { %v2031_v60 = vadd.f32 %v2020_v56, %v705_v30  ;;  %v2030_v61 = vadd.f32 %v1951_v57, %v701_v31  ;;  %v2022_v62 = vpop.f32.mrb[7].mxu1  ;;  %v2264_v30 = vld [vmem:[#allocation8 + $0x4d0] sm:$0xff]  ;;  %v15033_v31 = vpack.c.bf16 %v2266_v29, %v2262_v25  ;;  %v15044_v56 = vpack.c.bf16 %v2274_v51, %v2270_v49  ;;  %v2279_v57 = vld [vmem:[#allocation8 + $0x548] sm:$0xff]  ;;  %v2294_v49 = vld [vmem:[#allocation8 + $0x5c0] sm:$0xff] }
 0x1cf   :  { %v2032_v3 = vadd.f32 %v2022_v62, %v709_v32  ;;  %v2268_v32 = vld [vmem:[#allocation8 + $0x4f0] sm:$0xff]  ;;  %v2285_v62 = vld [vmem:[#allocation8 + $0x578] sm:$0xff]  ;;  %v2295_v29 = vld [vmem:[#allocation8 + $0x5c8] sm:$0xff] }
 0x1d0   :  { %v15011_v4 = vmax.f32 %v1592_v59, %v2030_v61  ;;  %v2039_v0 = vmax.f32 %v1593_v58, %v2031_v60  ;;  %v15037_v37 = vpack.c.bf16 %v2268_v32, %v2264_v30  ;;  %11536 = vmatpush1.bf16.msra.mxu0 %v15033_v31  ;;  %v2283_v58 = vld [vmem:[#allocation8 + $0x568] sm:$0xff]  ;;  %v2281_v59 = vld [vmem:[#allocation8 + $0x558] sm:$0xff]  ;;  %v15048_v60 = vpack.c.bf16 %v2276_v53, %v2272_v52  ;;  %v2292_v25 = vld [vmem:[#allocation8 + $0x5b0] sm:$0xff] }
 0x1d1   :  { %v2040_v6 = vmax.f32 %v1594_v63, %v2032_v3  ;;  %11538 = vmatprep.subr.bf16.mxu0 %v15039_v39  ;;  %v15050_v61 = vpack.c.bf16 %v2283_v58, %v2279_v57  ;;  %v2278_v63 = vld [vmem:[#allocation8 + $0x540] sm:$0xff]  ;;  %v2299_v30 = vld [vmem:[#allocation8 + $0x5e8] sm:$0xff]  ;;  %v2297_v32 = vld [vmem:[#allocation8 + $0x5d8] sm:$0xff]  ;;  %v15072_v41 = vpack.c.bf16 %v2292_v25, %v2288_v14 }
 0x1d2   :  { %2061 = vrot.lane.b32.xlu0 %v15011_v4, %s14443_s11  ;;  %11608 = vmatpush1.bf16.msra.mxu1 %v15037_v37  ;;  %v2282_v3 = vld [vmem:[#allocation8 + $0x560] sm:$0xff]  ;;  %v15074_v42 = vpack.c.bf16 %v2299_v30, %v2295_v29  ;;  %v2296_v52 = vld [vmem:[#allocation8 + $0x5d0] sm:$0xff]  ;;  %v15077_v53 = vpack.c.bf16 %v2301_v33, %v2297_v32  ;;  %v2303_v58 = vld [vmem:[#allocation8 + $0x608] sm:$0xff]  ;;  %v15092_v30 = vpack.c.bf16 %v2306_v11, %v2302_v8 }
 0x1d3   :  { %2065 = vrot.lane.b32.xlu1 %v2040_v6, %s14443_s11  ;;  %11610 = vmatprep.subr.bf16.mxu1 %v15041_v50  ;;  %v2280_v6 = vld [vmem:[#allocation8 + $0x550] sm:$0xff]  ;;  %v15056_v16 = vpack.c.bf16 %v2282_v3, %v2278_v63  ;;  %v2298_v51 = vld [vmem:[#allocation8 + $0x5e0] sm:$0xff]  ;;  %v2309_v63 = vld [vmem:[#allocation8 + $0x638] sm:$0xff]  ;;  %v15096_v32 = vpack.c.bf16 %v2308_v5, %v2304_v13 }
 0x1d4   :  { %11540 = vmatpush1.bf16.msra.mxu0 %v15044_v56  ;;  %v15060_v21 = vpack.c.bf16 %v2284_v7, %v2280_v6  ;;  %v2300_v57 = vld [vmem:[#allocation8 + $0x5f0] sm:$0xff]  ;;  %v15080_v3 = vpack.c.bf16 %v2298_v51, %v2294_v49  ;;  %v2315_v14 = vld [vmem:[#allocation8 + $0x668] sm:$0xff]  ;;  %v2313_v25 = vld [vmem:[#allocation8 + $0x658] sm:$0xff] }
 0x1d5   :  { %11542 = vmatprep.subr.bf16.mxu0 %v15050_v61  ;;  %v15084_v6 = vpack.c.bf16 %v2300_v57, %v2296_v52  ;;  %v2317_v29 = vld [vmem:[#allocation8 + $0x678] sm:$0xff]  ;;  %v15098_v33 = vpack.c.bf16 %v2315_v14, %v2311_v10  ;;  %v2310_v49 = vld [vmem:[#allocation8 + $0x640] sm:$0xff]  ;;  %v2312_v52 = vld [vmem:[#allocation8 + $0x650] sm:$0xff] }
 0x1d6   :  { %2063 = vrot.lane.b32.xlu0 %v2039_v0, %s14443_s11  ;;  %v15053_v0 = vpack.c.bf16 %v2285_v62, %v2281_v59  ;;  %11612 = vmatpush1.bf16.msra.mxu1 %v15048_v60  ;;  %v2307_v59 = vld [vmem:[#allocation8 + $0x628] sm:$0xff]  ;;  %v2305_v62 = vld [vmem:[#allocation8 + $0x618] sm:$0xff]  ;;  %v2314_v51 = vld [vmem:[#allocation8 + $0x660] sm:$0xff]  ;;  %v15101_v57 = vpack.c.bf16 %v2317_v29, %v2313_v25 }
 0x1d7   :  { %v15086_v7 = vpack.c.bf16 %v2307_v59, %v2303_v58  ;;  %v15089_v15 = vpack.c.bf16 %v2309_v63, %v2305_v62  ;;  %v2316_v58 = vld [vmem:[#allocation8 + $0x670] sm:$0xff]  ;;  %v2319_v59 = vld [vmem:[#allocation8 + $0x688] sm:$0xff]  ;;  %v2321_v63 = vld [vmem:[#allocation8 + $0x698] sm:$0xff]  ;;  %v15104_v11 = vpack.c.bf16 %v2314_v51, %v2310_v49 }
 0x1d8   :  { %11614 = vmatprep.subr.bf16.mxu1 %v15053_v0  ;;  %11544 = vmatpush1.bf16.msra.mxu0 %v15056_v16  ;;  %v2323_v62 = vld [vmem:[#allocation8 + $0x6a8] sm:$0xff]  ;;  %v2325_v8 = vld [vmem:[#allocation8 + $0x6b8] sm:$0xff]  ;;  %v15108_v13 = vpack.c.bf16 %v2316_v58, %v2312_v52  ;;  %v2318_v10 = vld [vmem:[#allocation8 + $0x680] sm:$0xff]  ;;  %v15122_v58 = vpack.c.bf16 %v2331_v46, %v2327_v48  ;;  %v15134_v46 = vpack.c.bf16 %v2339_v27, %v2335_v28 }
 0x1d9   :  { %11546 = vmatprep.subr.bf16.mxu0 %v15062_v22  ;;  %v15110_v5 = vpack.c.bf16 %v2323_v62, %v2319_v59  ;;  %v2322_v14 = vld [vmem:[#allocation8 + $0x6a0] sm:$0xff]  ;;  %v2320_v25 = vld [vmem:[#allocation8 + $0x690] sm:$0xff]  ;;  %v15113_v29 = vpack.c.bf16 %v2325_v8, %v2321_v63  ;;  %v2329_v49 = vld [vmem:[#allocation8 + $0x6d8] sm:$0xff] }
 0x1da   :  { %11616 = vmatpush1.bf16.msra.mxu1 %v15060_v21  ;;  %v2333_v51 = vld [vmem:[#allocation8 + $0x6f8] sm:$0xff]  ;;  %v15116_v2 = vpack.c.bf16 %v2322_v14, %v2318_v10  ;;  %v15120_v52 = vpack.c.bf16 %v2324_v44, %v2320_v25  ;;  %17762 = vst [vmem:[#allocation32_spill] sm:$0xff] %v15122_v58  ;;  %v2326_v59 = vld [vmem:[#allocation8 + $0x6c0] sm:$0xff]  ;;  %v2328_v63 = vld [vmem:[#allocation8 + $0x6d0] sm:$0xff] }
 0x1db   :  { %11618 = vmatprep.subr.bf16.mxu1 %v15065_v18  ;;  %17759 = vst [vmem:[#allocation29_spill] sm:$0xff] %v15113_v29  ;;  %v2330_v62 = vld [vmem:[#allocation8 + $0x6e0] sm:$0xff]  ;;  %v15125_v8 = vpack.c.bf16 %v2333_v51, %v2329_v49  ;;  %v2337_v10 = vld [vmem:[#allocation8 + $0x718] sm:$0xff]  ;;  %v15132_v44 = vpack.c.bf16 %v2332_v1, %v2328_v63  ;;  %17766 = vst [vmem:[#allocation36_spill] sm:$0xff] %v15134_v46 }
 0x1dc   :  { %11548 = vmatpush1.bf16.msra.mxu0 %v15068_v36  ;;  %17760 = vst [vmem:[#allocation30_spill] sm:$0xff] %v15116_v2  ;;  %17761 = vst [vmem:[#allocation31_spill] sm:$0xff] %v15120_v52  ;;  %v2341_v14 = vld [vmem:[#allocation8 + $0x738] sm:$0xff]  ;;  %v15128_v26 = vpack.c.bf16 %v2330_v62, %v2326_v59  ;;  %v2334_v48 = vld [vmem:[#allocation8 + $0x700] sm:$0xff] }
 0x1dd   :  { %11550 = vmatprep.subr.bf16.mxu0 %v15074_v42  ;;  %17763 = vst [vmem:[#allocation33_spill] sm:$0xff] %v15125_v8  ;;  %17765 = vst [vmem:[#allocation35_spill] sm:$0xff] %v15132_v44  ;;  %v2338_v25 = vld [vmem:[#allocation8 + $0x720] sm:$0xff]  ;;  %v2336_v49 = vld [vmem:[#allocation8 + $0x710] sm:$0xff]  ;;  %v15137_v51 = vpack.c.bf16 %v2341_v14, %v2337_v10 }
 0x1de   :  { %11620 = vmatpush1.bf16.msra.mxu1 %v15072_v41  ;;  %17764 = vst [vmem:[#allocation34_spill] sm:$0xff] %v15128_v26  ;;  %v2345_v59 = vld [vmem:[#allocation8 + $0x758] sm:$0xff]  ;;  %v15144_v1 = vpack.c.bf16 %v2340_v24, %v2336_v49  ;;  %v2342_v28 = vld [vmem:[#allocation8 + $0x740] sm:$0xff]  ;;  %v2344_v10 = vld [vmem:[#allocation8 + $0x750] sm:$0xff] }
 0x1df   :  { %11622 = vmatprep.subr.bf16.mxu1 %v15077_v53  ;;  %17767 = vst [vmem:[#allocation37_spill] sm:$0xff] %v15137_v51  ;;  %v2349_v62 = vld [vmem:[#allocation8 + $0x778] sm:$0xff]  ;;  %v2346_v63 = vld [vmem:[#allocation8 + $0x760] sm:$0xff] }
 0x1e0   :  { %11552 = vmatpush1.bf16.msra.mxu0 %v15080_v3  ;;  %17769 = vst [vmem:[#allocation39_spill] sm:$0xff] %v15144_v1  ;;  %v15149_v14 = vpack.c.bf16 %v2349_v62, %v2345_v59  ;;  %v2354_v49 = vld [vmem:[#allocation8 + $0x7a0] sm:$0xff]  ;;  %v2352_v59 = vld [vmem:[#allocation8 + $0x790] sm:$0xff] }
 0x1e1   :  { %11554 = vmatprep.subr.bf16.mxu0 %v15086_v7 }
 0x1e2   :  { %11624 = vmatpush1.bf16.msra.mxu1 %v15084_v6  ;;  %17770 = vst [vmem:[#allocation40_spill] sm:$0xff] %v15149_v14 }
 0x1e3   :  { %11626 = vmatprep.subr.bf16.mxu1 %v15089_v15 }
 0x1e4   :  { %11556 = vmatpush1.bf16.msra.mxu0 %v15092_v30 }
 0x1e5   :  { %11558 = vmatprep.subr.bf16.mxu0 %v15098_v33 }
 0x1e6   :  { %11628 = vmatpush1.bf16.msra.mxu1 %v15096_v32 }
 0x1e7   :  { %11630 = vmatprep.subr.bf16.mxu1 %v15101_v57 }
 0x1e8   :  { %11560 = vmatpush1.bf16.msra.mxu0 %v15104_v11 }
 0x1e9   :  { %11562 = vmatprep.subr.bf16.mxu0 %v15110_v5 }
 0x1ea   :  { %11632 = vmatpush1.bf16.msra.mxu1 %v15108_v13 }
 0x1eb   :  { %11634 = vmatprep.subr.bf16.mxu1 %v15113_v29  ;;  %v2343_v29 = vld [vmem:[#allocation8 + $0x748] sm:$0xff] }
 0x1ec   :  { %11564 = vmatpush1.bf16.msra.mxu0 %v15116_v2  ;;  %v2347_v2 = vld [vmem:[#allocation8 + $0x768] sm:$0xff] }
 0x1ed   :  { %11566 = vmatprep.subr.bf16.mxu0 %v15122_v58  ;;  %v15146_v27 = vpack.c.bf16 %v2347_v2, %v2343_v29  ;;  %v2351_v58 = vld [vmem:[#allocation8 + $0x788] sm:$0xff]  ;;  %v2350_v29 = vld [vmem:[#allocation8 + $0x780] sm:$0xff] }
 0x1ee   :  { %11636 = vmatpush1.bf16.msra.mxu1 %v15120_v52  ;;  %v15140_v52 = vpack.c.bf16 %v2338_v25, %v2334_v48  ;;  %v2353_v48 = vld [vmem:[#allocation8 + $0x798] sm:$0xff] }
 0x1ef   :  { %11638 = vmatprep.subr.bf16.mxu1 %v15125_v8  ;;  %v2348_v8 = vld [vmem:[#allocation8 + $0x770] sm:$0xff]  ;;  %v2357_v25 = vld [vmem:[#allocation8 + $0x7b8] sm:$0xff] }
 0x1f0   :  { %11568 = vmatpush1.bf16.msra.mxu0 %v15128_v26  ;;  %17768 = vst [vmem:[#allocation38_spill] sm:$0xff] %v15140_v52  ;;  %v2355_v26 = vld [vmem:[#allocation8 + $0x7a8] sm:$0xff]  ;;  %v15156_v24 = vpack.c.bf16 %v2348_v8, %v2344_v10  ;;  %v15161_v62 = vpack.c.bf16 %v2357_v25, %v2353_v48  ;;  %v2358_v8 = vld [vmem:[#allocation8 + $0x7c0] sm:$0xff]  ;;  %v2360_v25 = vld [vmem:[#allocation8 + $0x7d0] sm:$0xff] }
 0x1f1   :  { %11570 = vmatprep.subr.bf16.mxu0 %v15134_v46  ;;  %v15158_v2 = vpack.c.bf16 %v2355_v26, %v2351_v58  ;;  %v2359_v46 = vld [vmem:[#allocation8 + $0x7c8] sm:$0xff]  ;;  %v2362_v10 = vld [vmem:[#allocation8 + $0x7e0] sm:$0xff] }
 0x1f2   :  { %11640 = vmatpush1.bf16.msra.mxu1 %v15132_v44  ;;  %v15152_v44 = vpack.c.bf16 %v2346_v63, %v2342_v28  ;;  %17772 = vst [vmem:[#allocation42_spill] sm:$0xff] %v15161_v62  ;;  %v2361_v28 = vld [vmem:[#allocation8 + $0x7d8] sm:$0xff] }
 0x1f3   :  { %11642 = vmatprep.subr.bf16.mxu1 %v15137_v51  ;;  %17771 = vst [vmem:[#allocation41_spill] sm:$0xff] %v15158_v2  ;;  %v2356_v51 = vld [vmem:[#allocation8 + $0x7b0] sm:$0xff]  ;;  %v2365_v63 = vld [vmem:[#allocation8 + $0x7f8] sm:$0xff] }
 0x1f4   :  { %11572 = vmatpush1.bf16.msra.mxu0 %v15140_v52  ;;  %v2363_v52 = vld [vmem:[#allocation8 + $0x7e8] sm:$0xff]  ;;  %v15168_v26 = vpack.c.bf16 %v2356_v51, %v2352_v59  ;;  %v15173_v48 = vpack.c.bf16 %v2365_v63, %v2361_v28  ;;  %v2373_v63 = vld [vmem:[#allocation8 + $0x838] sm:$0xff] }
 0x1f5   :  { %11574 = vmatprep.subr.bf16.mxu0 %v15146_v27  ;;  %v15170_v58 = vpack.c.bf16 %v2363_v52, %v2359_v46  ;;  %v2367_v52 = vld [vmem:[#allocation8 + $0x808] sm:$0xff] }
 0x1f6   :  { %11644 = vmatpush1.bf16.msra.mxu1 %v15144_v1  ;;  %v15164_v1 = vpack.c.bf16 %v2354_v49, %v2350_v29  ;;  %17774 = vst [vmem:[#allocation44_spill] sm:$0xff] %v15168_v26  ;;  %17776 = vst [vmem:[#allocation46_spill] sm:$0xff] %v15173_v48  ;;  %v15176_v29 = vpack.c.bf16 %v2362_v10, %v2358_v8  ;;  %v2371_v46 = vld [vmem:[#allocation8 + $0x828] sm:$0xff]  ;;  %v2369_v49 = vld [vmem:[#allocation8 + $0x818] sm:$0xff] }
 0x1f7   :  { %11646 = vmatprep.subr.bf16.mxu1 %v15149_v14  ;;  %17775 = vst [vmem:[#allocation45_spill] sm:$0xff] %v15170_v58  ;;  %v2364_v14 = vld [vmem:[#allocation8 + $0x7f0] sm:$0xff]  ;;  %v15185_v28 = vpack.c.bf16 %v2371_v46, %v2367_v52  ;;  %v2366_v8 = vld [vmem:[#allocation8 + $0x800] sm:$0xff]  ;;  %v2379_v52 = vld [vmem:[#allocation8 + $0x868] sm:$0xff] }
 0x1f8   :  { %11576 = vmatpush1.bf16.msra.mxu0 %v15152_v44  ;;  %17773 = vst [vmem:[#allocation43_spill] sm:$0xff] %v15164_v1  ;;  %17777 = vst [vmem:[#allocation47_spill] sm:$0xff] %v15176_v29  ;;  %v15180_v51 = vpack.c.bf16 %v2364_v14, %v2360_v25  ;;  %v2370_v10 = vld [vmem:[#allocation8 + $0x820] sm:$0xff]  ;;  %v2368_v14 = vld [vmem:[#allocation8 + $0x810] sm:$0xff] }
 0x1f9   :  { %11578 = vmatprep.subr.bf16.mxu0 %v15158_v2  ;;  %17779 = vst [vmem:[#allocation49_spill] sm:$0xff] %v15185_v28  ;;  %v2372_v25 = vld [vmem:[#allocation8 + $0x830] sm:$0xff]  ;;  %v2377_v46 = vld [vmem:[#allocation8 + $0x858] sm:$0xff] }
 0x1fa   :  { %11648 = vmatpush1.bf16.msra.mxu1 %v15156_v24  ;;  %17778 = vst [vmem:[#allocation48_spill] sm:$0xff] %v15180_v51 }
 0x1fb   :  { %11650 = vmatprep.subr.bf16.mxu1 %v15161_v62  ;;  %v2380_v62 = vld [vmem:[#allocation8 + $0x870] sm:$0xff] }
 0x1fc   :  { %11580 = vmatpush1.bf16.msra.mxu0 %v15164_v1 }
 0x1fd   :  { %11582 = vmatprep.subr.bf16.mxu0 %v15170_v58  ;;  %v15189_v58 = vpack.c.bf16 %v2370_v10, %v2366_v8  ;;  %v2374_v8 = vld [vmem:[#allocation8 + $0x840] sm:$0xff] }
 0x1fe   :  { %11652 = vmatpush1.bf16.msra.mxu1 %v15168_v26  ;;  %v15187_v26 = vpack.c.bf16 %v2373_v63, %v2369_v49  ;;  %v2381_v63 = vld [vmem:[#allocation8 + $0x878] sm:$0xff]  ;;  %v2378_v10 = vld [vmem:[#allocation8 + $0x860] sm:$0xff] }
 0x1ff   :  { %11654 = vmatprep.subr.bf16.mxu1 %v15173_v48  ;;  %17781 = vst [vmem:[#allocation51_spill] sm:$0xff] %v15189_v58 }
 0x200   :  { %11584 = vmatpush1.bf16.msra.mxu0 %v15176_v29  ;;  %17780 = vst [vmem:[#allocation50_spill] sm:$0xff] %v15187_v26  ;;  %v15192_v29 = vpack.c.bf16 %v2372_v25, %v2368_v14  ;;  %v15201_v25 = vpack.c.bf16 %v2381_v63, %v2377_v46 }
 0x201   :  { %11586 = vmatprep.subr.bf16.mxu0 %v15185_v28 }
 0x202   :  { %11656 = vmatpush1.bf16.msra.mxu1 %v15180_v51  ;;  %17782 = vst [vmem:[#allocation52_spill] sm:$0xff] %v15192_v29  ;;  %v2375_v51 = vld [vmem:[#allocation8 + $0x848] sm:$0xff] }
 0x203   :  { %11658 = vmatprep.subr.bf16.mxu1 %v15187_v26  ;;  %v15197_v49 = vpack.c.bf16 %v2379_v52, %v2375_v51  ;;  %v15203_v26 = vpack.c.bf16 %v2378_v10, %v2374_v8 }
 0x204   :  { %11588 = vmatpush1.bf16.msra.mxu0 %v15189_v58  ;;  %v2376_v58 = vld [vmem:[#allocation8 + $0x850] sm:$0xff] }
 0x205   :  { %11590 = vmatprep.subr.bf16.mxu0 %v15197_v49  ;;  %v15210_v52 = vpack.c.bf16 %v2380_v62, %v2376_v58  ;;  %v2389_v62 = vld [vmem:[#allocation8 + $0x8b8] sm:$0xff]  ;;  %v17786_v58 = vmax.f32 %v14981_v38, %v14983_v40 }
 0x206   :  { %11660 = vmatpush1.bf16.msra.mxu1 %v15192_v29  ;;  %v17783_v29 = vmax.f32 %v15005_v54, %v15007_v55  ;;  %v2383_v54 = vld [vmem:[#allocation8 + $0x888] sm:$0xff] }
 0x207   :  { %17784 = vst [vmem:[#allocation53_spill] sm:$0xff] %v15210_v52  ;;  %11662 = vmatprep.subr.bf16.mxu1 %v15201_v25  ;;  %v2387_v55 = vld [vmem:[#allocation8 + $0x8a8] sm:$0xff] }
 0x208   :  { %11592 = vmatpush1.bf16.msra.mxu0 %v15203_v26 }
 0x20a   :  { %11664 = vmatpush1.bf16.msra.mxu1 %v15210_v52 }
 0x244   :  { %v2062_v59 = vpop.permute.xlu0 %2061 }
 0x245   :  { %v2066_v48 = vpop.permute.xlu1 %2065 }
 0x248   :  { %v2064_v1 = vpop.permute.xlu0 %2063 }
 0x249   :  { %v2067_v28 = vsel %vm136_vm4, %v2062_v59, %v2064_v1  ;;  %v2068_v14 = vsel %vm136_vm4, %v2064_v1, %v2066_v48 }
 0x24a   :  { %v2072_v2 = vmax.f32 %v15011_v4, %v2068_v14  ;;  %v2071_v51 = vmax.f32 %v17783_v29, %v2067_v28  ;;  %v2385_v4 = vld [vmem:[#allocation8 + $0x898] sm:$0xff]  ;;  %v15217_v29 = vpack.c.bf16 %v2387_v55, %v2383_v54  ;;  %v17788_v28 = vmax.f32 %v14985_v43, %v14989_v45  ;;  %v2388_v45 = vld [vmem:[#allocation8 + $0x8b0] sm:$0xff]  ;;  %v2395_v54 = vld [vmem:[#allocation8 + $0x8e8] sm:$0xff] }
 0x24b   :  { %v2393_v55 = vld [vmem:[#allocation8 + $0x8d8] sm:$0xff] }
 0x24c   :  { %v2074_v1 = vmax.f32 %v2072_v2, 0.0  ;;  %v2073_v48 = vmax.f32 %v2071_v51, 0.0  ;;  %17785 = vst [vmem:[#allocation54_spill] sm:$0xff] %v15217_v29  ;;  %v15225_v2 = vpack.c.bf16 %v2389_v62, %v2385_v4  ;;  %11594 = vmatprep.subr.bf16.mxu0 %v15217_v29  ;;  %v2382_v51 = vld [vmem:[#allocation8 + $0x880] sm:$0xff]  ;;  %v2397_v4 = vld [vmem:[#allocation8 + $0x8f8] sm:$0xff] }
 0x24e   :  { %v2092_v59 = vrot.slane %v2074_v1, 7  ;;  %v2091_v46 = vrot.slane %v2073_v48, 7  ;;  %17787 = vst [vmem:[#allocation55_spill] sm:$0xff] %v15225_v2  ;;  %11666 = vmatprep.subr.bf16.mxu1 %v15225_v2  ;;  %v2386_v1 = vld [vmem:[#allocation8 + $0x8a0] sm:$0xff]  ;;  %v2384_v48 = vld [vmem:[#allocation8 + $0x890] sm:$0xff] }
 0x24f   :  { %v15242_v2 = vpack.c.bf16 %v2388_v45, %v2384_v48 }
 0x250   :  { %2095 = vrot.lane.b32.xlu0 %v2092_v59, %s14443_s11  ;;  %2093 = vrot.lane.b32.xlu1 %v2091_v46, %s14443_s11  ;;  %v17789_v59 = vmax.f32 %v14977_v34, %v14979_v35  ;;  %v2391_v46 = vld [vmem:[#allocation8 + $0x8c8] sm:$0xff]  ;;  %v2392_v34 = vld [vmem:[#allocation8 + $0x8d0] sm:$0xff] }
 0x251   :  { %17791 = vst [vmem:[#allocation57_spill] sm:$0xff] %v15242_v2  ;;  %v15244_v29 = vpack.c.bf16 %v2395_v54, %v2391_v46  ;;  %v2396_v35 = vld [vmem:[#allocation8 + $0x8f0] sm:$0xff]  ;;  %v2106_v54 = vld [vmem:[#allocation8] sm:$0xff] }
 0x253   :  { %17792 = vst [vmem:[#allocation58_spill] sm:$0xff] %v15244_v29 }
 0x254   :  { %2046 = vrot.lane.b32.xlu0 %v17786_v58, %s14443_s11  ;;  %2044 = vrot.lane.b32.xlu1 %v14993_v47, %s14443_s11 }
 0x258   :  { %2048 = vrot.lane.b32.xlu1 %v17788_v28, %s14443_s11  ;;  %v15239_v28 = vpack.c.bf16 %v2386_v1, %v2382_v51  ;;  %v2107_v51 = vld [vmem:[#allocation8 + $0x8] sm:$0xff] }
 0x259   :  { %v2111_v1 = vld [vmem:[#allocation8 + $0x28] sm:$0xff] }
 0x25a   :  { %17790 = vst [vmem:[#allocation56_spill] sm:$0xff] %v15239_v28  ;;  %v15257_v46 = vpack.c.bf16 %v2111_v1, %v2107_v51 }
 0x25c   :  { %17796 = vst [vmem:[#allocation62_spill] sm:$0xff] %v15257_v46 }
 0x2c2   :  { %v2096_v63 = vpop.permute.xlu0 %2095  ;;  %v2094_v8 = vpop.permute.xlu1 %2093 }
 0x2c3   :  { %v2097_v38 = vsel %vm136_vm4, %v2094_v8, %v2096_v63  ;;  %2101 = vst.msk [vmem:[#allocation2 + $0x30] sm:$0xfe] %vm2086_vm5, %v2094_v8  ;;  %v2390_v63 = vld [vmem:[#allocation8 + $0x8c0] sm:$0xff] }
 0x2c4   :  { %2102 = vst [vmem:[#allocation2 + $0x38] sm:$0xfe] %v2097_v38  ;;  %v2394_v8 = vld [vmem:[#allocation8 + $0x8e0] sm:$0xff] }
 0x2c5   :  { %v15251_v45 = vpack.c.bf16 %v2394_v8, %v2390_v63  ;;  %v2112_v63 = vld [vmem:[#allocation8 + $0x30] sm:$0xff]  ;;  %v2115_v8 = vld [vmem:[#allocation8 + $0x48] sm:$0xff] }
 0x2c6   :  { %v2047_v40 = vpop.permute.xlu0 %2046  ;;  %v2045_v10 = vpop.permute.xlu1 %2044 }
 0x2c7   :  { %v2050_v14 = vsel %vm136_vm4, %v2045_v10, %v2047_v40  ;;  %17794 = vst [vmem:[#allocation60_spill] sm:$0xff] %v15251_v45 }
 0x2c8   :  { %v2054_v43 = vmax.f32 %v17789_v59, %v2050_v14 }
 0x2ca   :  { %v2049_v62 = vpop.permute.xlu1 %2048  ;;  %v2056_v58 = vmax.f32 %v2054_v43, 0.0  ;;  %v2250_v14 = vld [vmem:[#allocation2 + $0x30] sm:$0xff]  ;;  %v15247_v43 = vpack.c.bf16 %v2397_v4, %v2393_v55  ;;  %v2110_v55 = vld [vmem:[#allocation8 + $0x20] sm:$0xff] }
 0x2cb   :  { %v2051_v38 = vsel %vm136_vm4, %v2047_v40, %v2049_v62  ;;  %v2251_v10 = vld [vmem:[#allocation2 + $0x38] sm:$0xff] }
 0x2cc   :  { %2465 = vmatprep.mubr.f32.mxu0 %v2251_v10  ;;  %2607 = vmatprep.mubr.f32.mxu1 %v2251_v10  ;;  %v2077_v59 = vrot.slane %v2056_v58, 7  ;;  %v2055_v52 = vmax.f32 %v14993_v47, %v2051_v38  ;;  %17793 = vst [vmem:[#allocation59_spill] sm:$0xff] %v15247_v43  ;;  %v2109_v40 = vld [vmem:[#allocation8 + $0x18] sm:$0xff]  ;;  %v15255_v47 = vpack.c.bf16 %v2396_v35, %v2392_v34  ;;  %v2108_v4 = vld [vmem:[#allocation8 + $0x10] sm:$0xff]  ;;  %v2119_v10 = vld [vmem:[#allocation8 + $0x68] sm:$0xff] }
 0x2cd   :  { %2466 = vmatmul.mubr.f32.vlgmr.msra.gmra.mrb[8].mxu0 %v2250_v14  ;;  %2608 = vmatmul.mubr.f32.vlgmr.msra.gmra.mrb[8].mxu1 %v2250_v14  ;;  %v2113_v62 = vld [vmem:[#allocation8 + $0x38] sm:$0xff]  ;;  %v15272_v51 = vpack.c.bf16 %v2112_v63, %v2108_v4  ;;  %v15274_v1 = vpack.c.bf16 %v2119_v10, %v2115_v8  ;;  %v2122_v10 = vld [vmem:[#allocation8 + $0x80] sm:$0xff] }
 0x2ce   :  { %2079 = vrot.lane.b32.xlu0 %v2077_v59, %s14443_s11  ;;  %v2057_v48 = vmax.f32 %v2055_v52, 0.0  ;;  %11596 = vmatpush1.bf16.msra.mxu0 %v15239_v28  ;;  %17795 = vst [vmem:[#allocation61_spill] sm:$0xff] %v15255_v47  ;;  %v15260_v38 = vld [vmem:[#allocation2] sm:$0xff]  ;;  %v15263_v52 = vpack.c.bf16 %v2113_v62, %v2109_v40  ;;  %v15268_v59 = vpack.c.bf16 %v2110_v55, %v2106_v54 }
 0x2cf   :  { %11668 = vmatpush1.bf16.msra.mxu1 %v15242_v2  ;;  %11598 = vmatprep.subr.bf16.mxu0 %v15244_v29  ;;  %v2117_v34 = vld [vmem:[#allocation8 + $0x58] sm:$0xff]  ;;  %17799 = vst [vmem:[#allocation65_spill] sm:$0xff] %v15272_v51  ;;  %17800 = vst [vmem:[#allocation66_spill] sm:$0xff] %v15274_v1  ;;  %v2114_v40 = vld [vmem:[#allocation8 + $0x40] sm:$0xff] }
 0x2d0   :  { %v2078_v58 = vrot.slane %v2057_v48, 7  ;;  %11670 = vmatprep.subr.bf16.mxu1 %v15247_v43  ;;  %2536 = vmatprep.mubr.f32.mxu0 %v15260_v38  ;;  %17797 = vst [vmem:[#allocation63_spill] sm:$0xff] %v15263_v52  ;;  %v2121_v35 = vld [vmem:[#allocation8 + $0x78] sm:$0xff]  ;;  %17798 = vst [vmem:[#allocation64_spill] sm:$0xff] %v15268_v59  ;;  %v2118_v62 = vld [vmem:[#allocation8 + $0x60] sm:$0xff] }
 0x2d1   :  { %2678 = vmatprep.mubr.f32.mxu1 %v15260_v38  ;;  %v2252_v14 = vld [vmem:[#allocation2 + $0x40] sm:$0xff]  ;;  %v2116_v48 = vld [vmem:[#allocation8 + $0x50] sm:$0xff]  ;;  %v15277_v43 = vpack.c.bf16 %v2121_v35, %v2117_v34  ;;  %v2127_v29 = vld [vmem:[#allocation8 + $0xa8] sm:$0xff]  ;;  %v15282_v4 = vpack.c.bf16 %v2118_v62, %v2114_v40  ;;  %141 = vst.msk [vmem:[#allocation2 + $0x28] sm:$0x1] %vm140_vm6, %v15260_v38 }
 0x2d2   :  { %2081 = vrot.lane.b32.xlu1 %v2078_v58, %s14443_s11  ;;  %11600 = vmatpush1.bf16.msra.mxu0 %v15251_v45  ;;  %v2120_v58 = vld [vmem:[#allocation8 + $0x70] sm:$0xff]  ;;  %v2123_v45 = vld [vmem:[#allocation8 + $0x88] sm:$0xff]  ;;  %v2125_v54 = vld [vmem:[#allocation8 + $0x98] sm:$0xff]  ;;  %147 = vst.msk [vmem:[#allocation2 + $0x58] sm:$0x1] %vm140_vm6, %v15260_v38 }
 0x2d3   :  { %11672 = vmatpush1.bf16.msra.mxu1 %v15255_v47  ;;  %11674 = vmatprep.subr.bf16.mxu0 %v15257_v46  ;;  %17801 = vst [vmem:[#allocation67_spill] sm:$0xff] %v15277_v43  ;;  %v2129_v55 = vld [vmem:[#allocation8 + $0xb8] sm:$0xff]  ;;  %17802 = vst [vmem:[#allocation68_spill] sm:$0xff] %v15282_v4  ;;  %v15286_v63 = vpack.c.bf16 %v2120_v58, %v2116_v48  ;;  %v15288_v8 = vpack.c.bf16 %v2127_v29, %v2123_v45  ;;  %v2126_v34 = vld [vmem:[#allocation8 + $0xa0] sm:$0xff] }
 0x2d4   :  { %11746 = vmatprep.subr.bf16.mxu1 %v15263_v52  ;;  %v2124_v35 = vld [vmem:[#allocation8 + $0x90] sm:$0xff]  ;;  %v15291_v52 = vpack.c.bf16 %v2129_v55, %v2125_v54  ;;  %v2131_v46 = vld [vmem:[#allocation8 + $0xc8] sm:$0xff]  ;;  %v2133_v40 = vld [vmem:[#allocation8 + $0xd8] sm:$0xff]  ;;  %153 = vst.msk [vmem:[#allocation2 + $0x88] sm:$0x1] %vm140_vm6, %v15260_v38 }
 0x2d5   :  { %10523 = vmatmul.mubr.msk.f32.vlgmr.msra.gmra.mrb[8].mxu0 %vm136_vm4, %v2252_v14  ;;  %17803 = vst [vmem:[#allocation69_spill] sm:$0xff] %v15286_v63  ;;  %17804 = vst [vmem:[#allocation70_spill] sm:$0xff] %v15288_v8  ;;  %v2137_v62 = vld [vmem:[#allocation8 + $0xf8] sm:$0xff]  ;;  %v2130_v48 = vld [vmem:[#allocation8 + $0xc0] sm:$0xff] }
 0x2d6   :  { %10524 = vmatmul.mubr.msk.f32.vlgmr.msra.gmra.mrb[8].mxu1 %vm136_vm4, %v2252_v14  ;;  %11676 = vmatpush1.bf16.msra.mxu0 %v15268_v59  ;;  %17805 = vst [vmem:[#allocation71_spill] sm:$0xff] %v15291_v52  ;;  %v2128_v14 = vld [vmem:[#allocation8 + $0xb0] sm:$0xff]  ;;  %v2135_v59 = vld [vmem:[#allocation8 + $0xe8] sm:$0xff]  ;;  %v2134_v58 = vld [vmem:[#allocation8 + $0xe0] sm:$0xff]  ;;  %v15303_v55 = vpack.c.bf16 %v2137_v62, %v2133_v40 }
 0x2d7   :  { %11748 = vmatpush1.bf16.msra.mxu1 %v15272_v51  ;;  %11678 = vmatprep.subr.bf16.mxu0 %v15274_v1  ;;  %v15294_v51 = vpack.c.bf16 %v2126_v34, %v2122_v10  ;;  %v15298_v29 = vpack.c.bf16 %v2128_v14, %v2124_v35  ;;  %v15300_v45 = vpack.c.bf16 %v2135_v59, %v2131_v46  ;;  %v2132_v54 = vld [vmem:[#allocation8 + $0xd0] sm:$0xff]  ;;  %v2139_v1 = vld [vmem:[#allocation8 + $0x108] sm:$0xff]  ;;  %v2141_v10 = vld [vmem:[#allocation8 + $0x118] sm:$0xff] }
 0x2d8   :  { %11750 = vmatprep.subr.bf16.mxu1 %v15277_v43  ;;  %17809 = vst [vmem:[#allocation75_spill] sm:$0xff] %v15303_v55  ;;  %v2136_v43 = vld [vmem:[#allocation8 + $0xf0] sm:$0xff]  ;;  %v2145_v34 = vld [vmem:[#allocation8 + $0x138] sm:$0xff]  ;;  %v2138_v35 = vld [vmem:[#allocation8 + $0x100] sm:$0xff] }
 0x2d9   :  { %17806 = vst [vmem:[#allocation72_spill] sm:$0xff] %v15294_v51  ;;  %17807 = vst [vmem:[#allocation73_spill] sm:$0xff] %v15298_v29  ;;  %v15310_v46 = vpack.c.bf16 %v2136_v43, %v2132_v54  ;;  %v2142_v14 = vld [vmem:[#allocation8 + $0x120] sm:$0xff]  ;;  %v2140_v40 = vld [vmem:[#allocation8 + $0x110] sm:$0xff]  ;;  %v15315_v62 = vpack.c.bf16 %v2145_v34, %v2141_v10 }
 0x2da   :  { %11680 = vmatpush1.bf16.msra.mxu0 %v15282_v4  ;;  %17808 = vst [vmem:[#allocation74_spill] sm:$0xff] %v15300_v45  ;;  %v2143_v4 = vld [vmem:[#allocation8 + $0x128] sm:$0xff]  ;;  %v2150_v54 = vld [vmem:[#allocation8 + $0x160] sm:$0xff]  ;;  %v2148_v10 = vld [vmem:[#allocation8 + $0x150] sm:$0xff] }
 0x2db   :  { %11752 = vmatpush1.bf16.msra.mxu1 %v15286_v63  ;;  %11682 = vmatprep.subr.bf16.mxu0 %v15288_v8  ;;  %v15306_v63 = vpack.c.bf16 %v2134_v58, %v2130_v48  ;;  %17811 = vst [vmem:[#allocation77_spill] sm:$0xff] %v15310_v46  ;;  %v15312_v59 = vpack.c.bf16 %v2143_v4, %v2139_v1  ;;  %17813 = vst [vmem:[#allocation79_spill] sm:$0xff] %v15315_v62  ;;  %v2147_v8 = vld [vmem:[#allocation8 + $0x148] sm:$0xff]  ;;  %v2149_v48 = vld [vmem:[#allocation8 + $0x158] sm:$0xff] }
 0x2dc   :  { %11754 = vmatprep.subr.bf16.mxu1 %v15291_v52  ;;  %v2144_v52 = vld [vmem:[#allocation8 + $0x130] sm:$0xff]  ;;  %v2153_v58 = vld [vmem:[#allocation8 + $0x178] sm:$0xff]  ;;  %v2146_v4 = vld [vmem:[#allocation8 + $0x140] sm:$0xff]  ;;  %159 = vst.msk [vmem:[#allocation2 + $0xb8] sm:$0x1] %vm140_vm6, %v15260_v38 }
 0x2dd   :  { %17810 = vst [vmem:[#allocation76_spill] sm:$0xff] %v15306_v63  ;;  %17812 = vst [vmem:[#allocation78_spill] sm:$0xff] %v15312_v59  ;;  %v15322_v43 = vpack.c.bf16 %v2144_v52, %v2140_v40  ;;  %v15327_v34 = vpack.c.bf16 %v2153_v58, %v2149_v48  ;;  %v2158_v40 = vld [vmem:[#allocation8 + $0x1a0] sm:$0xff]  ;;  %v2156_v48 = vld [vmem:[#allocation8 + $0x190] sm:$0xff] }
 0x2de   :  { %11684 = vmatpush1.bf16.msra.mxu0 %v15294_v51  ;;  %v2151_v51 = vld [vmem:[#allocation8 + $0x168] sm:$0xff]  ;;  %v2986_v47 = vld [vmem:[#allocation8 + $0x938] sm:$0xff] }
 0x2df   :  { %11756 = vmatpush1.bf16.msra.mxu1 %v15298_v29  ;;  %11686 = vmatprep.subr.bf16.mxu0 %v15300_v45  ;;  %v15318_v29 = vpack.c.bf16 %v2142_v14, %v2138_v35  ;;  %17815 = vst [vmem:[#allocation81_spill] sm:$0xff] %v15322_v43  ;;  %v15324_v1 = vpack.c.bf16 %v2151_v51, %v2147_v8  ;;  %17817 = vst [vmem:[#allocation83_spill] sm:$0xff] %v15327_v34  ;;  %v2155_v45 = vld [vmem:[#allocation8 + $0x188] sm:$0xff]  ;;  %v2157_v35 = vld [vmem:[#allocation8 + $0x198] sm:$0xff] }
 0x2e0   :  { %11758 = vmatprep.subr.bf16.mxu1 %v15303_v55  ;;  %v2152_v55 = vld [vmem:[#allocation8 + $0x170] sm:$0xff]  ;;  %v2161_v14 = vld [vmem:[#allocation8 + $0x1b8] sm:$0xff]  ;;  %v2154_v8 = vld [vmem:[#allocation8 + $0x180] sm:$0xff] }
 0x2e1   :  { %17814 = vst [vmem:[#allocation80_spill] sm:$0xff] %v15318_v29  ;;  %17816 = vst [vmem:[#allocation82_spill] sm:$0xff] %v15324_v1  ;;  %v15334_v52 = vpack.c.bf16 %v2152_v55, %v2148_v10  ;;  %v15339_v58 = vpack.c.bf16 %v2161_v14, %v2157_v35  ;;  %v2162_v55 = vld [vmem:[#allocation8 + $0x1c0] sm:$0xff]  ;;  %v2164_v35 = vld [vmem:[#allocation8 + $0x1d0] sm:$0xff] }
 0x2e2   :  { %11688 = vmatpush1.bf16.msra.mxu0 %v15306_v63  ;;  %v2159_v63 = vld [vmem:[#allocation8 + $0x1a8] sm:$0xff]  ;;  %v2166_v10 = vld [vmem:[#allocation8 + $0x1e0] sm:$0xff] }
 0x2e3   :  { %11760 = vmatpush1.bf16.msra.mxu1 %v15310_v46  ;;  %11690 = vmatprep.subr.bf16.mxu0 %v15312_v59  ;;  %v15330_v46 = vpack.c.bf16 %v2150_v54, %v2146_v4  ;;  %17819 = vst [vmem:[#allocation85_spill] sm:$0xff] %v15334_v52  ;;  %v15336_v51 = vpack.c.bf16 %v2159_v63, %v2155_v45  ;;  %17821 = vst [vmem:[#allocation87_spill] sm:$0xff] %v15339_v58  ;;  %v2163_v59 = vld [vmem:[#allocation8 + $0x1c8] sm:$0xff]  ;;  %v2165_v4 = vld [vmem:[#allocation8 + $0x1d8] sm:$0xff] }
 0x2e4   :  { %11762 = vmatprep.subr.bf16.mxu1 %v15315_v62  ;;  %v2160_v62 = vld [vmem:[#allocation8 + $0x1b0] sm:$0xff]  ;;  %v2169_v54 = vld [vmem:[#allocation8 + $0x1f8] sm:$0xff]  ;;  %v2996_v2 = vld [vmem:[#allocation8 + $0x988] sm:$0xff] }
 0x2e5   :  { %17818 = vst [vmem:[#allocation84_spill] sm:$0xff] %v15330_v46  ;;  %17820 = vst [vmem:[#allocation86_spill] sm:$0xff] %v15336_v51  ;;  %v15346_v63 = vpack.c.bf16 %v2160_v62, %v2156_v48  ;;  %v15351_v14 = vpack.c.bf16 %v2169_v54, %v2165_v4  ;;  %v2170_v62 = vld [vmem:[#allocation8 + $0x200] sm:$0xff]  ;;  %v2172_v4 = vld [vmem:[#allocation8 + $0x210] sm:$0xff] }
 0x2e6   :  { %11692 = vmatpush1.bf16.msra.mxu0 %v15318_v29  ;;  %v2167_v29 = vld [vmem:[#allocation8 + $0x1e8] sm:$0xff]  ;;  %v2174_v48 = vld [vmem:[#allocation8 + $0x220] sm:$0xff] }
 0x2e7   :  { %11764 = vmatpush1.bf16.msra.mxu1 %v15322_v43  ;;  %11694 = vmatprep.subr.bf16.mxu0 %v15324_v1  ;;  %v15342_v43 = vpack.c.bf16 %v2158_v40, %v2154_v8  ;;  %17823 = vst [vmem:[#allocation89_spill] sm:$0xff] %v15346_v63  ;;  %v15348_v45 = vpack.c.bf16 %v2167_v29, %v2163_v59  ;;  %17825 = vst [vmem:[#allocation91_spill] sm:$0xff] %v15351_v14  ;;  %v2171_v1 = vld [vmem:[#allocation8 + $0x208] sm:$0xff]  ;;  %v2173_v8 = vld [vmem:[#allocation8 + $0x218] sm:$0xff] }
 0x2e8   :  { %11766 = vmatprep.subr.bf16.mxu1 %v15327_v34  ;;  %v2168_v34 = vld [vmem:[#allocation8 + $0x1f0] sm:$0xff]  ;;  %v2177_v40 = vld [vmem:[#allocation8 + $0x238] sm:$0xff] }
 0x2e9   :  { %17822 = vst [vmem:[#allocation88_spill] sm:$0xff] %v15342_v43  ;;  %17824 = vst [vmem:[#allocation90_spill] sm:$0xff] %v15348_v45  ;;  %v15358_v29 = vpack.c.bf16 %v2168_v34, %v2164_v35  ;;  %v15363_v54 = vpack.c.bf16 %v2177_v40, %v2173_v8  ;;  %v2178_v34 = vld [vmem:[#allocation8 + $0x240] sm:$0xff]  ;;  %v2180_v8 = vld [vmem:[#allocation8 + $0x250] sm:$0xff] }
 0x2ea   :  { %11696 = vmatpush1.bf16.msra.mxu0 %v15330_v46  ;;  %v2175_v46 = vld [vmem:[#allocation8 + $0x228] sm:$0xff]  ;;  %v2182_v35 = vld [vmem:[#allocation8 + $0x260] sm:$0xff] }
 0x2eb   :  { %11768 = vmatpush1.bf16.msra.mxu1 %v15334_v52  ;;  %11698 = vmatprep.subr.bf16.mxu0 %v15336_v51  ;;  %v15354_v52 = vpack.c.bf16 %v2166_v10, %v2162_v55  ;;  %17827 = vst [vmem:[#allocation93_spill] sm:$0xff] %v15358_v29  ;;  %v15360_v59 = vpack.c.bf16 %v2175_v46, %v2171_v1  ;;  %17829 = vst [vmem:[#allocation95_spill] sm:$0xff] %v15363_v54  ;;  %v2179_v51 = vld [vmem:[#allocation8 + $0x248] sm:$0xff]  ;;  %v2181_v55 = vld [vmem:[#allocation8 + $0x258] sm:$0xff] }
 0x2ec   :  { %11770 = vmatprep.subr.bf16.mxu1 %v15339_v58  ;;  %v2176_v58 = vld [vmem:[#allocation8 + $0x230] sm:$0xff]  ;;  %v2185_v10 = vld [vmem:[#allocation8 + $0x278] sm:$0xff] }
 0x2ed   :  { %17826 = vst [vmem:[#allocation92_spill] sm:$0xff] %v15354_v52  ;;  %17828 = vst [vmem:[#allocation94_spill] sm:$0xff] %v15360_v59  ;;  %v15370_v46 = vpack.c.bf16 %v2176_v58, %v2172_v4  ;;  %v15375_v40 = vpack.c.bf16 %v2185_v10, %v2181_v55  ;;  %v2186_v58 = vld [vmem:[#allocation8 + $0x280] sm:$0xff]  ;;  %v2188_v55 = vld [vmem:[#allocation8 + $0x290] sm:$0xff] }
 0x2ee   :  { %11700 = vmatpush1.bf16.msra.mxu0 %v15342_v43  ;;  %v2183_v43 = vld [vmem:[#allocation8 + $0x268] sm:$0xff]  ;;  %v2190_v4 = vld [vmem:[#allocation8 + $0x2a0] sm:$0xff] }
 0x2ef   :  { %11772 = vmatpush1.bf16.msra.mxu1 %v15346_v63  ;;  %11702 = vmatprep.subr.bf16.mxu0 %v15348_v45  ;;  %v15366_v63 = vpack.c.bf16 %v2174_v48, %v2170_v62  ;;  %17831 = vst [vmem:[#allocation97_spill] sm:$0xff] %v15370_v46  ;;  %v15372_v1 = vpack.c.bf16 %v2183_v43, %v2179_v51  ;;  %17833 = vst [vmem:[#allocation99_spill] sm:$0xff] %v15375_v40  ;;  %v2187_v45 = vld [vmem:[#allocation8 + $0x288] sm:$0xff]  ;;  %v2189_v62 = vld [vmem:[#allocation8 + $0x298] sm:$0xff] }
 0x2f0   :  { %11774 = vmatprep.subr.bf16.mxu1 %v15351_v14  ;;  %v2184_v14 = vld [vmem:[#allocation8 + $0x270] sm:$0xff]  ;;  %v2193_v48 = vld [vmem:[#allocation8 + $0x2b8] sm:$0xff] }
 0x2f1   :  { %17830 = vst [vmem:[#allocation96_spill] sm:$0xff] %v15366_v63  ;;  %17832 = vst [vmem:[#allocation98_spill] sm:$0xff] %v15372_v1  ;;  %v15382_v43 = vpack.c.bf16 %v2184_v14, %v2180_v8  ;;  %v15387_v10 = vpack.c.bf16 %v2193_v48, %v2189_v62  ;;  %v2194_v14 = vld [vmem:[#allocation8 + $0x2c0] sm:$0xff]  ;;  %v2196_v62 = vld [vmem:[#allocation8 + $0x2d0] sm:$0xff] }
 0x2f2   :  { %11704 = vmatpush1.bf16.msra.mxu0 %v15354_v52  ;;  %v2191_v52 = vld [vmem:[#allocation8 + $0x2a8] sm:$0xff]  ;;  %v2198_v8 = vld [vmem:[#allocation8 + $0x2e0] sm:$0xff] }
 0x2f3   :  { %11776 = vmatpush1.bf16.msra.mxu1 %v15358_v29  ;;  %11706 = vmatprep.subr.bf16.mxu0 %v15360_v59  ;;  %v15378_v29 = vpack.c.bf16 %v2182_v35, %v2178_v34  ;;  %17835 = vst [vmem:[#allocation101_spill] sm:$0xff] %v15382_v43  ;;  %v15384_v51 = vpack.c.bf16 %v2191_v52, %v2187_v45  ;;  %17837 = vst [vmem:[#allocation103_spill] sm:$0xff] %v15387_v10  ;;  %v2195_v59 = vld [vmem:[#allocation8 + $0x2c8] sm:$0xff]  ;;  %v2197_v34 = vld [vmem:[#allocation8 + $0x2d8] sm:$0xff] }
 0x2f4   :  { %11778 = vmatprep.subr.bf16.mxu1 %v15363_v54  ;;  %v2192_v54 = vld [vmem:[#allocation8 + $0x2b0] sm:$0xff]  ;;  %v2201_v35 = vld [vmem:[#allocation8 + $0x2f8] sm:$0xff] }
 0x2f5   :  { %17834 = vst [vmem:[#allocation100_spill] sm:$0xff] %v15378_v29  ;;  %17836 = vst [vmem:[#allocation102_spill] sm:$0xff] %v15384_v51  ;;  %v15394_v52 = vpack.c.bf16 %v2192_v54, %v2188_v55  ;;  %v15399_v48 = vpack.c.bf16 %v2201_v35, %v2197_v34  ;;  %v2202_v54 = vld [vmem:[#allocation8 + $0x300] sm:$0xff]  ;;  %v2204_v34 = vld [vmem:[#allocation8 + $0x310] sm:$0xff] }
 0x2f6   :  { %11708 = vmatpush1.bf16.msra.mxu0 %v15366_v63  ;;  %v2199_v63 = vld [vmem:[#allocation8 + $0x2e8] sm:$0xff]  ;;  %v2206_v55 = vld [vmem:[#allocation8 + $0x320] sm:$0xff] }
 0x2f7   :  { %11780 = vmatpush1.bf16.msra.mxu1 %v15370_v46  ;;  %11710 = vmatprep.subr.bf16.mxu0 %v15372_v1  ;;  %v15390_v46 = vpack.c.bf16 %v2190_v4, %v2186_v58  ;;  %17839 = vst [vmem:[#allocation105_spill] sm:$0xff] %v15394_v52  ;;  %v15396_v45 = vpack.c.bf16 %v2199_v63, %v2195_v59  ;;  %17841 = vst [vmem:[#allocation107_spill] sm:$0xff] %v15399_v48  ;;  %v2203_v1 = vld [vmem:[#allocation8 + $0x308] sm:$0xff]  ;;  %v2205_v58 = vld [vmem:[#allocation8 + $0x318] sm:$0xff] }
 0x2f8   :  { %11782 = vmatprep.subr.bf16.mxu1 %v15375_v40  ;;  %v2200_v40 = vld [vmem:[#allocation8 + $0x2f0] sm:$0xff]  ;;  %v2209_v4 = vld [vmem:[#allocation8 + $0x338] sm:$0xff] }
 0x2f9   :  { %17838 = vst [vmem:[#allocation104_spill] sm:$0xff] %v15390_v46  ;;  %17840 = vst [vmem:[#allocation106_spill] sm:$0xff] %v15396_v45  ;;  %v15406_v63 = vpack.c.bf16 %v2200_v40, %v2196_v62  ;;  %v15411_v35 = vpack.c.bf16 %v2209_v4, %v2205_v58  ;;  %v2210_v40 = vld [vmem:[#allocation8 + $0x340] sm:$0xff]  ;;  %v2212_v58 = vld [vmem:[#allocation8 + $0x350] sm:$0xff] }
 0x2fa   :  { %11712 = vmatpush1.bf16.msra.mxu0 %v15378_v29  ;;  %v2207_v29 = vld [vmem:[#allocation8 + $0x328] sm:$0xff]  ;;  %v2214_v62 = vld [vmem:[#allocation8 + $0x360] sm:$0xff] }
 0x2fb   :  { %11784 = vmatpush1.bf16.msra.mxu1 %v15382_v43  ;;  %11714 = vmatprep.subr.bf16.mxu0 %v15384_v51  ;;  %v15402_v43 = vpack.c.bf16 %v2198_v8, %v2194_v14  ;;  %17843 = vst [vmem:[#allocation109_spill] sm:$0xff] %v15406_v63  ;;  %v15408_v59 = vpack.c.bf16 %v2207_v29, %v2203_v1  ;;  %17845 = vst [vmem:[#allocation111_spill] sm:$0xff] %v15411_v35  ;;  %v2211_v51 = vld [vmem:[#allocation8 + $0x348] sm:$0xff]  ;;  %v2213_v14 = vld [vmem:[#allocation8 + $0x358] sm:$0xff] }
 0x2fc   :  { %11786 = vmatprep.subr.bf16.mxu1 %v15387_v10  ;;  %v2208_v10 = vld [vmem:[#allocation8 + $0x330] sm:$0xff]  ;;  %v2217_v8 = vld [vmem:[#allocation8 + $0x378] sm:$0xff] }
 0x2fd   :  { %17842 = vst [vmem:[#allocation108_spill] sm:$0xff] %v15402_v43  ;;  %17844 = vst [vmem:[#allocation110_spill] sm:$0xff] %v15408_v59  ;;  %v15418_v29 = vpack.c.bf16 %v2208_v10, %v2204_v34  ;;  %v15423_v4 = vpack.c.bf16 %v2217_v8, %v2213_v14  ;;  %v2218_v10 = vld [vmem:[#allocation8 + $0x380] sm:$0xff]  ;;  %v2220_v14 = vld [vmem:[#allocation8 + $0x390] sm:$0xff] }
 0x2fe   :  { %11716 = vmatpush1.bf16.msra.mxu0 %v15390_v46  ;;  %v2215_v46 = vld [vmem:[#allocation8 + $0x368] sm:$0xff]  ;;  %v2222_v34 = vld [vmem:[#allocation8 + $0x3a0] sm:$0xff] }
 0x2ff   :  { %11788 = vmatpush1.bf16.msra.mxu1 %v15394_v52  ;;  %11718 = vmatprep.subr.bf16.mxu0 %v15396_v45  ;;  %v15414_v52 = vpack.c.bf16 %v2206_v55, %v2202_v54  ;;  %17847 = vst [vmem:[#allocation113_spill] sm:$0xff] %v15418_v29  ;;  %v15420_v1 = vpack.c.bf16 %v2215_v46, %v2211_v51  ;;  %17849 = vst [vmem:[#allocation115_spill] sm:$0xff] %v15423_v4  ;;  %v2219_v45 = vld [vmem:[#allocation8 + $0x388] sm:$0xff]  ;;  %v2221_v54 = vld [vmem:[#allocation8 + $0x398] sm:$0xff] }
 0x300   :  { %11790 = vmatprep.subr.bf16.mxu1 %v15399_v48  ;;  %v2216_v48 = vld [vmem:[#allocation8 + $0x370] sm:$0xff]  ;;  %v2225_v55 = vld [vmem:[#allocation8 + $0x3b8] sm:$0xff] }
 0x301   :  { %17846 = vst [vmem:[#allocation112_spill] sm:$0xff] %v15414_v52  ;;  %17848 = vst [vmem:[#allocation114_spill] sm:$0xff] %v15420_v1  ;;  %v15430_v46 = vpack.c.bf16 %v2216_v48, %v2212_v58  ;;  %v15435_v8 = vpack.c.bf16 %v2225_v55, %v2221_v54  ;;  %v2226_v48 = vld [vmem:[#allocation8 + $0x3c0] sm:$0xff]  ;;  %v2228_v54 = vld [vmem:[#allocation8 + $0x3d0] sm:$0xff] }
 0x302   :  { %11720 = vmatpush1.bf16.msra.mxu0 %v15402_v43  ;;  %v2223_v43 = vld [vmem:[#allocation8 + $0x3a8] sm:$0xff]  ;;  %v2230_v58 = vld [vmem:[#allocation8 + $0x3e0] sm:$0xff] }
 0x303   :  { %11792 = vmatpush1.bf16.msra.mxu1 %v15406_v63  ;;  %11722 = vmatprep.subr.bf16.mxu0 %v15408_v59  ;;  %v15426_v63 = vpack.c.bf16 %v2214_v62, %v2210_v40  ;;  %17851 = vst [vmem:[#allocation117_spill] sm:$0xff] %v15430_v46  ;;  %v15432_v51 = vpack.c.bf16 %v2223_v43, %v2219_v45  ;;  %17853 = vst [vmem:[#allocation119_spill] sm:$0xff] %v15435_v8  ;;  %v2227_v59 = vld [vmem:[#allocation8 + $0x3c8] sm:$0xff]  ;;  %v2229_v40 = vld [vmem:[#allocation8 + $0x3d8] sm:$0xff] }
 0x304   :  { %11794 = vmatprep.subr.bf16.mxu1 %v15411_v35  ;;  %v2224_v35 = vld [vmem:[#allocation8 + $0x3b0] sm:$0xff]  ;;  %v2233_v62 = vld [vmem:[#allocation8 + $0x3f8] sm:$0xff] }
 0x305   :  { %17850 = vst [vmem:[#allocation116_spill] sm:$0xff] %v15426_v63  ;;  %17852 = vst [vmem:[#allocation118_spill] sm:$0xff] %v15432_v51  ;;  %v15442_v43 = vpack.c.bf16 %v2224_v35, %v2220_v14  ;;  %v15447_v55 = vpack.c.bf16 %v2233_v62, %v2229_v40  ;;  %v2234_v14 = vld [vmem:[#allocation8 + $0x400] sm:$0xff]  ;;  %v2236_v62 = vld [vmem:[#allocation8 + $0x410] sm:$0xff] }
 0x306   :  { %11724 = vmatpush1.bf16.msra.mxu0 %v15414_v52  ;;  %v2231_v52 = vld [vmem:[#allocation8 + $0x3e8] sm:$0xff]  ;;  %v2238_v40 = vld [vmem:[#allocation8 + $0x420] sm:$0xff] }
 0x307   :  { %11796 = vmatpush1.bf16.msra.mxu1 %v15418_v29  ;;  %11726 = vmatprep.subr.bf16.mxu0 %v15420_v1  ;;  %v15438_v29 = vpack.c.bf16 %v2222_v34, %v2218_v10  ;;  %17855 = vst [vmem:[#allocation121_spill] sm:$0xff] %v15442_v43  ;;  %v15444_v45 = vpack.c.bf16 %v2231_v52, %v2227_v59  ;;  %17857 = vst [vmem:[#allocation123_spill] sm:$0xff] %v15447_v55  ;;  %v2235_v1 = vld [vmem:[#allocation8 + $0x408] sm:$0xff]  ;;  %v2237_v10 = vld [vmem:[#allocation8 + $0x418] sm:$0xff] }
 0x308   :  { %11798 = vmatprep.subr.bf16.mxu1 %v15423_v4  ;;  %v2232_v4 = vld [vmem:[#allocation8 + $0x3f0] sm:$0xff]  ;;  %v2241_v34 = vld [vmem:[#allocation8 + $0x438] sm:$0xff] }
 0x309   :  { %17854 = vst [vmem:[#allocation120_spill] sm:$0xff] %v15438_v29  ;;  %17856 = vst [vmem:[#allocation122_spill] sm:$0xff] %v15444_v45  ;;  %v15454_v52 = vpack.c.bf16 %v2232_v4, %v2228_v54  ;;  %v15459_v35 = vpack.c.bf16 %v2241_v34, %v2237_v10  ;;  %v2247_v54 = vld [vmem:[#allocation8 + $0x468] sm:$0xff]  ;;  %v2245_v10 = vld [vmem:[#allocation8 + $0x458] sm:$0xff] }
 0x30a   :  { %11728 = vmatpush1.bf16.msra.mxu0 %v15426_v63  ;;  %v2239_v63 = vld [vmem:[#allocation8 + $0x428] sm:$0xff]  ;;  %v2249_v34 = vld [vmem:[#allocation8 + $0x478] sm:$0xff] }
 0x30b   :  { %11800 = vmatpush1.bf16.msra.mxu1 %v15430_v46  ;;  %11730 = vmatprep.subr.bf16.mxu0 %v15432_v51  ;;  %v15450_v46 = vpack.c.bf16 %v2230_v58, %v2226_v48  ;;  %17859 = vst [vmem:[#allocation125_spill] sm:$0xff] %v15454_v52  ;;  %v15456_v59 = vpack.c.bf16 %v2239_v63, %v2235_v1  ;;  %17861 = vst [vmem:[#allocation127_spill] sm:$0xff] %v15459_v35  ;;  %v2240_v48 = vld [vmem:[#allocation8 + $0x430] sm:$0xff]  ;;  %v2243_v58 = vld [vmem:[#allocation8 + $0x448] sm:$0xff] }
 0x30c   :  { %11802 = vmatprep.subr.bf16.mxu1 %v15435_v8  ;;  %v2982_v51 = vld [vmem:[#allocation8 + $0x918] sm:$0xff] }
 0x30d   :  { %17858 = vst [vmem:[#allocation124_spill] sm:$0xff] %v15450_v46  ;;  %17860 = vst [vmem:[#allocation126_spill] sm:$0xff] %v15456_v59 }
 0x30e   :  { %11732 = vmatpush1.bf16.msra.mxu0 %v15438_v29  ;;  %v15475_v29 = vpack.c.bf16 %v2247_v54, %v2243_v58  ;;  %v2976_v58 = vld [vmem:[#allocation2 + $0x20] sm:$0x1]  ;;  %v15489_v54 = vpack.c.bf16 %v2986_v47, %v2982_v51 }
 0x30f   :  { %11804 = vmatpush1.bf16.msra.mxu1 %v15442_v43  ;;  %11734 = vmatprep.subr.bf16.mxu0 %v15444_v45  ;;  %v2248_v45 = vld [vmem:[#allocation8 + $0x470] sm:$0xff] }
 0x310   :  { %11806 = vmatprep.subr.bf16.mxu1 %v15447_v55  ;;  %v2244_v55 = vld [vmem:[#allocation8 + $0x450] sm:$0xff]  ;;  %17864 = vst [vmem:[#allocation130_spill] sm:$0xff] %v15475_v29  ;;  %17869 = vst [vmem:[#allocation135_spill] sm:$0xff] %v15489_v54 }
 0x312   :  { %11736 = vmatpush1.bf16.msra.mxu0 %v15450_v46  ;;  %v2246_v46 = vld [vmem:[#allocation8 + $0x460] sm:$0xff] }
 0x313   :  { %11808 = vmatpush1.bf16.msra.mxu1 %v15454_v52  ;;  %11738 = vmatprep.subr.bf16.mxu0 %v15456_v59  ;;  %v15471_v59 = vpack.c.bf16 %v2238_v40, %v2234_v14  ;;  %v15473_v52 = vpack.c.bf16 %v2240_v48, %v2236_v62  ;;  %v15483_v40 = vpack.c.bf16 %v2248_v45, %v2244_v55  ;;  %v2979_v62 = vld [vmem:[#allocation8 + $0x900] sm:$0xff]  ;;  %v2992_v45 = vld [vmem:[#allocation8 + $0x968] sm:$0xff]  ;;  %v2990_v55 = vld [vmem:[#allocation8 + $0x958] sm:$0xff] }
 0x314   :  { %11810 = vmatprep.subr.bf16.mxu1 %v15459_v35  ;;  %v2242_v35 = vld [vmem:[#allocation8 + $0x440] sm:$0xff] }
 0x315   :  { %17862 = vst [vmem:[#allocation128_spill] sm:$0xff] %v15471_v59  ;;  %17863 = vst [vmem:[#allocation129_spill] sm:$0xff] %v15473_v52  ;;  %v15481_v14 = vpack.c.bf16 %v2246_v46, %v2242_v35  ;;  %v2983_v48 = vld [vmem:[#allocation8 + $0x920] sm:$0xff]  ;;  %v2988_v46 = vld [vmem:[#allocation8 + $0x948] sm:$0xff] }
 0x316   :  { %17867 = vst [vmem:[#allocation133_spill] sm:$0xff] %v15483_v40  ;;  %v2994_v35 = vld [vmem:[#allocation8 + $0x978] sm:$0xff]  ;;  %v15501_v28 = vpack.c.bf16 %v2992_v45, %v2988_v46  ;;  %v2999_v46 = vld [vmem:[#allocation8 + $0x9a0] sm:$0xff] }
 0x317   :  { %17866 = vst [vmem:[#allocation132_spill] sm:$0xff] %v15481_v14 }
 0x318   :  { %17872 = vst [vmem:[#allocation138_spill] sm:$0xff] %v15501_v28 }
 0x340   :  { %v2080_v63 = vpop.permute.xlu0 %2079 }
 0x341   :  { %2087 = vst.msk [vmem:[#allocation2] sm:$0xfe] %vm2086_vm5, %v2080_v63 }
 0x344   :  { %v2082_v1 = vpop.permute.xlu1 %2081 }
 0x345   :  { %v2083_v4 = vsel %vm136_vm4, %v2080_v63, %v2082_v1  ;;  %v15477_v63 = vpack.c.bf16 %v2249_v34, %v2245_v10  ;;  %v2980_v1 = vld [vmem:[#allocation8 + $0x908] sm:$0xff]  ;;  %v2985_v10 = vld [vmem:[#allocation8 + $0x930] sm:$0xff] }
 0x346   :  { %2088 = vst [vmem:[#allocation2 + $0x8] sm:$0xfe] %v2083_v4  ;;  %v2984_v4 = vld [vmem:[#allocation8 + $0x928] sm:$0xff] }
 0x347   :  { %17865 = vst [vmem:[#allocation131_spill] sm:$0xff] %v15477_v63 }
 0x348   :  { %v2103_v8 = vld [vmem:[#allocation2] sm:$0xff] }
 0x34d   :  { %v2104_v43 = vld [vmem:[#allocation2 + $0x8] sm:$0xff] }
 0x34e   :  { %2752 = vmatprep.mubr.f32.mxu0 %v2104_v43  ;;  %2894 = vmatprep.mubr.f32.mxu1 %v2104_v43  ;;  %v15487_v43 = vpack.c.bf16 %v2984_v4, %v2980_v1  ;;  %v2973_v34 = vld [vmem:[#allocation2 + $0x8] sm:$0xfe]  ;;  %v15495_v1 = vpack.c.bf16 %v2983_v48, %v2979_v62  ;;  %v3134_v4 = vrot.slane %v2976_v58, 1  ;;  %v2998_v62 = vld [vmem:[#allocation8 + $0x998] sm:$0xff] }
 0x34f   :  { %2753 = vmatmul.mubr.f32.vlgmr.msra.gmra.mrb[8].mxu0 %v2103_v8  ;;  %2895 = vmatmul.mubr.f32.vlgmr.msra.gmra.mrb[8].mxu1 %v2103_v8  ;;  %v2981_v8 = vld [vmem:[#allocation8 + $0x910] sm:$0xff]  ;;  %v3133_v51 = vrot.slane %v2973_v34, 1  ;;  %v3002_v48 = vld [vmem:[#allocation8 + $0x9b8] sm:$0xff]  ;;  %v2995_v34 = vld [vmem:[#allocation8 + $0x980] sm:$0xff] }
 0x350   :  { %11740 = vmatpush1.bf16.msra.mxu0 %v15471_v59  ;;  %11812 = vmatpush1.bf16.msra.mxu1 %v15473_v52  ;;  %17868 = vst [vmem:[#allocation134_spill] sm:$0xff] %v15487_v43  ;;  %17870 = vst [vmem:[#allocation136_spill] sm:$0xff] %v15495_v1  ;;  %v15497_v47 = vpack.c.bf16 %v2985_v10, %v2981_v8  ;;  %v2991_v52 = vld [vmem:[#allocation8 + $0x960] sm:$0xff]  ;;  %v2993_v59 = vld [vmem:[#allocation8 + $0x970] sm:$0xff] }
 0x351   :  { %11742 = vmatprep.subr.bf16.mxu0 %v15475_v29  ;;  %11814 = vmatprep.subr.bf16.mxu1 %v15477_v63  ;;  %v2105_v63 = vld [vmem:[#allocation2 + $0x10] sm:$0xff]  ;;  %v2987_v29 = vld [vmem:[#allocation8 + $0x940] sm:$0xff]  ;;  %v15510_v58 = vsel %vm3129_vm7, %v3133_v51, %v3134_v4  ;;  %v15526_v51 = vpack.c.bf16 %v2999_v46, %v2995_v34 }
 0x352   :  { %2823 = vmatprep.mubr.f32.mxu0 %v15260_v38  ;;  %2965 = vmatprep.mubr.f32.mxu1 %v15260_v38  ;;  %17871 = vst [vmem:[#allocation137_spill] sm:$0xff] %v15497_v47  ;;  %v2989_v38 = vld [vmem:[#allocation8 + $0x950] sm:$0xff]  ;;  %v15512_v8 = vpack.c.bf16 %v2991_v52, %v2987_v29  ;;  %v3008_v29 = vld [vmem:[#allocation8 + $0x9e8] sm:$0xff]  ;;  %v3006_v52 = vld [vmem:[#allocation8 + $0x9d8] sm:$0xff] }
 0x353   :  { %v15514_v10 = vpack.c.bf16 %v2993_v59, %v2989_v38  ;;  %v3010_v59 = vld [vmem:[#allocation8 + $0x9f8] sm:$0xff]  ;;  %17878 = vst [vmem:[#allocation144_spill] sm:$0xff] %v15526_v51  ;;  %v3007_v4 = vld [vmem:[#allocation8 + $0x9e0] sm:$0xff] }
 0x354   :  { %11744 = vmatpush1.bf16.msra.mxu0 %v15481_v14  ;;  %11816 = vmatpush1.bf16.msra.mxu1 %v15483_v40  ;;  %v15503_v14 = vpack.c.bf16 %v2994_v35, %v2990_v55  ;;  %v3000_v40 = vld [vmem:[#allocation8 + $0x9a8] sm:$0xff]  ;;  %17874 = vst [vmem:[#allocation140_spill] sm:$0xff] %v15512_v8  ;;  %v2997_v55 = vld [vmem:[#allocation8 + $0x990] sm:$0xff] }
 0x355   :  { %11818 = vmatprep.subr.bf16.mxu0 %v15487_v43  ;;  %11890 = vmatprep.subr.bf16.mxu1 %v15489_v54  ;;  %17875 = vst [vmem:[#allocation141_spill] sm:$0xff] %v15514_v10  ;;  %v15518_v45 = vpack.c.bf16 %v3000_v40, %v2996_v2  ;;  %v3001_v35 = vld [vmem:[#allocation8 + $0x9b0] sm:$0xff]  ;;  %v3003_v40 = vld [vmem:[#allocation8 + $0x9c0] sm:$0xff]  ;;  %v3116_v54 = vld [vmem:[#allocation8 + $0xd48] sm:$0xff] }
 0x356   :  { %17873 = vst [vmem:[#allocation139_spill] sm:$0xff] %v15503_v14  ;;  %v15528_v2 = vpack.c.bf16 %v3001_v35, %v2997_v55  ;;  %v15538_v34 = vpack.c.bf16 %v3007_v4, %v3003_v40  ;;  %v3011_v55 = vld [vmem:[#allocation8 + $0xa00] sm:$0xff] }
 0x357   :  { %10525 = vmatmul.mubr.msk.f32.vlgmr.msra.gmra.mrb[8].mxu0 %vm136_vm4, %v2105_v63  ;;  %10526 = vmatmul.mubr.msk.f32.vlgmr.msra.gmra.mrb[8].mxu1 %vm136_vm4, %v2105_v63  ;;  %17876 = vst [vmem:[#allocation142_spill] sm:$0xff] %v15518_v45  ;;  %v15520_v63 = vpack.c.bf16 %v3002_v48, %v2998_v62  ;;  %v15534_v62 = vpack.c.bf16 %v3010_v59, %v3006_v52  ;;  %v3005_v48 = vld [vmem:[#allocation8 + $0x9d0] sm:$0xff]  ;;  %v3015_v35 = vld [vmem:[#allocation8 + $0xa20] sm:$0xff] }
 0x358   :  { %11820 = vmatpush1.bf16.msra.mxu0 %v15495_v1  ;;  %11892 = vmatpush1.bf16.msra.mxu1 %v15497_v47  ;;  %v3004_v47 = vld [vmem:[#allocation8 + $0x9c8] sm:$0xff]  ;;  %17879 = vst [vmem:[#allocation145_spill] sm:$0xff] %v15528_v2  ;;  %v3014_v1 = vld [vmem:[#allocation8 + $0xa18] sm:$0xff]  ;;  %17882 = vst [vmem:[#allocation148_spill] sm:$0xff] %v15538_v34 }
 0x359   :  { %3207 = vmatprep.mubr.f32.mxu0 %v15510_v58  ;;  %3349 = vmatprep.mubr.f32.mxu1 %v15510_v58  ;;  %17877 = vst [vmem:[#allocation143_spill] sm:$0xff] %v15520_v63  ;;  %v15532_v38 = vpack.c.bf16 %v3008_v29, %v3004_v47  ;;  %17881 = vst [vmem:[#allocation147_spill] sm:$0xff] %v15534_v62  ;;  %v3013_v52 = vld [vmem:[#allocation8 + $0xa10] sm:$0xff]  ;;  %v3019_v4 = vld [vmem:[#allocation8 + $0xa40] sm:$0xff] }
 0x35a   :  { %11822 = vmatprep.subr.bf16.mxu0 %v15501_v28  ;;  %11894 = vmatprep.subr.bf16.mxu1 %v15503_v14  ;;  %v3009_v14 = vld [vmem:[#allocation8 + $0x9f0] sm:$0xff]  ;;  %v3012_v28 = vld [vmem:[#allocation8 + $0xa08] sm:$0xff] }
 0x35b   :  { %17880 = vst [vmem:[#allocation146_spill] sm:$0xff] %v15532_v38  ;;  %v15540_v46 = vpack.c.bf16 %v3009_v14, %v3005_v48  ;;  %v3017_v59 = vld [vmem:[#allocation8 + $0xa30] sm:$0xff]  ;;  %v15550_v14 = vpack.c.bf16 %v3015_v35, %v3011_v55  ;;  %v3023_v48 = vld [vmem:[#allocation8 + $0xa60] sm:$0xff] }
 0x35c   :  { %11824 = vmatpush1.bf16.msra.mxu0 %v15512_v8  ;;  %11896 = vmatpush1.bf16.msra.mxu1 %v15514_v10  ;;  %v3016_v8 = vld [vmem:[#allocation8 + $0xa28] sm:$0xff]  ;;  %v3018_v10 = vld [vmem:[#allocation8 + $0xa38] sm:$0xff]  ;;  %v15552_v40 = vpack.c.bf16 %v3017_v59, %v3013_v52  ;;  %v15562_v55 = vpack.c.bf16 %v3023_v48, %v3019_v4  ;;  %v3027_v52 = vld [vmem:[#allocation8 + $0xa80] sm:$0xff] }
 0x35d   :  { %11826 = vmatprep.subr.bf16.mxu0 %v15518_v45  ;;  %11898 = vmatprep.subr.bf16.mxu1 %v15520_v63  ;;  %17883 = vst [vmem:[#allocation149_spill] sm:$0xff] %v15540_v46  ;;  %v15544_v47 = vpack.c.bf16 %v3016_v8, %v3012_v28  ;;  %v15546_v29 = vpack.c.bf16 %v3018_v10, %v3014_v1  ;;  %v3020_v63 = vld [vmem:[#allocation8 + $0xa48] sm:$0xff]  ;;  %v3022_v45 = vld [vmem:[#allocation8 + $0xa58] sm:$0xff]  ;;  %17886 = vst [vmem:[#allocation152_spill] sm:$0xff] %v15550_v14 }
 0x35e   :  { %17887 = vst [vmem:[#allocation153_spill] sm:$0xff] %v15552_v40  ;;  %v3021_v8 = vld [vmem:[#allocation8 + $0xa50] sm:$0xff]  ;;  %17890 = vst [vmem:[#allocation156_spill] sm:$0xff] %v15562_v55  ;;  %v3031_v59 = vld [vmem:[#allocation8 + $0xaa0] sm:$0xff] }
 0x35f   :  { %17884 = vst [vmem:[#allocation150_spill] sm:$0xff] %v15544_v47  ;;  %17885 = vst [vmem:[#allocation151_spill] sm:$0xff] %v15546_v29  ;;  %v3025_v10 = vld [vmem:[#allocation8 + $0xa70] sm:$0xff]  ;;  %v15574_v4 = vpack.c.bf16 %v3031_v59, %v3027_v52 }
 0x360   :  { %11828 = vmatpush1.bf16.msra.mxu0 %v15526_v51  ;;  %11900 = vmatpush1.bf16.msra.mxu1 %v15528_v2  ;;  %v3024_v51 = vld [vmem:[#allocation8 + $0xa68] sm:$0xff]  ;;  %v3026_v2 = vld [vmem:[#allocation8 + $0xa78] sm:$0xff]  ;;  %v15564_v35 = vpack.c.bf16 %v3025_v10, %v3021_v8  ;;  %v3035_v8 = vld [vmem:[#allocation8 + $0xac0] sm:$0xff] }
 0x361   :  { %11830 = vmatprep.subr.bf16.mxu0 %v15532_v38  ;;  %11902 = vmatprep.subr.bf16.mxu1 %v15534_v62  ;;  %v15556_v28 = vpack.c.bf16 %v3024_v51, %v3020_v63  ;;  %v15558_v1 = vpack.c.bf16 %v3026_v2, %v3022_v45  ;;  %v3028_v62 = vld [vmem:[#allocation8 + $0xa88] sm:$0xff]  ;;  %v3030_v38 = vld [vmem:[#allocation8 + $0xa98] sm:$0xff]  ;;  %v3029_v51 = vld [vmem:[#allocation8 + $0xa90] sm:$0xff]  ;;  %17894 = vst [vmem:[#allocation160_spill] sm:$0xff] %v15574_v4 }
 0x362   :  { %17891 = vst [vmem:[#allocation157_spill] sm:$0xff] %v15564_v35  ;;  %v3033_v2 = vld [vmem:[#allocation8 + $0xab0] sm:$0xff]  ;;  %v3039_v10 = vld [vmem:[#allocation8 + $0xae0] sm:$0xff] }
 0x363   :  { %17888 = vst [vmem:[#allocation154_spill] sm:$0xff] %v15556_v28  ;;  %17889 = vst [vmem:[#allocation155_spill] sm:$0xff] %v15558_v1  ;;  %v15576_v48 = vpack.c.bf16 %v3033_v2, %v3029_v51  ;;  %v15586_v52 = vpack.c.bf16 %v3039_v10, %v3035_v8  ;;  %v3043_v51 = vld [vmem:[#allocation8 + $0xb00] sm:$0xff] }
 0x364   :  { %11832 = vmatpush1.bf16.msra.mxu0 %v15538_v34  ;;  %11904 = vmatpush1.bf16.msra.mxu1 %v15540_v46  ;;  %v3032_v34 = vld [vmem:[#allocation8 + $0xaa8] sm:$0xff]  ;;  %v3034_v46 = vld [vmem:[#allocation8 + $0xab8] sm:$0xff]  ;;  %v3047_v2 = vld [vmem:[#allocation8 + $0xb20] sm:$0xff] }
 0x365   :  { %11834 = vmatprep.subr.bf16.mxu0 %v15544_v47  ;;  %11906 = vmatprep.subr.bf16.mxu1 %v15546_v29  ;;  %v15568_v45 = vpack.c.bf16 %v3032_v34, %v3028_v62  ;;  %v15570_v63 = vpack.c.bf16 %v3034_v46, %v3030_v38  ;;  %v3036_v29 = vld [vmem:[#allocation8 + $0xac8] sm:$0xff]  ;;  %v3038_v47 = vld [vmem:[#allocation8 + $0xad8] sm:$0xff]  ;;  %17895 = vst [vmem:[#allocation161_spill] sm:$0xff] %v15576_v48  ;;  %v3037_v34 = vld [vmem:[#allocation8 + $0xad0] sm:$0xff] }
 0x366   :  { %v3041_v46 = vld [vmem:[#allocation8 + $0xaf0] sm:$0xff]  ;;  %17898 = vst [vmem:[#allocation164_spill] sm:$0xff] %v15586_v52  ;;  %v15598_v8 = vpack.c.bf16 %v3047_v2, %v3043_v51 }
 0x367   :  { %17892 = vst [vmem:[#allocation158_spill] sm:$0xff] %v15568_v45  ;;  %17893 = vst [vmem:[#allocation159_spill] sm:$0xff] %v15570_v63  ;;  %v15588_v59 = vpack.c.bf16 %v3041_v46, %v3037_v34  ;;  %v3051_v34 = vld [vmem:[#allocation8 + $0xb40] sm:$0xff] }
 0x368   :  { %11836 = vmatpush1.bf16.msra.mxu0 %v15550_v14  ;;  %11908 = vmatpush1.bf16.msra.mxu1 %v15552_v40  ;;  %v3040_v14 = vld [vmem:[#allocation8 + $0xae8] sm:$0xff]  ;;  %v3042_v40 = vld [vmem:[#allocation8 + $0xaf8] sm:$0xff]  ;;  %17902 = vst [vmem:[#allocation168_spill] sm:$0xff] %v15598_v8  ;;  %v3055_v46 = vld [vmem:[#allocation8 + $0xb60] sm:$0xff] }
 0x369   :  { %11838 = vmatprep.subr.bf16.mxu0 %v15556_v28  ;;  %11910 = vmatprep.subr.bf16.mxu1 %v15558_v1  ;;  %v15580_v38 = vpack.c.bf16 %v3040_v14, %v3036_v29  ;;  %v15582_v62 = vpack.c.bf16 %v3042_v40, %v3038_v47  ;;  %v3044_v1 = vld [vmem:[#allocation8 + $0xb08] sm:$0xff]  ;;  %v3046_v28 = vld [vmem:[#allocation8 + $0xb18] sm:$0xff]  ;;  %17899 = vst [vmem:[#allocation165_spill] sm:$0xff] %v15588_v59  ;;  %v3045_v14 = vld [vmem:[#allocation8 + $0xb10] sm:$0xff] }
 0x36a   :  { %v3049_v40 = vld [vmem:[#allocation8 + $0xb30] sm:$0xff]  ;;  %v15610_v51 = vpack.c.bf16 %v3055_v46, %v3051_v34 }
 0x36b   :  { %17896 = vst [vmem:[#allocation162_spill] sm:$0xff] %v15580_v38  ;;  %17897 = vst [vmem:[#allocation163_spill] sm:$0xff] %v15582_v62  ;;  %v15600_v10 = vpack.c.bf16 %v3049_v40, %v3045_v14  ;;  %v3059_v14 = vld [vmem:[#allocation8 + $0xb80] sm:$0xff] }
 0x36c   :  { %11840 = vmatpush1.bf16.msra.mxu0 %v15562_v55  ;;  %11912 = vmatpush1.bf16.msra.mxu1 %v15564_v35  ;;  %v3048_v55 = vld [vmem:[#allocation8 + $0xb28] sm:$0xff]  ;;  %v3050_v35 = vld [vmem:[#allocation8 + $0xb38] sm:$0xff]  ;;  %17906 = vst [vmem:[#allocation172_spill] sm:$0xff] %v15610_v51  ;;  %v3063_v40 = vld [vmem:[#allocation8 + $0xba0] sm:$0xff] }
 0x36d   :  { %11842 = vmatprep.subr.bf16.mxu0 %v15568_v45  ;;  %11914 = vmatprep.subr.bf16.mxu1 %v15570_v63  ;;  %v15592_v47 = vpack.c.bf16 %v3048_v55, %v3044_v1  ;;  %v15594_v29 = vpack.c.bf16 %v3050_v35, %v3046_v28  ;;  %v3052_v63 = vld [vmem:[#allocation8 + $0xb48] sm:$0xff]  ;;  %v3054_v45 = vld [vmem:[#allocation8 + $0xb58] sm:$0xff]  ;;  %17903 = vst [vmem:[#allocation169_spill] sm:$0xff] %v15600_v10  ;;  %v3053_v55 = vld [vmem:[#allocation8 + $0xb50] sm:$0xff] }
 0x36e   :  { %v3057_v35 = vld [vmem:[#allocation8 + $0xb70] sm:$0xff]  ;;  %v15622_v34 = vpack.c.bf16 %v3063_v40, %v3059_v14 }
 0x36f   :  { %17900 = vst [vmem:[#allocation166_spill] sm:$0xff] %v15592_v47  ;;  %17901 = vst [vmem:[#allocation167_spill] sm:$0xff] %v15594_v29  ;;  %v15612_v2 = vpack.c.bf16 %v3057_v35, %v3053_v55  ;;  %v3067_v55 = vld [vmem:[#allocation8 + $0xbc0] sm:$0xff] }
 0x370   :  { %11844 = vmatpush1.bf16.msra.mxu0 %v15574_v4  ;;  %11916 = vmatpush1.bf16.msra.mxu1 %v15576_v48  ;;  %v3056_v4 = vld [vmem:[#allocation8 + $0xb68] sm:$0xff]  ;;  %v3058_v48 = vld [vmem:[#allocation8 + $0xb78] sm:$0xff]  ;;  %17910 = vst [vmem:[#allocation176_spill] sm:$0xff] %v15622_v34  ;;  %v3071_v35 = vld [vmem:[#allocation8 + $0xbe0] sm:$0xff] }
 0x371   :  { %11846 = vmatprep.subr.bf16.mxu0 %v15580_v38  ;;  %11918 = vmatprep.subr.bf16.mxu1 %v15582_v62  ;;  %v15604_v28 = vpack.c.bf16 %v3056_v4, %v3052_v63  ;;  %v15606_v1 = vpack.c.bf16 %v3058_v48, %v3054_v45  ;;  %v3060_v62 = vld [vmem:[#allocation8 + $0xb88] sm:$0xff]  ;;  %v3062_v38 = vld [vmem:[#allocation8 + $0xb98] sm:$0xff]  ;;  %17907 = vst [vmem:[#allocation173_spill] sm:$0xff] %v15612_v2  ;;  %v3061_v4 = vld [vmem:[#allocation8 + $0xb90] sm:$0xff] }
 0x372   :  { %v3065_v48 = vld [vmem:[#allocation8 + $0xbb0] sm:$0xff]  ;;  %v15634_v14 = vpack.c.bf16 %v3071_v35, %v3067_v55 }
 0x373   :  { %17904 = vst [vmem:[#allocation170_spill] sm:$0xff] %v15604_v28  ;;  %17905 = vst [vmem:[#allocation171_spill] sm:$0xff] %v15606_v1  ;;  %v15624_v46 = vpack.c.bf16 %v3065_v48, %v3061_v4  ;;  %v3075_v4 = vld [vmem:[#allocation8 + $0xc00] sm:$0xff] }
 0x374   :  { %11848 = vmatpush1.bf16.msra.mxu0 %v15586_v52  ;;  %11920 = vmatpush1.bf16.msra.mxu1 %v15588_v59  ;;  %v3064_v52 = vld [vmem:[#allocation8 + $0xba8] sm:$0xff]  ;;  %v3066_v59 = vld [vmem:[#allocation8 + $0xbb8] sm:$0xff]  ;;  %17914 = vst [vmem:[#allocation180_spill] sm:$0xff] %v15634_v14  ;;  %v3079_v48 = vld [vmem:[#allocation8 + $0xc20] sm:$0xff] }
 0x375   :  { %11850 = vmatprep.subr.bf16.mxu0 %v15592_v47  ;;  %11922 = vmatprep.subr.bf16.mxu1 %v15594_v29  ;;  %v15616_v45 = vpack.c.bf16 %v3064_v52, %v3060_v62  ;;  %v15618_v63 = vpack.c.bf16 %v3066_v59, %v3062_v38  ;;  %v3068_v29 = vld [vmem:[#allocation8 + $0xbc8] sm:$0xff]  ;;  %v3070_v47 = vld [vmem:[#allocation8 + $0xbd8] sm:$0xff]  ;;  %17911 = vst [vmem:[#allocation177_spill] sm:$0xff] %v15624_v46  ;;  %v3069_v52 = vld [vmem:[#allocation8 + $0xbd0] sm:$0xff] }
 0x376   :  { %v3073_v59 = vld [vmem:[#allocation8 + $0xbf0] sm:$0xff]  ;;  %v15646_v55 = vpack.c.bf16 %v3079_v48, %v3075_v4 }
 0x377   :  { %17908 = vst [vmem:[#allocation174_spill] sm:$0xff] %v15616_v45  ;;  %17909 = vst [vmem:[#allocation175_spill] sm:$0xff] %v15618_v63  ;;  %v15636_v40 = vpack.c.bf16 %v3073_v59, %v3069_v52  ;;  %v3083_v52 = vld [vmem:[#allocation8 + $0xc40] sm:$0xff] }
 0x378   :  { %11852 = vmatpush1.bf16.msra.mxu0 %v15598_v8  ;;  %11924 = vmatpush1.bf16.msra.mxu1 %v15600_v10  ;;  %v3072_v8 = vld [vmem:[#allocation8 + $0xbe8] sm:$0xff]  ;;  %v3074_v10 = vld [vmem:[#allocation8 + $0xbf8] sm:$0xff]  ;;  %17918 = vst [vmem:[#allocation184_spill] sm:$0xff] %v15646_v55  ;;  %v3087_v59 = vld [vmem:[#allocation8 + $0xc60] sm:$0xff] }
 0x379   :  { %11854 = vmatprep.subr.bf16.mxu0 %v15604_v28  ;;  %11926 = vmatprep.subr.bf16.mxu1 %v15606_v1  ;;  %v15628_v38 = vpack.c.bf16 %v3072_v8, %v3068_v29  ;;  %v15630_v62 = vpack.c.bf16 %v3074_v10, %v3070_v47  ;;  %v3076_v1 = vld [vmem:[#allocation8 + $0xc08] sm:$0xff]  ;;  %v3078_v28 = vld [vmem:[#allocation8 + $0xc18] sm:$0xff]  ;;  %17915 = vst [vmem:[#allocation181_spill] sm:$0xff] %v15636_v40  ;;  %v3077_v8 = vld [vmem:[#allocation8 + $0xc10] sm:$0xff] }
 0x37a   :  { %v3081_v10 = vld [vmem:[#allocation8 + $0xc30] sm:$0xff]  ;;  %v15658_v4 = vpack.c.bf16 %v3087_v59, %v3083_v52 }
 0x37b   :  { %17912 = vst [vmem:[#allocation178_spill] sm:$0xff] %v15628_v38  ;;  %17913 = vst [vmem:[#allocation179_spill] sm:$0xff] %v15630_v62  ;;  %v15648_v35 = vpack.c.bf16 %v3081_v10, %v3077_v8  ;;  %v3091_v8 = vld [vmem:[#allocation8 + $0xc80] sm:$0xff] }
 0x37c   :  { %11856 = vmatpush1.bf16.msra.mxu0 %v15610_v51  ;;  %11928 = vmatpush1.bf16.msra.mxu1 %v15612_v2  ;;  %v3080_v51 = vld [vmem:[#allocation8 + $0xc28] sm:$0xff]  ;;  %v3082_v2 = vld [vmem:[#allocation8 + $0xc38] sm:$0xff]  ;;  %17922 = vst [vmem:[#allocation188_spill] sm:$0xff] %v15658_v4  ;;  %v3095_v10 = vld [vmem:[#allocation8 + $0xca0] sm:$0xff] }
 0x37d   :  { %11858 = vmatprep.subr.bf16.mxu0 %v15616_v45  ;;  %11930 = vmatprep.subr.bf16.mxu1 %v15618_v63  ;;  %v15640_v47 = vpack.c.bf16 %v3080_v51, %v3076_v1  ;;  %v15642_v29 = vpack.c.bf16 %v3082_v2, %v3078_v28  ;;  %v3084_v63 = vld [vmem:[#allocation8 + $0xc48] sm:$0xff]  ;;  %v3086_v45 = vld [vmem:[#allocation8 + $0xc58] sm:$0xff]  ;;  %17919 = vst [vmem:[#allocation185_spill] sm:$0xff] %v15648_v35  ;;  %v3085_v51 = vld [vmem:[#allocation8 + $0xc50] sm:$0xff] }
 0x37e   :  { %v3089_v2 = vld [vmem:[#allocation8 + $0xc70] sm:$0xff]  ;;  %v15670_v52 = vpack.c.bf16 %v3095_v10, %v3091_v8  ;;  %v2972_v8 = vld [vmem:[#allocation2] sm:$0xfe] }
 0x37f   :  { %17916 = vst [vmem:[#allocation182_spill] sm:$0xff] %v15640_v47  ;;  %17917 = vst [vmem:[#allocation183_spill] sm:$0xff] %v15642_v29  ;;  %v15660_v48 = vpack.c.bf16 %v3089_v2, %v3085_v51  ;;  %v3099_v51 = vld [vmem:[#allocation8 + $0xcc0] sm:$0xff]  ;;  %v2975_v10 = vld [vmem:[#allocation2 + $0x18] sm:$0x1] }
 0x380   :  { %11860 = vmatpush1.bf16.msra.mxu0 %v15622_v34  ;;  %11932 = vmatpush1.bf16.msra.mxu1 %v15624_v46  ;;  %v3088_v34 = vld [vmem:[#allocation8 + $0xc68] sm:$0xff]  ;;  %v3090_v46 = vld [vmem:[#allocation8 + $0xc78] sm:$0xff]  ;;  %17926 = vst [vmem:[#allocation192_spill] sm:$0xff] %v15670_v52  ;;  %v3103_v2 = vld [vmem:[#allocation8 + $0xce0] sm:$0xff]  ;;  %v3131_v43 = vrot.slane %v2975_v10, 1 }
 0x381   :  { %11862 = vmatprep.subr.bf16.mxu0 %v15628_v38  ;;  %11934 = vmatprep.subr.bf16.mxu1 %v15630_v62  ;;  %v15652_v28 = vpack.c.bf16 %v3088_v34, %v3084_v63  ;;  %v15654_v1 = vpack.c.bf16 %v3090_v46, %v3086_v45  ;;  %v3092_v62 = vld [vmem:[#allocation8 + $0xc88] sm:$0xff]  ;;  %v3094_v38 = vld [vmem:[#allocation8 + $0xc98] sm:$0xff]  ;;  %17923 = vst [vmem:[#allocation189_spill] sm:$0xff] %v15660_v48  ;;  %v3093_v34 = vld [vmem:[#allocation8 + $0xc90] sm:$0xff] }
 0x382   :  { %v3097_v46 = vld [vmem:[#allocation8 + $0xcb0] sm:$0xff] }
 0x383   :  { %17920 = vst [vmem:[#allocation186_spill] sm:$0xff] %v15652_v28  ;;  %17921 = vst [vmem:[#allocation187_spill] sm:$0xff] %v15654_v1  ;;  %v15672_v59 = vpack.c.bf16 %v3097_v46, %v3093_v34  ;;  %v15682_v34 = vpack.c.bf16 %v3103_v2, %v3099_v51  ;;  %v3118_v51 = vld [vmem:[#allocation8 + $0xd58] sm:$0xff]  ;;  %v3121_v10 = vld [vmem:[#allocation8 + $0xd70] sm:$0xff] }
 0x384   :  { %11864 = vmatpush1.bf16.msra.mxu0 %v15634_v14  ;;  %11936 = vmatpush1.bf16.msra.mxu1 %v15636_v40  ;;  %v3096_v14 = vld [vmem:[#allocation8 + $0xca8] sm:$0xff]  ;;  %v3098_v40 = vld [vmem:[#allocation8 + $0xcb8] sm:$0xff] }
 0x385   :  { %11866 = vmatprep.subr.bf16.mxu0 %v15640_v47  ;;  %11938 = vmatprep.subr.bf16.mxu1 %v15642_v29  ;;  %v15664_v45 = vpack.c.bf16 %v3096_v14, %v3092_v62  ;;  %v15666_v63 = vpack.c.bf16 %v3098_v40, %v3094_v38  ;;  %v3100_v29 = vld [vmem:[#allocation8 + $0xcc8] sm:$0xff]  ;;  %v3102_v47 = vld [vmem:[#allocation8 + $0xcd8] sm:$0xff]  ;;  %17927 = vst [vmem:[#allocation193_spill] sm:$0xff] %v15672_v59  ;;  %v3101_v14 = vld [vmem:[#allocation8 + $0xcd0] sm:$0xff] }
 0x386   :  { %v3105_v40 = vld [vmem:[#allocation8 + $0xcf0] sm:$0xff]  ;;  %17929 = vst [vmem:[#allocation195_spill] sm:$0xff] %v15682_v34  ;;  %v3122_v2 = vld [vmem:[#allocation8 + $0xd78] sm:$0xff] }
 0x387   :  { %17924 = vst [vmem:[#allocation190_spill] sm:$0xff] %v15664_v45  ;;  %17925 = vst [vmem:[#allocation191_spill] sm:$0xff] %v15666_v63  ;;  %v15684_v46 = vpack.c.bf16 %v3105_v40, %v3101_v14 }
 0x388   :  { %11868 = vmatpush1.bf16.msra.mxu0 %v15646_v55  ;;  %11940 = vmatpush1.bf16.msra.mxu1 %v15648_v35  ;;  %v3104_v55 = vld [vmem:[#allocation8 + $0xce8] sm:$0xff]  ;;  %v3106_v35 = vld [vmem:[#allocation8 + $0xcf8] sm:$0xff] }
 0x389   :  { %11870 = vmatprep.subr.bf16.mxu0 %v15652_v28  ;;  %11942 = vmatprep.subr.bf16.mxu1 %v15654_v1  ;;  %v15676_v38 = vpack.c.bf16 %v3104_v55, %v3100_v29  ;;  %v15678_v62 = vpack.c.bf16 %v3106_v35, %v3102_v47  ;;  %v3108_v1 = vld [vmem:[#allocation8 + $0xd08] sm:$0xff]  ;;  %v3110_v28 = vld [vmem:[#allocation8 + $0xd18] sm:$0xff]  ;;  %17930 = vst [vmem:[#allocation196_spill] sm:$0xff] %v15684_v46  ;;  %v3107_v29 = vld [vmem:[#allocation8 + $0xd00] sm:$0xff] }
 0x38a   :  { %v3111_v55 = vld [vmem:[#allocation8 + $0xd20] sm:$0xff] }
 0x38b   :  { %17928 = vst [vmem:[#allocation194_spill] sm:$0xff] %v15678_v62  ;;  %v15694_v14 = vpack.c.bf16 %v3111_v55, %v3107_v29  ;;  %v17973_v29 = vld [vmem:[#allocation71_spill] sm:$0xff]  ;;  %v17974_v55 = vld [vmem:[#allocation72_spill] sm:$0xff] }
 0x38c   :  { %11872 = vmatpush1.bf16.msra.mxu0 %v15658_v4  ;;  %11944 = vmatpush1.bf16.msra.mxu1 %v15660_v48  ;;  %v3112_v4 = vld [vmem:[#allocation8 + $0xd28] sm:$0xff]  ;;  %v3114_v48 = vld [vmem:[#allocation8 + $0xd38] sm:$0xff] }
 0x38d   :  { %11874 = vmatprep.subr.bf16.mxu0 %v15664_v45  ;;  %11946 = vmatprep.subr.bf16.mxu1 %v15666_v63  ;;  %v15688_v47 = vpack.c.bf16 %v3112_v4, %v3108_v1  ;;  %v15690_v35 = vpack.c.bf16 %v3114_v48, %v3110_v28  ;;  %v3109_v63 = vld [vmem:[#allocation8 + $0xd10] sm:$0xff]  ;;  %v3115_v1 = vld [vmem:[#allocation8 + $0xd40] sm:$0xff] }
 0x38e   :  { %v3113_v45 = vld [vmem:[#allocation8 + $0xd30] sm:$0xff]  ;;  %v3119_v4 = vld [vmem:[#allocation8 + $0xd60] sm:$0xff] }
 0x38f   :  { %v15696_v40 = vpack.c.bf16 %v3113_v45, %v3109_v63  ;;  %v3117_v28 = vld [vmem:[#allocation8 + $0xd50] sm:$0xff]  ;;  %v15711_v45 = vpack.c.bf16 %v3119_v4, %v3115_v1  ;;  %v17977_v1 = vld [vmem:[#allocation75_spill] sm:$0xff] }
 0x390   :  { %11876 = vmatpush1.bf16.msra.mxu0 %v15670_v52  ;;  %11948 = vmatpush1.bf16.msra.mxu1 %v15672_v59  ;;  %v3130_v52 = vrot.slane %v2972_v8, 1  ;;  %v3120_v59 = vld [vmem:[#allocation8 + $0xd68] sm:$0xff]  ;;  %v15702_v8 = vpack.c.bf16 %v3122_v2, %v3118_v51  ;;  %v17975_v51 = vld [vmem:[#allocation73_spill] sm:$0xff]  ;;  %v17976_v2 = vld [vmem:[#allocation74_spill] sm:$0xff] }
 0x391   :  { %11878 = vmatprep.subr.bf16.mxu0 %v15676_v38  ;;  %11950 = vmatprep.subr.bf16.mxu1 %v15678_v62  ;;  %v15700_v48 = vpack.c.bf16 %v3120_v59, %v3116_v54  ;;  %v2974_v62 = vld [vmem:[#allocation2 + $0x10] sm:$0xfe]  ;;  %v15713_v54 = vpack.c.bf16 %v3121_v10, %v3117_v28  ;;  %v17980_v10 = vld [vmem:[#allocation78_spill] sm:$0xff] }
 0x392   :  { %v3136_v63 = vrot.slane %v2974_v62, 1  ;;  %v17970_v62 = vld [vmem:[#allocation68_spill] sm:$0xff]  ;;  %v17979_v28 = vld [vmem:[#allocation77_spill] sm:$0xff] }
 0x393   :  { %v17978_v4 = vld [vmem:[#allocation76_spill] sm:$0xff] }
 0x394   :  { %11880 = vmatpush1.bf16.msra.mxu0 %v15682_v34  ;;  %11952 = vmatpush1.bf16.msra.mxu1 %v15684_v46  ;;  %v2977_v34 = vld [vmem:[#allocation2 + $0x28] sm:$0x1]  ;;  %v15705_v46 = vsel %vm3129_vm7, %v3130_v52, %v3131_v43  ;;  %v15717_v43 = vld [vmem:[#allocation2 + $0x60] sm:$0xff] }
 0x395   :  { %11882 = vmatprep.subr.bf16.mxu0 %v15688_v47  ;;  %11954 = vmatprep.subr.bf16.mxu1 %v15690_v35  ;;  %v3137_v59 = vrot.slane %v2977_v34, 1  ;;  %v17971_v34 = vld [vmem:[#allocation69_spill] sm:$0xff] }
 0x397   :  { %3208 = vmatmul.mubr.f32.vlgmr.msra.gmra.mrb[8].mxu0 %v15705_v46  ;;  %3350 = vmatmul.mubr.f32.vlgmr.msra.gmra.mrb[8].mxu1 %v15705_v46  ;;  %v15724_v52 = vsel %vm3129_vm7, %v3136_v63, %v3137_v59  ;;  %v17981_v63 = vld [vmem:[#allocation79_spill] sm:$0xff]  ;;  %v17982_v59 = vld [vmem:[#allocation80_spill] sm:$0xff] }
 0x398   :  { %11884 = vmatpush1.bf16.msra.mxu0 %v15694_v14  ;;  %11956 = vmatpush1.bf16.msra.mxu1 %v15696_v40 }
 0x399   :  { %11886 = vmatprep.subr.bf16.mxu0 %v15700_v48  ;;  %11958 = vmatprep.subr.bf16.mxu1 %v15702_v8 }
 0x39a   :  { %3278 = vmatprep.mubr.f32.mxu0 %v15717_v43  ;;  %3420 = vmatprep.mubr.f32.mxu1 %v15717_v43 }
 0x39c   :  { %11888 = vmatpush1.bf16.msra.mxu0 %v15711_v45  ;;  %11960 = vmatpush1.bf16.msra.mxu1 %v15713_v54 }
 0x39d   :  { %11962 = vmatprep.subr.bf16.mxu0 %v15017_v12  ;;  %12034 = vmatprep.subr.bf16.mxu1 %v15019_v17  ;;  %v17931_v12 = vld [vmem:[#allocation29_spill] sm:$0xff]  ;;  %v17932_v17 = vld [vmem:[#allocation30_spill] sm:$0xff] }
 0x39f   :  { %10527 = vmatmul.mubr.msk.f32.vlgmr.msra.gmra.mrb[8].mxu0 %vm136_vm4, %v15724_v52  ;;  %10528 = vmatmul.mubr.msk.f32.vlgmr.msra.gmra.mrb[8].mxu1 %vm136_vm4, %v15724_v52 }
 0x3a0   :  { %11964 = vmatpush1.bf16.msra.mxu0 %v15021_v20  ;;  %3521 = vmatprep.mubr.f32.mxu0 %v15510_v58  ;;  %v17933_v20 = vld [vmem:[#allocation31_spill] sm:$0xff] }
 0x3a1   :  { %12036 = vmatpush1.bf16.msra.mxu1 %v15024_v9  ;;  %3663 = vmatprep.mubr.f32.mxu1 %v15510_v58  ;;  %v17934_v9 = vld [vmem:[#allocation32_spill] sm:$0xff]  ;;  %v17969_v58 = vld [vmem:[#allocation67_spill] sm:$0xff] }
 0x3a2   :  { %11966 = vmatprep.subr.bf16.mxu0 %v15028_v19  ;;  %12038 = vmatprep.subr.bf16.mxu1 %v15030_v23  ;;  %v17935_v19 = vld [vmem:[#allocation33_spill] sm:$0xff]  ;;  %v17936_v23 = vld [vmem:[#allocation34_spill] sm:$0xff] }
 0x3a4   :  { %11968 = vmatpush1.bf16.msra.mxu0 %v15033_v31  ;;  %v17937_v31 = vld [vmem:[#allocation35_spill] sm:$0xff] }
 0x3a5   :  { %12040 = vmatpush1.bf16.msra.mxu1 %v15037_v37  ;;  %11970 = vmatprep.subr.bf16.mxu0 %v15039_v39  ;;  %v17938_v37 = vld [vmem:[#allocation36_spill] sm:$0xff]  ;;  %v17939_v39 = vld [vmem:[#allocation37_spill] sm:$0xff] }
 0x3a6   :  { %12042 = vmatprep.subr.bf16.mxu1 %v15041_v50  ;;  %v17940_v50 = vld [vmem:[#allocation38_spill] sm:$0xff] }
 0x3a8   :  { %11972 = vmatpush1.bf16.msra.mxu0 %v15044_v56  ;;  %v17941_v56 = vld [vmem:[#allocation39_spill] sm:$0xff] }
 0x3a9   :  { %12044 = vmatpush1.bf16.msra.mxu1 %v15048_v60  ;;  %11974 = vmatprep.subr.bf16.mxu0 %v15050_v61  ;;  %v17942_v60 = vld [vmem:[#allocation40_spill] sm:$0xff]  ;;  %v17943_v61 = vld [vmem:[#allocation41_spill] sm:$0xff] }
 0x3aa   :  { %12046 = vmatprep.subr.bf16.mxu1 %v15053_v0  ;;  %v17944_v0 = vld [vmem:[#allocation42_spill] sm:$0xff] }
 0x3ac   :  { %11976 = vmatpush1.bf16.msra.mxu0 %v15056_v16  ;;  %v17945_v16 = vld [vmem:[#allocation43_spill] sm:$0xff] }
 0x3ad   :  { %12048 = vmatpush1.bf16.msra.mxu1 %v15060_v21  ;;  %11978 = vmatprep.subr.bf16.mxu0 %v15062_v22  ;;  %v17946_v21 = vld [vmem:[#allocation44_spill] sm:$0xff]  ;;  %v17947_v22 = vld [vmem:[#allocation45_spill] sm:$0xff] }
 0x3ae   :  { %12050 = vmatprep.subr.bf16.mxu1 %v15065_v18  ;;  %v17948_v18 = vld [vmem:[#allocation46_spill] sm:$0xff] }
 0x3b0   :  { %11980 = vmatpush1.bf16.msra.mxu0 %v15068_v36  ;;  %v17949_v36 = vld [vmem:[#allocation47_spill] sm:$0xff] }
 0x3b1   :  { %12052 = vmatpush1.bf16.msra.mxu1 %v15072_v41  ;;  %11982 = vmatprep.subr.bf16.mxu0 %v15074_v42  ;;  %v17950_v41 = vld [vmem:[#allocation48_spill] sm:$0xff]  ;;  %v17951_v42 = vld [vmem:[#allocation49_spill] sm:$0xff] }
 0x3b2   :  { %12054 = vmatprep.subr.bf16.mxu1 %v15077_v53  ;;  %v17952_v53 = vld [vmem:[#allocation50_spill] sm:$0xff] }
 0x3b4   :  { %11984 = vmatpush1.bf16.msra.mxu0 %v15080_v3  ;;  %v17953_v3 = vld [vmem:[#allocation51_spill] sm:$0xff] }
 0x3b5   :  { %12056 = vmatpush1.bf16.msra.mxu1 %v15084_v6  ;;  %11986 = vmatprep.subr.bf16.mxu0 %v15086_v7  ;;  %v17954_v6 = vld [vmem:[#allocation52_spill] sm:$0xff]  ;;  %v17955_v7 = vld [vmem:[#allocation53_spill] sm:$0xff] }
 0x3b6   :  { %12058 = vmatprep.subr.bf16.mxu1 %v15089_v15  ;;  %v17956_v15 = vld [vmem:[#allocation54_spill] sm:$0xff] }
 0x3b8   :  { %11988 = vmatpush1.bf16.msra.mxu0 %v15092_v30  ;;  %v17957_v30 = vld [vmem:[#allocation55_spill] sm:$0xff] }
 0x3b9   :  { %12060 = vmatpush1.bf16.msra.mxu1 %v15096_v32  ;;  %11990 = vmatprep.subr.bf16.mxu0 %v15098_v33  ;;  %v17958_v32 = vld [vmem:[#allocation56_spill] sm:$0xff]  ;;  %v17959_v33 = vld [vmem:[#allocation57_spill] sm:$0xff] }
 0x3ba   :  { %12062 = vmatprep.subr.bf16.mxu1 %v15101_v57  ;;  %v17960_v57 = vld [vmem:[#allocation58_spill] sm:$0xff] }
 0x3bc   :  { %11992 = vmatpush1.bf16.msra.mxu0 %v15104_v11  ;;  %v17961_v11 = vld [vmem:[#allocation59_spill] sm:$0xff] }
 0x3bd   :  { %12064 = vmatpush1.bf16.msra.mxu1 %v15108_v13  ;;  %11994 = vmatprep.subr.bf16.mxu0 %v15110_v5  ;;  %v17962_v13 = vld [vmem:[#allocation60_spill] sm:$0xff]  ;;  %v17963_v5 = vld [vmem:[#allocation61_spill] sm:$0xff] }
 0x3be   :  { %12066 = vmatprep.subr.bf16.mxu1 %v17931_v12  ;;  %v17984_v12 = vld [vmem:[#allocation82_spill] sm:$0xff] }
 0x3c0   :  { %11996 = vmatpush1.bf16.msra.mxu0 %v17932_v17  ;;  %v17985_v17 = vld [vmem:[#allocation83_spill] sm:$0xff] }
 0x3c1   :  { %12068 = vmatpush1.bf16.msra.mxu1 %v17933_v20  ;;  %11998 = vmatprep.subr.bf16.mxu0 %v17934_v9  ;;  %v17986_v20 = vld [vmem:[#allocation84_spill] sm:$0xff]  ;;  %v17987_v9 = vld [vmem:[#allocation85_spill] sm:$0xff] }
 0x3c2   :  { %12070 = vmatprep.subr.bf16.mxu1 %v17935_v19  ;;  %v17988_v19 = vld [vmem:[#allocation86_spill] sm:$0xff] }
 0x3c4   :  { %12000 = vmatpush1.bf16.msra.mxu0 %v17936_v23  ;;  %v17989_v23 = vld [vmem:[#allocation87_spill] sm:$0xff] }
 0x3c5   :  { %12072 = vmatpush1.bf16.msra.mxu1 %v17937_v31  ;;  %12002 = vmatprep.subr.bf16.mxu0 %v17938_v37  ;;  %v17990_v31 = vld [vmem:[#allocation88_spill] sm:$0xff]  ;;  %v17991_v37 = vld [vmem:[#allocation89_spill] sm:$0xff] }
 0x3c6   :  { %12074 = vmatprep.subr.bf16.mxu1 %v17939_v39  ;;  %v17992_v39 = vld [vmem:[#allocation90_spill] sm:$0xff] }
 0x3c8   :  { %12004 = vmatpush1.bf16.msra.mxu0 %v17940_v50  ;;  %v17993_v50 = vld [vmem:[#allocation91_spill] sm:$0xff] }
 0x3c9   :  { %12076 = vmatpush1.bf16.msra.mxu1 %v17941_v56  ;;  %12006 = vmatprep.subr.bf16.mxu0 %v15146_v27  ;;  %v17965_v27 = vld [vmem:[#allocation63_spill] sm:$0xff]  ;;  %v17994_v56 = vld [vmem:[#allocation92_spill] sm:$0xff] }
 0x3ca   :  { %12078 = vmatprep.subr.bf16.mxu1 %v17942_v60  ;;  %v17995_v60 = vld [vmem:[#allocation93_spill] sm:$0xff] }
 0x3cc   :  { %12008 = vmatpush1.bf16.msra.mxu0 %v15152_v44  ;;  %v17964_v44 = vld [vmem:[#allocation62_spill] sm:$0xff] }
 0x3cd   :  { %12080 = vmatpush1.bf16.msra.mxu1 %v15156_v24  ;;  %12010 = vmatprep.subr.bf16.mxu0 %v17943_v61  ;;  %v17966_v24 = vld [vmem:[#allocation64_spill] sm:$0xff]  ;;  %v17996_v61 = vld [vmem:[#allocation94_spill] sm:$0xff] }
 0x3ce   :  { %12082 = vmatprep.subr.bf16.mxu1 %v17944_v0  ;;  %v17997_v0 = vld [vmem:[#allocation95_spill] sm:$0xff] }
 0x3d0   :  { %12012 = vmatpush1.bf16.msra.mxu0 %v17945_v16  ;;  %v17998_v16 = vld [vmem:[#allocation96_spill] sm:$0xff] }
 0x3d1   :  { %12084 = vmatpush1.bf16.msra.mxu1 %v17946_v21  ;;  %12014 = vmatprep.subr.bf16.mxu0 %v17947_v22  ;;  %v17999_v21 = vld [vmem:[#allocation97_spill] sm:$0xff]  ;;  %v18000_v22 = vld [vmem:[#allocation98_spill] sm:$0xff] }
 0x3d2   :  { %12086 = vmatprep.subr.bf16.mxu1 %v17948_v18  ;;  %v18001_v18 = vld [vmem:[#allocation99_spill] sm:$0xff] }
 0x3d4   :  { %12016 = vmatpush1.bf16.msra.mxu0 %v17949_v36  ;;  %v18002_v36 = vld [vmem:[#allocation100_spill] sm:$0xff] }
 0x3d5   :  { %12088 = vmatpush1.bf16.msra.mxu1 %v17950_v41  ;;  %12018 = vmatprep.subr.bf16.mxu0 %v17951_v42  ;;  %v18003_v41 = vld [vmem:[#allocation101_spill] sm:$0xff]  ;;  %v18004_v42 = vld [vmem:[#allocation102_spill] sm:$0xff] }
 0x3d6   :  { %12090 = vmatprep.subr.bf16.mxu1 %v17952_v53  ;;  %v18005_v53 = vld [vmem:[#allocation103_spill] sm:$0xff] }
 0x3d8   :  { %12020 = vmatpush1.bf16.msra.mxu0 %v17953_v3  ;;  %v18006_v3 = vld [vmem:[#allocation104_spill] sm:$0xff] }
 0x3d9   :  { %12092 = vmatpush1.bf16.msra.mxu1 %v17954_v6  ;;  %12022 = vmatprep.subr.bf16.mxu0 %v15197_v49  ;;  %v17967_v49 = vld [vmem:[#allocation65_spill] sm:$0xff] }
 0x3da   :  { %12094 = vmatprep.subr.bf16.mxu1 %v15201_v25  ;;  %v17968_v25 = vld [vmem:[#allocation66_spill] sm:$0xff]  ;;  %v18007_v6 = vld [vmem:[#allocation105_spill] sm:$0xff] }
 0x3dc   :  { %12024 = vmatpush1.bf16.msra.mxu0 %v15203_v26  ;;  %v14220_v26 = vld [vmem:[#allocation2 + $0x38] sm:$0xff] }
 0x3dd   :  { %12096 = vmatpush1.bf16.msra.mxu1 %v17955_v7  ;;  %12026 = vmatprep.subr.bf16.mxu0 %v17956_v15  ;;  %v18008_v7 = vld [vmem:[#allocation106_spill] sm:$0xff]  ;;  %v18009_v15 = vld [vmem:[#allocation107_spill] sm:$0xff] }
 0x3de   :  { %12098 = vmatprep.subr.bf16.mxu1 %v17957_v30  ;;  %v18010_v30 = vld [vmem:[#allocation108_spill] sm:$0xff] }
 0x3df   :  { %3522 = vmatmul.mubr.f32.vlgmr.msra.gmra.mrb[10].mxu0 %v15705_v46 }
 0x3e0   :  { %3664 = vmatmul.mubr.f32.vlgmr.msra.gmra.mrb[10].mxu1 %v15705_v46  ;;  %12028 = vmatpush1.bf16.msra.mxu0 %v17958_v32  ;;  %v17972_v46 = vld [vmem:[#allocation70_spill] sm:$0xff]  ;;  %v18011_v32 = vld [vmem:[#allocation109_spill] sm:$0xff] }
 0x3e1   :  { %12100 = vmatpush1.bf16.msra.mxu1 %v17959_v33  ;;  %12030 = vmatprep.subr.bf16.mxu0 %v17960_v57  ;;  %v18012_v33 = vld [vmem:[#allocation110_spill] sm:$0xff]  ;;  %v18013_v57 = vld [vmem:[#allocation111_spill] sm:$0xff] }
 0x3e2   :  { %12102 = vmatprep.subr.bf16.mxu1 %v17961_v11  ;;  %3592 = vmatprep.mubr.f32.mxu0 %v15717_v43  ;;  %v18014_v11 = vld [vmem:[#allocation112_spill] sm:$0xff] }
 0x3e3   :  { %3734 = vmatprep.mubr.f32.mxu1 %v15717_v43 }
 0x3e4   :  { %12032 = vmatpush1.bf16.msra.mxu0 %v17962_v13  ;;  %v18015_v13 = vld [vmem:[#allocation113_spill] sm:$0xff] }
 0x3e5   :  { %12104 = vmatpush1.bf16.msra.mxu1 %v17963_v5  ;;  %12106 = vmatprep.subr.bf16.mxu0 %v17964_v44  ;;  %v18016_v5 = vld [vmem:[#allocation114_spill] sm:$0xff]  ;;  %v18017_v44 = vld [vmem:[#allocation115_spill] sm:$0xff] }
 0x3e6   :  { %12178 = vmatprep.subr.bf16.mxu1 %v17965_v27  ;;  %v18018_v27 = vld [vmem:[#allocation116_spill] sm:$0xff] }
 0x3e7   :  { %10529 = vmatmul.mubr.msk.f32.vlgmr.msra.gmra.mrb[10].mxu0 %vm136_vm4, %v15724_v52 }
 0x3e8   :  { %10530 = vmatmul.mubr.msk.f32.vlgmr.msra.gmra.mrb[10].mxu1 %vm136_vm4, %v15724_v52  ;;  %12108 = vmatpush1.bf16.msra.mxu0 %v17966_v24  ;;  %v17983_v52 = vld [vmem:[#allocation81_spill] sm:$0xff] }
 0x3e9   :  { %3805 = vmatprep.mubr.f32.mxu0 %v14220_v26  ;;  %12180 = vmatpush1.bf16.msra.mxu1 %v17967_v49  ;;  %v18019_v24 = vld [vmem:[#allocation117_spill] sm:$0xff]  ;;  %v18021_v49 = vld [vmem:[#allocation119_spill] sm:$0xff] }
 0x3ea   :  { %3947 = vmatprep.mubr.f32.mxu1 %v14220_v26  ;;  %12110 = vmatprep.subr.bf16.mxu0 %v17968_v25  ;;  %v18020_v26 = vld [vmem:[#allocation118_spill] sm:$0xff]  ;;  %v18022_v25 = vld [vmem:[#allocation120_spill] sm:$0xff] }
 0x3eb   :  { %12182 = vmatprep.subr.bf16.mxu1 %v17969_v58  ;;  %v18023_v58 = vld [vmem:[#allocation121_spill] sm:$0xff] }
 0x3ec   :  { %12112 = vmatpush1.bf16.msra.mxu0 %v17970_v62  ;;  %v18024_v62 = vld [vmem:[#allocation122_spill] sm:$0xff] }
 0x3ed   :  { %12184 = vmatpush1.bf16.msra.mxu1 %v17971_v34  ;;  %12114 = vmatprep.subr.bf16.mxu0 %v17972_v46  ;;  %v18025_v34 = vld [vmem:[#allocation123_spill] sm:$0xff]  ;;  %v18026_v46 = vld [vmem:[#allocation124_spill] sm:$0xff] }
 0x3ee   :  { %12186 = vmatprep.subr.bf16.mxu1 %v17973_v29  ;;  %v18027_v29 = vld [vmem:[#allocation125_spill] sm:$0xff] }
 0x3f0   :  { %12116 = vmatpush1.bf16.msra.mxu0 %v17974_v55  ;;  %v18028_v55 = vld [vmem:[#allocation126_spill] sm:$0xff] }
 0x3f1   :  { %12188 = vmatpush1.bf16.msra.mxu1 %v17975_v51  ;;  %12118 = vmatprep.subr.bf16.mxu0 %v17976_v2  ;;  %v18029_v51 = vld [vmem:[#allocation127_spill] sm:$0xff]  ;;  %v14221_v2 = vld [vmem:[#allocation2 + $0x30] sm:$0xff] }
 0x3f2   :  { %12190 = vmatprep.subr.bf16.mxu1 %v17977_v1  ;;  %v18030_v1 = vld [vmem:[#allocation128_spill] sm:$0xff] }
 0x3f4   :  { %12120 = vmatpush1.bf16.msra.mxu0 %v17978_v4  ;;  %v18031_v4 = vld [vmem:[#allocation129_spill] sm:$0xff] }
 0x3f5   :  { %12192 = vmatpush1.bf16.msra.mxu1 %v17979_v28  ;;  %12122 = vmatprep.subr.bf16.mxu0 %v17980_v10  ;;  %v18032_v28 = vld [vmem:[#allocation130_spill] sm:$0xff] }
 0x3f6   :  { %12194 = vmatprep.subr.bf16.mxu1 %v17981_v63  ;;  %v4026_v10 = vld [vmem:[#allocation2 + $0x38] sm:$0xfe]  ;;  %v4029_v63 = vld [vmem:[#allocation2 + $0x50] sm:$0x1] }
 0x3f8   :  { %12124 = vmatpush1.bf16.msra.mxu0 %v17982_v59  ;;  %v18033_v59 = vld [vmem:[#allocation131_spill] sm:$0xff] }
 0x3f9   :  { %12196 = vmatpush1.bf16.msra.mxu1 %v17983_v52  ;;  %12126 = vmatprep.subr.bf16.mxu0 %v17984_v12  ;;  %v18034_v52 = vld [vmem:[#allocation132_spill] sm:$0xff]  ;;  %v4040_v12 = vrot.slane %v4026_v10, 1  ;;  %v18081_v10 = vld [vmem:[#allocation179_spill] sm:$0xff] }
 0x3fa   :  { %12198 = vmatprep.subr.bf16.mxu1 %v17985_v17  ;;  %v4041_v17 = vrot.slane %v4029_v63, 1  ;;  %v18082_v63 = vld [vmem:[#allocation180_spill] sm:$0xff] }
 0x3fc   :  { %12128 = vmatpush1.bf16.msra.mxu0 %v17986_v20  ;;  %v18035_v20 = vld [vmem:[#allocation133_spill] sm:$0xff] }
 0x3fd   :  { %12200 = vmatpush1.bf16.msra.mxu1 %v17987_v9  ;;  %12130 = vmatprep.subr.bf16.mxu0 %v17988_v19  ;;  %v18036_v9 = vld [vmem:[#allocation134_spill] sm:$0xff]  ;;  %v18037_v19 = vld [vmem:[#allocation135_spill] sm:$0xff] }
 0x3fe   :  { %12202 = vmatprep.subr.bf16.mxu1 %v17989_v23  ;;  %v14222_v23 = vld [vmem:[#allocation2 + $0x40] sm:$0xff] }
 0x400   :  { %12132 = vmatpush1.bf16.msra.mxu0 %v17990_v31  ;;  %v18038_v31 = vld [vmem:[#allocation136_spill] sm:$0xff] }
 0x401   :  { %12204 = vmatpush1.bf16.msra.mxu1 %v17991_v37  ;;  %12134 = vmatprep.subr.bf16.mxu0 %v17992_v39  ;;  %v4042_v37 = vsel %vm3129_vm7, %v4040_v12, %v4041_v17  ;;  %v18039_v39 = vld [vmem:[#allocation137_spill] sm:$0xff]  ;;  %v18085_v12 = vld [vmem:[#allocation183_spill] sm:$0xff]  ;;  %v18086_v17 = vld [vmem:[#allocation184_spill] sm:$0xff] }
 0x402   :  { %12206 = vmatprep.subr.bf16.mxu1 %v17993_v50  ;;  %v18040_v50 = vld [vmem:[#allocation138_spill] sm:$0xff] }
 0x404   :  { %12136 = vmatpush1.bf16.msra.mxu0 %v17994_v56  ;;  %v18041_v56 = vld [vmem:[#allocation139_spill] sm:$0xff] }
 0x405   :  { %12208 = vmatpush1.bf16.msra.mxu1 %v17995_v60  ;;  %12138 = vmatprep.subr.bf16.mxu0 %v17996_v61  ;;  %v18042_v60 = vld [vmem:[#allocation140_spill] sm:$0xff]  ;;  %v18043_v61 = vld [vmem:[#allocation141_spill] sm:$0xff] }
 0x406   :  { %12210 = vmatprep.subr.bf16.mxu1 %v17997_v0  ;;  %v18044_v0 = vld [vmem:[#allocation142_spill] sm:$0xff] }
 0x408   :  { %12140 = vmatpush1.bf16.msra.mxu0 %v17998_v16  ;;  %v18045_v16 = vld [vmem:[#allocation143_spill] sm:$0xff] }
 0x409   :  { %12212 = vmatpush1.bf16.msra.mxu1 %v17999_v21  ;;  %12142 = vmatprep.subr.bf16.mxu0 %v18000_v22  ;;  %v18046_v21 = vld [vmem:[#allocation144_spill] sm:$0xff]  ;;  %v18047_v22 = vld [vmem:[#allocation145_spill] sm:$0xff] }
 0x40a   :  { %12214 = vmatprep.subr.bf16.mxu1 %v18001_v18  ;;  %v18048_v18 = vld [vmem:[#allocation146_spill] sm:$0xff] }
 0x40c   :  { %12144 = vmatpush1.bf16.msra.mxu0 %v18002_v36  ;;  %v18049_v36 = vld [vmem:[#allocation147_spill] sm:$0xff] }
 0x40d   :  { %12216 = vmatpush1.bf16.msra.mxu1 %v18003_v41  ;;  %12146 = vmatprep.subr.bf16.mxu0 %v18004_v42  ;;  %v18050_v41 = vld [vmem:[#allocation148_spill] sm:$0xff]  ;;  %v18051_v42 = vld [vmem:[#allocation149_spill] sm:$0xff] }
 0x40e   :  { %12218 = vmatprep.subr.bf16.mxu1 %v18005_v53  ;;  %v18052_v53 = vld [vmem:[#allocation150_spill] sm:$0xff] }
 0x410   :  { %12148 = vmatpush1.bf16.msra.mxu0 %v18006_v3  ;;  %v18053_v3 = vld [vmem:[#allocation151_spill] sm:$0xff] }
 0x411   :  { %12220 = vmatpush1.bf16.msra.mxu1 %v18007_v6  ;;  %12150 = vmatprep.subr.bf16.mxu0 %v18008_v7  ;;  %v18054_v6 = vld [vmem:[#allocation152_spill] sm:$0xff]  ;;  %v18055_v7 = vld [vmem:[#allocation153_spill] sm:$0xff] }
 0x412   :  { %12222 = vmatprep.subr.bf16.mxu1 %v18009_v15  ;;  %v18056_v15 = vld [vmem:[#allocation154_spill] sm:$0xff] }
 0x414   :  { %12152 = vmatpush1.bf16.msra.mxu0 %v18010_v30  ;;  %v18057_v30 = vld [vmem:[#allocation155_spill] sm:$0xff] }
 0x415   :  { %12224 = vmatpush1.bf16.msra.mxu1 %v18011_v32  ;;  %12154 = vmatprep.subr.bf16.mxu0 %v18012_v33  ;;  %v18058_v32 = vld [vmem:[#allocation156_spill] sm:$0xff]  ;;  %v18059_v33 = vld [vmem:[#allocation157_spill] sm:$0xff] }
 0x416   :  { %12226 = vmatprep.subr.bf16.mxu1 %v18013_v57  ;;  %v18060_v57 = vld [vmem:[#allocation158_spill] sm:$0xff] }
 0x418   :  { %12156 = vmatpush1.bf16.msra.mxu0 %v18014_v11  ;;  %v18061_v11 = vld [vmem:[#allocation159_spill] sm:$0xff] }
 0x419   :  { %12228 = vmatpush1.bf16.msra.mxu1 %v18015_v13  ;;  %12158 = vmatprep.subr.bf16.mxu0 %v18016_v5  ;;  %v18062_v13 = vld [vmem:[#allocation160_spill] sm:$0xff]  ;;  %v18063_v5 = vld [vmem:[#allocation161_spill] sm:$0xff] }
 0x41a   :  { %12230 = vmatprep.subr.bf16.mxu1 %v18017_v44  ;;  %v18064_v44 = vld [vmem:[#allocation162_spill] sm:$0xff] }
 0x41c   :  { %12160 = vmatpush1.bf16.msra.mxu0 %v18018_v27  ;;  %v18065_v27 = vld [vmem:[#allocation163_spill] sm:$0xff] }
 0x41d   :  { %12232 = vmatpush1.bf16.msra.mxu1 %v18019_v24  ;;  %12162 = vmatprep.subr.bf16.mxu0 %v18020_v26  ;;  %v18066_v24 = vld [vmem:[#allocation164_spill] sm:$0xff]  ;;  %v18067_v26 = vld [vmem:[#allocation165_spill] sm:$0xff] }
 0x41e   :  { %12234 = vmatprep.subr.bf16.mxu1 %v18021_v49  ;;  %v18068_v49 = vld [vmem:[#allocation166_spill] sm:$0xff] }
 0x420   :  { %12164 = vmatpush1.bf16.msra.mxu0 %v18022_v25  ;;  %v18069_v25 = vld [vmem:[#allocation167_spill] sm:$0xff] }
 0x421   :  { %12236 = vmatpush1.bf16.msra.mxu1 %v18023_v58  ;;  %12166 = vmatprep.subr.bf16.mxu0 %v18024_v62  ;;  %v18070_v58 = vld [vmem:[#allocation168_spill] sm:$0xff]  ;;  %v18071_v62 = vld [vmem:[#allocation169_spill] sm:$0xff] }
 0x422   :  { %12238 = vmatprep.subr.bf16.mxu1 %v18025_v34  ;;  %v18072_v34 = vld [vmem:[#allocation170_spill] sm:$0xff] }
 0x424   :  { %12168 = vmatpush1.bf16.msra.mxu0 %v18026_v46  ;;  %v18073_v46 = vld [vmem:[#allocation171_spill] sm:$0xff] }
 0x425   :  { %12240 = vmatpush1.bf16.msra.mxu1 %v18027_v29  ;;  %12170 = vmatprep.subr.bf16.mxu0 %v18028_v55  ;;  %v18074_v29 = vld [vmem:[#allocation172_spill] sm:$0xff]  ;;  %v18075_v55 = vld [vmem:[#allocation173_spill] sm:$0xff] }
 0x426   :  { %12242 = vmatprep.subr.bf16.mxu1 %v18029_v51  ;;  %v18076_v51 = vld [vmem:[#allocation174_spill] sm:$0xff] }
 0x427   :  { %3806 = vmatmul.mubr.f32.vlgmr.msra.gmra.mrb[10].mxu0 %v14221_v2 }
 0x428   :  { %3948 = vmatmul.mubr.f32.vlgmr.msra.gmra.mrb[10].mxu1 %v14221_v2  ;;  %12172 = vmatpush1.bf16.msra.mxu0 %v18030_v1  ;;  %v18077_v2 = vld [vmem:[#allocation175_spill] sm:$0xff]  ;;  %v18078_v1 = vld [vmem:[#allocation176_spill] sm:$0xff] }
 0x429   :  { %12244 = vmatpush1.bf16.msra.mxu1 %v18031_v4  ;;  %12174 = vmatprep.subr.bf16.mxu0 %v18032_v28  ;;  %v18079_v4 = vld [vmem:[#allocation177_spill] sm:$0xff]  ;;  %v18080_v28 = vld [vmem:[#allocation178_spill] sm:$0xff] }
 0x42a   :  { %12246 = vmatprep.subr.bf16.mxu1 %v18033_v59  ;;  %3876 = vmatprep.mubr.f32.mxu0 %v15717_v43  ;;  %v18083_v59 = vld [vmem:[#allocation181_spill] sm:$0xff] }
 0x42b   :  { %4018 = vmatprep.mubr.f32.mxu1 %v15717_v43 }
 0x42c   :  { %12176 = vmatpush1.bf16.msra.mxu0 %v18034_v52  ;;  %v18084_v52 = vld [vmem:[#allocation182_spill] sm:$0xff] }
 0x42d   :  { %12248 = vmatpush1.bf16.msra.mxu1 %v18035_v20  ;;  %12250 = vmatprep.subr.bf16.mxu0 %v18036_v9  ;;  %v18087_v20 = vld [vmem:[#allocation185_spill] sm:$0xff]  ;;  %v18088_v9 = vld [vmem:[#allocation186_spill] sm:$0xff] }
 0x42e   :  { %12322 = vmatprep.subr.bf16.mxu1 %v18037_v19  ;;  %v18089_v19 = vld [vmem:[#allocation187_spill] sm:$0xff] }
 0x42f   :  { %10531 = vmatmul.mubr.msk.f32.vlgmr.msra.gmra.mrb[10].mxu0 %vm136_vm4, %v14222_v23 }
 0x430   :  { %10532 = vmatmul.mubr.msk.f32.vlgmr.msra.gmra.mrb[10].mxu1 %vm136_vm4, %v14222_v23  ;;  %12252 = vmatpush1.bf16.msra.mxu0 %v18038_v31  ;;  %v18090_v23 = vld [vmem:[#allocation188_spill] sm:$0xff]  ;;  %v18091_v31 = vld [vmem:[#allocation189_spill] sm:$0xff] }
 0x431   :  { %4114 = vmatprep.mubr.f32.mxu0 %v4042_v37  ;;  %12324 = vmatpush1.bf16.msra.mxu1 %v18039_v39  ;;  %v18093_v39 = vld [vmem:[#allocation191_spill] sm:$0xff] }
 0x432   :  { %4256 = vmatprep.mubr.f32.mxu1 %v4042_v37  ;;  %12254 = vmatprep.subr.bf16.mxu0 %v18040_v50  ;;  %v18092_v37 = vld [vmem:[#allocation190_spill] sm:$0xff]  ;;  %v4025_v50 = vld [vmem:[#allocation2 + $0x30] sm:$0xfe] }
 0x433   :  { %12326 = vmatprep.subr.bf16.mxu1 %v18041_v56  ;;  %v4028_v56 = vld [vmem:[#allocation2 + $0x48] sm:$0x1] }
 0x434   :  { %12256 = vmatpush1.bf16.msra.mxu0 %v18042_v60  ;;  %v18094_v60 = vld [vmem:[#allocation192_spill] sm:$0xff] }
 0x435   :  { %12328 = vmatpush1.bf16.msra.mxu1 %v18043_v61  ;;  %12258 = vmatprep.subr.bf16.mxu0 %v18044_v0  ;;  %v18095_v61 = vld [vmem:[#allocation193_spill] sm:$0xff]  ;;  %v18096_v0 = vld [vmem:[#allocation194_spill] sm:$0xff] }
 0x436   :  { %12330 = vmatprep.subr.bf16.mxu1 %v18045_v16  ;;  %v4037_v16 = vrot.slane %v4025_v50, 1  ;;  %v4357_v50 = vld [vmem:[#allocation11 + $0x38] sm:$0xff] }
 0x438   :  { %12260 = vmatpush1.bf16.msra.mxu0 %v18046_v21  ;;  %v4038_v21 = vrot.slane %v4028_v56, 1  ;;  %v4407_v56 = vld [vmem:[#allocation11 + $0x1c0] sm:$0xff] }
 0x439   :  { %12332 = vmatpush1.bf16.msra.mxu1 %v18047_v22  ;;  %12262 = vmatprep.subr.bf16.mxu0 %v18048_v18  ;;  %v18097_v22 = vld [vmem:[#allocation195_spill] sm:$0xff]  ;;  %v18098_v18 = vld [vmem:[#allocation196_spill] sm:$0xff] }
 0x43a   :  { %12334 = vmatprep.subr.bf16.mxu1 %v18049_v36  ;;  %v4027_v36 = vld [vmem:[#allocation2 + $0x40] sm:$0xfe] }
 0x43c   :  { %12264 = vmatpush1.bf16.msra.mxu0 %v18050_v41  ;;  %v4030_v41 = vld [vmem:[#allocation2 + $0x58] sm:$0x1] }
 0x43d   :  { %12336 = vmatpush1.bf16.msra.mxu1 %v18051_v42  ;;  %12266 = vmatprep.subr.bf16.mxu0 %v18052_v53  ;;  %v4039_v42 = vsel %vm3129_vm7, %v4037_v16, %v4038_v21  ;;  %v4399_v53 = vld [vmem:[#allocation11 + $0x180] sm:$0xff] }
 0x43e   :  { %12338 = vmatprep.subr.bf16.mxu1 %v18053_v3  ;;  %v4400_v3 = vld [vmem:[#allocation11 + $0x188] sm:$0xff] }
 0x440   :  { %12268 = vmatpush1.bf16.msra.mxu0 %v18054_v6  ;;  %v4367_v6 = vld [vmem:[#allocation11 + $0x88] sm:$0xff] }
 0x441   :  { %12340 = vmatpush1.bf16.msra.mxu1 %v18055_v7  ;;  %12270 = vmatprep.subr.bf16.mxu0 %v18056_v15  ;;  %v4043_v7 = vrot.slane %v4027_v36, 1  ;;  %v4044_v15 = vrot.slane %v4030_v41, 1  ;;  %v4392_v36 = vld [vmem:[#allocation11 + $0x148] sm:$0xff] }
 0x442   :  { %12342 = vmatprep.subr.bf16.mxu1 %v18057_v30  ;;  %v12393_v30 = vpack.c.bf16 %v4400_v3, %v4399_v53  ;;  %v4359_v53 = vld [vmem:[#allocation11 + $0x48] sm:$0xff]  ;;  %v4376_v3 = vld [vmem:[#allocation11 + $0xd0] sm:$0xff] }
 0x444   :  { %12272 = vmatpush1.bf16.msra.mxu0 %v18058_v32  ;;  %v4383_v32 = vld [vmem:[#allocation11 + $0x100] sm:$0xff] }
 0x445   :  { %12344 = vmatpush1.bf16.msra.mxu1 %v18059_v33  ;;  %12274 = vmatprep.subr.bf16.mxu0 %v18060_v57  ;;  %v4384_v33 = vld [vmem:[#allocation11 + $0x108] sm:$0xff] }
 0x446   :  { %12346 = vmatprep.subr.bf16.mxu1 %v18061_v11 }
 0x448   :  { %12276 = vmatpush1.bf16.msra.mxu0 %v18062_v13  ;;  %v4401_v13 = vld [vmem:[#allocation11 + $0x190] sm:$0xff] }
 0x449   :  { %12348 = vmatpush1.bf16.msra.mxu1 %v18063_v5  ;;  %12278 = vmatprep.subr.bf16.mxu0 %v18064_v44  ;;  %v4402_v5 = vld [vmem:[#allocation11 + $0x198] sm:$0xff] }
 0x44a   :  { %12350 = vmatprep.subr.bf16.mxu1 %v18065_v27  ;;  %v4369_v27 = vld [vmem:[#allocation11 + $0x98] sm:$0xff] }
 0x44c   :  { %12280 = vmatpush1.bf16.msra.mxu0 %v18066_v24  ;;  %v4045_v24 = vsel %vm3129_vm7, %v4043_v7, %v4044_v15 }
 0x44d   :  { %12352 = vmatpush1.bf16.msra.mxu1 %v18067_v26  ;;  %12282 = vmatprep.subr.bf16.mxu0 %v18068_v49  ;;  %v12395_v26 = vpack.c.bf16 %v4384_v33, %v4383_v32  ;;  %v4352_v49 = vld [vmem:[#allocation11 + $0x10] sm:$0xff] }
 0x44e   :  { %12354 = vmatprep.subr.bf16.mxu1 %v18069_v25  ;;  %v12397_v25 = vpack.c.bf16 %v4402_v5, %v4401_v13  ;;  %v4409_v33 = vld [vmem:[#allocation11 + $0x1d0] sm:$0xff]  ;;  %v4394_v5 = vld [vmem:[#allocation11 + $0x158] sm:$0xff] }
 0x44f   :  { %v4393_v13 = vld [vmem:[#allocation11 + $0x150] sm:$0xff] }
 0x450   :  { %12284 = vmatpush1.bf16.msra.mxu0 %v18070_v58  ;;  %v4385_v58 = vld [vmem:[#allocation11 + $0x110] sm:$0xff] }
 0x451   :  { %12356 = vmatpush1.bf16.msra.mxu1 %v18071_v62  ;;  %12286 = vmatprep.subr.bf16.mxu0 %v18072_v34  ;;  %v4386_v62 = vld [vmem:[#allocation11 + $0x118] sm:$0xff] }
 0x452   :  { %12358 = vmatprep.subr.bf16.mxu1 %v18073_v46  ;;  %v4353_v46 = vld [vmem:[#allocation11 + $0x18] sm:$0xff] }
 0x454   :  { %12288 = vmatpush1.bf16.msra.mxu0 %v18074_v29  ;;  %v4403_v29 = vld [vmem:[#allocation11 + $0x1a0] sm:$0xff] }
 0x455   :  { %12360 = vmatpush1.bf16.msra.mxu1 %v18075_v55  ;;  %12290 = vmatprep.subr.bf16.mxu0 %v18076_v51  ;;  %v4370_v55 = vld [vmem:[#allocation11 + $0xa0] sm:$0xff]  ;;  %v12399_v51 = vpack.c.bf16 %v4386_v62, %v4385_v58  ;;  %v4412_v62 = vld [vmem:[#allocation11 + $0x1e8] sm:$0xff] }
 0x456   :  { %12362 = vmatprep.subr.bf16.mxu1 %v18077_v2  ;;  %v4354_v2 = vld [vmem:[#allocation11 + $0x20] sm:$0xff] }
 0x457   :  { %v4411_v58 = vld [vmem:[#allocation11 + $0x1e0] sm:$0xff] }
 0x458   :  { %12292 = vmatpush1.bf16.msra.mxu0 %v18078_v1 }
 0x459   :  { %12364 = vmatpush1.bf16.msra.mxu1 %v18079_v4  ;;  %12294 = vmatprep.subr.bf16.mxu0 %v18080_v28  ;;  %v4387_v4 = vld [vmem:[#allocation11 + $0x120] sm:$0xff]  ;;  %v4388_v28 = vld [vmem:[#allocation11 + $0x128] sm:$0xff] }
 0x45a   :  { %12366 = vmatprep.subr.bf16.mxu1 %v18081_v10 }
 0x45c   :  { %12296 = vmatpush1.bf16.msra.mxu0 %v18082_v63  ;;  %v4355_v63 = vld [vmem:[#allocation11 + $0x28] sm:$0xff] }
 0x45d   :  { %12368 = vmatpush1.bf16.msra.mxu1 %v18083_v59  ;;  %12298 = vmatprep.subr.bf16.mxu0 %v18084_v52  ;;  %v4405_v59 = vld [vmem:[#allocation11 + $0x1b0] sm:$0xff]  ;;  %v4406_v52 = vld [vmem:[#allocation11 + $0x1b8] sm:$0xff] }
 0x45e   :  { %12370 = vmatprep.subr.bf16.mxu1 %v18085_v12  ;;  %v4372_v12 = vld [vmem:[#allocation11 + $0xb0] sm:$0xff] }
 0x460   :  { %12300 = vmatpush1.bf16.msra.mxu0 %v18086_v17  ;;  %v4373_v17 = vld [vmem:[#allocation11 + $0xb8] sm:$0xff] }
 0x461   :  { %12372 = vmatpush1.bf16.msra.mxu1 %v18087_v20  ;;  %12302 = vmatprep.subr.bf16.mxu0 %v18088_v9  ;;  %v12403_v20 = vpack.c.bf16 %v4388_v28, %v4387_v4  ;;  %v12435_v9 = vpack.c.bf16 %v4355_v63, %v4354_v2  ;;  %v4365_v2 = vld [vmem:[#allocation11 + $0x78] sm:$0xff]  ;;  %v4413_v4 = vld [vmem:[#allocation11 + $0x1f0] sm:$0xff] }
 0x462   :  { %12374 = vmatprep.subr.bf16.mxu1 %v18089_v19  ;;  %v4356_v19 = vld [vmem:[#allocation11 + $0x30] sm:$0xff]  ;;  %v4414_v28 = vld [vmem:[#allocation11 + $0x1f8] sm:$0xff] }
 0x463   :  { %v12439_v21 = vpack.c.bf16 %v4357_v50, %v4356_v19  ;;  %v4397_v63 = vld [vmem:[#allocation11 + $0x170] sm:$0xff]  ;;  %v4579_v19 = vld [vmem:[#allocation11 + $0x288] sm:$0xff] }
 0x464   :  { %12304 = vmatpush1.bf16.msra.mxu0 %v18090_v23  ;;  %v12405_v23 = vpack.c.bf16 %v4406_v52, %v4405_v59  ;;  %v4398_v59 = vld [vmem:[#allocation11 + $0x178] sm:$0xff] }
 0x465   :  { %12376 = vmatpush1.bf16.msra.mxu1 %v18091_v31  ;;  %12306 = vmatprep.subr.bf16.mxu0 %v18092_v37  ;;  %v4389_v31 = vld [vmem:[#allocation11 + $0x130] sm:$0xff]  ;;  %v4390_v37 = vld [vmem:[#allocation11 + $0x138] sm:$0xff]  ;;  %v12423_v52 = vpack.c.bf16 %v4398_v59, %v4397_v63  ;;  %v4674_v63 = vld [vmem:[#allocation11 + $0x320] sm:$0xff] }
 0x466   :  { %12378 = vmatprep.subr.bf16.mxu1 %v18093_v39  ;;  %v12437_v39 = vpack.c.bf16 %v4373_v17, %v4372_v12  ;;  %v12407_v16 = vpack.c.bf16 %v4390_v37, %v4389_v31  ;;  %v4686_v12 = vld [vmem:[#allocation11 + $0x380] sm:$0xff]  ;;  %v4687_v17 = vld [vmem:[#allocation11 + $0x388] sm:$0xff]  ;;  %v3431_v31 = vld [vmem:[#allocation9] sm:$0xf] }
 0x467   :  { %v18099_v37 = vld [vmem:[#allocation25_spill] sm:$0xff]  ;;  %v18100_v50 = vld [vmem:[#allocation26_spill] sm:$0xff] }
 0x468   :  { %12308 = vmatpush1.bf16.msra.mxu0 %v18094_v60  ;;  %v4408_v60 = vld [vmem:[#allocation11 + $0x1c8] sm:$0xff] }
 0x469   :  { %12380 = vmatpush1.bf16.msra.mxu1 %v18095_v61  ;;  %12310 = vmatprep.subr.bf16.mxu0 %v15676_v38  ;;  %v4366_v38 = vld [vmem:[#allocation11 + $0x80] sm:$0xff]  ;;  %v4675_v59 = vld [vmem:[#allocation11 + $0x328] sm:$0xff] }
 0x46a   :  { %12382 = vmatprep.subr.bf16.mxu1 %v18096_v0  ;;  %v12425_v11 = vpack.c.bf16 %v4367_v6, %v4366_v38  ;;  %v4374_v61 = vld [vmem:[#allocation11 + $0xc0] sm:$0xff]  ;;  %v4375_v0 = vld [vmem:[#allocation11 + $0xc8] sm:$0xff]  ;;  %v4377_v38 = vld [vmem:[#allocation11 + $0xd8] sm:$0xff] }
 0x46b   :  { %v12441_v41 = vpack.c.bf16 %v4375_v0, %v4374_v61  ;;  %v12445_v15 = vpack.c.bf16 %v4377_v38, %v4376_v3  ;;  %v18102_v0 = vld [vmem:[#allocation28_spill] sm:$0xff] }
 0x46c   :  { %12312 = vmatpush1.bf16.msra.mxu0 %v18097_v22  ;;  %v12409_v22 = vpack.c.bf16 %v4408_v60, %v4407_v56  ;;  %v3444_v56 = vrot.slane %v3431_v31, %v18100_v50  ;;  %v18101_v60 = vld [vmem:[#allocation27_spill] sm:$0xff] }
 0x46d   :  { %12384 = vmatpush1.bf16.msra.mxu1 %v18098_v18  ;;  %12314 = vmatprep.subr.bf16.mxu0 %v15688_v47  ;;  %v4350_v47 = vld [vmem:[#allocation11] sm:$0xff]  ;;  %v3440_v61 = vrot.slane %v3431_v31, %v18101_v60 }
 0x46e   :  { %12386 = vmatprep.subr.bf16.mxu1 %v15690_v35  ;;  %v4391_v18 = vld [vmem:[#allocation11 + $0x140] sm:$0xff] }
 0x46f   :  { %4115 = vmatmul.mubr.f32.vlgmr.msra.gmra.mrb[10].mxu0 %v4039_v42  ;;  %v12411_v6 = vpack.c.bf16 %v4392_v36, %v4391_v18 }
 0x470   :  { %4257 = vmatmul.mubr.f32.vlgmr.msra.gmra.mrb[10].mxu1 %v4039_v42  ;;  %12316 = vmatpush1.bf16.msra.mxu0 %v15694_v14  ;;  %v4351_v14 = vld [vmem:[#allocation11 + $0x8] sm:$0xff]  ;;  %v4358_v42 = vld [vmem:[#allocation11 + $0x40] sm:$0xff] }
 0x471   :  { %12388 = vmatpush1.bf16.msra.mxu1 %v15696_v40  ;;  %12318 = vmatprep.subr.bf16.mxu0 %v15700_v48  ;;  %v4368_v48 = vld [vmem:[#allocation11 + $0x90] sm:$0xff]  ;;  %v12443_v7 = vpack.c.bf16 %v4359_v53, %v4358_v42 }
 0x472   :  { %v15959_v57 = vpop.f32.mrb[8].mxu0  ;;  %v15961_v35 = vpop.f32.mrb[8].mxu1  ;;  %12390 = vmatprep.subr.bf16.mxu1 %v15702_v8  ;;  %4185 = vmatprep.mubr.f32.mxu0 %v15717_v43  ;;  %v12427_v8 = vpack.c.bf16 %v4351_v14, %v4350_v47  ;;  %v12429_v34 = vpack.c.bf16 %v4369_v27, %v4368_v48  ;;  %v4360_v47 = vld [vmem:[#allocation11 + $0x50] sm:$0xff]  ;;  %v12415_v48 = vpack.c.bf16 %v4394_v5, %v4393_v13  ;;  %v4378_v27 = vld [vmem:[#allocation11 + $0xe0] sm:$0xff] }
 0x473   :  { %v15965_v44 = vpop.f32.mrb[9].mxu0  ;;  %v15967_v40 = vpop.f32.mrb[9].mxu1  ;;  %4327 = vmatprep.mubr.f32.mxu1 %v15717_v43  ;;  %v4404_v43 = vld [vmem:[#allocation11 + $0x1a8] sm:$0xff]  ;;  %v3455_v42 = vadd.f32 %v3444_v56, %v15961_v35 }
 0x474   :  { %12320 = vmatpush1.bf16.msra.mxu0 %v15711_v45  ;;  %v4371_v45 = vld [vmem:[#allocation11 + $0xa8] sm:$0xff]  ;;  %v12401_v1 = vpack.c.bf16 %v4404_v43, %v4403_v29  ;;  %v3454_v53 = vadd.f32 %v3440_v61, %v15965_v44 }
 0x475   :  { %12392 = vmatpush1.bf16.msra.mxu1 %v15713_v54  ;;  %12394 = vmatprep.subr.bf16.mxu0 %v12393_v30  ;;  %v12431_v54 = vpack.c.bf16 %v4353_v46, %v4352_v49  ;;  %v12433_v10 = vpack.c.bf16 %v4371_v45, %v4370_v55  ;;  %v4361_v30 = vld [vmem:[#allocation11 + $0x58] sm:$0xff]  ;;  %v4363_v49 = vld [vmem:[#allocation11 + $0x68] sm:$0xff]  ;;  %v4395_v46 = vld [vmem:[#allocation11 + $0x160] sm:$0xff] }
 0x476   :  { %12426 = vmatprep.subr.bf16.mxu1 %v12425_v11  ;;  %v12447_v32 = vpack.c.bf16 %v4361_v30, %v4360_v47  ;;  %v4410_v11 = vld [vmem:[#allocation11 + $0x1d8] sm:$0xff]  ;;  %v4396_v29 = vld [vmem:[#allocation11 + $0x168] sm:$0xff]  ;;  %v4380_v55 = vld [vmem:[#allocation11 + $0xf0] sm:$0xff] }
 0x477   :  { %10533 = vmatmul.mubr.msk.f32.vlgmr.msra.gmra.mrb[10].mxu0 %vm136_vm4, %v4045_v24  ;;  %v12413_v14 = vpack.c.bf16 %v4410_v11, %v4409_v33  ;;  %v12419_v43 = vpack.c.bf16 %v4396_v29, %v4395_v46  ;;  %v4381_v45 = vld [vmem:[#allocation11 + $0xf8] sm:$0xff]  ;;  %v4563_v35 = vld [vmem:[#allocation11 + $0x208] sm:$0xff]  ;;  %v4690_v46 = vld [vmem:[#allocation11 + $0x3a0] sm:$0xff] }
 0x478   :  { %10534 = vmatmul.mubr.msk.f32.vlgmr.msra.gmra.mrb[10].mxu1 %vm136_vm4, %v4045_v24  ;;  %12396 = vmatpush3.bf16.msra.mxu0 %v12395_v26  ;;  %v4379_v24 = vld [vmem:[#allocation11 + $0xe8] sm:$0xff] }
 0x479   :  { %12428 = vmatpush3.bf16.msra.mxu1 %v12427_v8  ;;  %12398 = vmatprep.subr.bf16.mxu0 %v12397_v25  ;;  %v12449_v26 = vpack.c.bf16 %v4379_v24, %v4378_v27  ;;  %v4362_v8 = vld [vmem:[#allocation11 + $0x60] sm:$0xff]  ;;  %v4688_v27 = vld [vmem:[#allocation11 + $0x390] sm:$0xff]  ;;  %v4691_v29 = vld [vmem:[#allocation11 + $0x3a8] sm:$0xff] }
 0x47a   :  { %12430 = vmatprep.subr.bf16.mxu1 %v12429_v34  ;;  %v12451_v25 = vpack.c.bf16 %v4363_v49, %v4362_v8  ;;  %v12417_v34 = vpack.c.bf16 %v4412_v62, %v4411_v58  ;;  %v4580_v8 = vld [vmem:[#allocation11 + $0x290] sm:$0xff] }
 0x47b   :  { %v4672_v49 = vld [vmem:[#allocation11 + $0x310] sm:$0xff] }
 0x47c   :  { %12400 = vmatpush3.bf16.msra.mxu0 %v12399_v51  ;;  %v12453_v51 = vpack.c.bf16 %v4381_v45, %v4380_v55 }
 0x47d   :  { %12432 = vmatpush3.bf16.msra.mxu1 %v12431_v54  ;;  %12402 = vmatprep.subr.bf16.mxu0 %v12401_v1  ;;  %v4364_v54 = vld [vmem:[#allocation11 + $0x70] sm:$0xff] }
 0x47e   :  { %12434 = vmatprep.subr.bf16.mxu1 %v12433_v10  ;;  %v12455_v1 = vpack.c.bf16 %v4365_v2, %v4364_v54  ;;  %v12421_v10 = vpack.c.bf16 %v4414_v28, %v4413_v4  ;;  %v4565_v54 = vld [vmem:[#allocation11 + $0x218] sm:$0xff]  ;;  %v4582_v4 = vld [vmem:[#allocation11 + $0x2a0] sm:$0xff]  ;;  %v4583_v28 = vld [vmem:[#allocation11 + $0x2a8] sm:$0xff] }
 0x480   :  { %12404 = vmatpush3.bf16.msra.mxu0 %v12403_v20  ;;  %v12489_v20 = vpack.c.bf16 %v4687_v17, %v4686_v12  ;;  %v4692_v12 = vld [vmem:[#allocation11 + $0x3b0] sm:$0xff]  ;;  %v4693_v17 = vld [vmem:[#allocation11 + $0x3b8] sm:$0xff] }
 0x481   :  { %12436 = vmatpush3.bf16.msra.mxu1 %v12435_v9  ;;  %12406 = vmatprep.subr.bf16.mxu0 %v12405_v23  ;;  %v4578_v9 = vld [vmem:[#allocation11 + $0x280] sm:$0xff] }
 0x482   :  { %12438 = vmatprep.subr.bf16.mxu1 %v12437_v39  ;;  %v12457_v23 = vpack.c.bf16 %v4579_v19, %v4578_v9  ;;  %v3436_v39 = vrot.slane %v3431_v31, %v18099_v37  ;;  %v4566_v9 = vld [vmem:[#allocation11 + $0x220] sm:$0xff]  ;;  %v4567_v19 = vld [vmem:[#allocation11 + $0x228] sm:$0xff] }
 0x484   :  { %12408 = vmatpush3.bf16.msra.mxu0 %v12407_v16  ;;  %v3448_v16 = vrot.slane %v3431_v31, %v18102_v0  ;;  %v4584_v31 = vld [vmem:[#allocation11 + $0x2b0] sm:$0xff] }
 0x485   :  { %12440 = vmatpush3.bf16.msra.mxu1 %v12439_v21  ;;  %12410 = vmatprep.subr.bf16.mxu0 %v12409_v22  ;;  %v3453_v22 = vadd.f32 %v3436_v39, %v15959_v57  ;;  %v4671_v57 = vld [vmem:[#allocation11 + $0x308] sm:$0xff] }
 0x486   :  { %12442 = vmatprep.subr.bf16.mxu1 %v12441_v41 }
 0x488   :  { %12412 = vmatpush3.bf16.msra.mxu0 %v12411_v6 }
 0x489   :  { %12444 = vmatpush3.bf16.msra.mxu1 %v12443_v7  ;;  %12414 = vmatprep.subr.bf16.mxu0 %v12413_v14  ;;  %v3456_v7 = vadd.f32 %v3448_v16, %v15967_v40  ;;  %v4670_v14 = vld [vmem:[#allocation11 + $0x300] sm:$0xff]  ;;  %v4581_v40 = vld [vmem:[#allocation11 + $0x298] sm:$0xff] }
 0x48a   :  { %12446 = vmatprep.subr.bf16.mxu1 %v12445_v15  ;;  %v12491_v24 = vpack.c.bf16 %v4671_v57, %v4670_v14  ;;  %v12461_v45 = vpack.c.bf16 %v4581_v40, %v4580_v8  ;;  %v4571_v14 = vld [vmem:[#allocation11 + $0x248] sm:$0xff]  ;;  %v4698_v8 = vld [vmem:[#allocation11 + $0x3e0] sm:$0xff] }
 0x48b   :  { %v4699_v40 = vld [vmem:[#allocation11 + $0x3e8] sm:$0xff] }
 0x48c   :  { %12416 = vmatpush3.bf16.msra.mxu0 %v12415_v48  ;;  %v4562_v48 = vld [vmem:[#allocation11 + $0x200] sm:$0xff] }
 0x48d   :  { %12448 = vmatpush3.bf16.msra.mxu1 %v12447_v32  ;;  %12418 = vmatprep.subr.bf16.mxu0 %v12417_v34  ;;  %v12459_v34 = vpack.c.bf16 %v4563_v35, %v4562_v48  ;;  %v4589_v48 = vld [vmem:[#allocation11 + $0x2d8] sm:$0xff] }
 0x48e   :  { %12450 = vmatprep.subr.bf16.mxu1 %v12449_v26  ;;  %v4689_v26 = vld [vmem:[#allocation11 + $0x398] sm:$0xff] }
 0x48f   :  { %v12493_v55 = vpack.c.bf16 %v4689_v26, %v4688_v27  ;;  %v4680_v27 = vld [vmem:[#allocation11 + $0x350] sm:$0xff] }
 0x490   :  { %12420 = vmatpush3.bf16.msra.mxu0 %v12419_v43 }
 0x491   :  { %12452 = vmatpush3.bf16.msra.mxu1 %v12451_v25  ;;  %12422 = vmatprep.subr.bf16.mxu0 %v12421_v10  ;;  %v4673_v25 = vld [vmem:[#allocation11 + $0x318] sm:$0xff]  ;;  %v12497_v10 = vpack.c.bf16 %v4691_v29, %v4690_v46  ;;  %v4591_v46 = vld [vmem:[#allocation11 + $0x2e8] sm:$0xff]  ;;  %v12513_v29 = vpack.c.bf16 %v4699_v40, %v4698_v8  ;;  %v4798_v8 = vld [vmem:[#allocation11 + $0x4a0] sm:$0xff] }
 0x492   :  { %12454 = vmatprep.subr.bf16.mxu1 %v12453_v51  ;;  %v4564_v51 = vld [vmem:[#allocation11 + $0x210] sm:$0xff]  ;;  %v4799_v40 = vld [vmem:[#allocation11 + $0x4a8] sm:$0xff] }
 0x494   :  { %12424 = vmatpush3.bf16.msra.mxu0 %v12423_v52  ;;  %v12463_v52 = vpack.c.bf16 %v4565_v54, %v4564_v51  ;;  %v4700_v51 = vld [vmem:[#allocation11 + $0x3f0] sm:$0xff]  ;;  %v4701_v54 = vld [vmem:[#allocation11 + $0x3f8] sm:$0xff] }
 0x495   :  { %12456 = vmatpush3.bf16.msra.mxu1 %v12455_v1  ;;  %12458 = vmatprep.subr.bf16.mxu0 %v12457_v23  ;;  %v12495_v1 = vpack.c.bf16 %v4673_v25, %v4672_v49  ;;  %v12499_v23 = vpack.c.bf16 %v4675_v59, %v4674_v63  ;;  %v4572_v25 = vld [vmem:[#allocation11 + $0x250] sm:$0xff]  ;;  %v4593_v63 = vld [vmem:[#allocation11 + $0x2f8] sm:$0xff]  ;;  %v12517_v59 = vpack.c.bf16 %v4701_v54, %v4700_v51 }
 0x496   :  { %12490 = vmatprep.subr.bf16.mxu1 %v12489_v20  ;;  %v12465_v20 = vpack.c.bf16 %v4583_v28, %v4582_v4  ;;  %v4575_v4 = vld [vmem:[#allocation11 + $0x268] sm:$0xff]  ;;  %v4800_v51 = vld [vmem:[#allocation11 + $0x4b0] sm:$0xff]  ;;  %v4801_v54 = vld [vmem:[#allocation11 + $0x4b8] sm:$0xff] }
 0x54a   :  { %v4187_v21 = vpop.f32.mrb[10].mxu0 }
 0x54b   :  { %v4338_v18 = vadd.f32 %v4187_v21, %v3436_v39  ;;  %v4329_v36 = vpop.f32.mrb[10].mxu1  ;;  %v4189_v41 = vpop.f32.mrb[11].mxu0  ;;  %v4585_v39 = vld [vmem:[#allocation11 + $0x2b8] sm:$0xff]  ;;  %v12467_v21 = vpack.c.bf16 %v4567_v19, %v4566_v9  ;;  %v4903_v9 = vld [vmem:[#allocation11 + $0x588] sm:$0xff] }
 0x54c   :  { %v4340_v3 = vadd.f32 %v4329_v36, %v3444_v56  ;;  %v4339_v38 = vadd.f32 %v4189_v41, %v3440_v61  ;;  %v4331_v6 = vpop.f32.mrb[11].mxu1  ;;  %v12501_v56 = vpack.c.bf16 %v4693_v17, %v4692_v12  ;;  %v4676_v61 = vld [vmem:[#allocation11 + $0x330] sm:$0xff]  ;;  %v12469_v36 = vpack.c.bf16 %v4585_v39, %v4584_v31  ;;  %v4685_v12 = vld [vmem:[#allocation11 + $0x378] sm:$0xff] }
 0x54d   :  { %v4342_v15 = vmax.f32 %v3453_v22, %v4338_v18  ;;  %v4341_v47 = vadd.f32 %v4331_v6, %v3448_v16  ;;  %v4677_v16 = vld [vmem:[#allocation11 + $0x338] sm:$0xff]  ;;  %v4694_v22 = vld [vmem:[#allocation11 + $0x3c0] sm:$0xff]  ;;  %v4695_v18 = vld [vmem:[#allocation11 + $0x3c8] sm:$0xff] }
 0x54e   :  { %v4344_v30 = vmax.f32 %v3455_v42, %v4340_v3  ;;  %v4343_v32 = vmax.f32 %v3454_v53, %v4339_v38  ;;  %v4568_v41 = vld [vmem:[#allocation11 + $0x230] sm:$0xff]  ;;  %v4569_v42 = vld [vmem:[#allocation11 + $0x238] sm:$0xff]  ;;  %v12503_v53 = vpack.c.bf16 %v4677_v16, %v4676_v61  ;;  %v4586_v3 = vld [vmem:[#allocation11 + $0x2c0] sm:$0xff]  ;;  %v12505_v6 = vpack.c.bf16 %v4695_v18, %v4694_v22 }
 0x54f   :  { %v4345_v33 = vmax.f32 %v3456_v7, %v4341_v47  ;;  %v4587_v38 = vld [vmem:[#allocation11 + $0x2c8] sm:$0xff]  ;;  %v4678_v7 = vld [vmem:[#allocation11 + $0x340] sm:$0xff]  ;;  %v12471_v47 = vpack.c.bf16 %v4569_v42, %v4568_v41  ;;  %v4577_v31 = vld [vmem:[#allocation11 + $0x278] sm:$0xff] }
 0x550   :  { %v4346_v11 = vmax.f32 %v4342_v15, %v4344_v30  ;;  %v4679_v15 = vld [vmem:[#allocation11 + $0x348] sm:$0xff]  ;;  %v4696_v30 = vld [vmem:[#allocation11 + $0x3d0] sm:$0xff]  ;;  %v4905_v41 = vld [vmem:[#allocation11 + $0x598] sm:$0xff] }
 0x551   :  { %v4347_v13 = vmax.f32 %v4343_v32, %v4345_v33  ;;  %v4697_v32 = vld [vmem:[#allocation11 + $0x3d8] sm:$0xff]  ;;  %v12473_v33 = vpack.c.bf16 %v4587_v38, %v4586_v3  ;;  %v12507_v57 = vpack.c.bf16 %v4679_v15, %v4678_v7  ;;  %v4795_v61 = vld [vmem:[#allocation11 + $0x488] sm:$0xff] }
 0x552   :  { %v15983_v5 = vmax.f32 %v4346_v11, 0.0  ;;  %v4570_v11 = vld [vmem:[#allocation11 + $0x240] sm:$0xff]  ;;  %v12509_v35 = vpack.c.bf16 %v4697_v32, %v4696_v30  ;;  %v4887_v22 = vld [vmem:[#allocation11 + $0x508] sm:$0xff]  ;;  %v4797_v7 = vld [vmem:[#allocation11 + $0x498] sm:$0xff] }
 0x553   :  { %v15985_v44 = vmax.f32 %v4347_v13, 0.0  ;;  %v4588_v13 = vld [vmem:[#allocation11 + $0x2d0] sm:$0xff]  ;;  %v12475_v26 = vpack.c.bf16 %v4571_v14, %v4570_v11  ;;  %v4779_v3 = vld [vmem:[#allocation11 + $0x408] sm:$0xff]  ;;  %v4889_v32 = vld [vmem:[#allocation11 + $0x518] sm:$0xff] }
 0x554   :  { %v4417_v43 = vrot.slane %v15983_v5, 1  ;;  %v12477_v49 = vpack.c.bf16 %v4589_v48, %v4588_v13  ;;  %v4702_v15 = vrot.slane %v15983_v5, 3  ;;  %v4888_v30 = vld [vmem:[#allocation11 + $0x510] sm:$0xff]  ;;  %v4906_v14 = vld [vmem:[#allocation11 + $0x5a0] sm:$0xff]  ;;  %v4594_v13 = vrot.slane %v15983_v5, 2 }
 0x555   :  { %4555 = vmatprep.mubr.f32.mxu1 %v15985_v44  ;;  %v4418_v58 = vrot.slane %v15985_v44, 1  ;;  %v4703_v62 = vrot.slane %v15985_v44, 3  ;;  %v4595_v2 = vrot.slane %v15985_v44, 2 }
 0x556   :  { %4556 = vmatmul.mubr.f32.vlgmr.msra.gmra.mrb[12].mxu1 %v15983_v5 }
 0x557   :  { %12492 = vmatpush3.bf16.msra.mxu1 %v12491_v24  ;;  %4485 = vmatprep.mubr.f32.mxu0 %v4418_v58  ;;  %v4681_v24 = vld [vmem:[#allocation11 + $0x358] sm:$0xff] }
 0x558   :  { %4770 = vmatprep.mubr.f32.mxu1 %v4703_v62  ;;  %4486 = vmatmul.mubr.f32.vlgmr.msra.gmra.mrb[12].mxu0 %v4417_v43  ;;  %v4573_v58 = vld [vmem:[#allocation11 + $0x258] sm:$0xff]  ;;  %v12511_v62 = vpack.c.bf16 %v4681_v24, %v4680_v27  ;;  %v4682_v43 = vld [vmem:[#allocation11 + $0x360] sm:$0xff]  ;;  %v4811_v24 = vrot.slane %v15985_v44, 4 }
 0x559   :  { %12460 = vmatpush3.bf16.msra.mxu0 %v12459_v34  ;;  %4662 = vmatprep.mubr.f32.mxu0 %v4595_v2  ;;  %v4590_v34 = vld [vmem:[#allocation11 + $0x2e0] sm:$0xff]  ;;  %v4781_v27 = vld [vmem:[#allocation11 + $0x418] sm:$0xff] }
 0x55a   :  { %12494 = vmatprep.subr.bf16.mxu1 %v12493_v55  ;;  %12462 = vmatprep.subr.bf16.mxu0 %v12461_v45  ;;  %v4683_v55 = vld [vmem:[#allocation11 + $0x368] sm:$0xff]  ;;  %v12479_v45 = vpack.c.bf16 %v4573_v58, %v4572_v25  ;;  %v12481_v2 = vpack.c.bf16 %v4591_v46, %v4590_v34  ;;  %v4890_v25 = vld [vmem:[#allocation11 + $0x520] sm:$0xff]  ;;  %v4908_v34 = vld [vmem:[#allocation11 + $0x5b0] sm:$0xff] }
 0x55b   :  { %12496 = vmatpush3.bf16.msra.mxu1 %v12495_v1  ;;  %v4574_v1 = vld [vmem:[#allocation11 + $0x260] sm:$0xff]  ;;  %v12515_v28 = vpack.c.bf16 %v4683_v55, %v4682_v43  ;;  %v4891_v58 = vld [vmem:[#allocation11 + $0x528] sm:$0xff]  ;;  %v4909_v46 = vld [vmem:[#allocation11 + $0x5b8] sm:$0xff] }
 0x55c   :  { %12498 = vmatprep.subr.bf16.mxu1 %v12497_v10  ;;  %v4592_v10 = vld [vmem:[#allocation11 + $0x2f0] sm:$0xff]  ;;  %v12483_v17 = vpack.c.bf16 %v4575_v4, %v4574_v1  ;;  %v4782_v43 = vld [vmem:[#allocation11 + $0x420] sm:$0xff]  ;;  %v4783_v55 = vld [vmem:[#allocation11 + $0x428] sm:$0xff] }
 0x55d   :  { %12464 = vmatpush3.bf16.msra.mxu0 %v12463_v52  ;;  %v4684_v52 = vld [vmem:[#allocation11 + $0x370] sm:$0xff]  ;;  %v12485_v19 = vpack.c.bf16 %v4593_v63, %v4592_v10  ;;  %v4893_v4 = vld [vmem:[#allocation11 + $0x538] sm:$0xff]  ;;  %v4910_v10 = vld [vmem:[#allocation11 + $0x5c0] sm:$0xff] }
 0x55e   :  { %12466 = vmatprep.subr.bf16.mxu0 %v12465_v20  ;;  %v4902_v20 = vld [vmem:[#allocation11 + $0x580] sm:$0xff]  ;;  %v12519_v39 = vpack.c.bf16 %v4685_v12, %v4684_v52  ;;  %v4892_v1 = vld [vmem:[#allocation11 + $0x530] sm:$0xff]  ;;  %v4911_v63 = vld [vmem:[#allocation11 + $0x5c8] sm:$0xff] }
 0x55f   :  { %12500 = vmatpush3.bf16.msra.mxu1 %v12499_v23  ;;  %v4576_v23 = vld [vmem:[#allocation11 + $0x270] sm:$0xff]  ;;  %v12553_v16 = vpack.c.bf16 %v4903_v9, %v4902_v20  ;;  %v4785_v12 = vld [vmem:[#allocation11 + $0x438] sm:$0xff]  ;;  %v4802_v20 = vld [vmem:[#allocation11 + $0x4c0] sm:$0xff] }
 0x560   :  { %12502 = vmatprep.subr.bf16.mxu1 %v12501_v56  ;;  %v4794_v56 = vld [vmem:[#allocation11 + $0x480] sm:$0xff]  ;;  %v12487_v18 = vpack.c.bf16 %v4577_v31, %v4576_v23  ;;  %v4784_v52 = vld [vmem:[#allocation11 + $0x430] sm:$0xff]  ;;  %v4803_v9 = vld [vmem:[#allocation11 + $0x4c8] sm:$0xff] }
 0x561   :  { %12468 = vmatpush3.bf16.msra.mxu0 %v12467_v21  ;;  %v4886_v21 = vld [vmem:[#allocation11 + $0x500] sm:$0xff]  ;;  %v12521_v42 = vpack.c.bf16 %v4795_v61, %v4794_v56  ;;  %v4895_v31 = vld [vmem:[#allocation11 + $0x548] sm:$0xff]  ;;  %v4912_v56 = vld [vmem:[#allocation11 + $0x5d0] sm:$0xff] }
 0x562   :  { %12470 = vmatprep.subr.bf16.mxu0 %v12469_v36  ;;  %v4904_v36 = vld [vmem:[#allocation11 + $0x590] sm:$0xff]  ;;  %v12555_v38 = vpack.c.bf16 %v4887_v22, %v4886_v21  ;;  %v4894_v23 = vld [vmem:[#allocation11 + $0x540] sm:$0xff]  ;;  %v4913_v61 = vld [vmem:[#allocation11 + $0x5d8] sm:$0xff] }
 0x563   :  { %12504 = vmatpush3.bf16.msra.mxu1 %v12503_v53  ;;  %v4778_v53 = vld [vmem:[#allocation11 + $0x400] sm:$0xff]  ;;  %v4787_v22 = vld [vmem:[#allocation11 + $0x448] sm:$0xff] }
 0x564   :  { %12506 = vmatprep.subr.bf16.mxu1 %v12505_v6  ;;  %v4796_v6 = vld [vmem:[#allocation11 + $0x490] sm:$0xff]  ;;  %v12523_v11 = vpack.c.bf16 %v4779_v3, %v4778_v53  ;;  %v4786_v21 = vld [vmem:[#allocation11 + $0x440] sm:$0xff]  ;;  %v4897_v3 = vld [vmem:[#allocation11 + $0x558] sm:$0xff] }
 0x565   :  { %12472 = vmatpush3.bf16.msra.mxu0 %v12471_v47  ;;  %v12557_v47 = vpack.c.bf16 %v4905_v41, %v4904_v36  ;;  %v12525_v48 = vpack.c.bf16 %v4797_v7, %v4796_v6  ;;  %v4804_v36 = vld [vmem:[#allocation11 + $0x4d0] sm:$0xff]  ;;  %v4805_v41 = vld [vmem:[#allocation11 + $0x4d8] sm:$0xff]  ;;  %v4914_v6 = vld [vmem:[#allocation11 + $0x5e0] sm:$0xff] }
 0x566   :  { %12474 = vmatprep.subr.bf16.mxu0 %v12473_v33  ;;  %v4919_v33 = vrot.slane %v15985_v44, 5  ;;  %v4896_v53 = vld [vmem:[#allocation11 + $0x550] sm:$0xff]  ;;  %v4915_v7 = vld [vmem:[#allocation11 + $0x5e8] sm:$0xff] }
 0x567   :  { %12508 = vmatpush3.bf16.msra.mxu1 %v12507_v57  ;;  %v4907_v57 = vld [vmem:[#allocation11 + $0x5a8] sm:$0xff] }
 0x568   :  { %12510 = vmatprep.subr.bf16.mxu1 %v12509_v35  ;;  %v4780_v35 = vld [vmem:[#allocation11 + $0x410] sm:$0xff] }
 0x569   :  { %12476 = vmatpush3.bf16.msra.mxu0 %v12475_v26  ;;  %v12559_v26 = vpack.c.bf16 %v4889_v32, %v4888_v30  ;;  %v4789_v30 = vld [vmem:[#allocation11 + $0x458] sm:$0xff]  ;;  %v12575_v32 = vpack.c.bf16 %v4897_v3, %v4896_v53  ;;  %v5027_v3 = vrot.slane %v15985_v44, 6 }
 0x56a   :  { %12478 = vmatprep.subr.bf16.mxu0 %v12477_v49  ;;  %v12561_v49 = vpack.c.bf16 %v4907_v57, %v4906_v14  ;;  %v12577_v14 = vpack.c.bf16 %v4915_v7, %v4914_v6  ;;  %v4898_v57 = vld [vmem:[#allocation11 + $0x560] sm:$0xff]  ;;  %v4997_v53 = vld [vmem:[#allocation11 + $0x618] sm:$0xff]  ;;  %v5015_v7 = vld [vmem:[#allocation11 + $0x6a8] sm:$0xff] }
 0x56b   :  { %12512 = vmatpush3.bf16.msra.mxu1 %v12511_v62  ;;  %v12527_v62 = vpack.c.bf16 %v4781_v27, %v4780_v35  ;;  %v4916_v35 = vld [vmem:[#allocation11 + $0x5f0] sm:$0xff]  ;;  %v4917_v27 = vld [vmem:[#allocation11 + $0x5f8] sm:$0xff]  ;;  %v5014_v6 = vld [vmem:[#allocation11 + $0x6a0] sm:$0xff] }
 0x56c   :  { %12514 = vmatprep.subr.bf16.mxu1 %v12513_v29  ;;  %v12529_v29 = vpack.c.bf16 %v4799_v40, %v4798_v8  ;;  %v4791_v8 = vld [vmem:[#allocation11 + $0x468] sm:$0xff] }
 0x56d   :  { %12480 = vmatpush3.bf16.msra.mxu0 %v12479_v45  ;;  %v12563_v45 = vpack.c.bf16 %v4891_v58, %v4890_v25  ;;  %v4809_v25 = vld [vmem:[#allocation11 + $0x4f8] sm:$0xff]  ;;  %v12581_v58 = vpack.c.bf16 %v4917_v27, %v4916_v35 }
 0x56e   :  { %12482 = vmatprep.subr.bf16.mxu0 %v12481_v2  ;;  %v12565_v2 = vpack.c.bf16 %v4909_v46, %v4908_v34  ;;  %v4901_v34 = vld [vmem:[#allocation11 + $0x578] sm:$0xff] }
 0x56f   :  { %12516 = vmatpush3.bf16.msra.mxu1 %v12515_v28  ;;  %v12531_v28 = vpack.c.bf16 %v4783_v55, %v4782_v43  ;;  %v5119_v43 = vld [vmem:[#allocation11 + $0x788] sm:$0xff]  ;;  %v5017_v35 = vld [vmem:[#allocation11 + $0x6b8] sm:$0xff] }
 0x570   :  { %12518 = vmatprep.subr.bf16.mxu1 %v12517_v59  ;;  %v12533_v59 = vpack.c.bf16 %v4801_v54, %v4800_v51  ;;  %v4793_v51 = vld [vmem:[#allocation11 + $0x478] sm:$0xff] }
 0x571   :  { %12484 = vmatpush3.bf16.msra.mxu0 %v12483_v17  ;;  %v12567_v17 = vpack.c.bf16 %v4893_v4, %v4892_v1  ;;  %v5011_v1 = vld [vmem:[#allocation11 + $0x688] sm:$0xff] }
 0x572   :  { %12486 = vmatprep.subr.bf16.mxu0 %v12485_v19  ;;  %v12569_v19 = vpack.c.bf16 %v4911_v63, %v4910_v10  ;;  %v5103_v10 = vld [vmem:[#allocation11 + $0x708] sm:$0xff] }
 0x573   :  { %12520 = vmatpush3.bf16.msra.mxu1 %v12519_v39  ;;  %v12535_v39 = vpack.c.bf16 %v4785_v12, %v4784_v52  ;;  %v5121_v52 = vld [vmem:[#allocation11 + $0x798] sm:$0xff] }
 0x574   :  { %12554 = vmatprep.subr.bf16.mxu1 %v12553_v16  ;;  %v12537_v16 = vpack.c.bf16 %v4803_v9, %v4802_v20  ;;  %v4995_v20 = vld [vmem:[#allocation11 + $0x608] sm:$0xff] }
 0x575   :  { %12488 = vmatpush3.bf16.msra.mxu0 %v12487_v18  ;;  %v12571_v18 = vpack.c.bf16 %v4895_v31, %v4894_v23  ;;  %v5013_v23 = vld [vmem:[#allocation11 + $0x698] sm:$0xff]  ;;  %v4918_v31 = vrot.slane %v15983_v5, 5 }
 0x576   :  { %4771 = vmatmul.mubr.f32.vlgmr.msra.gmra.mrb[14].mxu1 %v4702_v15  ;;  %12522 = vmatprep.subr.bf16.mxu0 %v12521_v42  ;;  %v12573_v42 = vpack.c.bf16 %v4913_v61, %v4912_v56  ;;  %v12541_v15 = vpack.c.bf16 %v4805_v41, %v4804_v36  ;;  %v5104_v56 = vld [vmem:[#allocation11 + $0x710] sm:$0xff]  ;;  %v5105_v61 = vld [vmem:[#allocation11 + $0x718] sm:$0xff]  ;;  %v4810_v36 = vrot.slane %v15983_v5, 4 }
 0x577   :  { %12556 = vmatpush3.bf16.msra.mxu1 %v12555_v38  ;;  %4986 = vmatprep.mubr.f32.mxu1 %v4919_v33  ;;  %v12539_v38 = vpack.c.bf16 %v4787_v22, %v4786_v21  ;;  %v4806_v33 = vld [vmem:[#allocation11 + $0x4e0] sm:$0xff] }
 0x578   :  { %4663 = vmatmul.mubr.f32.vlgmr.msra.gmra.mrb[14].mxu0 %v4594_v13  ;;  %12558 = vmatprep.subr.bf16.mxu1 %v12557_v47  ;;  %v4788_v47 = vld [vmem:[#allocation11 + $0x450] sm:$0xff]  ;;  %v4899_v13 = vld [vmem:[#allocation11 + $0x568] sm:$0xff]  ;;  %v5122_v22 = vld [vmem:[#allocation11 + $0x7a0] sm:$0xff] }
 0x579   :  { %12524 = vmatpush3.bf16.msra.mxu0 %v12523_v11  ;;  %4878 = vmatprep.mubr.f32.mxu0 %v4811_v24  ;;  %v4807_v11 = vld [vmem:[#allocation11 + $0x4e8] sm:$0xff]  ;;  %v12579_v40 = vpack.c.bf16 %v4899_v13, %v4898_v57  ;;  %v4998_v57 = vld [vmem:[#allocation11 + $0x620] sm:$0xff] }
 0x57a   :  { %12526 = vmatprep.subr.bf16.mxu0 %v12525_v48  ;;  %v12543_v48 = vpack.c.bf16 %v4789_v30, %v4788_v47  ;;  %v12545_v24 = vpack.c.bf16 %v4807_v11, %v4806_v33  ;;  %v5106_v47 = vld [vmem:[#allocation11 + $0x720] sm:$0xff]  ;;  %v5107_v30 = vld [vmem:[#allocation11 + $0x728] sm:$0xff]  ;;  %v5124_v33 = vld [vmem:[#allocation11 + $0x7b0] sm:$0xff] }
 0x57b   :  { %12560 = vmatpush3.bf16.msra.mxu1 %v12559_v26  ;;  %v4790_v26 = vld [vmem:[#allocation11 + $0x460] sm:$0xff]  ;;  %v5125_v11 = vld [vmem:[#allocation11 + $0x7b8] sm:$0xff]  ;;  %v4999_v13 = vld [vmem:[#allocation11 + $0x628] sm:$0xff] }
 0x57c   :  { %12562 = vmatprep.subr.bf16.mxu1 %v12561_v49  ;;  %v4808_v49 = vld [vmem:[#allocation11 + $0x4f0] sm:$0xff]  ;;  %v12547_v46 = vpack.c.bf16 %v4791_v8, %v4790_v26  ;;  %v12629_v27 = vpack.c.bf16 %v5125_v11, %v5124_v33  ;;  %v5109_v26 = vld [vmem:[#allocation11 + $0x738] sm:$0xff]  ;;  %v12595_v8 = vpack.c.bf16 %v4999_v13, %v4998_v57 }
 0x57d   :  { %12528 = vmatpush3.bf16.msra.mxu0 %v12527_v62  ;;  %v4900_v62 = vld [vmem:[#allocation11 + $0x570] sm:$0xff]  ;;  %v12549_v55 = vpack.c.bf16 %v4809_v25, %v4808_v49  ;;  %v5127_v49 = vld [vmem:[#allocation11 + $0x7c8] sm:$0xff]  ;;  %v5009_v57 = vld [vmem:[#allocation11 + $0x678] sm:$0xff] }
 0x57e   :  { %12530 = vmatprep.subr.bf16.mxu0 %v12529_v29  ;;  %v5118_v29 = vld [vmem:[#allocation11 + $0x780] sm:$0xff]  ;;  %v12583_v54 = vpack.c.bf16 %v4901_v34, %v4900_v62  ;;  %v5001_v62 = vld [vmem:[#allocation11 + $0x638] sm:$0xff] }
 0x57f   :  { %12564 = vmatpush3.bf16.msra.mxu1 %v12563_v45  ;;  %v4792_v45 = vld [vmem:[#allocation11 + $0x470] sm:$0xff]  ;;  %v12617_v4 = vpack.c.bf16 %v5119_v43, %v5118_v29  ;;  %v5019_v29 = vld [vmem:[#allocation11 + $0x6c8] sm:$0xff] }
 0x580   :  { %12566 = vmatprep.subr.bf16.mxu1 %v12565_v2  ;;  %v5010_v2 = vld [vmem:[#allocation11 + $0x680] sm:$0xff]  ;;  %v12551_v63 = vpack.c.bf16 %v4793_v51, %v4792_v45  ;;  %v5111_v45 = vld [vmem:[#allocation11 + $0x748] sm:$0xff] }
 0x581   :  { %12532 = vmatpush3.bf16.msra.mxu0 %v12531_v28  ;;  %v5102_v28 = vld [vmem:[#allocation11 + $0x700] sm:$0xff]  ;;  %v12585_v12 = vpack.c.bf16 %v5011_v1, %v5010_v2  ;;  %v5129_v2 = vld [vmem:[#allocation11 + $0x7d8] sm:$0xff] }
 0x582   :  { %12534 = vmatprep.subr.bf16.mxu0 %v12533_v59  ;;  %v5120_v59 = vld [vmem:[#allocation11 + $0x790] sm:$0xff]  ;;  %v12619_v9 = vpack.c.bf16 %v5103_v10, %v5102_v28  ;;  %v5003_v28 = vld [vmem:[#allocation11 + $0x648] sm:$0xff] }
 0x583   :  { %12568 = vmatpush3.bf16.msra.mxu1 %v12567_v17  ;;  %v4994_v17 = vld [vmem:[#allocation11 + $0x600] sm:$0xff] }
 0x584   :  { %12570 = vmatprep.subr.bf16.mxu1 %v12569_v19  ;;  %v5012_v19 = vld [vmem:[#allocation11 + $0x690] sm:$0xff]  ;;  %v12587_v21 = vpack.c.bf16 %v4995_v20, %v4994_v17  ;;  %v5113_v17 = vld [vmem:[#allocation11 + $0x758] sm:$0xff] }
 0x585   :  { %12536 = vmatpush3.bf16.msra.mxu0 %v12535_v39  ;;  %v12621_v39 = vpack.c.bf16 %v5121_v52, %v5120_v59  ;;  %v12589_v41 = vpack.c.bf16 %v5013_v23, %v5012_v19  ;;  %v5021_v59 = vld [vmem:[#allocation11 + $0x6d8] sm:$0xff]  ;;  %v5131_v19 = vld [vmem:[#allocation11 + $0x7e8] sm:$0xff] }
 0x586   :  { %12538 = vmatprep.subr.bf16.mxu0 %v12537_v16  ;;  %v5135_v16 = vrot.slane %v15985_v44, 7  ;;  %v5016_v44 = vld [vmem:[#allocation11 + $0x6b0] sm:$0xff] }
 0x587   :  { %12572 = vmatpush3.bf16.msra.mxu1 %v12571_v18  ;;  %v5123_v18 = vld [vmem:[#allocation11 + $0x7a8] sm:$0xff]  ;;  %v12597_v25 = vpack.c.bf16 %v5017_v35, %v5016_v44  ;;  %v5134_v44 = vrot.slane %v15983_v5, 7  ;;  %v5026_v35 = vrot.slane %v15983_v5, 6  ;;  %v5330_v5 = vld [vmem:[#allocation3 + $0xc8] sm:$0xff] }
 0x588   :  { %12574 = vmatprep.subr.bf16.mxu1 %v12573_v42  ;;  %v4996_v42 = vld [vmem:[#allocation11 + $0x610] sm:$0xff] }
 0x589   :  { %12540 = vmatpush3.bf16.msra.mxu0 %v12539_v38  ;;  %v12623_v38 = vpack.c.bf16 %v5105_v61, %v5104_v56  ;;  %v5022_v61 = vld [vmem:[#allocation11 + $0x6e0] sm:$0xff] }
 0x58a   :  { %12542 = vmatprep.subr.bf16.mxu0 %v12541_v15  ;;  %v12625_v15 = vpack.c.bf16 %v5123_v18, %v5122_v22  ;;  %v5114_v22 = vld [vmem:[#allocation11 + $0x760] sm:$0xff]  ;;  %v5115_v18 = vld [vmem:[#allocation11 + $0x768] sm:$0xff] }
 0x58b   :  { %12576 = vmatpush3.bf16.msra.mxu1 %v12575_v32  ;;  %v12591_v32 = vpack.c.bf16 %v4997_v53, %v4996_v42  ;;  %v5133_v42 = vld [vmem:[#allocation11 + $0x7f8] sm:$0xff] }
 0x58c   :  { %12578 = vmatprep.subr.bf16.mxu1 %v12577_v14  ;;  %v12593_v14 = vpack.c.bf16 %v5015_v7, %v5014_v6  ;;  %v12643_v6 = vpack.c.bf16 %v5115_v18, %v5114_v22  ;;  %v5024_v7 = vld [vmem:[#allocation11 + $0x6f0] sm:$0xff]  ;;  %v5304_v22 = vld [vmem:[#allocation3 + $0x8] sm:$0xff] }
 0x58d   :  { %12544 = vmatpush3.bf16.msra.mxu0 %v12543_v48  ;;  %v12627_v48 = vpack.c.bf16 %v5107_v30, %v5106_v47  ;;  %v5116_v30 = vld [vmem:[#allocation11 + $0x770] sm:$0xff]  ;;  %v5308_v18 = vld [vmem:[#allocation3 + $0x28] sm:$0xff] }
 0x58e   :  { %12546 = vmatprep.subr.bf16.mxu0 %v12545_v24  ;;  %v5108_v24 = vld [vmem:[#allocation11 + $0x730] sm:$0xff] }
 0x58f   :  { %12580 = vmatpush3.bf16.msra.mxu1 %v12579_v40  ;;  %v5126_v40 = vld [vmem:[#allocation11 + $0x7c0] sm:$0xff]  ;;  %v12631_v34 = vpack.c.bf16 %v5109_v26, %v5108_v24 }
 0x590   :  { %12582 = vmatprep.subr.bf16.mxu1 %v12581_v58  ;;  %v5000_v58 = vld [vmem:[#allocation11 + $0x630] sm:$0xff]  ;;  %v12633_v43 = vpack.c.bf16 %v5127_v49, %v5126_v40  ;;  %v5322_v24 = vld [vmem:[#allocation3 + $0x88] sm:$0xff]  ;;  %v17577_v40 = vmov 0.0|0.0  }
 0x591   :  { %12548 = vmatpush3.bf16.msra.mxu0 %v12547_v46  ;;  %v5018_v46 = vld [vmem:[#allocation11 + $0x6c0] sm:$0xff]  ;;  %v12599_v51 = vpack.c.bf16 %v5001_v62, %v5000_v58  ;;  %v5321_v58 = vld [vmem:[#allocation3 + $0x80] sm:$0xff] }
 0x592   :  { %12550 = vmatprep.subr.bf16.mxu0 %v12549_v55  ;;  %v5110_v55 = vld [vmem:[#allocation11 + $0x740] sm:$0xff]  ;;  %v12601_v1 = vpack.c.bf16 %v5019_v29, %v5018_v46  ;;  %v5325_v62 = vld [vmem:[#allocation3 + $0xa0] sm:$0xff] }
 0x593   :  { %12584 = vmatpush3.bf16.msra.mxu1 %v12583_v54  ;;  %v5128_v54 = vld [vmem:[#allocation11 + $0x7d0] sm:$0xff]  ;;  %v12635_v10 = vpack.c.bf16 %v5111_v45, %v5110_v55  ;;  %v5326_v26 = vld [vmem:[#allocation3 + $0xa8] sm:$0xff]  ;;  %v16009_v46 = vpack.c.bf16 %v5325_v62, %v5321_v58  ;;  %v5309_v62 = vld [vmem:[#allocation3 + $0x30] sm:$0xff] }
 0x594   :  { %12618 = vmatprep.subr.bf16.mxu1 %v12617_v4  ;;  %v5002_v4 = vld [vmem:[#allocation11 + $0x640] sm:$0xff]  ;;  %v12637_v52 = vpack.c.bf16 %v5129_v2, %v5128_v54  ;;  %v16007_v49 = vpack.c.bf16 %v5326_v26, %v5322_v24  ;;  %v5333_v54 = vld [vmem:[#allocation3 + $0xe0] sm:$0x3f] }
 0x595   :  { %12552 = vmatpush3.bf16.msra.mxu0 %v12551_v63  ;;  %v5020_v63 = vld [vmem:[#allocation11 + $0x6d0] sm:$0xff]  ;;  %v12603_v20 = vpack.c.bf16 %v5003_v28, %v5002_v4  ;;  %v5334_v29 = vld [vmem:[#allocation3 + $0xe8] sm:$0x3f] }
 0x596   :  { %4987 = vmatmul.mubr.f32.vlgmr.msra.gmra.mrb[16].mxu1 %v4918_v31  ;;  %12586 = vmatprep.subr.bf16.mxu0 %v12585_v12  ;;  %v5112_v12 = vld [vmem:[#allocation11 + $0x750] sm:$0xff]  ;;  %v12605_v23 = vpack.c.bf16 %v5021_v59, %v5020_v63  ;;  %v16012_v55 = vpack.c.bf16 %v5334_v29, %v5330_v5  ;;  %v5215_v45 = vld [vmem:[#allocation14 + $0x18] sm:$0xff]  ;;  %v5216_v59 = vld [vmem:[#allocation14 + $0x20] sm:$0xff] }
 0x597   :  { %12620 = vmatpush3.bf16.msra.mxu1 %v12619_v9  ;;  %5202 = vmatprep.mubr.f32.mxu1 %v5135_v16  ;;  %v5130_v9 = vld [vmem:[#allocation11 + $0x7e0] sm:$0xff]  ;;  %v5004_v31 = vld [vmem:[#allocation11 + $0x650] sm:$0xff]  ;;  %v12639_v56 = vpack.c.bf16 %v5113_v17, %v5112_v12  ;;  %v5023_v16 = vld [vmem:[#allocation11 + $0x6e8] sm:$0xff] }
 0x598   :  { %4879 = vmatmul.mubr.f32.vlgmr.msra.gmra.mrb[16].mxu0 %v4810_v36  ;;  %12622 = vmatprep.subr.bf16.mxu1 %v12621_v39  ;;  %v5005_v39 = vld [vmem:[#allocation11 + $0x658] sm:$0xff]  ;;  %v12609_v53 = vpack.c.bf16 %v5023_v16, %v5022_v61  ;;  %v5324_v4 = vld [vmem:[#allocation3 + $0x98] sm:$0xff]  ;;  %v5323_v12 = vld [vmem:[#allocation3 + $0x90] sm:$0xff] }
 0x599   :  { %12588 = vmatpush3.bf16.msra.mxu0 %v12587_v21  ;;  %5094 = vmatprep.mubr.f32.mxu0 %v5027_v3  ;;  %v12641_v21 = vpack.c.bf16 %v5131_v19, %v5130_v9  ;;  %v12607_v36 = vpack.c.bf16 %v5005_v39, %v5004_v31  ;;  %v5006_v3 = vld [vmem:[#allocation11 + $0x660] sm:$0xff]  ;;  %v5328_v28 = vld [vmem:[#allocation3 + $0xb8] sm:$0xff]  ;;  %v5327_v17 = vld [vmem:[#allocation3 + $0xb0] sm:$0xff] }
 0x59a   :  { %12590 = vmatprep.subr.bf16.mxu0 %v12589_v41  ;;  %v5132_v41 = vld [vmem:[#allocation11 + $0x7f0] sm:$0xff]  ;;  %v16021_v63 = vpack.c.bf16 %v5328_v28, %v5324_v4  ;;  %v16031_v31 = vpack.c.bf16 %v5327_v17, %v5323_v12  ;;  %v5219_v61 = vld [vmem:[#allocation14 + $0x38] sm:$0xff]  ;;  %v5331_v16 = vld [vmem:[#allocation3 + $0xd0] sm:$0xff] }
 0x59b   :  { %12624 = vmatpush3.bf16.msra.mxu1 %v12623_v38  ;;  %v5007_v38 = vld [vmem:[#allocation11 + $0x668] sm:$0xff]  ;;  %v12645_v47 = vpack.c.bf16 %v5133_v42, %v5132_v41  ;;  %v5336_v9 = vld [vmem:[#allocation3 + $0xf8] sm:$0x3f]  ;;  %v5658_v12 = vld [vmem:[#allocation3 + $0x128] sm:$0xff] }
 0x59c   :  { %12626 = vmatprep.subr.bf16.mxu1 %v12625_v15  ;;  %v5025_v15 = vld [vmem:[#allocation11 + $0x6f8] sm:$0xff]  ;;  %v12611_v33 = vpack.c.bf16 %v5007_v38, %v5006_v3  ;;  %v5220_v42 = vld [vmem:[#allocation14 + $0x40] sm:$0xff]  ;;  %v5221_v3 = vld [vmem:[#allocation14 + $0x48] sm:$0xff] }
 0x59d   :  { %12592 = vmatpush3.bf16.msra.mxu0 %v12591_v32  ;;  %v5117_v32 = vld [vmem:[#allocation11 + $0x778] sm:$0xff]  ;;  %v12613_v11 = vpack.c.bf16 %v5025_v15, %v5024_v7  ;;  %v12662_v7 = vpack.c.bf16 %v5221_v3, %v5220_v42  ;;  %v5224_v26 = vld [vmem:[#allocation14 + $0x60] sm:$0xff]  ;;  %v5314_v29 = vld [vmem:[#allocation3 + $0x58] sm:$0xff] }
 0x59e   :  { %12594 = vmatprep.subr.bf16.mxu0 %v12593_v14  ;;  %v5008_v14 = vld [vmem:[#allocation11 + $0x670] sm:$0xff]  ;;  %v12647_v13 = vpack.c.bf16 %v5117_v32, %v5116_v30  ;;  %v5303_v38 = vld [vmem:[#allocation3] sm:$0xff]  ;;  %v5316_v30 = vld [vmem:[#allocation3 + $0x68] sm:$0x3f] }
 0x59f   :  { %12628 = vmatpush3.bf16.msra.mxu1 %v12627_v48  ;;  %v12615_v48 = vpack.c.bf16 %v5009_v57, %v5008_v14  ;;  %v5218_v39 = vld [vmem:[#allocation14 + $0x30] sm:$0xff]  ;;  %v5317_v28 = vld [vmem:[#allocation3 + $0x70] sm:$0x3f] }
 0x5a0   :  { %12630 = vmatprep.subr.bf16.mxu1 %v12629_v27  ;;  %v16003_v27 = vld [vmem:[#allocation2 + $0x60] sm:$0xff]  ;;  %v5660_v42 = vld [vmem:[#allocation3 + $0x138] sm:$0xff] }
 0x5a1   :  { %12596 = vmatpush3.bf16.msra.mxu0 %v12595_v8  ;;  %v5212_v8 = vld [vmem:[#allocation14] sm:$0xff]  ;;  %v5311_v14 = vld [vmem:[#allocation3 + $0x40] sm:$0xff] }
 0x5a2   :  { %12598 = vmatprep.subr.bf16.mxu0 %v12597_v25  ;;  %v5213_v25 = vld [vmem:[#allocation14 + $0x8] sm:$0xff] }
 0x5a3   :  { %12632 = vmatpush3.bf16.msra.mxu1 %v12631_v34  ;;  %v12650_v34 = vpack.c.bf16 %v5213_v25, %v5212_v8  ;;  %v5225_v8 = vld [vmem:[#allocation14 + $0x68] sm:$0xff] }
 0x5a4   :  { %12634 = vmatprep.subr.bf16.mxu1 %v12633_v43  ;;  %v5214_v43 = vld [vmem:[#allocation14 + $0x10] sm:$0xff]  ;;  %v5305_v25 = vld [vmem:[#allocation3 + $0x10] sm:$0xff]  ;;  %v12668_v58 = vpack.c.bf16 %v5225_v8, %v5224_v26 }
 0x5a5   :  { %12600 = vmatpush3.bf16.msra.mxu0 %v12599_v51  ;;  %v5329_v51 = vld [vmem:[#allocation3 + $0xc0] sm:$0xff]  ;;  %v12653_v2 = vpack.c.bf16 %v5215_v45, %v5214_v43  ;;  %v16078_v5 = vpack.c.bf16 %v5309_v62, %v5305_v25  ;;  %v5318_v43 = vld [vmem:[#allocation3 + $0x78] sm:$0x3f] }
 0x5a6   :  { %12602 = vmatprep.subr.bf16.mxu0 %v12601_v1  ;;  %v16015_v1 = vpack.c.bf16 %v5333_v54, %v5329_v51  ;;  %v16083_v45 = vpack.c.bf16 %v5318_v43, %v5314_v29  ;;  %v5226_v51 = vld [vmem:[#allocation14 + $0x70] sm:$0xff]  ;;  %v5227_v54 = vld [vmem:[#allocation14 + $0x78] sm:$0xff] }
 0x5a7   :  { %12636 = vmatpush3.bf16.msra.mxu1 %v12635_v10  ;;  %v12671_v4 = vpack.c.bf16 %v5227_v54, %v5226_v51 }
 0x5a8   :  { %12638 = vmatprep.subr.bf16.mxu1 %v12637_v52  ;;  %v5217_v52 = vld [vmem:[#allocation14 + $0x28] sm:$0xff] }
 0x5a9   :  { %12604 = vmatpush3.bf16.msra.mxu0 %v12603_v20  ;;  %v5332_v20 = vld [vmem:[#allocation3 + $0xd8] sm:$0xff]  ;;  %v12656_v19 = vpack.c.bf16 %v5217_v52, %v5216_v59  ;;  %v5654_v52 = vld [vmem:[#allocation3 + $0x108] sm:$0xff] }
 0x5aa   :  { %12606 = vmatprep.subr.bf16.mxu0 %v12605_v23  ;;  %v16029_v23 = vld [vmem:[%s17389_s0 + $0x28] sm:$0x7f]  ;;  %v16096_v17 = vpack.c.bf16 %v5658_v12, %v5654_v52 }
 0x5ab   :  { %12640 = vmatpush3.bf16.msra.mxu1 %v12639_v56  ;;  %v16035_v56 = vpack.c.bf16 %v5336_v9, %v5332_v20  ;;  %v5653_v20 = vld [vmem:[#allocation3 + $0x100] sm:$0xff] }
 0x5ac   :  { %12642 = vmatprep.subr.bf16.mxu1 %v12641_v21  ;;  %v5335_v21 = vld [vmem:[#allocation3 + $0xf0] sm:$0x3f]  ;;  %v5657_v9 = vld [vmem:[#allocation3 + $0x120] sm:$0xff] }
 0x5ad   :  { %12608 = vmatpush3.bf16.msra.mxu0 %v12607_v36  ;;  %v12659_v36 = vpack.c.bf16 %v5219_v61, %v5218_v39  ;;  %v16040_v41 = vpack.c.bf16 %v5335_v21, %v5331_v16  ;;  %v5662_v39 = vld [vmem:[#allocation3 + $0x148] sm:$0xff]  ;;  %v5661_v21 = vld [vmem:[#allocation3 + $0x140] sm:$0xff] }
 0x5ae   :  { %12610 = vmatprep.subr.bf16.mxu0 %v12609_v53  ;;  %v16046_v53 = vpack.c.bf16 %v5308_v18, %v5304_v22  ;;  %v5666_v61 = vld [vmem:[#allocation3 + $0x168] sm:$0x3f]  ;;  %v5665_v22 = vld [vmem:[#allocation3 + $0x160] sm:$0x3f] }
 0x5af   :  { %12644 = vmatpush3.bf16.msra.mxu1 %v12643_v6  ;;  %v5307_v6 = vld [vmem:[#allocation3 + $0x20] sm:$0xff]  ;;  %v16103_v16 = vpack.c.bf16 %v5666_v61, %v5662_v39  ;;  %v16106_v18 = vpack.c.bf16 %v5665_v22, %v5661_v21 }
 0x5b0   :  { %12646 = vmatprep.subr.bf16.mxu1 %v12645_v47  ;;  %v16052_v15 = vpack.c.bf16 %v5307_v6, %v5303_v38  ;;  %v5312_v47 = vld [vmem:[#allocation3 + $0x48] sm:$0xff]  ;;  %v5655_v38 = vld [vmem:[#allocation3 + $0x110] sm:$0xff] }
 0x5b1   :  { %12612 = vmatpush3.bf16.msra.mxu0 %v12611_v33  ;;  %v16061_v32 = vpack.c.bf16 %v5316_v30, %v5312_v47  ;;  %v5222_v33 = vld [vmem:[#allocation14 + $0x50] sm:$0xff]  ;;  %v5659_v6 = vld [vmem:[#allocation3 + $0x130] sm:$0xff] }
 0x5b2   :  { %12614 = vmatprep.subr.bf16.mxu0 %v12613_v11  ;;  %v5223_v11 = vld [vmem:[#allocation14 + $0x58] sm:$0xff]  ;;  %v16122_v47 = vpack.c.bf16 %v5659_v6, %v5655_v38  ;;  %v5664_v30 = vld [vmem:[#allocation3 + $0x158] sm:$0xff] }
 0x5b3   :  { %12648 = vmatpush3.bf16.msra.mxu1 %v12647_v13  ;;  %v12665_v57 = vpack.c.bf16 %v5223_v11, %v5222_v33  ;;  %v5315_v13 = vld [vmem:[#allocation3 + $0x60] sm:$0x3f]  ;;  %v5668_v33 = vld [vmem:[#allocation3 + $0x178] sm:$0x3f] }
 0x5b4   :  { %12674 = vmatprep.subr.bf16.mxu1 %v16007_v49  ;;  %v16127_v11 = vpack.c.bf16 %v5668_v33, %v5664_v30 }
 0x5b5   :  { %12616 = vmatpush3.bf16.msra.mxu0 %v12615_v48  ;;  %v16066_v48 = vpack.c.bf16 %v5315_v13, %v5311_v14  ;;  %v5663_v14 = vld [vmem:[#allocation3 + $0x150] sm:$0xff] }
 0x5b6   :  { %5203 = vmatmul.mubr.f32.vlgmr.msra.gmra.mrb[18].mxu1 %v5134_v44  ;;  %12649 = vmatprep.subr.bf16.mxu0 %v17577_v40  ;;  %v5306_v44 = vld [vmem:[#allocation3 + $0x18] sm:$0xff] }
 0x5b7   :  { %5416 = vmatprep.mubr.f32.mxu1 %v16003_v27  ;;  %12676 = vmatpush1.bf16.msra.mxu1 %v16009_v46 }
 0x5b8   :  { %5095 = vmatmul.mubr.f32.vlgmr.msra.gmra.mrb[18].mxu0 %v5026_v35  ;;  %12679 = vmatprep.subr.msk.bf16.mxu1 %vm14635_vm2, %v16012_v55  ;;  %v5310_v35 = vld [vmem:[#allocation3 + $0x38] sm:$0xff] }
 0x5b9   :  { %12651 = vmatpush3.bf16.msra.mxu0 %v12650_v34  ;;  %v16072_v24 = vpack.c.bf16 %v5310_v35, %v5306_v44  ;;  %v10535_v34 = vld [vmem:[%s17389_s0 + $0x20] sm:$0x7f]  ;;  %11251 = vmatprep.mubr.msk.f32.mxu0 %vm14453_vm8, %v16003_v27 }
 0x5ba   :  { %12652 = vmatprep.subr.bf16.mxu0 %v17577_v40 }
 0x5bb   :  { %12682 = vmatpush1.bf16.msk.msra.mxu1 %vm14635_vm2, %v16015_v1 }
 0x5bc   :  { %12684 = vmatprep.subr.bf16.mxu1 %v16021_v63 }
 0x5bd   :  { %12654 = vmatpush3.bf16.msra.mxu0 %v12653_v2  ;;  %v5313_v2 = vld [vmem:[#allocation3 + $0x50] sm:$0xff] }
 0x5be   :  { %12655 = vmatprep.subr.bf16.mxu0 %v17577_v40  ;;  %10539 = vmatmul.mubr.msk.f32.vlgmr.msra.gmra.mrb[20].mxu1 %vm196_vm3, %v16029_v23  ;;  %v16089_v59 = vpack.c.bf16 %v5317_v28, %v5313_v2  ;;  %v16202_v28 = vld [vmem:[%s17389_s0 + $0x21] sm:$0x7f] }
 0x5bf   :  { %12686 = vmatpush1.bf16.msra.mxu1 %v16031_v31  ;;  %5487 = vmatprep.mubr.f32.mxu1 %v16003_v27 }
 0x5c0   :  { %12689 = vmatprep.subr.msk.bf16.mxu1 %vm14635_vm2, %v16035_v56 }
 0x5c1   :  { %12657 = vmatpush3.bf16.msra.mxu0 %v12656_v19  ;;  %v16099_v19 = vpack.c.bf16 %v5657_v9, %v5653_v20 }
 0x5c2   :  { %12658 = vmatprep.subr.bf16.mxu0 %v17577_v40 }
 0x5c3   :  { %12692 = vmatpush1.bf16.msk.msra.mxu1 %vm14635_vm2, %v16040_v41 }
 0x5c4   :  { %12694 = vmatprep.subr.bf16.mxu1 %v16046_v53 }
 0x5c5   :  { %12660 = vmatpush3.bf16.msra.mxu0 %v12659_v36  ;;  %v5656_v36 = vld [vmem:[#allocation3 + $0x118] sm:$0xff] }
 0x5c6   :  { %12661 = vmatprep.subr.bf16.mxu0 %v17577_v40  ;;  %10542 = vmatmul.mubr.msk.f32.vlgmr.msra.gmra.mrb[22].mxu1 %vm196_vm3, %v16029_v23  ;;  %v16112_v3 = vpack.c.bf16 %v5660_v42, %v5656_v36 }
 0x5c7   :  { %12696 = vmatpush1.bf16.msra.mxu1 %v16052_v15  ;;  %5573 = vmatprep.mubr.f32.mxu1 %v16003_v27 }
 0x5c8   :  { %12699 = vmatprep.subr.msk.bf16.mxu1 %vm14635_vm2, %v16061_v32 }
 0x5c9   :  { %12663 = vmatpush3.bf16.msra.mxu0 %v12662_v7  ;;  %v16120_v7 = vld [vmem:[%s17389_s0 + $0x30] sm:$0x7f] }
 0x5ca   :  { %12664 = vmatprep.subr.bf16.mxu0 %v17577_v40 }
 0x5cb   :  { %12702 = vmatpush1.bf16.msk.msra.mxu1 %vm14635_vm2, %v16066_v48 }
 0x5cc   :  { %12704 = vmatprep.subr.bf16.mxu1 %v16072_v24 }
 0x5cd   :  { %12666 = vmatpush3.bf16.msra.mxu0 %v12665_v57  ;;  %v5667_v57 = vld [vmem:[#allocation3 + $0x170] sm:$0x3f] }
 0x5ce   :  { %12667 = vmatprep.subr.bf16.mxu0 %v17577_v40  ;;  %10545 = vmatmul.mubr.msk.f32.vlgmr.msra.gmra.mrb[20].mxu1 %vm196_vm3, %v10535_v34  ;;  %v16130_v13 = vpack.c.bf16 %v5667_v57, %v5663_v14 }
 0x5cf   :  { %12706 = vmatpush1.bf16.msra.mxu1 %v16078_v5  ;;  %5644 = vmatprep.mubr.f32.mxu1 %v16003_v27 }
 0x5d0   :  { %12709 = vmatprep.subr.msk.bf16.mxu1 %vm14635_vm2, %v16083_v45 }
 0x5d1   :  { %12669 = vmatpush3.bf16.msra.mxu0 %v12668_v58 }
 0x5d2   :  { %12670 = vmatprep.subr.bf16.mxu0 %v17577_v40  ;;  %v7461_v40 = vld [vmem:[#allocation8 + $0x6b0] sm:$0xff] }
 0x5d3   :  { %12712 = vmatpush1.bf16.msk.msra.mxu1 %vm14635_vm2, %v16089_v59 }
 0x5d4   :  { %12714 = vmatprep.subr.bf16.mxu1 %v16096_v17 }
 0x5d5   :  { %12672 = vmatpush3.bf16.msra.mxu0 %v12671_v4 }
 0x5d6   :  { %12734 = vmatprep.subr.bf16.mxu0 %v16007_v49  ;;  %10548 = vmatmul.mubr.msk.f32.vlgmr.msra.gmra.mrb[22].mxu1 %vm196_vm3, %v10535_v34  ;;  %v16154_v34 = vld [vmem:[%s17389_s0 + $0x38] sm:$0x7f] }
 0x5d7   :  { %12716 = vmatpush1.bf16.msra.mxu1 %v16099_v19  ;;  %5748 = vmatprep.mubr.f32.mxu1 %v16003_v27 }
 0x5d8   :  { %12719 = vmatprep.subr.msk.bf16.mxu1 %vm14635_vm2, %v16103_v16 }
 0x5db   :  { %12722 = vmatpush1.bf16.msk.msra.mxu1 %vm14635_vm2, %v16106_v18 }
 0x5dc   :  { %12724 = vmatprep.subr.bf16.mxu1 %v16112_v3 }
 0x5de   :  { %10552 = vmatmul.mubr.msk.f32.vlgmr.msra.gmra.mrb[20].mxu1 %vm196_vm3, %v16120_v7 }
 0x5df   :  { %12726 = vmatpush1.bf16.msra.mxu1 %v16122_v47  ;;  %5819 = vmatprep.mubr.f32.mxu1 %v16003_v27 }
 0x5e0   :  { %12729 = vmatprep.subr.msk.bf16.mxu1 %vm14635_vm2, %v16127_v11 }
 0x5e3   :  { %12732 = vmatpush1.bf16.msk.msra.mxu1 %vm14635_vm2, %v16130_v13 }
 0x5e4   :  { %12794 = vmatprep.subr.bf16.mxu1 %v16007_v49 }
 0x5e6   :  { %10555 = vmatmul.mubr.msk.f32.vlgmr.msra.gmra.mrb[22].mxu1 %vm196_vm3, %v16120_v7 }
 0x5e7   :  { %12796 = vmatpush1.bf16.msra.mxu1 %v16009_v46  ;;  %6359 = vmatprep.mubr.f32.mxu1 %v16003_v27 }
 0x5e8   :  { %12799 = vmatprep.subr.msk.bf16.mxu1 %vm14635_vm2, %v16012_v55 }
 0x5eb   :  { %12802 = vmatpush1.bf16.msk.msra.mxu1 %vm14635_vm2, %v16015_v1 }
 0x5ec   :  { %12804 = vmatprep.subr.bf16.mxu1 %v16021_v63 }
 0x5ee   :  { %10577 = vmatmul.mubr.msk.f32.vlgmr.msra.gmra.mrb[24].mxu1 %vm196_vm3, %v16154_v34 }
 0x5ef   :  { %12806 = vmatpush1.bf16.msra.mxu1 %v16031_v31  ;;  %6430 = vmatprep.mubr.f32.mxu1 %v16003_v27 }
 0x5f0   :  { %12809 = vmatprep.subr.msk.bf16.mxu1 %vm14635_vm2, %v16035_v56 }
 0x5f3   :  { %12812 = vmatpush1.bf16.msk.msra.mxu1 %vm14635_vm2, %v16040_v41 }
 0x5f4   :  { %12814 = vmatprep.subr.bf16.mxu1 %v16046_v53 }
 0x5f6   :  { %10580 = vmatmul.mubr.msk.f32.vlgmr.msra.gmra.mrb[26].mxu1 %vm196_vm3, %v16154_v34 }
 0x5f7   :  { %12816 = vmatpush1.bf16.msra.mxu1 %v16052_v15  ;;  %6501 = vmatprep.mubr.f32.mxu1 %v16003_v27 }
 0x5f8   :  { %12819 = vmatprep.subr.msk.bf16.mxu1 %vm14635_vm2, %v16061_v32 }
 0x5fb   :  { %12822 = vmatpush1.bf16.msk.msra.mxu1 %vm14635_vm2, %v16066_v48 }
 0x5fc   :  { %12824 = vmatprep.subr.bf16.mxu1 %v16072_v24 }
 0x5fe   :  { %10583 = vmatmul.mubr.msk.f32.vlgmr.msra.gmra.mrb[24].mxu1 %vm196_vm3, %v16120_v7 }
 0x5ff   :  { %12826 = vmatpush1.bf16.msra.mxu1 %v16078_v5  ;;  %6572 = vmatprep.mubr.f32.mxu1 %v16003_v27 }
 0x600   :  { %12829 = vmatprep.subr.msk.bf16.mxu1 %vm14635_vm2, %v16083_v45 }
 0x603   :  { %12832 = vmatpush1.bf16.msk.msra.mxu1 %vm14635_vm2, %v16089_v59 }
 0x604   :  { %12834 = vmatprep.subr.bf16.mxu1 %v16096_v17 }
 0x606   :  { %10586 = vmatmul.mubr.msk.f32.vlgmr.msra.gmra.mrb[26].mxu1 %vm196_vm3, %v16120_v7 }
 0x607   :  { %12836 = vmatpush1.bf16.msra.mxu1 %v16099_v19  ;;  %6647 = vmatprep.mubr.f32.mxu1 %v16003_v27 }
 0x608   :  { %12839 = vmatprep.subr.msk.bf16.mxu1 %vm14635_vm2, %v16103_v16 }
 0x60b   :  { %12842 = vmatpush1.bf16.msk.msra.mxu1 %vm14635_vm2, %v16106_v18 }
 0x60c   :  { %12844 = vmatprep.subr.bf16.mxu1 %v16112_v3 }
 0x60e   :  { %10590 = vmatmul.mubr.msk.f32.vlgmr.msra.gmra.mrb[24].mxu1 %vm196_vm3, %v16202_v28 }
 0x60f   :  { %12846 = vmatpush1.bf16.msra.mxu1 %v16122_v47  ;;  %6718 = vmatprep.mubr.f32.mxu1 %v16003_v27 }
 0x610   :  { %12849 = vmatprep.subr.msk.bf16.mxu1 %vm14635_vm2, %v16127_v11 }
 0x613   :  { %12852 = vmatpush1.bf16.msk.msra.mxu1 %vm14635_vm2, %v16130_v13 }
 0x616   :  { %10593 = vmatmul.mubr.msk.f32.vlgmr.msra.gmra.mrb[26].mxu1 %vm196_vm3, %v16202_v28 }
 0x629   :  { %v10692_v44 = vpop.f32.mrb[12].mxu1 }
 0x62a   :  { %v10693_v35 = vpop.f32.mrb[13].mxu1 }
 0x62b   :  { %v10694_v26 = vadd.f32 %v10693_v35, %v10692_v44  ;;  %v10657_v8 = vpop.f32.mrb[12].mxu0  ;;  %v5209_v35 = vld [vmem:[#allocation12] sm:$0x1] }
 0x62c   :  { %v10658_v25 = vpop.f32.mrb[13].mxu0 }
 0x62d   :  { %v10659_v58 = vadd.f32 %v10658_v25, %v10657_v8 }
 0x62f   :  { %v4558_v62 = vadd.f32 %v10694_v26, %v10659_v58 }
 0x649   :  { %v10762_v29 = vpop.f32.mrb[14].mxu1 }
 0x64a   :  { %v10763_v43 = vpop.f32.mrb[15].mxu1 }
 0x64b   :  { %v10764_v51 = vadd.f32 %v10763_v43, %v10762_v29  ;;  %v10727_v54 = vpop.f32.mrb[14].mxu0 }
 0x64c   :  { %v10728_v2 = vpop.f32.mrb[15].mxu0 }
 0x64d   :  { %v10729_v4 = vadd.f32 %v10728_v2, %v10727_v54 }
 0x64f   :  { %v4668_v52 = vadd.f32 %v10729_v4, %v4558_v62 }
 0x651   :  { %v4776_v12 = vadd.f32 %v10764_v51, %v4668_v52  ;;  %v7468_v51 = vld [vmem:[#allocation8 + $0x6e8] sm:$0xff] }
 0x669   :  { %v10832_v20 = vpop.f32.mrb[16].mxu1 }
 0x66a   :  { %v10833_v9 = vpop.f32.mrb[17].mxu1 }
 0x66b   :  { %v10834_v39 = vadd.f32 %v10833_v9, %v10832_v20  ;;  %v10797_v61 = vpop.f32.mrb[16].mxu0  ;;  %v7469_v20 = vld [vmem:[#allocation8 + $0x6f0] sm:$0xff] }
 0x66c   :  { %v10798_v21 = vpop.f32.mrb[17].mxu0 }
 0x66d   :  { %v10799_v22 = vadd.f32 %v10798_v21, %v10797_v61 }
 0x66f   :  { %v4884_v36 = vadd.f32 %v10799_v22, %v4776_v12 }
 0x671   :  { %v4992_v42 = vadd.f32 %v10834_v39, %v4884_v36 }
 0x689   :  { %v10902_v38 = vpop.f32.mrb[18].mxu1 }
 0x68a   :  { %v10903_v6 = vpop.f32.mrb[19].mxu1 }
 0x68b   :  { %v10904_v30 = vadd.f32 %v10903_v6, %v10902_v38  ;;  %v10867_v33 = vpop.f32.mrb[18].mxu0 }
 0x68c   :  { %v10868_v14 = vpop.f32.mrb[19].mxu0 }
 0x68d   :  { %v10869_v57 = vadd.f32 %v10868_v14, %v10867_v33  ;;  %v7396_v33 = vld [vmem:[#allocation8 + $0x4a8] sm:$0xff]  ;;  %v7394_v14 = vld [vmem:[#allocation8 + $0x498] sm:$0xff] }
 0x68f   :  { %v5100_v44 = vadd.f32 %v10869_v57, %v4992_v42 }
 0x691   :  { %v5208_v26 = vadd.f32 %v10904_v30, %v5100_v44  ;;  %v7392_v30 = vld [vmem:[#allocation8 + $0x488] sm:$0xff]  ;;  %v7398_v44 = vld [vmem:[#allocation8 + $0x4b8] sm:$0xff] }
 0x692   :  { %v16386_v57 = vpack.c.bf16 %v7396_v33, %v7392_v30  ;;  %v7421_v30 = vld [vmem:[#allocation8 + $0x570] sm:$0xff]  ;;  %v7424_v33 = vld [vmem:[#allocation8 + $0x588] sm:$0xff] }
 0x693   :  { %v5210_v8 = vadd.f32 %v5209_v35, %v5208_v26  ;;  %v7391_v35 = vld [vmem:[#allocation8 + $0x480] sm:$0xff] }
 0x694   :  { %v7395_v26 = vld [vmem:[#allocation8 + $0x4a0] sm:$0xff]  ;;  %12914 = vmatprep.subr.bf16.mxu1 %v16386_v57 }
 0x695   :  { %v5211_v25 = vmax.f32 %v5210_v8, 0.0  ;;  %v16388_v8 = vpack.c.bf16 %v7398_v44, %v7394_v14  ;;  %v7428_v14 = vld [vmem:[#allocation8 + $0x5a8] sm:$0xff]  ;;  %v7426_v44 = vld [vmem:[#allocation8 + $0x598] sm:$0xff] }
 0x697   :  { %11252 = vmatmul.mubr.f32.vlgmr.msra.gmra.mrb[20].mxu0 %v5211_v25  ;;  %v16390_v25 = vpack.c.bf16 %v7395_v26, %v7391_v35  ;;  %v7430_v35 = vld [vmem:[#allocation8 + $0x5b8] sm:$0xff] }
 0x698   :  { %12736 = vmatpush1.bf16.msra.mxu0 %v16009_v46  ;;  %5920 = vmatprep.mubr.f32.mxu0 %v16003_v27 }
 0x699   :  { %12739 = vmatprep.subr.msk.bf16.mxu0 %vm14635_vm2, %v16012_v55  ;;  %12916 = vmatpush1.bf16.msra.mxu1 %v16390_v25 }
 0x69c   :  { %12742 = vmatpush1.bf16.msk.msra.mxu0 %vm14635_vm2, %v16015_v1 }
 0x69d   :  { %12744 = vmatprep.subr.bf16.mxu0 %v16021_v63 }
 0x69f   :  { %10558 = vmatmul.mubr.msk.f32.vlgmr.msra.gmra.mrb[22].mxu0 %vm196_vm3, %v16120_v7 }
 0x6a0   :  { %12746 = vmatpush1.bf16.msra.mxu0 %v16031_v31  ;;  %5991 = vmatprep.mubr.f32.mxu0 %v16003_v27 }
 0x6a1   :  { %12749 = vmatprep.subr.msk.bf16.mxu0 %vm14635_vm2, %v16035_v56 }
 0x6a4   :  { %12752 = vmatpush1.bf16.msk.msra.mxu0 %vm14635_vm2, %v16040_v41 }
 0x6a5   :  { %12754 = vmatprep.subr.bf16.mxu0 %v16046_v53 }
 0x6a7   :  { %10561 = vmatmul.mubr.msk.f32.vlgmr.msra.gmra.mrb[24].mxu0 %vm196_vm3, %v16120_v7 }
 0x6a8   :  { %12756 = vmatpush1.bf16.msra.mxu0 %v16052_v15  ;;  %6062 = vmatprep.mubr.f32.mxu0 %v16003_v27 }
 0x6a9   :  { %12759 = vmatprep.subr.msk.bf16.mxu0 %vm14635_vm2, %v16061_v32 }
 0x6ac   :  { %12762 = vmatpush1.bf16.msk.msra.mxu0 %vm14635_vm2, %v16066_v48 }
 0x6ad   :  { %12764 = vmatprep.subr.bf16.mxu0 %v16072_v24 }
 0x6af   :  { %10564 = vmatmul.mubr.msk.f32.vlgmr.msra.gmra.mrb[22].mxu0 %vm196_vm3, %v16029_v23 }
 0x6b0   :  { %12766 = vmatpush1.bf16.msra.mxu0 %v16078_v5  ;;  %6133 = vmatprep.mubr.f32.mxu0 %v16003_v27 }
 0x6b1   :  { %12769 = vmatprep.subr.msk.bf16.mxu0 %vm14635_vm2, %v16083_v45 }
 0x6b4   :  { %12772 = vmatpush1.bf16.msk.msra.mxu0 %vm14635_vm2, %v16089_v59 }
 0x6b5   :  { %12774 = vmatprep.subr.bf16.mxu0 %v16096_v17 }
 0x6b7   :  { %10567 = vmatmul.mubr.msk.f32.vlgmr.msra.gmra.mrb[24].mxu0 %vm196_vm3, %v16029_v23 }
 0x6b8   :  { %12776 = vmatpush1.bf16.msra.mxu0 %v16099_v19  ;;  %6209 = vmatprep.mubr.f32.mxu0 %v16003_v27 }
 0x6b9   :  { %12779 = vmatprep.subr.msk.bf16.mxu0 %vm14635_vm2, %v16103_v16 }
 0x6bc   :  { %12782 = vmatpush1.bf16.msk.msra.mxu0 %vm14635_vm2, %v16106_v18 }
 0x6bd   :  { %12784 = vmatprep.subr.bf16.mxu0 %v16112_v3 }
 0x6bf   :  { %10571 = vmatmul.mubr.msk.f32.vlgmr.msra.gmra.mrb[22].mxu0 %vm196_vm3, %v16154_v34 }
 0x6c0   :  { %12786 = vmatpush1.bf16.msra.mxu0 %v16122_v47  ;;  %6280 = vmatprep.mubr.f32.mxu0 %v16003_v27 }
 0x6c1   :  { %12789 = vmatprep.subr.msk.bf16.mxu0 %vm14635_vm2, %v16127_v11 }
 0x6c4   :  { %12792 = vmatpush1.bf16.msk.msra.mxu0 %vm14635_vm2, %v16130_v13 }
 0x6c5   :  { %12854 = vmatprep.subr.bf16.mxu0 %v16007_v49  ;;  %v10606_v49 = vld [vmem:[%s17389_s0 + $0x29] sm:$0x7f]  ;;  %s14454_s0 = smov [#allocation17]  }
 0x6c7   :  { %10574 = vmatmul.mubr.msk.f32.vlgmr.msra.gmra.mrb[24].mxu0 %vm196_vm3, %v16154_v34 }
 0x6c8   :  { %12856 = vmatpush1.bf16.msra.mxu0 %v16009_v46  ;;  %6797 = vmatprep.mubr.f32.mxu0 %v16003_v27  ;;  %v5750_v46 = vpop.f32.mrb[20].mxu1 }
 0x6c9   :  { %12859 = vmatprep.subr.msk.bf16.mxu0 %vm14635_vm2, %v16012_v55  ;;  %v5752_v55 = vpop.f32.mrb[21].mxu1 }
 0x6cc   :  { %12862 = vmatpush1.bf16.msk.msra.mxu0 %vm14635_vm2, %v16015_v1  ;;  %v5821_v1 = vpop.f32.mrb[22].mxu1 }
 0x6cd   :  { %12864 = vmatprep.subr.bf16.mxu0 %v16021_v63  ;;  %v5823_v63 = vpop.f32.mrb[23].mxu1 }
 0x6cf   :  { %10596 = vmatmul.mubr.msk.f32.vlgmr.msra.gmra.mrb[26].mxu0 %vm196_vm3, %v16202_v28 }
 0x6d0   :  { %12866 = vmatpush1.bf16.msra.mxu0 %v16031_v31  ;;  %6868 = vmatprep.mubr.f32.mxu0 %v16003_v27 }
 0x6d1   :  { %12869 = vmatprep.subr.msk.bf16.mxu0 %vm14635_vm2, %v16035_v56 }
 0x6d4   :  { %12872 = vmatpush1.bf16.msk.msra.mxu0 %vm14635_vm2, %v16040_v41 }
 0x6d5   :  { %12874 = vmatprep.subr.bf16.mxu0 %v16046_v53  ;;  %v5228_v53 = vld [vmem:[#allocation15] sm:$0x1] }
 0x6d7   :  { %10599 = vmatmul.mubr.msk.f32.vlgmr.msra.gmra.mrb[28].mxu0 %vm196_vm3, %v16202_v28 }
 0x6d8   :  { %12876 = vmatpush1.bf16.msra.mxu0 %v16052_v15  ;;  %6939 = vmatprep.mubr.f32.mxu0 %v16003_v27 }
 0x6d9   :  { %12879 = vmatprep.subr.msk.bf16.mxu0 %vm14635_vm2, %v16061_v32 }
 0x6dc   :  { %12882 = vmatpush1.bf16.msk.msra.mxu0 %vm14635_vm2, %v16066_v48  ;;  %v5830_v48 = vld [vmem:[#allocation6] sm:$0xf] }
 0x6dd   :  { %12884 = vmatprep.subr.bf16.mxu0 %v16072_v24  ;;  %v5835_v10 = vrot.slane %v5830_v48, %v18099_v37  ;;  %v5839_v24 = vrot.slane %v5830_v48, %v18101_v60  ;;  %v5843_v7 = vrot.slane %v5830_v48, %v18100_v50  ;;  %v7476_v60 = vld [vmem:[#allocation8 + $0x728] sm:$0xff]  ;;  %v7477_v37 = vld [vmem:[#allocation8 + $0x730] sm:$0xff] }
 0x6df   :  { %10602 = vmatmul.mubr.msk.f32.vlgmr.msra.gmra.mrb[26].mxu0 %vm196_vm3, %v16154_v34 }
 0x6e0   :  { %12886 = vmatpush1.bf16.msra.mxu0 %v16078_v5  ;;  %7010 = vmatprep.mubr.f32.mxu0 %v16003_v27 }
 0x6e1   :  { %12889 = vmatprep.subr.msk.bf16.mxu0 %vm14635_vm2, %v16083_v45  ;;  %v6649_v23 = vpop.f32.mrb[24].mxu1  ;;  %v16352_v45 = vadd.f32 %v5835_v10, %v5750_v46  ;;  %v7397_v46 = vld [vmem:[#allocation8 + $0x4b0] sm:$0xff] }
 0x6e2   :  { %v6651_v31 = vpop.f32.mrb[25].mxu1  ;;  %v16374_v2 = vadd.f32 %v6649_v23, %v5835_v10  ;;  %v7402_v23 = vld [vmem:[#allocation8 + $0x4d8] sm:$0xff] }
 0x6e3   :  { %v6730_v52 = vadd.f32 %v6651_v31, %v5839_v24  ;;  %v7406_v31 = vld [vmem:[#allocation8 + $0x4f8] sm:$0xff] }
 0x6e4   :  { %12892 = vmatpush1.bf16.msk.msra.mxu0 %vm14635_vm2, %v16089_v59 }
 0x6e5   :  { %12894 = vmatprep.subr.bf16.mxu0 %v16096_v17 }
 0x6e7   :  { %10605 = vmatmul.mubr.msk.f32.vlgmr.msra.gmra.mrb[28].mxu0 %vm196_vm3, %v16154_v34 }
 0x6e8   :  { %12896 = vmatpush1.bf16.msra.mxu0 %v16099_v19  ;;  %7085 = vmatprep.mubr.f32.mxu0 %v16003_v27  ;;  %v5853_v19 = vadd.f32 %v5839_v24, %v5752_v55  ;;  %v7400_v55 = vld [vmem:[#allocation8 + $0x4c8] sm:$0xff] }
 0x6e9   :  { %12899 = vmatprep.subr.msk.bf16.mxu0 %vm14635_vm2, %v16103_v16  ;;  %v6720_v56 = vpop.f32.mrb[26].mxu1 }
 0x6ea   :  { %v6722_v41 = vpop.f32.mrb[27].mxu1  ;;  %v6731_v61 = vadd.f32 %v6720_v56, %v5843_v7 }
 0x6ec   :  { %12902 = vmatpush1.bf16.msk.msra.mxu0 %vm14635_vm2, %v16106_v18  ;;  %v7464_v18 = vld [vmem:[#allocation8 + $0x6c8] sm:$0xff] }
 0x6ed   :  { %12904 = vmatprep.subr.bf16.mxu0 %v16112_v3 }
 0x6ef   :  { %10609 = vmatmul.mubr.msk.f32.vlgmr.msra.gmra.mrb[26].mxu0 %vm196_vm3, %v10606_v49 }
 0x6f0   :  { %12906 = vmatpush1.bf16.msra.mxu0 %v16122_v47  ;;  %7156 = vmatprep.mubr.f32.mxu0 %v16003_v27  ;;  %v5847_v47 = vrot.slane %v5830_v48, %v18102_v0  ;;  %v7405_v48 = vld [vmem:[#allocation8 + $0x4f0] sm:$0xff]  ;;  %v7472_v0 = vld [vmem:[#allocation8 + $0x708] sm:$0xff] }
 0x6f1   :  { %12909 = vmatprep.subr.msk.bf16.mxu0 %vm14635_vm2, %v16127_v11 }
 0x6f2   :  { %v16366_v34 = vadd.f32 %v5847_v47, %v5823_v63  ;;  %v6732_v36 = vadd.f32 %v6722_v41, %v5847_v47  ;;  %v7404_v63 = vld [vmem:[#allocation8 + $0x4e8] sm:$0xff]  ;;  %v16399_v41 = vpack.c.bf16 %v7406_v31, %v7402_v23  ;;  %v7425_v23 = vld [vmem:[#allocation8 + $0x590] sm:$0xff]  ;;  %v16434_v31 = vpack.c.bf16 %v7430_v35, %v7426_v44 }
 0x6f3   :  { %v16397_v56 = vpack.c.bf16 %v7404_v63, %v7400_v55  ;;  %v7423_v55 = vld [vmem:[#allocation8 + $0x580] sm:$0xff]  ;;  %v7441_v44 = vld [vmem:[#allocation8 + $0x610] sm:$0xff] }
 0x6f4   :  { %12912 = vmatpush1.bf16.msk.msra.mxu0 %vm14635_vm2, %v16130_v13  ;;  %v16362_v13 = vadd.f32 %v5843_v7, %v5821_v1  ;;  %v7427_v63 = vld [vmem:[#allocation8 + $0x5a0] sm:$0xff] }
 0x6f5   :  { %12986 = vmatprep.subr.bf16.mxu0 %v16388_v8  ;;  %12918 = vmatprep.subr.bf16.mxu1 %v16397_v56 }
 0x6f7   :  { %10612 = vmatmul.mubr.msk.f32.vlgmr.msra.gmra.mrb[28].mxu0 %vm196_vm3, %v10606_v49  ;;  %v7393_v49 = vld [vmem:[#allocation8 + $0x490] sm:$0xff] }
 0x6f8   :  { %v16393_v1 = vpack.c.bf16 %v7397_v46, %v7393_v49  ;;  %v16431_v46 = vpack.c.bf16 %v7428_v14, %v7424_v33  ;;  %v7439_v33 = vld [vmem:[#allocation8 + $0x600] sm:$0xff] }
 0x6f9   :  { %v7443_v14 = vld [vmem:[#allocation8 + $0x620] sm:$0xff] }
 0x6fa   :  { %12988 = vmatpush1.bf16.msra.mxu0 %v16393_v1 }
 0x6fb   :  { %12990 = vmatprep.subr.bf16.mxu0 %v16399_v41 }
 0x76a   :  { %v5295_v27 = vpop.f32.mrb[20].mxu0 }
 0x76b   :  { %v5296_v15 = vadd.f32 %v5295_v27, %v5228_v53  ;;  %v11253_v32 = vpop.f32.mrb[21].mxu0  ;;  %v7399_v53 = vld [vmem:[#allocation8 + $0x4c0] sm:$0xff] }
 0x76c   :  { %v7403_v27 = vld [vmem:[#allocation8 + $0x4e0] sm:$0xff] }
 0x76d   :  { %5300 = vst.msk [vmem:[#allocation17] sm:$0x1] %vm5299_vm9, %v5296_v15  ;;  %v7401_v15 = vld [vmem:[#allocation8 + $0x4d0] sm:$0xff]  ;;  %v16402_v32 = vpack.c.bf16 %v7403_v27, %v7399_v53  ;;  %v7432_v27 = vld [vmem:[#allocation8 + $0x5c8] sm:$0xff] }
 0x76e   :  { %v7429_v53 = vld [vmem:[#allocation8 + $0x5b0] sm:$0xff] }
 0x76f   :  { %12920 = vmatpush1.bf16.msra.mxu1 %v16402_v32 }
 0x792   :  { %v6211_v5 = vpop.f32.mrb[22].mxu0 }
 0x793   :  { %v16354_v59 = vadd.f32 %v6211_v5, %v5835_v10  ;;  %v6213_v17 = vpop.f32.mrb[23].mxu0  ;;  %v16406_v5 = vpack.c.bf16 %v7405_v48, %v7401_v15  ;;  %v7436_v15 = vld [vmem:[#allocation8 + $0x5e8] sm:$0xff]  ;;  %v7434_v48 = vld [vmem:[#allocation8 + $0x5d8] sm:$0xff] }
 0x794   :  { %v6292_v16 = vadd.f32 %v6213_v17, %v5839_v24 }
 0x795   :  { %12992 = vmatpush1.bf16.msra.mxu0 %v16406_v5 }
 0x796   :  { %v16358_v3 = vmax.f32 %v5853_v19, %v6292_v16  ;;  %v7410_v19 = vld [vmem:[#allocation8 + $0x518] sm:$0xff] }
 0x797   :  { %v7414_v16 = vld [vmem:[#allocation8 + $0x538] sm:$0xff] }
 0x79a   :  { %v6282_v11 = vpop.f32.mrb[24].mxu0 }
 0x79b   :  { %v16364_v58 = vadd.f32 %v6282_v11, %v5843_v7  ;;  %v6284_v62 = vpop.f32.mrb[25].mxu0  ;;  %v7411_v11 = vld [vmem:[#allocation8 + $0x520] sm:$0xff] }
 0x79c   :  { %v16368_v29 = vadd.f32 %v6284_v62, %v5847_v47  ;;  %v7409_v62 = vld [vmem:[#allocation8 + $0x510] sm:$0xff] }
 0x7c2   :  { %v7087_v54 = vpop.f32.mrb[26].mxu0 }
 0x7c3   :  { %v16376_v4 = vadd.f32 %v7087_v54, %v5835_v10  ;;  %v7089_v28 = vpop.f32.mrb[27].mxu0  ;;  %v7408_v10 = vld [vmem:[#allocation8 + $0x508] sm:$0xff]  ;;  %v7413_v54 = vld [vmem:[#allocation8 + $0x530] sm:$0xff] }
 0x7c4   :  { %v7168_v12 = vadd.f32 %v7089_v28, %v5839_v24  ;;  %v7412_v24 = vld [vmem:[#allocation8 + $0x528] sm:$0xff] }
 0x7c5   :  { %v16408_v17 = vpack.c.bf16 %v7412_v24, %v7408_v10  ;;  %v7438_v10 = vld [vmem:[#allocation8 + $0x5f8] sm:$0xff]  ;;  %v16437_v24 = vpack.c.bf16 %v7427_v63, %v7423_v55  ;;  %v7445_v55 = vld [vmem:[#allocation8 + $0x630] sm:$0xff]  ;;  %v7448_v63 = vld [vmem:[#allocation8 + $0x648] sm:$0xff] }
 0x7c6   :  { %v16380_v9 = vmax.f32 %v6730_v52, %v7168_v12  ;;  %v7416_v52 = vld [vmem:[#allocation8 + $0x548] sm:$0xff] }
 0x7c7   :  { %v7420_v12 = vld [vmem:[#allocation8 + $0x568] sm:$0xff]  ;;  %12922 = vmatprep.subr.bf16.mxu1 %v16408_v17 }
 0x7c8   :  { %7199 = vrot.lane.b32.xlu0 %v16380_v9, %s14443_s11 }
 0x7ca   :  { %v7158_v39 = vpop.f32.mrb[28].mxu0 }
 0x7cb   :  { %v7169_v21 = vadd.f32 %v7158_v39, %v5843_v7  ;;  %v7160_v22 = vpop.f32.mrb[29].mxu0  ;;  %v7407_v7 = vld [vmem:[#allocation8 + $0x500] sm:$0xff]  ;;  %v7418_v39 = vld [vmem:[#allocation8 + $0x558] sm:$0xff] }
 0x7cc   :  { %v7170_v42 = vadd.f32 %v7160_v22, %v5847_v47  ;;  %v16410_v47 = vpack.c.bf16 %v7414_v16, %v7410_v19  ;;  %v16413_v28 = vpack.c.bf16 %v7411_v11, %v7407_v7  ;;  %v7422_v22 = vld [vmem:[#allocation8 + $0x578] sm:$0xff]  ;;  %v16441_v19 = vpack.c.bf16 %v7429_v53, %v7425_v23  ;;  %v7431_v7 = vld [vmem:[#allocation8 + $0x5c0] sm:$0xff]  ;;  %v7452_v23 = vld [vmem:[#allocation8 + $0x668] sm:$0xff] }
 0x7cd   :  { %v7177_v38 = vmax.f32 %v6731_v61, %v7169_v21  ;;  %v16417_v61 = vpack.c.bf16 %v7413_v54, %v7409_v62  ;;  %v16419_v21 = vpack.c.bf16 %v7420_v12, %v7416_v52  ;;  %v16443_v16 = vpack.c.bf16 %v7436_v15, %v7432_v27  ;;  %v7435_v11 = vld [vmem:[#allocation8 + $0x5e0] sm:$0xff]  ;;  %v7433_v62 = vld [vmem:[#allocation8 + $0x5d0] sm:$0xff]  ;;  %v7440_v12 = vld [vmem:[#allocation8 + $0x608] sm:$0xff] }
 0x7ce   :  { %v7178_v6 = vmax.f32 %v6732_v36, %v7170_v42  ;;  %v7415_v36 = vld [vmem:[#allocation8 + $0x540] sm:$0xff]  ;;  %12994 = vmatprep.subr.bf16.mxu0 %v16410_v47  ;;  %12924 = vmatpush1.bf16.msra.mxu1 %v16413_v28  ;;  %v16446_v54 = vpack.c.bf16 %v7438_v10, %v7434_v48  ;;  %v7437_v52 = vld [vmem:[#allocation8 + $0x5f0] sm:$0xff]  ;;  %v7450_v53 = vld [vmem:[#allocation8 + $0x658] sm:$0xff]  ;;  %v16461_v15 = vpack.c.bf16 %v7443_v14, %v7439_v33 }
 0x7cf   :  { %7201 = vrot.lane.b32.xlu1 %v7177_v38, %s14443_s11  ;;  %v7419_v42 = vld [vmem:[#allocation8 + $0x560] sm:$0xff]  ;;  %v16422_v38 = vpack.c.bf16 %v7422_v22, %v7418_v39  ;;  %12996 = vmatpush1.bf16.msra.mxu0 %v16417_v61  ;;  %v7444_v39 = vld [vmem:[#allocation8 + $0x628] sm:$0xff]  ;;  %v7442_v22 = vld [vmem:[#allocation8 + $0x618] sm:$0xff]  ;;  %v16465_v48 = vpack.c.bf16 %v7445_v55, %v7441_v44  ;;  %v16467_v10 = vpack.c.bf16 %v7452_v23, %v7448_v63 }
 0x7d0   :  { %7203 = vrot.lane.b32.xlu0 %v7178_v6, %s14443_s11  ;;  %v7417_v6 = vld [vmem:[#allocation8 + $0x550] sm:$0xff]  ;;  %v16425_v26 = vpack.c.bf16 %v7419_v42, %v7415_v36  ;;  %12926 = vmatprep.subr.bf16.mxu1 %v16419_v21  ;;  %v7446_v36 = vld [vmem:[#allocation8 + $0x638] sm:$0xff]  ;;  %v16449_v42 = vpack.c.bf16 %v7435_v11, %v7431_v7  ;;  %v7447_v7 = vld [vmem:[#allocation8 + $0x640] sm:$0xff] }
 0x7d1   :  { %v16429_v49 = vpack.c.bf16 %v7421_v30, %v7417_v6  ;;  %12998 = vmatprep.subr.bf16.mxu0 %v16422_v38  ;;  %v16453_v6 = vpack.c.bf16 %v7437_v52, %v7433_v62  ;;  %v16455_v30 = vpack.c.bf16 %v7444_v39, %v7440_v12  ;;  %v16458_v35 = vpack.c.bf16 %v7446_v36, %v7442_v22  ;;  %v7454_v27 = vld [vmem:[#allocation8 + $0x678] sm:$0xff]  ;;  %v7451_v11 = vld [vmem:[#allocation8 + $0x660] sm:$0xff]  ;;  %v7449_v62 = vld [vmem:[#allocation8 + $0x650] sm:$0xff] }
 0x7d2   :  { %12928 = vmatpush1.bf16.msra.mxu1 %v16425_v26  ;;  %v16470_v52 = vpack.c.bf16 %v7454_v27, %v7450_v53  ;;  %v7453_v12 = vld [vmem:[#allocation8 + $0x670] sm:$0xff]  ;;  %v7456_v39 = vld [vmem:[#allocation8 + $0x688] sm:$0xff]  ;;  %v7458_v36 = vld [vmem:[#allocation8 + $0x698] sm:$0xff]  ;;  %v16473_v14 = vpack.c.bf16 %v7451_v11, %v7447_v7 }
 0x7d3   :  { %13000 = vmatpush1.bf16.msra.mxu0 %v16429_v49  ;;  %12930 = vmatprep.subr.bf16.mxu1 %v16431_v46  ;;  %v7460_v22 = vld [vmem:[#allocation8 + $0x6a8] sm:$0xff]  ;;  %v7462_v33 = vld [vmem:[#allocation8 + $0x6b8] sm:$0xff]  ;;  %v16477_v44 = vpack.c.bf16 %v7453_v12, %v7449_v62  ;;  %v7455_v63 = vld [vmem:[#allocation8 + $0x680] sm:$0xff]  ;;  %v16491_v12 = vpack.c.bf16 %v7468_v51, %v7464_v18  ;;  %v16503_v18 = vpack.c.bf16 %v7476_v60, %v7472_v0 }
 0x7d4   :  { %13002 = vmatprep.subr.bf16.mxu0 %v16434_v31  ;;  %v16479_v55 = vpack.c.bf16 %v7460_v22, %v7456_v39  ;;  %v7459_v23 = vld [vmem:[#allocation8 + $0x6a0] sm:$0xff]  ;;  %v7457_v53 = vld [vmem:[#allocation8 + $0x690] sm:$0xff]  ;;  %v16482_v27 = vpack.c.bf16 %v7462_v33, %v7458_v36  ;;  %v7466_v7 = vld [vmem:[#allocation8 + $0x6d8] sm:$0xff] }
 0x7d5   :  { %v7470_v11 = vld [vmem:[#allocation8 + $0x6f8] sm:$0xff]  ;;  %v16485_v43 = vpack.c.bf16 %v7459_v23, %v7455_v63  ;;  %v16489_v62 = vpack.c.bf16 %v7461_v40, %v7457_v53  ;;  %18107 = vst [vmem:[#allocation32_spill] sm:$0xff] %v16491_v12  ;;  %v7463_v39 = vld [vmem:[#allocation8 + $0x6c0] sm:$0xff]  ;;  %v7465_v36 = vld [vmem:[#allocation8 + $0x6d0] sm:$0xff] }
 0x7d6   :  { %12932 = vmatpush1.bf16.msra.mxu1 %v16437_v24  ;;  %18104 = vst [vmem:[#allocation29_spill] sm:$0xff] %v16482_v27  ;;  %v7467_v22 = vld [vmem:[#allocation8 + $0x6e0] sm:$0xff]  ;;  %v16494_v33 = vpack.c.bf16 %v7470_v11, %v7466_v7  ;;  %v7474_v63 = vld [vmem:[#allocation8 + $0x718] sm:$0xff]  ;;  %v16501_v40 = vpack.c.bf16 %v7469_v20, %v7465_v36  ;;  %18111 = vst [vmem:[#allocation36_spill] sm:$0xff] %v16503_v18 }
 0x7d7   :  { %13004 = vmatpush1.bf16.msra.mxu0 %v16441_v19  ;;  %12934 = vmatprep.subr.bf16.mxu1 %v16443_v16  ;;  %18105 = vst [vmem:[#allocation30_spill] sm:$0xff] %v16485_v43  ;;  %18106 = vst [vmem:[#allocation31_spill] sm:$0xff] %v16489_v62  ;;  %v7478_v23 = vld [vmem:[#allocation8 + $0x738] sm:$0xff]  ;;  %v16497_v50 = vpack.c.bf16 %v7467_v22, %v7463_v39  ;;  %v7471_v51 = vld [vmem:[#allocation8 + $0x700] sm:$0xff] }
 0x7d8   :  { %13006 = vmatprep.subr.bf16.mxu0 %v16446_v54  ;;  %18108 = vst [vmem:[#allocation33_spill] sm:$0xff] %v16494_v33  ;;  %18110 = vst [vmem:[#allocation35_spill] sm:$0xff] %v16501_v40  ;;  %v7475_v53 = vld [vmem:[#allocation8 + $0x720] sm:$0xff]  ;;  %v7473_v7 = vld [vmem:[#allocation8 + $0x710] sm:$0xff]  ;;  %v16506_v11 = vpack.c.bf16 %v7478_v23, %v7474_v63 }
 0x7d9   :  { %18109 = vst [vmem:[#allocation34_spill] sm:$0xff] %v16497_v50  ;;  %v7482_v39 = vld [vmem:[#allocation8 + $0x758] sm:$0xff]  ;;  %v16513_v60 = vpack.c.bf16 %v7477_v37, %v7473_v7  ;;  %v7479_v20 = vld [vmem:[#allocation8 + $0x740] sm:$0xff]  ;;  %v7481_v63 = vld [vmem:[#allocation8 + $0x750] sm:$0xff] }
 0x7da   :  { %12936 = vmatpush1.bf16.msra.mxu1 %v16449_v42  ;;  %18112 = vst [vmem:[#allocation37_spill] sm:$0xff] %v16506_v11  ;;  %v7486_v22 = vld [vmem:[#allocation8 + $0x778] sm:$0xff]  ;;  %v7483_v36 = vld [vmem:[#allocation8 + $0x760] sm:$0xff] }
 0x7db   :  { %13008 = vmatpush1.bf16.msra.mxu0 %v16453_v6  ;;  %12938 = vmatprep.subr.bf16.mxu1 %v16455_v30  ;;  %18114 = vst [vmem:[#allocation39_spill] sm:$0xff] %v16513_v60  ;;  %v16518_v23 = vpack.c.bf16 %v7486_v22, %v7482_v39  ;;  %v7491_v7 = vld [vmem:[#allocation8 + $0x7a0] sm:$0xff]  ;;  %v7489_v39 = vld [vmem:[#allocation8 + $0x790] sm:$0xff] }
 0x7dc   :  { %13010 = vmatprep.subr.bf16.mxu0 %v16458_v35 }
 0x7de   :  { %12940 = vmatpush1.bf16.msra.mxu1 %v16461_v15 }
 0x7df   :  { %13012 = vmatpush1.bf16.msra.mxu0 %v16465_v48  ;;  %12942 = vmatprep.subr.bf16.mxu1 %v16467_v10 }
 0x7e0   :  { %13014 = vmatprep.subr.bf16.mxu0 %v16470_v52 }
 0x7e2   :  { %12944 = vmatpush1.bf16.msra.mxu1 %v16473_v14 }
 0x7e3   :  { %13016 = vmatpush1.bf16.msra.mxu0 %v16477_v44  ;;  %12946 = vmatprep.subr.bf16.mxu1 %v16479_v55 }
 0x7e4   :  { %13018 = vmatprep.subr.bf16.mxu0 %v16482_v27  ;;  %v7480_v27 = vld [vmem:[#allocation8 + $0x748] sm:$0xff] }
 0x7e6   :  { %12948 = vmatpush1.bf16.msra.mxu1 %v16485_v43  ;;  %v7484_v43 = vld [vmem:[#allocation8 + $0x768] sm:$0xff] }
 0x7e7   :  { %13020 = vmatpush1.bf16.msra.mxu0 %v16489_v62  ;;  %12950 = vmatprep.subr.bf16.mxu1 %v16491_v12  ;;  %v16509_v62 = vpack.c.bf16 %v7475_v53, %v7471_v51  ;;  %v16515_v0 = vpack.c.bf16 %v7484_v43, %v7480_v27  ;;  %v7488_v12 = vld [vmem:[#allocation8 + $0x788] sm:$0xff]  ;;  %v7490_v51 = vld [vmem:[#allocation8 + $0x798] sm:$0xff]  ;;  %v7487_v27 = vld [vmem:[#allocation8 + $0x780] sm:$0xff] }
 0x7e8   :  { %13022 = vmatprep.subr.bf16.mxu0 %v16494_v33  ;;  %v7485_v33 = vld [vmem:[#allocation8 + $0x770] sm:$0xff]  ;;  %v7494_v53 = vld [vmem:[#allocation8 + $0x7b8] sm:$0xff] }
 0x7e9   :  { %18113 = vst [vmem:[#allocation38_spill] sm:$0xff] %v16509_v62  ;;  %v16525_v37 = vpack.c.bf16 %v7485_v33, %v7481_v63  ;;  %v16530_v22 = vpack.c.bf16 %v7494_v53, %v7490_v51  ;;  %v7495_v63 = vld [vmem:[#allocation8 + $0x7c0] sm:$0xff]  ;;  %v7497_v53 = vld [vmem:[#allocation8 + $0x7d0] sm:$0xff] }
 0x7ea   :  { %12952 = vmatpush1.bf16.msra.mxu1 %v16497_v50  ;;  %v7492_v50 = vld [vmem:[#allocation8 + $0x7a8] sm:$0xff]  ;;  %v7499_v51 = vld [vmem:[#allocation8 + $0x7e0] sm:$0xff] }
 0x7eb   :  { %13024 = vmatpush1.bf16.msra.mxu0 %v16501_v40  ;;  %12954 = vmatprep.subr.bf16.mxu1 %v16503_v18  ;;  %v16521_v40 = vpack.c.bf16 %v7483_v36, %v7479_v20  ;;  %18116 = vst [vmem:[#allocation41_spill] sm:$0xff] %v16525_v37  ;;  %v16527_v43 = vpack.c.bf16 %v7492_v50, %v7488_v12  ;;  %18118 = vst [vmem:[#allocation43_spill] sm:$0xff] %v16530_v22  ;;  %v7496_v18 = vld [vmem:[#allocation8 + $0x7c8] sm:$0xff]  ;;  %v7498_v20 = vld [vmem:[#allocation8 + $0x7d8] sm:$0xff] }
 0x7ec   :  { %13026 = vmatprep.subr.bf16.mxu0 %v16506_v11  ;;  %v7493_v11 = vld [vmem:[#allocation8 + $0x7b0] sm:$0xff]  ;;  %v7502_v36 = vld [vmem:[#allocation8 + $0x7f8] sm:$0xff] }
 0x7ed   :  { %18115 = vst [vmem:[#allocation40_spill] sm:$0xff] %v16521_v40  ;;  %18117 = vst [vmem:[#allocation42_spill] sm:$0xff] %v16527_v43  ;;  %v16537_v50 = vpack.c.bf16 %v7493_v11, %v7489_v39  ;;  %v16542_v33 = vpack.c.bf16 %v7502_v36, %v7498_v20  ;;  %v7501_v11 = vld [vmem:[#allocation8 + $0x7f0] sm:$0xff]  ;;  %v7506_v39 = vld [vmem:[#allocation8 + $0x818] sm:$0xff] }
 0x7ee   :  { %12956 = vmatpush1.bf16.msra.mxu1 %v16509_v62  ;;  %v7500_v62 = vld [vmem:[#allocation8 + $0x7e8] sm:$0xff] }
 0x7ef   :  { %13028 = vmatpush1.bf16.msra.mxu0 %v16513_v60  ;;  %12958 = vmatprep.subr.bf16.mxu1 %v16515_v0  ;;  %v16533_v60 = vpack.c.bf16 %v7491_v7, %v7487_v27  ;;  %18120 = vst [vmem:[#allocation45_spill] sm:$0xff] %v16537_v50  ;;  %v16539_v12 = vpack.c.bf16 %v7500_v62, %v7496_v18  ;;  %18122 = vst [vmem:[#allocation47_spill] sm:$0xff] %v16542_v33  ;;  %v7504_v18 = vld [vmem:[#allocation8 + $0x808] sm:$0xff] }
 0x7f0   :  { %13030 = vmatprep.subr.bf16.mxu0 %v16518_v23  ;;  %v16548_v27 = vpack.c.bf16 %v7499_v51, %v7495_v63  ;;  %v16550_v62 = vpack.c.bf16 %v7501_v11, %v7497_v53  ;;  %v7508_v7 = vld [vmem:[#allocation8 + $0x828] sm:$0xff]  ;;  %v7505_v51 = vld [vmem:[#allocation8 + $0x810] sm:$0xff] }
 0x7f1   :  { %18119 = vst [vmem:[#allocation44_spill] sm:$0xff] %v16533_v60  ;;  %18121 = vst [vmem:[#allocation46_spill] sm:$0xff] %v16539_v12  ;;  %v16554_v36 = vpack.c.bf16 %v7508_v7, %v7504_v18  ;;  %v7509_v53 = vld [vmem:[#allocation8 + $0x830] sm:$0xff]  ;;  %v7512_v18 = vld [vmem:[#allocation8 + $0x848] sm:$0xff] }
 0x7f2   :  { %12960 = vmatpush1.bf16.msra.mxu1 %v16521_v40  ;;  %18123 = vst [vmem:[#allocation48_spill] sm:$0xff] %v16548_v27  ;;  %18124 = vst [vmem:[#allocation49_spill] sm:$0xff] %v16550_v62  ;;  %v16561_v11 = vpack.c.bf16 %v7509_v53, %v7505_v51  ;;  %v7516_v7 = vld [vmem:[#allocation8 + $0x868] sm:$0xff]  ;;  %v18128_v53 = vmax.f32 %v16374_v2, %v16376_v4 }
 0x7f3   :  { %13032 = vmatpush1.bf16.msra.mxu0 %v16525_v37  ;;  %12962 = vmatprep.subr.bf16.mxu1 %v16527_v43  ;;  %18125 = vst [vmem:[#allocation50_spill] sm:$0xff] %v16554_v36  ;;  %v7513_v37 = vld [vmem:[#allocation8 + $0x850] sm:$0xff] }
 0x7f4   :  { %13034 = vmatprep.subr.bf16.mxu0 %v16530_v22 }
 0x7f6   :  { %12964 = vmatpush1.bf16.msra.mxu1 %v16533_v60 }
 0x7f7   :  { %13036 = vmatpush1.bf16.msra.mxu0 %v16537_v50  ;;  %12966 = vmatprep.subr.bf16.mxu1 %v16539_v12  ;;  %v7510_v12 = vld [vmem:[#allocation8 + $0x838] sm:$0xff]  ;;  %v7507_v50 = vld [vmem:[#allocation8 + $0x820] sm:$0xff] }
 0x7f8   :  { %13038 = vmatprep.subr.bf16.mxu0 %v16542_v33  ;;  %v7503_v33 = vld [vmem:[#allocation8 + $0x800] sm:$0xff]  ;;  %v16556_v60 = vpack.c.bf16 %v7510_v12, %v7506_v39 }
 0x7f9   :  { %v16558_v63 = vpack.c.bf16 %v7507_v50, %v7503_v33  ;;  %v16567_v50 = vpack.c.bf16 %v7516_v7, %v7512_v18  ;;  %v7518_v33 = vld [vmem:[#allocation8 + $0x878] sm:$0xff]  ;;  %v7511_v39 = vld [vmem:[#allocation8 + $0x840] sm:$0xff] }
 0x7fa   :  { %12968 = vmatpush1.bf16.msra.mxu1 %v16548_v27  ;;  %18126 = vst [vmem:[#allocation51_spill] sm:$0xff] %v16556_v60 }
 0x7fb   :  { %13040 = vmatpush1.bf16.msra.mxu0 %v16550_v62  ;;  %18127 = vst [vmem:[#allocation52_spill] sm:$0xff] %v16558_v63  ;;  %12970 = vmatprep.subr.bf16.mxu1 %v16554_v36  ;;  %v7514_v62 = vld [vmem:[#allocation8 + $0x858] sm:$0xff]  ;;  %v7515_v36 = vld [vmem:[#allocation8 + $0x860] sm:$0xff] }
 0x7fc   :  { %13042 = vmatprep.subr.bf16.mxu0 %v16556_v60  ;;  %v16575_v43 = vpack.c.bf16 %v7515_v36, %v7511_v39 }
 0x7fe   :  { %12972 = vmatpush1.bf16.msra.mxu1 %v16558_v63  ;;  %v16573_v63 = vpack.c.bf16 %v7518_v33, %v7514_v62  ;;  %18129 = vst [vmem:[#allocation53_spill] sm:$0xff] %v16575_v43  ;;  %v7522_v62 = vld [vmem:[#allocation8 + $0x898] sm:$0xff] }
 0x7ff   :  { %13044 = vmatpush1.bf16.msra.mxu0 %v16561_v11  ;;  %12974 = vmatprep.subr.bf16.mxu1 %v16567_v50 }
 0x800   :  { %13046 = vmatprep.subr.bf16.mxu0 %v16573_v63 }
 0x802   :  { %12976 = vmatpush1.bf16.msra.mxu1 %v16575_v43 }
 0x83a   :  { %v7200_v20 = vpop.permute.xlu0 %7199 }
 0x841   :  { %v7202_v27 = vpop.permute.xlu1 %7201 }
 0x842   :  { %v7205_v22 = vsel %vm136_vm4, %v7200_v20, %v7202_v27  ;;  %v7204_v12 = vpop.permute.xlu0 %7203  ;;  %v7517_v20 = vld [vmem:[#allocation8 + $0x870] sm:$0xff] }
 0x843   :  { %v7206_v51 = vsel %vm136_vm4, %v7202_v27, %v7204_v12  ;;  %v7209_v60 = vmax.f32 %v18128_v53, %v7205_v22  ;;  %v16579_v18 = vpack.c.bf16 %v7517_v20, %v7513_v37  ;;  %v7520_v22 = vld [vmem:[#allocation8 + $0x888] sm:$0xff]  ;;  %v7526_v37 = vld [vmem:[#allocation8 + $0x8b8] sm:$0xff]  ;;  %v18134_v12 = vmax.f32 %v16366_v34, %v16368_v29  ;;  %v7525_v34 = vld [vmem:[#allocation8 + $0x8b0] sm:$0xff] }
 0x844   :  { %v7210_v40 = vmax.f32 %v16380_v9, %v7206_v51  ;;  %v7524_v9 = vld [vmem:[#allocation8 + $0x8a8] sm:$0xff] }
 0x845   :  { %18130 = vst [vmem:[#allocation54_spill] sm:$0xff] %v16579_v18  ;;  %v7211_v7 = vmax.f32 %v7209_v60, 0.0  ;;  %13048 = vmatpush1.bf16.msra.mxu0 %v16579_v18  ;;  %v16586_v36 = vpack.c.bf16 %v7524_v9, %v7520_v22  ;;  %v16590_v60 = vpack.c.bf16 %v7526_v37, %v7522_v62  ;;  %v7528_v29 = vld [vmem:[#allocation8 + $0x8c8] sm:$0xff]  ;;  %v7530_v62 = vld [vmem:[#allocation8 + $0x8d8] sm:$0xff] }
 0x846   :  { %v7212_v27 = vmax.f32 %v7210_v40, 0.0  ;;  %v18133_v40 = vmax.f32 %v16362_v13, %v16364_v58  ;;  %v7519_v58 = vld [vmem:[#allocation8 + $0x880] sm:$0xff]  ;;  %v7532_v22 = vld [vmem:[#allocation8 + $0x8e8] sm:$0xff]  ;;  %v7534_v37 = vld [vmem:[#allocation8 + $0x8f8] sm:$0xff] }
 0x847   :  { %v7229_v2 = vrot.slane %v7211_v7, 7  ;;  %18131 = vst [vmem:[#allocation55_spill] sm:$0xff] %v16586_v36  ;;  %18132 = vst [vmem:[#allocation56_spill] sm:$0xff] %v16590_v60  ;;  %12978 = vmatprep.subr.bf16.mxu1 %v16586_v36  ;;  %13050 = vmatprep.subr.bf16.mxu0 %v16590_v60  ;;  %v7523_v7 = vld [vmem:[#allocation8 + $0x8a0] sm:$0xff]  ;;  %v16616_v43 = vpack.c.bf16 %v7534_v37, %v7530_v62 }
 0x848   :  { %v7230_v4 = vrot.slane %v7212_v27, 7  ;;  %v7521_v27 = vld [vmem:[#allocation8 + $0x890] sm:$0xff]  ;;  %v7248_v62 = vld [vmem:[#allocation8 + $0x20] sm:$0xff] }
 0x849   :  { %7231 = vrot.lane.b32.xlu1 %v7229_v2, %s14443_s11  ;;  %v18135_v2 = vmax.f32 %v16352_v45, %v16354_v59  ;;  %v16612_v36 = vpack.c.bf16 %v7525_v34, %v7521_v27  ;;  %v16614_v45 = vpack.c.bf16 %v7532_v22, %v7528_v29  ;;  %v7529_v59 = vld [vmem:[#allocation8 + $0x8d0] sm:$0xff]  ;;  %18139 = vst [vmem:[#allocation60_spill] sm:$0xff] %v16616_v43  ;;  %v7244_v22 = vld [vmem:[#allocation8] sm:$0xff] }
 0x84a   :  { %7233 = vrot.lane.b32.xlu0 %v7230_v4, %s14443_s11  ;;  %v16629_v37 = vld [vmem:[#allocation2 + $0x60] sm:$0xff] }
 0x84b   :  { %18137 = vst [vmem:[#allocation58_spill] sm:$0xff] %v16612_v36  ;;  %18138 = vst [vmem:[#allocation59_spill] sm:$0xff] %v16614_v45 }
 0x84d   :  { %7182 = vrot.lane.b32.xlu1 %v16358_v3, %s14443_s11 }
 0x84e   :  { %7184 = vrot.lane.b32.xlu0 %v18133_v40, %s14443_s11 }
 0x851   :  { %7186 = vrot.lane.b32.xlu1 %v18134_v12, %s14443_s11 }
 0x8bb   :  { %v7232_v33 = vpop.permute.xlu1 %7231 }
 0x8bc   :  { %7239 = vst.msk [vmem:[#allocation2 + $0x90] sm:$0xfe] %vm2086_vm5, %v7232_v33  ;;  %v7234_v39 = vpop.permute.xlu0 %7233 }
 0x8bd   :  { %v7235_v51 = vsel %vm136_vm4, %v7232_v33, %v7234_v39  ;;  %v16609_v33 = vpack.c.bf16 %v7523_v7, %v7519_v58  ;;  %v7527_v39 = vld [vmem:[#allocation8 + $0x8c0] sm:$0xff]  ;;  %v7249_v58 = vld [vmem:[#allocation8 + $0x28] sm:$0xff] }
 0x8be   :  { %7240 = vst [vmem:[#allocation2 + $0x98] sm:$0xfe] %v7235_v51  ;;  %v7531_v51 = vld [vmem:[#allocation8 + $0x8e0] sm:$0xff] }
 0x8bf   :  { %v7183_v53 = vpop.permute.xlu1 %7182  ;;  %18136 = vst [vmem:[#allocation57_spill] sm:$0xff] %v16609_v33 }
 0x8c0   :  { %v7185_v20 = vpop.permute.xlu0 %7184 }
 0x8c1   :  { %v7188_v13 = vsel %vm136_vm4, %v7183_v53, %v7185_v20 }
 0x8c2   :  { %v7192_v4 = vmax.f32 %v18135_v2, %v7188_v13  ;;  %v7533_v13 = vld [vmem:[#allocation8 + $0x8f0] sm:$0xff] }
 0x8c3   :  { %v7187_v9 = vpop.permute.xlu1 %7186  ;;  %v7388_v2 = vld [vmem:[#allocation2 + $0x90] sm:$0xff]  ;;  %v16624_v34 = vpack.c.bf16 %v7533_v13, %v7529_v59  ;;  %v7390_v59 = vld [vmem:[#allocation2 + $0xa0] sm:$0xff]  ;;  %v16637_v13 = vpack.c.bf16 %v7248_v62, %v7244_v22 }
 0x8c4   :  { %v7189_v40 = vsel %vm136_vm4, %v7185_v20, %v7187_v9  ;;  %v7194_v12 = vmax.f32 %v7192_v4, 0.0  ;;  %v7245_v20 = vld [vmem:[#allocation8 + $0x8] sm:$0xff]  ;;  %v7247_v4 = vld [vmem:[#allocation8 + $0x18] sm:$0xff] }
 0x8c5   :  { %v7389_v53 = vld [vmem:[#allocation2 + $0x98] sm:$0xff]  ;;  %v7193_v60 = vmax.f32 %v16358_v3, %v7189_v40  ;;  %v16620_v3 = vpack.c.bf16 %v7531_v51, %v7527_v39  ;;  %18141 = vst [vmem:[#allocation62_spill] sm:$0xff] %v16624_v34  ;;  %v16626_v29 = vpack.c.bf16 %v7249_v58, %v7245_v20  ;;  %v7257_v39 = vld [vmem:[#allocation8 + $0x68] sm:$0xff]  ;;  %18144 = vst [vmem:[#allocation65_spill] sm:$0xff] %v16637_v13 }
 0x8c6   :  { %7602 = vmatprep.mubr.f32.mxu1 %v7389_v53  ;;  %7744 = vmatprep.mubr.f32.mxu0 %v7389_v53  ;;  %v7215_v18 = vrot.slane %v7194_v12, 7  ;;  %v7251_v9 = vld [vmem:[#allocation8 + $0x38] sm:$0xff]  ;;  %v7250_v40 = vld [vmem:[#allocation8 + $0x30] sm:$0xff]  ;;  %v7253_v12 = vld [vmem:[#allocation8 + $0x48] sm:$0xff] }
 0x8c7   :  { %7603 = vmatmul.mubr.f32.vlgmr.msra.gmra.mrb[28].mxu1 %v7388_v2  ;;  %7745 = vmatmul.mubr.f32.vlgmr.msra.gmra.mrb[30].mxu0 %v7388_v2  ;;  %v7195_v7 = vmax.f32 %v7193_v60, 0.0  ;;  %18140 = vst [vmem:[#allocation61_spill] sm:$0xff] %v16620_v3  ;;  %18142 = vst [vmem:[#allocation63_spill] sm:$0xff] %v16626_v29  ;;  %v7246_v60 = vld [vmem:[#allocation8 + $0x10] sm:$0xff]  ;;  %v7255_v51 = vld [vmem:[#allocation8 + $0x58] sm:$0xff]  ;;  %v16643_v20 = vpack.c.bf16 %v7257_v39, %v7253_v12 }
 0x8c8   :  { %7217 = vrot.lane.b32.xlu0 %v7215_v18, %s14443_s11  ;;  %12980 = vmatpush1.bf16.msra.mxu1 %v16609_v33  ;;  %v16632_v18 = vpack.c.bf16 %v7251_v9, %v7247_v4  ;;  %v7259_v53 = vld [vmem:[#allocation8 + $0x78] sm:$0xff]  ;;  %v16641_v2 = vpack.c.bf16 %v7250_v40, %v7246_v60  ;;  %v7252_v58 = vld [vmem:[#allocation8 + $0x40] sm:$0xff]  ;;  %v7254_v4 = vld [vmem:[#allocation8 + $0x50] sm:$0xff] }
 0x8c9   :  { %v7216_v27 = vrot.slane %v7195_v7, 7  ;;  %13052 = vmatpush1.bf16.msra.mxu0 %v16612_v36  ;;  %12982 = vmatprep.subr.bf16.mxu1 %v16614_v45  ;;  %18146 = vst [vmem:[#allocation67_spill] sm:$0xff] %v16643_v20  ;;  %v7256_v7 = vld [vmem:[#allocation8 + $0x60] sm:$0xff]  ;;  %v16646_v9 = vpack.c.bf16 %v7259_v53, %v7255_v51  ;;  %v7263_v22 = vld [vmem:[#allocation8 + $0x98] sm:$0xff]  ;;  %v7262_v53 = vld [vmem:[#allocation8 + $0x90] sm:$0xff] }
 0x8ca   :  { %13054 = vmatprep.subr.bf16.mxu0 %v16616_v43  ;;  %7673 = vmatprep.mubr.f32.mxu1 %v16629_v37  ;;  %18143 = vst [vmem:[#allocation64_spill] sm:$0xff] %v16632_v18  ;;  %18145 = vst [vmem:[#allocation66_spill] sm:$0xff] %v16641_v2  ;;  %v7265_v43 = vld [vmem:[#allocation8 + $0xa8] sm:$0xff]  ;;  %v7267_v62 = vld [vmem:[#allocation8 + $0xb8] sm:$0xff]  ;;  %v16651_v60 = vpack.c.bf16 %v7256_v7, %v7252_v58 }
 0x8cb   :  { %7219 = vrot.lane.b32.xlu1 %v7216_v27, %s14443_s11  ;;  %7815 = vmatprep.mubr.f32.mxu0 %v16629_v37  ;;  %18147 = vst [vmem:[#allocation68_spill] sm:$0xff] %v16646_v9  ;;  %v7258_v27 = vld [vmem:[#allocation8 + $0x70] sm:$0xff]  ;;  %v7260_v39 = vld [vmem:[#allocation8 + $0x80] sm:$0xff]  ;;  %v7271_v58 = vld [vmem:[#allocation8 + $0xd8] sm:$0xff]  ;;  %s10434_s11 = sshll.u32 %s14454_s0, 4  ;;  %s10435_s11 = int_to_ptr.vmem [resolvable:$true] %s10434_s11 }
 0x8cc   :  { %12984 = vmatpush1.bf16.msra.mxu1 %v16620_v3  ;;  %v7261_v3 = vld [vmem:[#allocation8 + $0x88] sm:$0xff]  ;;  %18148 = vst [vmem:[#allocation69_spill] sm:$0xff] %v16651_v60  ;;  %v16655_v40 = vpack.c.bf16 %v7258_v27, %v7254_v4  ;;  %v7264_v51 = vld [vmem:[#allocation8 + $0xa0] sm:$0xff]  ;;  %v7275_v7 = vld [vmem:[#allocation8 + $0xf8] sm:$0xff]  ;;  %s14404_s13 = scalar_lea.vmem %s10435_s11, 32  ;;  %p14409_p9 = scmp.lt.s32.totalorder %s10435_s11, %s10435_s11 }
 0x8cd   :  { %13056 = vmatpush1.bf16.msra.mxu0 %v16624_v34  ;;  %13058 = vmatprep.subr.bf16.mxu1 %v16626_v29  ;;  %v16657_v12 = vpack.c.bf16 %v7265_v43, %v7261_v3  ;;  %v7269_v29 = vld [vmem:[#allocation8 + $0xc8] sm:$0xff]  ;;  %v7268_v4 = vld [vmem:[#allocation8 + $0xc0] sm:$0xff]  ;;  %v8122_v34 = vld [vmem:[#allocation8 + $0x938] sm:$0xff]  ;;  %p14405_p8 = scmp.ne.s32.totalorder %s10435_s11, %s14404_s13  ;;  %p14410_p10 = scmp.lt.s32.totalorder %s14404_s13, %s14404_s13 }
 0x8ce   :  { %13130 = vmatprep.subr.bf16.mxu0 %v16632_v18  ;;  %18149 = vst [vmem:[#allocation70_spill] sm:$0xff] %v16655_v40  ;;  %v16660_v18 = vpack.c.bf16 %v7267_v62, %v7263_v22  ;;  %v7272_v27 = vld [vmem:[#allocation8 + $0xe0] sm:$0xff]  ;;  %v7270_v22 = vld [vmem:[#allocation8 + $0xd0] sm:$0xff]  ;;  %v16672_v62 = vpack.c.bf16 %v7275_v7, %v7271_v58  ;;  %v8132_v36 = vld [vmem:[#allocation8 + $0x988] sm:$0xff] }
 0x8cf   :  { %10613 = vmatmul.mubr.msk.f32.vlgmr.msra.gmra.mrb[28].mxu1 %vm136_vm4, %v7390_v59  ;;  %18150 = vst [vmem:[#allocation71_spill] sm:$0xff] %v16657_v12  ;;  %v7278_v58 = vld [vmem:[#allocation8 + $0x110] sm:$0xff]  ;;  %p14411_p11 = por %p14410_p10, %p14409_p9 }
 0x8d0   :  { %10614 = vmatmul.mubr.msk.f32.vlgmr.msra.gmra.mrb[30].mxu0 %vm136_vm4, %v7390_v59  ;;  %13060 = vmatpush1.bf16.msra.mxu1 %v16637_v13  ;;  %18151 = vst [vmem:[#allocation72_spill] sm:$0xff] %v16660_v18  ;;  %v7266_v59 = vld [vmem:[#allocation8 + $0xb0] sm:$0xff]  ;;  %v7273_v13 = vld [vmem:[#allocation8 + $0xe8] sm:$0xff]  ;;  %18155 = vst [vmem:[#allocation76_spill] sm:$0xff] %v16672_v62 }
 0x8d1   :  { %13132 = vmatpush1.bf16.msra.mxu0 %v16641_v2  ;;  %13062 = vmatprep.subr.bf16.mxu1 %v16643_v20  ;;  %v16663_v2 = vpack.c.bf16 %v7264_v51, %v7260_v39  ;;  %v16667_v43 = vpack.c.bf16 %v7266_v59, %v7262_v53  ;;  %v16669_v3 = vpack.c.bf16 %v7273_v13, %v7269_v29  ;;  %v7277_v20 = vld [vmem:[#allocation8 + $0x108] sm:$0xff]  ;;  %v7279_v39 = vld [vmem:[#allocation8 + $0x118] sm:$0xff]  ;;  %v7276_v53 = vld [vmem:[#allocation8 + $0x100] sm:$0xff]  ;;  %p14412_p12 = pnand %p14411_p11, %p14405_p8 }
 0x8d2   :  { %13134 = vmatprep.subr.bf16.mxu0 %v16646_v9  ;;  %v7274_v9 = vld [vmem:[#allocation8 + $0xf0] sm:$0xff]  ;;  %v7283_v51 = vld [vmem:[#allocation8 + $0x138] sm:$0xff]  ;;  %v7280_v59 = vld [vmem:[#allocation8 + $0x120] sm:$0xff] }
 0x8d3   :  { %18152 = vst [vmem:[#allocation73_spill] sm:$0xff] %v16663_v2  ;;  %18153 = vst [vmem:[#allocation74_spill] sm:$0xff] %v16667_v43  ;;  %v16679_v29 = vpack.c.bf16 %v7274_v9, %v7270_v22  ;;  %v16684_v7 = vpack.c.bf16 %v7283_v51, %v7279_v39  ;;  %v7288_v22 = vld [vmem:[#allocation8 + $0x160] sm:$0xff]  ;;  %v7286_v39 = vld [vmem:[#allocation8 + $0x150] sm:$0xff] }
 0x8d4   :  { %13064 = vmatpush1.bf16.msra.mxu1 %v16651_v60  ;;  %18154 = vst [vmem:[#allocation75_spill] sm:$0xff] %v16669_v3  ;;  %v7281_v60 = vld [vmem:[#allocation8 + $0x128] sm:$0xff]  ;;  %v8129_v45 = vld [vmem:[#allocation8 + $0x970] sm:$0xff] }
 0x8d5   :  { %13136 = vmatpush1.bf16.msra.mxu0 %v16655_v40  ;;  %13066 = vmatprep.subr.bf16.mxu1 %v16657_v12  ;;  %v16675_v40 = vpack.c.bf16 %v7272_v27, %v7268_v4  ;;  %18157 = vst [vmem:[#allocation78_spill] sm:$0xff] %v16679_v29  ;;  %v16681_v13 = vpack.c.bf16 %v7281_v60, %v7277_v20  ;;  %18159 = vst [vmem:[#allocation80_spill] sm:$0xff] %v16684_v7  ;;  %v7285_v12 = vld [vmem:[#allocation8 + $0x148] sm:$0xff]  ;;  %v7287_v4 = vld [vmem:[#allocation8 + $0x158] sm:$0xff] }
 0x8d6   :  { %13138 = vmatprep.subr.bf16.mxu0 %v16660_v18  ;;  %v7282_v18 = vld [vmem:[#allocation8 + $0x130] sm:$0xff]  ;;  %v7291_v27 = vld [vmem:[#allocation8 + $0x178] sm:$0xff]  ;;  %v7284_v60 = vld [vmem:[#allocation8 + $0x140] sm:$0xff] }
 0x8d7   :  { %18156 = vst [vmem:[#allocation77_spill] sm:$0xff] %v16675_v40  ;;  %18158 = vst [vmem:[#allocation79_spill] sm:$0xff] %v16681_v13  ;;  %v16691_v20 = vpack.c.bf16 %v7282_v18, %v7278_v58  ;;  %v16696_v51 = vpack.c.bf16 %v7291_v27, %v7287_v4  ;;  %v7296_v58 = vld [vmem:[#allocation8 + $0x1a0] sm:$0xff]  ;;  %v7294_v4 = vld [vmem:[#allocation8 + $0x190] sm:$0xff] }
 0x8d8   :  { %13068 = vmatpush1.bf16.msra.mxu1 %v16663_v2  ;;  %v7289_v2 = vld [vmem:[#allocation8 + $0x168] sm:$0xff] }
 0x8d9   :  { %13140 = vmatpush1.bf16.msra.mxu0 %v16667_v43  ;;  %13070 = vmatprep.subr.bf16.mxu1 %v16669_v3  ;;  %v16687_v43 = vpack.c.bf16 %v7280_v59, %v7276_v53  ;;  %18161 = vst [vmem:[#allocation82_spill] sm:$0xff] %v16691_v20  ;;  %v16693_v9 = vpack.c.bf16 %v7289_v2, %v7285_v12  ;;  %18163 = vst [vmem:[#allocation84_spill] sm:$0xff] %v16696_v51  ;;  %v7293_v3 = vld [vmem:[#allocation8 + $0x188] sm:$0xff]  ;;  %v7295_v53 = vld [vmem:[#allocation8 + $0x198] sm:$0xff] }
 0x8da   :  { %13142 = vmatprep.subr.bf16.mxu0 %v16672_v62  ;;  %v7290_v62 = vld [vmem:[#allocation8 + $0x170] sm:$0xff]  ;;  %v7299_v59 = vld [vmem:[#allocation8 + $0x1b8] sm:$0xff]  ;;  %v7292_v12 = vld [vmem:[#allocation8 + $0x180] sm:$0xff] }
 0x8db   :  { %18160 = vst [vmem:[#allocation81_spill] sm:$0xff] %v16687_v43  ;;  %18162 = vst [vmem:[#allocation83_spill] sm:$0xff] %v16693_v9  ;;  %v16703_v18 = vpack.c.bf16 %v7290_v62, %v7286_v39  ;;  %v16708_v27 = vpack.c.bf16 %v7299_v59, %v7295_v53  ;;  %v7300_v62 = vld [vmem:[#allocation8 + $0x1c0] sm:$0xff]  ;;  %v7302_v53 = vld [vmem:[#allocation8 + $0x1d0] sm:$0xff] }
 0x8dc   :  { %13072 = vmatpush1.bf16.msra.mxu1 %v16675_v40  ;;  %v7297_v40 = vld [vmem:[#allocation8 + $0x1a8] sm:$0xff]  ;;  %v7304_v39 = vld [vmem:[#allocation8 + $0x1e0] sm:$0xff] }
 0x8dd   :  { %13144 = vmatpush1.bf16.msra.mxu0 %v16679_v29  ;;  %13074 = vmatprep.subr.bf16.mxu1 %v16681_v13  ;;  %v16699_v29 = vpack.c.bf16 %v7288_v22, %v7284_v60  ;;  %18165 = vst [vmem:[#allocation86_spill] sm:$0xff] %v16703_v18  ;;  %v16705_v2 = vpack.c.bf16 %v7297_v40, %v7293_v3  ;;  %18167 = vst [vmem:[#allocation88_spill] sm:$0xff] %v16708_v27  ;;  %v7301_v13 = vld [vmem:[#allocation8 + $0x1c8] sm:$0xff]  ;;  %v7303_v60 = vld [vmem:[#allocation8 + $0x1d8] sm:$0xff] }
 0x8de   :  { %13146 = vmatprep.subr.bf16.mxu0 %v16684_v7  ;;  %v7298_v7 = vld [vmem:[#allocation8 + $0x1b0] sm:$0xff]  ;;  %v7307_v22 = vld [vmem:[#allocation8 + $0x1f8] sm:$0xff] }
 0x8df   :  { %18164 = vst [vmem:[#allocation85_spill] sm:$0xff] %v16699_v29  ;;  %18166 = vst [vmem:[#allocation87_spill] sm:$0xff] %v16705_v2  ;;  %v16715_v40 = vpack.c.bf16 %v7298_v7, %v7294_v4  ;;  %v16720_v59 = vpack.c.bf16 %v7307_v22, %v7303_v60  ;;  %v7308_v7 = vld [vmem:[#allocation8 + $0x200] sm:$0xff]  ;;  %v7310_v60 = vld [vmem:[#allocation8 + $0x210] sm:$0xff] }
 0x8e0   :  { %13076 = vmatpush1.bf16.msra.mxu1 %v16687_v43  ;;  %v7305_v43 = vld [vmem:[#allocation8 + $0x1e8] sm:$0xff]  ;;  %v7312_v4 = vld [vmem:[#allocation8 + $0x220] sm:$0xff] }
 0x8e1   :  { %13148 = vmatpush1.bf16.msra.mxu0 %v16691_v20  ;;  %13078 = vmatprep.subr.bf16.mxu1 %v16693_v9  ;;  %v16711_v20 = vpack.c.bf16 %v7296_v58, %v7292_v12  ;;  %18169 = vst [vmem:[#allocation90_spill] sm:$0xff] %v16715_v40  ;;  %v16717_v3 = vpack.c.bf16 %v7305_v43, %v7301_v13  ;;  %18171 = vst [vmem:[#allocation92_spill] sm:$0xff] %v16720_v59  ;;  %v7309_v9 = vld [vmem:[#allocation8 + $0x208] sm:$0xff]  ;;  %v7311_v12 = vld [vmem:[#allocation8 + $0x218] sm:$0xff] }
 0x8e2   :  { %13150 = vmatprep.subr.bf16.mxu0 %v16696_v51  ;;  %v7306_v51 = vld [vmem:[#allocation8 + $0x1f0] sm:$0xff]  ;;  %v7315_v58 = vld [vmem:[#allocation8 + $0x238] sm:$0xff] }
 0x8e3   :  { %18168 = vst [vmem:[#allocation89_spill] sm:$0xff] %v16711_v20  ;;  %18170 = vst [vmem:[#allocation91_spill] sm:$0xff] %v16717_v3  ;;  %v16727_v43 = vpack.c.bf16 %v7306_v51, %v7302_v53  ;;  %v16732_v22 = vpack.c.bf16 %v7315_v58, %v7311_v12  ;;  %v7316_v51 = vld [vmem:[#allocation8 + $0x240] sm:$0xff]  ;;  %v7318_v12 = vld [vmem:[#allocation8 + $0x250] sm:$0xff] }
 0x8e4   :  { %13080 = vmatpush1.bf16.msra.mxu1 %v16699_v29  ;;  %v7313_v29 = vld [vmem:[#allocation8 + $0x228] sm:$0xff]  ;;  %v7320_v53 = vld [vmem:[#allocation8 + $0x260] sm:$0xff] }
 0x8e5   :  { %13152 = vmatpush1.bf16.msra.mxu0 %v16703_v18  ;;  %13082 = vmatprep.subr.bf16.mxu1 %v16705_v2  ;;  %v16723_v18 = vpack.c.bf16 %v7304_v39, %v7300_v62  ;;  %18173 = vst [vmem:[#allocation94_spill] sm:$0xff] %v16727_v43  ;;  %v16729_v13 = vpack.c.bf16 %v7313_v29, %v7309_v9  ;;  %18175 = vst [vmem:[#allocation96_spill] sm:$0xff] %v16732_v22  ;;  %v7317_v2 = vld [vmem:[#allocation8 + $0x248] sm:$0xff]  ;;  %v7319_v62 = vld [vmem:[#allocation8 + $0x258] sm:$0xff] }
 0x8e6   :  { %13154 = vmatprep.subr.bf16.mxu0 %v16708_v27  ;;  %v7314_v27 = vld [vmem:[#allocation8 + $0x230] sm:$0xff]  ;;  %v7323_v39 = vld [vmem:[#allocation8 + $0x278] sm:$0xff] }
 0x8e7   :  { %18172 = vst [vmem:[#allocation93_spill] sm:$0xff] %v16723_v18  ;;  %18174 = vst [vmem:[#allocation95_spill] sm:$0xff] %v16729_v13  ;;  %v16739_v29 = vpack.c.bf16 %v7314_v27, %v7310_v60  ;;  %v16744_v58 = vpack.c.bf16 %v7323_v39, %v7319_v62  ;;  %v7324_v27 = vld [vmem:[#allocation8 + $0x280] sm:$0xff]  ;;  %v7326_v62 = vld [vmem:[#allocation8 + $0x290] sm:$0xff] }
 0x8e8   :  { %13084 = vmatpush1.bf16.msra.mxu1 %v16711_v20  ;;  %v7321_v20 = vld [vmem:[#allocation8 + $0x268] sm:$0xff]  ;;  %v7328_v60 = vld [vmem:[#allocation8 + $0x2a0] sm:$0xff] }
 0x8e9   :  { %13156 = vmatpush1.bf16.msra.mxu0 %v16715_v40  ;;  %13086 = vmatprep.subr.bf16.mxu1 %v16717_v3  ;;  %v16735_v40 = vpack.c.bf16 %v7312_v4, %v7308_v7  ;;  %18177 = vst [vmem:[#allocation98_spill] sm:$0xff] %v16739_v29  ;;  %v16741_v9 = vpack.c.bf16 %v7321_v20, %v7317_v2  ;;  %18179 = vst [vmem:[#allocation100_spill] sm:$0xff] %v16744_v58  ;;  %v7325_v3 = vld [vmem:[#allocation8 + $0x288] sm:$0xff]  ;;  %v7327_v7 = vld [vmem:[#allocation8 + $0x298] sm:$0xff] }
 0x8ea   :  { %13158 = vmatprep.subr.bf16.mxu0 %v16720_v59  ;;  %v7322_v59 = vld [vmem:[#allocation8 + $0x270] sm:$0xff]  ;;  %v7331_v4 = vld [vmem:[#allocation8 + $0x2b8] sm:$0xff] }
 0x8eb   :  { %18176 = vst [vmem:[#allocation97_spill] sm:$0xff] %v16735_v40  ;;  %18178 = vst [vmem:[#allocation99_spill] sm:$0xff] %v16741_v9  ;;  %v16751_v20 = vpack.c.bf16 %v7322_v59, %v7318_v12  ;;  %v16756_v39 = vpack.c.bf16 %v7331_v4, %v7327_v7  ;;  %v7332_v59 = vld [vmem:[#allocation8 + $0x2c0] sm:$0xff]  ;;  %v7334_v7 = vld [vmem:[#allocation8 + $0x2d0] sm:$0xff] }
 0x8ec   :  { %13088 = vmatpush1.bf16.msra.mxu1 %v16723_v18  ;;  %v7329_v18 = vld [vmem:[#allocation8 + $0x2a8] sm:$0xff]  ;;  %v7336_v12 = vld [vmem:[#allocation8 + $0x2e0] sm:$0xff] }
 0x8ed   :  { %13160 = vmatpush1.bf16.msra.mxu0 %v16727_v43  ;;  %13090 = vmatprep.subr.bf16.mxu1 %v16729_v13  ;;  %v16747_v43 = vpack.c.bf16 %v7320_v53, %v7316_v51  ;;  %18181 = vst [vmem:[#allocation102_spill] sm:$0xff] %v16751_v20  ;;  %v16753_v2 = vpack.c.bf16 %v7329_v18, %v7325_v3  ;;  %18183 = vst [vmem:[#allocation104_spill] sm:$0xff] %v16756_v39  ;;  %v7333_v13 = vld [vmem:[#allocation8 + $0x2c8] sm:$0xff]  ;;  %v7335_v51 = vld [vmem:[#allocation8 + $0x2d8] sm:$0xff] }
 0x8ee   :  { %13162 = vmatprep.subr.bf16.mxu0 %v16732_v22  ;;  %v7330_v22 = vld [vmem:[#allocation8 + $0x2b0] sm:$0xff]  ;;  %v7339_v53 = vld [vmem:[#allocation8 + $0x2f8] sm:$0xff] }
 0x8ef   :  { %18180 = vst [vmem:[#allocation101_spill] sm:$0xff] %v16747_v43  ;;  %18182 = vst [vmem:[#allocation103_spill] sm:$0xff] %v16753_v2  ;;  %v16763_v18 = vpack.c.bf16 %v7330_v22, %v7326_v62  ;;  %v16768_v4 = vpack.c.bf16 %v7339_v53, %v7335_v51  ;;  %v7340_v22 = vld [vmem:[#allocation8 + $0x300] sm:$0xff]  ;;  %v7342_v51 = vld [vmem:[#allocation8 + $0x310] sm:$0xff] }
 0x8f0   :  { %13092 = vmatpush1.bf16.msra.mxu1 %v16735_v40  ;;  %v7337_v40 = vld [vmem:[#allocation8 + $0x2e8] sm:$0xff]  ;;  %v7344_v62 = vld [vmem:[#allocation8 + $0x320] sm:$0xff] }
 0x8f1   :  { %13164 = vmatpush1.bf16.msra.mxu0 %v16739_v29  ;;  %13094 = vmatprep.subr.bf16.mxu1 %v16741_v9  ;;  %v16759_v29 = vpack.c.bf16 %v7328_v60, %v7324_v27  ;;  %18185 = vst [vmem:[#allocation106_spill] sm:$0xff] %v16763_v18  ;;  %v16765_v3 = vpack.c.bf16 %v7337_v40, %v7333_v13  ;;  %18187 = vst [vmem:[#allocation108_spill] sm:$0xff] %v16768_v4  ;;  %v7341_v9 = vld [vmem:[#allocation8 + $0x308] sm:$0xff]  ;;  %v7343_v27 = vld [vmem:[#allocation8 + $0x318] sm:$0xff] }
 0x8f2   :  { %13166 = vmatprep.subr.bf16.mxu0 %v16744_v58  ;;  %v7338_v58 = vld [vmem:[#allocation8 + $0x2f0] sm:$0xff]  ;;  %v7347_v60 = vld [vmem:[#allocation8 + $0x338] sm:$0xff] }
 0x8f3   :  { %18184 = vst [vmem:[#allocation105_spill] sm:$0xff] %v16759_v29  ;;  %18186 = vst [vmem:[#allocation107_spill] sm:$0xff] %v16765_v3  ;;  %v16775_v40 = vpack.c.bf16 %v7338_v58, %v7334_v7  ;;  %v16780_v53 = vpack.c.bf16 %v7347_v60, %v7343_v27  ;;  %v7348_v58 = vld [vmem:[#allocation8 + $0x340] sm:$0xff]  ;;  %v7350_v27 = vld [vmem:[#allocation8 + $0x350] sm:$0xff] }
 0x8f4   :  { %13096 = vmatpush1.bf16.msra.mxu1 %v16747_v43  ;;  %v7345_v43 = vld [vmem:[#allocation8 + $0x328] sm:$0xff]  ;;  %v7352_v7 = vld [vmem:[#allocation8 + $0x360] sm:$0xff] }
 0x8f5   :  { %13168 = vmatpush1.bf16.msra.mxu0 %v16751_v20  ;;  %13098 = vmatprep.subr.bf16.mxu1 %v16753_v2  ;;  %v16771_v20 = vpack.c.bf16 %v7336_v12, %v7332_v59  ;;  %18189 = vst [vmem:[#allocation110_spill] sm:$0xff] %v16775_v40  ;;  %v16777_v13 = vpack.c.bf16 %v7345_v43, %v7341_v9  ;;  %18191 = vst [vmem:[#allocation112_spill] sm:$0xff] %v16780_v53  ;;  %v7349_v2 = vld [vmem:[#allocation8 + $0x348] sm:$0xff]  ;;  %v7351_v59 = vld [vmem:[#allocation8 + $0x358] sm:$0xff] }
 0x8f6   :  { %13170 = vmatprep.subr.bf16.mxu0 %v16756_v39  ;;  %v7346_v39 = vld [vmem:[#allocation8 + $0x330] sm:$0xff]  ;;  %v7355_v12 = vld [vmem:[#allocation8 + $0x378] sm:$0xff] }
 0x8f7   :  { %18188 = vst [vmem:[#allocation109_spill] sm:$0xff] %v16771_v20  ;;  %18190 = vst [vmem:[#allocation111_spill] sm:$0xff] %v16777_v13  ;;  %v16787_v43 = vpack.c.bf16 %v7346_v39, %v7342_v51  ;;  %v16792_v60 = vpack.c.bf16 %v7355_v12, %v7351_v59  ;;  %v7356_v39 = vld [vmem:[#allocation8 + $0x380] sm:$0xff]  ;;  %v7358_v59 = vld [vmem:[#allocation8 + $0x390] sm:$0xff] }
 0x8f8   :  { %13100 = vmatpush1.bf16.msra.mxu1 %v16759_v29  ;;  %v7353_v29 = vld [vmem:[#allocation8 + $0x368] sm:$0xff]  ;;  %v7360_v51 = vld [vmem:[#allocation8 + $0x3a0] sm:$0xff] }
 0x8f9   :  { %13172 = vmatpush1.bf16.msra.mxu0 %v16763_v18  ;;  %13102 = vmatprep.subr.bf16.mxu1 %v16765_v3  ;;  %v16783_v18 = vpack.c.bf16 %v7344_v62, %v7340_v22  ;;  %18193 = vst [vmem:[#allocation114_spill] sm:$0xff] %v16787_v43  ;;  %v16789_v9 = vpack.c.bf16 %v7353_v29, %v7349_v2  ;;  %18195 = vst [vmem:[#allocation116_spill] sm:$0xff] %v16792_v60  ;;  %v7357_v3 = vld [vmem:[#allocation8 + $0x388] sm:$0xff]  ;;  %v7359_v22 = vld [vmem:[#allocation8 + $0x398] sm:$0xff] }
 0x8fa   :  { %13174 = vmatprep.subr.bf16.mxu0 %v16768_v4  ;;  %v7354_v4 = vld [vmem:[#allocation8 + $0x370] sm:$0xff]  ;;  %v7363_v62 = vld [vmem:[#allocation8 + $0x3b8] sm:$0xff] }
 0x8fb   :  { %18192 = vst [vmem:[#allocation113_spill] sm:$0xff] %v16783_v18  ;;  %18194 = vst [vmem:[#allocation115_spill] sm:$0xff] %v16789_v9  ;;  %v16799_v29 = vpack.c.bf16 %v7354_v4, %v7350_v27  ;;  %v16804_v12 = vpack.c.bf16 %v7363_v62, %v7359_v22  ;;  %v7364_v4 = vld [vmem:[#allocation8 + $0x3c0] sm:$0xff]  ;;  %v7366_v22 = vld [vmem:[#allocation8 + $0x3d0] sm:$0xff] }
 0x8fc   :  { %13104 = vmatpush1.bf16.msra.mxu1 %v16771_v20  ;;  %v7361_v20 = vld [vmem:[#allocation8 + $0x3a8] sm:$0xff]  ;;  %v7368_v27 = vld [vmem:[#allocation8 + $0x3e0] sm:$0xff] }
 0x8fd   :  { %13176 = vmatpush1.bf16.msra.mxu0 %v16775_v40  ;;  %13106 = vmatprep.subr.bf16.mxu1 %v16777_v13  ;;  %v16795_v40 = vpack.c.bf16 %v7352_v7, %v7348_v58  ;;  %18197 = vst [vmem:[#allocation118_spill] sm:$0xff] %v16799_v29  ;;  %v16801_v2 = vpack.c.bf16 %v7361_v20, %v7357_v3  ;;  %18199 = vst [vmem:[#allocation120_spill] sm:$0xff] %v16804_v12  ;;  %v7365_v13 = vld [vmem:[#allocation8 + $0x3c8] sm:$0xff]  ;;  %v7367_v58 = vld [vmem:[#allocation8 + $0x3d8] sm:$0xff] }
 0x8fe   :  { %13178 = vmatprep.subr.bf16.mxu0 %v16780_v53  ;;  %v7362_v53 = vld [vmem:[#allocation8 + $0x3b0] sm:$0xff]  ;;  %v7371_v7 = vld [vmem:[#allocation8 + $0x3f8] sm:$0xff] }
 0x8ff   :  { %18196 = vst [vmem:[#allocation117_spill] sm:$0xff] %v16795_v40  ;;  %18198 = vst [vmem:[#allocation119_spill] sm:$0xff] %v16801_v2  ;;  %v16811_v20 = vpack.c.bf16 %v7362_v53, %v7358_v59  ;;  %v16816_v62 = vpack.c.bf16 %v7371_v7, %v7367_v58  ;;  %v7374_v7 = vld [vmem:[#allocation8 + $0x410] sm:$0xff] }
 0x900   :  { %13108 = vmatpush1.bf16.msra.mxu1 %v16783_v18  ;;  %v7369_v18 = vld [vmem:[#allocation8 + $0x3e8] sm:$0xff] }
 0x901   :  { %13180 = vmatpush1.bf16.msra.mxu0 %v16787_v43  ;;  %13110 = vmatprep.subr.bf16.mxu1 %v16789_v9  ;;  %v16807_v43 = vpack.c.bf16 %v7360_v51, %v7356_v39  ;;  %18201 = vst [vmem:[#allocation122_spill] sm:$0xff] %v16811_v20  ;;  %v16813_v3 = vpack.c.bf16 %v7369_v18, %v7365_v13  ;;  %18203 = vst [vmem:[#allocation124_spill] sm:$0xff] %v16816_v62  ;;  %v7373_v9 = vld [vmem:[#allocation8 + $0x408] sm:$0xff]  ;;  %v7375_v39 = vld [vmem:[#allocation8 + $0x418] sm:$0xff] }
 0x902   :  { %13182 = vmatprep.subr.bf16.mxu0 %v16792_v60  ;;  %v7370_v60 = vld [vmem:[#allocation8 + $0x3f0] sm:$0xff]  ;;  %v7379_v51 = vld [vmem:[#allocation8 + $0x438] sm:$0xff] }
 0x903   :  { %18200 = vst [vmem:[#allocation121_spill] sm:$0xff] %v16807_v43  ;;  %18202 = vst [vmem:[#allocation123_spill] sm:$0xff] %v16813_v3  ;;  %v16823_v18 = vpack.c.bf16 %v7370_v60, %v7366_v22  ;;  %v16828_v53 = vpack.c.bf16 %v7379_v51, %v7375_v39  ;;  %v7385_v22 = vld [vmem:[#allocation8 + $0x468] sm:$0xff]  ;;  %v7383_v39 = vld [vmem:[#allocation8 + $0x458] sm:$0xff] }
 0x904   :  { %13112 = vmatpush1.bf16.msra.mxu1 %v16795_v40  ;;  %v7377_v40 = vld [vmem:[#allocation8 + $0x428] sm:$0xff]  ;;  %v7387_v51 = vld [vmem:[#allocation8 + $0x478] sm:$0xff] }
 0x905   :  { %13184 = vmatpush1.bf16.msra.mxu0 %v16799_v29  ;;  %13114 = vmatprep.subr.bf16.mxu1 %v16801_v2  ;;  %v16819_v29 = vpack.c.bf16 %v7368_v27, %v7364_v4  ;;  %18205 = vst [vmem:[#allocation126_spill] sm:$0xff] %v16823_v18  ;;  %v16825_v13 = vpack.c.bf16 %v7377_v40, %v7373_v9  ;;  %18207 = vst [vmem:[#allocation128_spill] sm:$0xff] %v16828_v53  ;;  %v7372_v40 = vld [vmem:[#allocation8 + $0x400] sm:$0xff]  ;;  %v7378_v4 = vld [vmem:[#allocation8 + $0x430] sm:$0xff] }
 0x906   :  { %13186 = vmatprep.subr.bf16.mxu0 %v16804_v12  ;;  %v7376_v9 = vld [vmem:[#allocation8 + $0x420] sm:$0xff]  ;;  %v7381_v27 = vld [vmem:[#allocation8 + $0x448] sm:$0xff]  ;;  %v8118_v2 = vld [vmem:[#allocation8 + $0x918] sm:$0xff] }
 0x907   :  { %18204 = vst [vmem:[#allocation125_spill] sm:$0xff] %v16819_v29  ;;  %18206 = vst [vmem:[#allocation127_spill] sm:$0xff] %v16825_v13 }
 0x908   :  { %13116 = vmatpush1.bf16.msra.mxu1 %v16807_v43  ;;  %v16840_v43 = vpack.c.bf16 %v7385_v22, %v7381_v27  ;;  %v8113_v27 = vld [vmem:[#allocation2 + $0x80] sm:$0x1]  ;;  %v16854_v22 = vpack.c.bf16 %v8122_v34, %v8118_v2 }
 0x909   :  { %13188 = vmatpush1.bf16.msra.mxu0 %v16811_v20  ;;  %13118 = vmatprep.subr.bf16.mxu1 %v16813_v3  ;;  %v7386_v3 = vld [vmem:[#allocation8 + $0x470] sm:$0xff] }
 0x90a   :  { %13190 = vmatprep.subr.bf16.mxu0 %v16816_v62  ;;  %v7382_v62 = vld [vmem:[#allocation8 + $0x450] sm:$0xff]  ;;  %18210 = vst [vmem:[#allocation131_spill] sm:$0xff] %v16840_v43  ;;  %18215 = vst [vmem:[#allocation136_spill] sm:$0xff] %v16854_v22 }
 0x90c   :  { %13120 = vmatpush1.bf16.msra.mxu1 %v16819_v29  ;;  %v16836_v29 = vpack.c.bf16 %v7376_v9, %v7372_v40  ;;  %v16848_v9 = vpack.c.bf16 %v7386_v3, %v7382_v62  ;;  %v8124_v3 = vld [vmem:[#allocation8 + $0x948] sm:$0xff] }
 0x90d   :  { %13192 = vmatpush1.bf16.msra.mxu0 %v16823_v18  ;;  %13122 = vmatprep.subr.bf16.mxu1 %v16825_v13  ;;  %v7380_v18 = vld [vmem:[#allocation8 + $0x440] sm:$0xff]  ;;  %v16838_v13 = vpack.c.bf16 %v7378_v4, %v7374_v7  ;;  %v8128_v62 = vld [vmem:[#allocation8 + $0x968] sm:$0xff] }
 0x90e   :  { %13194 = vmatprep.subr.bf16.mxu0 %v16828_v53  ;;  %18208 = vst [vmem:[#allocation129_spill] sm:$0xff] %v16836_v29  ;;  %v7384_v53 = vld [vmem:[#allocation8 + $0x460] sm:$0xff]  ;;  %18213 = vst [vmem:[#allocation134_spill] sm:$0xff] %v16848_v9  ;;  %v16866_v33 = vpack.c.bf16 %v8128_v62, %v8124_v3 }
 0x90f   :  { %18209 = vst [vmem:[#allocation130_spill] sm:$0xff] %v16838_v13  ;;  %v16846_v40 = vpack.c.bf16 %v7384_v53, %v7380_v18  ;;  %v8115_v7 = vld [vmem:[#allocation8 + $0x900] sm:$0xff]  ;;  %v8126_v18 = vld [vmem:[#allocation8 + $0x958] sm:$0xff] }
 0x910   :  { %v8119_v4 = vld [vmem:[#allocation8 + $0x920] sm:$0xff]  ;;  %v8130_v53 = vld [vmem:[#allocation8 + $0x978] sm:$0xff]  ;;  %18218 = vst [vmem:[#allocation139_spill] sm:$0xff] %v16866_v33 }
 0x911   :  { %18212 = vst [vmem:[#allocation133_spill] sm:$0xff] %v16846_v40  ;;  %v8135_v3 = vld [vmem:[#allocation8 + $0x9a0] sm:$0xff] }
 0x93a   :  { %v7218_v59 = vpop.permute.xlu0 %7217 }
 0x93b   :  { %7225 = vst.msk [vmem:[#allocation2 + $0x60] sm:$0xfe] %vm2086_vm5, %v7218_v59 }
 0x93d   :  { %v7220_v58 = vpop.permute.xlu1 %7219 }
 0x93e   :  { %v7221_v60 = vsel %vm136_vm4, %v7218_v59, %v7220_v58  ;;  %v16842_v59 = vpack.c.bf16 %v7387_v51, %v7383_v39  ;;  %v8116_v58 = vld [vmem:[#allocation8 + $0x908] sm:$0xff]  ;;  %v8121_v39 = vld [vmem:[#allocation8 + $0x930] sm:$0xff] }
 0x93f   :  { %7226 = vst [vmem:[#allocation2 + $0x68] sm:$0xfe] %v7221_v60  ;;  %v8120_v60 = vld [vmem:[#allocation8 + $0x928] sm:$0xff] }
 0x940   :  { %18211 = vst [vmem:[#allocation132_spill] sm:$0xff] %v16842_v59 }
 0x942   :  { %v7241_v12 = vld [vmem:[#allocation2 + $0x60] sm:$0xff] }
 0x946   :  { %v7242_v20 = vld [vmem:[#allocation2 + $0x68] sm:$0xff] }
 0x947   :  { %7889 = vmatprep.mubr.f32.mxu1 %v7242_v20  ;;  %8031 = vmatprep.mubr.f32.mxu0 %v7242_v20  ;;  %v16852_v20 = vpack.c.bf16 %v8120_v60, %v8116_v58  ;;  %v8110_v51 = vld [vmem:[#allocation2 + $0x68] sm:$0xfe]  ;;  %v16860_v58 = vpack.c.bf16 %v8119_v4, %v8115_v7  ;;  %v8269_v60 = vrot.slane %v8113_v27, 1  ;;  %v8134_v7 = vld [vmem:[#allocation8 + $0x998] sm:$0xff] }
 0x948   :  { %7890 = vmatmul.mubr.f32.vlgmr.msra.gmra.mrb[28].mxu1 %v7241_v12  ;;  %8032 = vmatmul.mubr.f32.vlgmr.msra.gmra.mrb[30].mxu0 %v7241_v12  ;;  %v8117_v12 = vld [vmem:[#allocation8 + $0x910] sm:$0xff]  ;;  %v8268_v2 = vrot.slane %v8110_v51, 1  ;;  %v8138_v4 = vld [vmem:[#allocation8 + $0x9b8] sm:$0xff]  ;;  %v8131_v51 = vld [vmem:[#allocation8 + $0x980] sm:$0xff] }
 0x949   :  { %13124 = vmatpush1.bf16.msra.mxu1 %v16836_v29  ;;  %13196 = vmatpush1.bf16.msra.mxu0 %v16838_v13  ;;  %18214 = vst [vmem:[#allocation135_spill] sm:$0xff] %v16852_v20  ;;  %18216 = vst [vmem:[#allocation137_spill] sm:$0xff] %v16860_v58  ;;  %v16862_v34 = vpack.c.bf16 %v8121_v39, %v8117_v12  ;;  %v8127_v13 = vld [vmem:[#allocation8 + $0x960] sm:$0xff]  ;;  %v8125_v29 = vld [vmem:[#allocation8 + $0x950] sm:$0xff] }
 0x94a   :  { %13126 = vmatprep.subr.bf16.mxu1 %v16840_v43  ;;  %13198 = vmatprep.subr.bf16.mxu0 %v16842_v59  ;;  %v7243_v59 = vld [vmem:[#allocation2 + $0x70] sm:$0xff]  ;;  %v8123_v43 = vld [vmem:[#allocation8 + $0x940] sm:$0xff]  ;;  %v16875_v27 = vsel %vm3129_vm7, %v8268_v2, %v8269_v60  ;;  %v16879_v39 = vpack.c.bf16 %v8129_v45, %v8125_v29  ;;  %v8142_v45 = vld [vmem:[#allocation8 + $0x9d8] sm:$0xff] }
 0x94b   :  { %7960 = vmatprep.mubr.f32.mxu1 %v16629_v37  ;;  %8102 = vmatprep.mubr.f32.mxu0 %v16629_v37  ;;  %18217 = vst [vmem:[#allocation138_spill] sm:$0xff] %v16862_v34  ;;  %v16877_v12 = vpack.c.bf16 %v8127_v13, %v8123_v43  ;;  %v8144_v43 = vld [vmem:[#allocation8 + $0x9e8] sm:$0xff]  ;;  %v8146_v29 = vld [vmem:[#allocation8 + $0x9f8] sm:$0xff]  ;;  %v16891_v13 = vpack.c.bf16 %v8135_v3, %v8131_v51  ;;  %v8143_v2 = vld [vmem:[#allocation8 + $0x9e0] sm:$0xff] }
 0x94c   :  { %18221 = vst [vmem:[#allocation142_spill] sm:$0xff] %v16879_v39 }
 0x94d   :  { %13128 = vmatpush1.bf16.msra.mxu1 %v16846_v40  ;;  %13200 = vmatpush1.bf16.msra.mxu0 %v16848_v9  ;;  %v16868_v40 = vpack.c.bf16 %v8130_v53, %v8126_v18  ;;  %v8136_v9 = vld [vmem:[#allocation8 + $0x9a8] sm:$0xff]  ;;  %18220 = vst [vmem:[#allocation141_spill] sm:$0xff] %v16877_v12  ;;  %v8133_v18 = vld [vmem:[#allocation8 + $0x990] sm:$0xff]  ;;  %18224 = vst [vmem:[#allocation145_spill] sm:$0xff] %v16891_v13 }
 0x94e   :  { %13202 = vmatprep.subr.bf16.mxu1 %v16852_v20  ;;  %13274 = vmatprep.subr.bf16.mxu0 %v16854_v22  ;;  %v16883_v62 = vpack.c.bf16 %v8136_v9, %v8132_v36  ;;  %v8137_v53 = vld [vmem:[#allocation8 + $0x9b0] sm:$0xff]  ;;  %v8139_v9 = vld [vmem:[#allocation8 + $0x9c0] sm:$0xff]  ;;  %v8252_v22 = vld [vmem:[#allocation8 + $0xd48] sm:$0xff] }
 0x94f   :  { %18219 = vst [vmem:[#allocation140_spill] sm:$0xff] %v16868_v40  ;;  %v16893_v36 = vpack.c.bf16 %v8137_v53, %v8133_v18  ;;  %v16903_v51 = vpack.c.bf16 %v8143_v2, %v8139_v9  ;;  %v8147_v18 = vld [vmem:[#allocation8 + $0xa00] sm:$0xff] }
 0x950   :  { %10615 = vmatmul.mubr.msk.f32.vlgmr.msra.gmra.mrb[28].mxu1 %vm136_vm4, %v7243_v59  ;;  %10616 = vmatmul.mubr.msk.f32.vlgmr.msra.gmra.mrb[30].mxu0 %vm136_vm4, %v7243_v59  ;;  %18222 = vst [vmem:[#allocation143_spill] sm:$0xff] %v16883_v62  ;;  %v16885_v59 = vpack.c.bf16 %v8138_v4, %v8134_v7  ;;  %v16899_v7 = vpack.c.bf16 %v8146_v29, %v8142_v45  ;;  %v8141_v4 = vld [vmem:[#allocation8 + $0x9d0] sm:$0xff]  ;;  %v8151_v53 = vld [vmem:[#allocation8 + $0xa20] sm:$0xff] }
 0x951   :  { %13204 = vmatpush1.bf16.msra.mxu1 %v16860_v58  ;;  %13276 = vmatpush1.bf16.msra.mxu0 %v16862_v34  ;;  %v8140_v34 = vld [vmem:[#allocation8 + $0x9c8] sm:$0xff]  ;;  %18225 = vst [vmem:[#allocation146_spill] sm:$0xff] %v16893_v36  ;;  %v8150_v58 = vld [vmem:[#allocation8 + $0xa18] sm:$0xff]  ;;  %18228 = vst [vmem:[#allocation149_spill] sm:$0xff] %v16903_v51 }
 0x952   :  { %8342 = vmatprep.mubr.f32.mxu1 %v16875_v27  ;;  %8484 = vmatprep.mubr.f32.mxu0 %v16875_v27  ;;  %18223 = vst [vmem:[#allocation144_spill] sm:$0xff] %v16885_v59  ;;  %v16897_v60 = vpack.c.bf16 %v8144_v43, %v8140_v34  ;;  %18227 = vst [vmem:[#allocation148_spill] sm:$0xff] %v16899_v7  ;;  %v8149_v45 = vld [vmem:[#allocation8 + $0xa10] sm:$0xff]  ;;  %v8155_v2 = vld [vmem:[#allocation8 + $0xa40] sm:$0xff] }
 0x953   :  { %13206 = vmatprep.subr.bf16.mxu1 %v16866_v33  ;;  %13278 = vmatprep.subr.bf16.mxu0 %v16868_v40  ;;  %v8145_v40 = vld [vmem:[#allocation8 + $0x9f0] sm:$0xff]  ;;  %v8148_v33 = vld [vmem:[#allocation8 + $0xa08] sm:$0xff] }
 0x954   :  { %18226 = vst [vmem:[#allocation147_spill] sm:$0xff] %v16897_v60  ;;  %v16905_v3 = vpack.c.bf16 %v8145_v40, %v8141_v4  ;;  %v8153_v29 = vld [vmem:[#allocation8 + $0xa30] sm:$0xff]  ;;  %v16915_v40 = vpack.c.bf16 %v8151_v53, %v8147_v18  ;;  %v8159_v4 = vld [vmem:[#allocation8 + $0xa60] sm:$0xff] }
 0x955   :  { %13208 = vmatpush1.bf16.msra.mxu1 %v16877_v12  ;;  %13280 = vmatpush1.bf16.msra.mxu0 %v16879_v39  ;;  %v8152_v12 = vld [vmem:[#allocation8 + $0xa28] sm:$0xff]  ;;  %v8154_v39 = vld [vmem:[#allocation8 + $0xa38] sm:$0xff]  ;;  %v16917_v9 = vpack.c.bf16 %v8153_v29, %v8149_v45  ;;  %v16927_v18 = vpack.c.bf16 %v8159_v4, %v8155_v2  ;;  %v8163_v45 = vld [vmem:[#allocation8 + $0xa80] sm:$0xff] }
 0x956   :  { %13210 = vmatprep.subr.bf16.mxu1 %v16883_v62  ;;  %13282 = vmatprep.subr.bf16.mxu0 %v16885_v59  ;;  %18229 = vst [vmem:[#allocation150_spill] sm:$0xff] %v16905_v3  ;;  %v16909_v34 = vpack.c.bf16 %v8152_v12, %v8148_v33  ;;  %v16911_v43 = vpack.c.bf16 %v8154_v39, %v8150_v58  ;;  %v8156_v59 = vld [vmem:[#allocation8 + $0xa48] sm:$0xff]  ;;  %v8158_v62 = vld [vmem:[#allocation8 + $0xa58] sm:$0xff]  ;;  %18232 = vst [vmem:[#allocation153_spill] sm:$0xff] %v16915_v40 }
 0x957   :  { %18233 = vst [vmem:[#allocation154_spill] sm:$0xff] %v16917_v9  ;;  %v8157_v12 = vld [vmem:[#allocation8 + $0xa50] sm:$0xff]  ;;  %18236 = vst [vmem:[#allocation157_spill] sm:$0xff] %v16927_v18  ;;  %v8167_v29 = vld [vmem:[#allocation8 + $0xaa0] sm:$0xff] }
 0x958   :  { %18230 = vst [vmem:[#allocation151_spill] sm:$0xff] %v16909_v34  ;;  %18231 = vst [vmem:[#allocation152_spill] sm:$0xff] %v16911_v43  ;;  %v8161_v39 = vld [vmem:[#allocation8 + $0xa70] sm:$0xff]  ;;  %v16939_v2 = vpack.c.bf16 %v8167_v29, %v8163_v45 }
 0x959   :  { %13212 = vmatpush1.bf16.msra.mxu1 %v16891_v13  ;;  %13284 = vmatpush1.bf16.msra.mxu0 %v16893_v36  ;;  %v8160_v13 = vld [vmem:[#allocation8 + $0xa68] sm:$0xff]  ;;  %v8162_v36 = vld [vmem:[#allocation8 + $0xa78] sm:$0xff]  ;;  %v16929_v53 = vpack.c.bf16 %v8161_v39, %v8157_v12  ;;  %v8171_v12 = vld [vmem:[#allocation8 + $0xac0] sm:$0xff] }
 0x95a   :  { %13214 = vmatprep.subr.bf16.mxu1 %v16897_v60  ;;  %13286 = vmatprep.subr.bf16.mxu0 %v16899_v7  ;;  %v16921_v33 = vpack.c.bf16 %v8160_v13, %v8156_v59  ;;  %v16923_v58 = vpack.c.bf16 %v8162_v36, %v8158_v62  ;;  %v8164_v7 = vld [vmem:[#allocation8 + $0xa88] sm:$0xff]  ;;  %v8166_v60 = vld [vmem:[#allocation8 + $0xa98] sm:$0xff]  ;;  %v8165_v13 = vld [vmem:[#allocation8 + $0xa90] sm:$0xff]  ;;  %18240 = vst [vmem:[#allocation161_spill] sm:$0xff] %v16939_v2 }
 0x95b   :  { %18237 = vst [vmem:[#allocation158_spill] sm:$0xff] %v16929_v53  ;;  %v8169_v36 = vld [vmem:[#allocation8 + $0xab0] sm:$0xff]  ;;  %v8175_v39 = vld [vmem:[#allocation8 + $0xae0] sm:$0xff] }
 0x95c   :  { %18234 = vst [vmem:[#allocation155_spill] sm:$0xff] %v16921_v33  ;;  %18235 = vst [vmem:[#allocation156_spill] sm:$0xff] %v16923_v58  ;;  %v16941_v4 = vpack.c.bf16 %v8169_v36, %v8165_v13  ;;  %v16951_v45 = vpack.c.bf16 %v8175_v39, %v8171_v12  ;;  %v8179_v13 = vld [vmem:[#allocation8 + $0xb00] sm:$0xff] }
 0x95d   :  { %13216 = vmatpush1.bf16.msra.mxu1 %v16903_v51  ;;  %13288 = vmatpush1.bf16.msra.mxu0 %v16905_v3  ;;  %v8168_v51 = vld [vmem:[#allocation8 + $0xaa8] sm:$0xff]  ;;  %v8170_v3 = vld [vmem:[#allocation8 + $0xab8] sm:$0xff]  ;;  %v8183_v36 = vld [vmem:[#allocation8 + $0xb20] sm:$0xff] }
 0x95e   :  { %13218 = vmatprep.subr.bf16.mxu1 %v16909_v34  ;;  %13290 = vmatprep.subr.bf16.mxu0 %v16911_v43  ;;  %v16933_v62 = vpack.c.bf16 %v8168_v51, %v8164_v7  ;;  %v16935_v59 = vpack.c.bf16 %v8170_v3, %v8166_v60  ;;  %v8172_v43 = vld [vmem:[#allocation8 + $0xac8] sm:$0xff]  ;;  %v8174_v34 = vld [vmem:[#allocation8 + $0xad8] sm:$0xff]  ;;  %18241 = vst [vmem:[#allocation162_spill] sm:$0xff] %v16941_v4  ;;  %v8173_v51 = vld [vmem:[#allocation8 + $0xad0] sm:$0xff] }
 0x95f   :  { %v8177_v3 = vld [vmem:[#allocation8 + $0xaf0] sm:$0xff]  ;;  %18244 = vst [vmem:[#allocation165_spill] sm:$0xff] %v16951_v45  ;;  %v16963_v12 = vpack.c.bf16 %v8183_v36, %v8179_v13 }
 0x960   :  { %18238 = vst [vmem:[#allocation159_spill] sm:$0xff] %v16933_v62  ;;  %18239 = vst [vmem:[#allocation160_spill] sm:$0xff] %v16935_v59  ;;  %v16953_v29 = vpack.c.bf16 %v8177_v3, %v8173_v51  ;;  %v8187_v51 = vld [vmem:[#allocation8 + $0xb40] sm:$0xff] }
 0x961   :  { %13220 = vmatpush1.bf16.msra.mxu1 %v16915_v40  ;;  %13292 = vmatpush1.bf16.msra.mxu0 %v16917_v9  ;;  %v8176_v40 = vld [vmem:[#allocation8 + $0xae8] sm:$0xff]  ;;  %v8178_v9 = vld [vmem:[#allocation8 + $0xaf8] sm:$0xff]  ;;  %18248 = vst [vmem:[#allocation169_spill] sm:$0xff] %v16963_v12  ;;  %v8191_v3 = vld [vmem:[#allocation8 + $0xb60] sm:$0xff] }
 0x962   :  { %13222 = vmatprep.subr.bf16.mxu1 %v16921_v33  ;;  %13294 = vmatprep.subr.bf16.mxu0 %v16923_v58  ;;  %v16945_v60 = vpack.c.bf16 %v8176_v40, %v8172_v43  ;;  %v16947_v7 = vpack.c.bf16 %v8178_v9, %v8174_v34  ;;  %v8180_v58 = vld [vmem:[#allocation8 + $0xb08] sm:$0xff]  ;;  %v8182_v33 = vld [vmem:[#allocation8 + $0xb18] sm:$0xff]  ;;  %18245 = vst [vmem:[#allocation166_spill] sm:$0xff] %v16953_v29  ;;  %v8181_v40 = vld [vmem:[#allocation8 + $0xb10] sm:$0xff] }
 0x963   :  { %v8185_v9 = vld [vmem:[#allocation8 + $0xb30] sm:$0xff]  ;;  %v16975_v13 = vpack.c.bf16 %v8191_v3, %v8187_v51 }
 0x964   :  { %18242 = vst [vmem:[#allocation163_spill] sm:$0xff] %v16945_v60  ;;  %18243 = vst [vmem:[#allocation164_spill] sm:$0xff] %v16947_v7  ;;  %v16965_v39 = vpack.c.bf16 %v8185_v9, %v8181_v40  ;;  %v8195_v40 = vld [vmem:[#allocation8 + $0xb80] sm:$0xff] }
 0x965   :  { %13224 = vmatpush1.bf16.msra.mxu1 %v16927_v18  ;;  %13296 = vmatpush1.bf16.msra.mxu0 %v16929_v53  ;;  %v8184_v18 = vld [vmem:[#allocation8 + $0xb28] sm:$0xff]  ;;  %v8186_v53 = vld [vmem:[#allocation8 + $0xb38] sm:$0xff]  ;;  %18252 = vst [vmem:[#allocation173_spill] sm:$0xff] %v16975_v13  ;;  %v8199_v9 = vld [vmem:[#allocation8 + $0xba0] sm:$0xff] }
 0x966   :  { %13226 = vmatprep.subr.bf16.mxu1 %v16933_v62  ;;  %13298 = vmatprep.subr.bf16.mxu0 %v16935_v59  ;;  %v16957_v34 = vpack.c.bf16 %v8184_v18, %v8180_v58  ;;  %v16959_v43 = vpack.c.bf16 %v8186_v53, %v8182_v33  ;;  %v8188_v59 = vld [vmem:[#allocation8 + $0xb48] sm:$0xff]  ;;  %v8190_v62 = vld [vmem:[#allocation8 + $0xb58] sm:$0xff]  ;;  %18249 = vst [vmem:[#allocation170_spill] sm:$0xff] %v16965_v39  ;;  %v8189_v18 = vld [vmem:[#allocation8 + $0xb50] sm:$0xff] }
 0x967   :  { %v8193_v53 = vld [vmem:[#allocation8 + $0xb70] sm:$0xff]  ;;  %v16987_v51 = vpack.c.bf16 %v8199_v9, %v8195_v40 }
 0x968   :  { %18246 = vst [vmem:[#allocation167_spill] sm:$0xff] %v16957_v34  ;;  %18247 = vst [vmem:[#allocation168_spill] sm:$0xff] %v16959_v43  ;;  %v16977_v36 = vpack.c.bf16 %v8193_v53, %v8189_v18  ;;  %v8203_v18 = vld [vmem:[#allocation8 + $0xbc0] sm:$0xff] }
 0x969   :  { %13228 = vmatpush1.bf16.msra.mxu1 %v16939_v2  ;;  %13300 = vmatpush1.bf16.msra.mxu0 %v16941_v4  ;;  %v8192_v2 = vld [vmem:[#allocation8 + $0xb68] sm:$0xff]  ;;  %v8194_v4 = vld [vmem:[#allocation8 + $0xb78] sm:$0xff]  ;;  %18256 = vst [vmem:[#allocation177_spill] sm:$0xff] %v16987_v51  ;;  %v8207_v53 = vld [vmem:[#allocation8 + $0xbe0] sm:$0xff] }
 0x96a   :  { %13230 = vmatprep.subr.bf16.mxu1 %v16945_v60  ;;  %13302 = vmatprep.subr.bf16.mxu0 %v16947_v7  ;;  %v16969_v33 = vpack.c.bf16 %v8192_v2, %v8188_v59  ;;  %v16971_v58 = vpack.c.bf16 %v8194_v4, %v8190_v62  ;;  %v8196_v7 = vld [vmem:[#allocation8 + $0xb88] sm:$0xff]  ;;  %v8198_v60 = vld [vmem:[#allocation8 + $0xb98] sm:$0xff]  ;;  %18253 = vst [vmem:[#allocation174_spill] sm:$0xff] %v16977_v36  ;;  %v8197_v2 = vld [vmem:[#allocation8 + $0xb90] sm:$0xff] }
 0x96b   :  { %v8201_v4 = vld [vmem:[#allocation8 + $0xbb0] sm:$0xff]  ;;  %v16999_v40 = vpack.c.bf16 %v8207_v53, %v8203_v18 }
 0x96c   :  { %18250 = vst [vmem:[#allocation171_spill] sm:$0xff] %v16969_v33  ;;  %18251 = vst [vmem:[#allocation172_spill] sm:$0xff] %v16971_v58  ;;  %v16989_v3 = vpack.c.bf16 %v8201_v4, %v8197_v2  ;;  %v8211_v2 = vld [vmem:[#allocation8 + $0xc00] sm:$0xff] }
 0x96d   :  { %13232 = vmatpush1.bf16.msra.mxu1 %v16951_v45  ;;  %13304 = vmatpush1.bf16.msra.mxu0 %v16953_v29  ;;  %v8200_v45 = vld [vmem:[#allocation8 + $0xba8] sm:$0xff]  ;;  %v8202_v29 = vld [vmem:[#allocation8 + $0xbb8] sm:$0xff]  ;;  %18260 = vst [vmem:[#allocation181_spill] sm:$0xff] %v16999_v40  ;;  %v8215_v4 = vld [vmem:[#allocation8 + $0xc20] sm:$0xff] }
 0x96e   :  { %13234 = vmatprep.subr.bf16.mxu1 %v16957_v34  ;;  %13306 = vmatprep.subr.bf16.mxu0 %v16959_v43  ;;  %v16981_v62 = vpack.c.bf16 %v8200_v45, %v8196_v7  ;;  %v16983_v59 = vpack.c.bf16 %v8202_v29, %v8198_v60  ;;  %v8204_v43 = vld [vmem:[#allocation8 + $0xbc8] sm:$0xff]  ;;  %v8206_v34 = vld [vmem:[#allocation8 + $0xbd8] sm:$0xff]  ;;  %18257 = vst [vmem:[#allocation178_spill] sm:$0xff] %v16989_v3  ;;  %v8205_v45 = vld [vmem:[#allocation8 + $0xbd0] sm:$0xff] }
 0x96f   :  { %v8209_v29 = vld [vmem:[#allocation8 + $0xbf0] sm:$0xff]  ;;  %v17011_v18 = vpack.c.bf16 %v8215_v4, %v8211_v2 }
 0x970   :  { %18254 = vst [vmem:[#allocation175_spill] sm:$0xff] %v16981_v62  ;;  %18255 = vst [vmem:[#allocation176_spill] sm:$0xff] %v16983_v59  ;;  %v17001_v9 = vpack.c.bf16 %v8209_v29, %v8205_v45  ;;  %v8219_v45 = vld [vmem:[#allocation8 + $0xc40] sm:$0xff] }
 0x971   :  { %13236 = vmatpush1.bf16.msra.mxu1 %v16963_v12  ;;  %13308 = vmatpush1.bf16.msra.mxu0 %v16965_v39  ;;  %v8208_v12 = vld [vmem:[#allocation8 + $0xbe8] sm:$0xff]  ;;  %v8210_v39 = vld [vmem:[#allocation8 + $0xbf8] sm:$0xff]  ;;  %18264 = vst [vmem:[#allocation185_spill] sm:$0xff] %v17011_v18  ;;  %v8223_v29 = vld [vmem:[#allocation8 + $0xc60] sm:$0xff] }
 0x972   :  { %13238 = vmatprep.subr.bf16.mxu1 %v16969_v33  ;;  %13310 = vmatprep.subr.bf16.mxu0 %v16971_v58  ;;  %v16993_v60 = vpack.c.bf16 %v8208_v12, %v8204_v43  ;;  %v16995_v7 = vpack.c.bf16 %v8210_v39, %v8206_v34  ;;  %v8212_v58 = vld [vmem:[#allocation8 + $0xc08] sm:$0xff]  ;;  %v8214_v33 = vld [vmem:[#allocation8 + $0xc18] sm:$0xff]  ;;  %18261 = vst [vmem:[#allocation182_spill] sm:$0xff] %v17001_v9  ;;  %v8213_v12 = vld [vmem:[#allocation8 + $0xc10] sm:$0xff] }
 0x973   :  { %v8217_v39 = vld [vmem:[#allocation8 + $0xc30] sm:$0xff]  ;;  %v17023_v2 = vpack.c.bf16 %v8223_v29, %v8219_v45 }
 0x974   :  { %18258 = vst [vmem:[#allocation179_spill] sm:$0xff] %v16993_v60  ;;  %18259 = vst [vmem:[#allocation180_spill] sm:$0xff] %v16995_v7  ;;  %v17013_v53 = vpack.c.bf16 %v8217_v39, %v8213_v12  ;;  %v8227_v12 = vld [vmem:[#allocation8 + $0xc80] sm:$0xff] }
 0x975   :  { %13240 = vmatpush1.bf16.msra.mxu1 %v16975_v13  ;;  %13312 = vmatpush1.bf16.msra.mxu0 %v16977_v36  ;;  %v8216_v13 = vld [vmem:[#allocation8 + $0xc28] sm:$0xff]  ;;  %v8218_v36 = vld [vmem:[#allocation8 + $0xc38] sm:$0xff]  ;;  %18268 = vst [vmem:[#allocation189_spill] sm:$0xff] %v17023_v2  ;;  %v8231_v39 = vld [vmem:[#allocation8 + $0xca0] sm:$0xff] }
 0x976   :  { %13242 = vmatprep.subr.bf16.mxu1 %v16981_v62  ;;  %13314 = vmatprep.subr.bf16.mxu0 %v16983_v59  ;;  %v17005_v34 = vpack.c.bf16 %v8216_v13, %v8212_v58  ;;  %v17007_v43 = vpack.c.bf16 %v8218_v36, %v8214_v33  ;;  %v8220_v59 = vld [vmem:[#allocation8 + $0xc48] sm:$0xff]  ;;  %v8222_v62 = vld [vmem:[#allocation8 + $0xc58] sm:$0xff]  ;;  %18265 = vst [vmem:[#allocation186_spill] sm:$0xff] %v17013_v53  ;;  %v8221_v13 = vld [vmem:[#allocation8 + $0xc50] sm:$0xff] }
 0x977   :  { %v8225_v36 = vld [vmem:[#allocation8 + $0xc70] sm:$0xff]  ;;  %v17035_v45 = vpack.c.bf16 %v8231_v39, %v8227_v12  ;;  %v8109_v12 = vld [vmem:[#allocation2 + $0x60] sm:$0xfe] }
 0x978   :  { %18262 = vst [vmem:[#allocation183_spill] sm:$0xff] %v17005_v34  ;;  %18263 = vst [vmem:[#allocation184_spill] sm:$0xff] %v17007_v43  ;;  %v17025_v4 = vpack.c.bf16 %v8225_v36, %v8221_v13  ;;  %v8235_v13 = vld [vmem:[#allocation8 + $0xcc0] sm:$0xff]  ;;  %v8112_v39 = vld [vmem:[#allocation2 + $0x78] sm:$0x1] }
 0x979   :  { %13244 = vmatpush1.bf16.msra.mxu1 %v16987_v51  ;;  %13316 = vmatpush1.bf16.msra.mxu0 %v16989_v3  ;;  %v8224_v51 = vld [vmem:[#allocation8 + $0xc68] sm:$0xff]  ;;  %v8226_v3 = vld [vmem:[#allocation8 + $0xc78] sm:$0xff]  ;;  %18272 = vst [vmem:[#allocation193_spill] sm:$0xff] %v17035_v45  ;;  %v8239_v36 = vld [vmem:[#allocation8 + $0xce0] sm:$0xff]  ;;  %v8266_v20 = vrot.slane %v8112_v39, 1 }
 0x97a   :  { %13246 = vmatprep.subr.bf16.mxu1 %v16993_v60  ;;  %13318 = vmatprep.subr.bf16.mxu0 %v16995_v7  ;;  %v17017_v33 = vpack.c.bf16 %v8224_v51, %v8220_v59  ;;  %v17019_v58 = vpack.c.bf16 %v8226_v3, %v8222_v62  ;;  %v8228_v7 = vld [vmem:[#allocation8 + $0xc88] sm:$0xff]  ;;  %v8230_v60 = vld [vmem:[#allocation8 + $0xc98] sm:$0xff]  ;;  %18269 = vst [vmem:[#allocation190_spill] sm:$0xff] %v17025_v4  ;;  %v8229_v51 = vld [vmem:[#allocation8 + $0xc90] sm:$0xff] }
 0x97b   :  { %v8233_v3 = vld [vmem:[#allocation8 + $0xcb0] sm:$0xff] }
 0x97c   :  { %18266 = vst [vmem:[#allocation187_spill] sm:$0xff] %v17017_v33  ;;  %18267 = vst [vmem:[#allocation188_spill] sm:$0xff] %v17019_v58  ;;  %v17037_v29 = vpack.c.bf16 %v8233_v3, %v8229_v51  ;;  %v17047_v51 = vpack.c.bf16 %v8239_v36, %v8235_v13  ;;  %v8254_v13 = vld [vmem:[#allocation8 + $0xd58] sm:$0xff]  ;;  %v8257_v39 = vld [vmem:[#allocation8 + $0xd70] sm:$0xff] }
 0x97d   :  { %13248 = vmatpush1.bf16.msra.mxu1 %v16999_v40  ;;  %13320 = vmatpush1.bf16.msra.mxu0 %v17001_v9  ;;  %v8232_v40 = vld [vmem:[#allocation8 + $0xca8] sm:$0xff]  ;;  %v8234_v9 = vld [vmem:[#allocation8 + $0xcb8] sm:$0xff] }
 0x97e   :  { %13250 = vmatprep.subr.bf16.mxu1 %v17005_v34  ;;  %13322 = vmatprep.subr.bf16.mxu0 %v17007_v43  ;;  %v17029_v62 = vpack.c.bf16 %v8232_v40, %v8228_v7  ;;  %v17031_v59 = vpack.c.bf16 %v8234_v9, %v8230_v60  ;;  %v8236_v43 = vld [vmem:[#allocation8 + $0xcc8] sm:$0xff]  ;;  %v8238_v34 = vld [vmem:[#allocation8 + $0xcd8] sm:$0xff]  ;;  %18273 = vst [vmem:[#allocation194_spill] sm:$0xff] %v17037_v29  ;;  %v8237_v40 = vld [vmem:[#allocation8 + $0xcd0] sm:$0xff] }
 0x97f   :  { %v8241_v9 = vld [vmem:[#allocation8 + $0xcf0] sm:$0xff]  ;;  %18275 = vst [vmem:[#allocation196_spill] sm:$0xff] %v17047_v51  ;;  %v8258_v36 = vld [vmem:[#allocation8 + $0xd78] sm:$0xff] }
 0x980   :  { %18270 = vst [vmem:[#allocation191_spill] sm:$0xff] %v17029_v62  ;;  %18271 = vst [vmem:[#allocation192_spill] sm:$0xff] %v17031_v59  ;;  %v17049_v3 = vpack.c.bf16 %v8241_v9, %v8237_v40 }
 0x981   :  { %13252 = vmatpush1.bf16.msra.mxu1 %v17011_v18  ;;  %13324 = vmatpush1.bf16.msra.mxu0 %v17013_v53  ;;  %v8240_v18 = vld [vmem:[#allocation8 + $0xce8] sm:$0xff]  ;;  %v8242_v53 = vld [vmem:[#allocation8 + $0xcf8] sm:$0xff] }
 0x982   :  { %13254 = vmatprep.subr.bf16.mxu1 %v17017_v33  ;;  %13326 = vmatprep.subr.bf16.mxu0 %v17019_v58  ;;  %v17041_v60 = vpack.c.bf16 %v8240_v18, %v8236_v43  ;;  %v17043_v7 = vpack.c.bf16 %v8242_v53, %v8238_v34  ;;  %v8244_v58 = vld [vmem:[#allocation8 + $0xd08] sm:$0xff]  ;;  %v8246_v33 = vld [vmem:[#allocation8 + $0xd18] sm:$0xff]  ;;  %18276 = vst [vmem:[#allocation24_spill] sm:$0xff] %v17049_v3  ;;  %v8243_v43 = vld [vmem:[#allocation8 + $0xd00] sm:$0xff] }
 0x983   :  { %v8247_v18 = vld [vmem:[#allocation8 + $0xd20] sm:$0xff] }
 0x984   :  { %18274 = vst [vmem:[#allocation195_spill] sm:$0xff] %v17043_v7  ;;  %v17059_v40 = vpack.c.bf16 %v8247_v18, %v8243_v43  ;;  %v18319_v43 = vld [vmem:[#allocation71_spill] sm:$0xff]  ;;  %v18320_v18 = vld [vmem:[#allocation72_spill] sm:$0xff] }
 0x985   :  { %13256 = vmatpush1.bf16.msra.mxu1 %v17023_v2  ;;  %13328 = vmatpush1.bf16.msra.mxu0 %v17025_v4  ;;  %v8248_v2 = vld [vmem:[#allocation8 + $0xd28] sm:$0xff]  ;;  %v8250_v4 = vld [vmem:[#allocation8 + $0xd38] sm:$0xff] }
 0x986   :  { %13258 = vmatprep.subr.bf16.mxu1 %v17029_v62  ;;  %13330 = vmatprep.subr.bf16.mxu0 %v17031_v59  ;;  %v17053_v34 = vpack.c.bf16 %v8248_v2, %v8244_v58  ;;  %v17055_v53 = vpack.c.bf16 %v8250_v4, %v8246_v33  ;;  %v8245_v59 = vld [vmem:[#allocation8 + $0xd10] sm:$0xff]  ;;  %v8251_v58 = vld [vmem:[#allocation8 + $0xd40] sm:$0xff] }
 0x987   :  { %v8249_v62 = vld [vmem:[#allocation8 + $0xd30] sm:$0xff]  ;;  %v8255_v2 = vld [vmem:[#allocation8 + $0xd60] sm:$0xff] }
 0x988   :  { %v17061_v9 = vpack.c.bf16 %v8249_v62, %v8245_v59  ;;  %v8253_v33 = vld [vmem:[#allocation8 + $0xd50] sm:$0xff]  ;;  %v17076_v62 = vpack.c.bf16 %v8255_v2, %v8251_v58  ;;  %v18323_v58 = vld [vmem:[#allocation75_spill] sm:$0xff] }
 0x989   :  { %13260 = vmatpush1.bf16.msra.mxu1 %v17035_v45  ;;  %13332 = vmatpush1.bf16.msra.mxu0 %v17037_v29  ;;  %v8265_v45 = vrot.slane %v8109_v12, 1  ;;  %v8256_v29 = vld [vmem:[#allocation8 + $0xd68] sm:$0xff]  ;;  %v17067_v12 = vpack.c.bf16 %v8258_v36, %v8254_v13  ;;  %v18321_v13 = vld [vmem:[#allocation73_spill] sm:$0xff]  ;;  %v18322_v36 = vld [vmem:[#allocation74_spill] sm:$0xff] }
 0x98a   :  { %13262 = vmatprep.subr.bf16.mxu1 %v17041_v60  ;;  %13334 = vmatprep.subr.bf16.mxu0 %v17043_v7  ;;  %v17065_v4 = vpack.c.bf16 %v8256_v29, %v8252_v22  ;;  %v8111_v7 = vld [vmem:[#allocation2 + $0x70] sm:$0xfe]  ;;  %v17078_v22 = vpack.c.bf16 %v8257_v39, %v8253_v33  ;;  %v18326_v39 = vld [vmem:[#allocation78_spill] sm:$0xff] }
 0x98b   :  { %v8271_v59 = vrot.slane %v8111_v7, 1  ;;  %v18316_v7 = vld [vmem:[#allocation68_spill] sm:$0xff]  ;;  %v18325_v33 = vld [vmem:[#allocation77_spill] sm:$0xff] }
 0x98c   :  { %v18324_v2 = vld [vmem:[#allocation76_spill] sm:$0xff] }
 0x98d   :  { %13264 = vmatpush1.bf16.msra.mxu1 %v17047_v51  ;;  %13336 = vmatpush1.bf16.msra.mxu0 %v17049_v3  ;;  %v8114_v51 = vld [vmem:[#allocation2 + $0x88] sm:$0x1]  ;;  %v17070_v3 = vsel %vm3129_vm7, %v8265_v45, %v8266_v20 }
 0x98e   :  { %13266 = vmatprep.subr.bf16.mxu1 %v17053_v34  ;;  %13338 = vmatprep.subr.bf16.mxu0 %v17055_v53  ;;  %v8272_v29 = vrot.slane %v8114_v51, 1  ;;  %v18315_v45 = vld [vmem:[#allocation67_spill] sm:$0xff]  ;;  %v18317_v51 = vld [vmem:[#allocation69_spill] sm:$0xff] }
 0x990   :  { %8343 = vmatmul.mubr.f32.vlgmr.msra.gmra.mrb[28].mxu1 %v17070_v3  ;;  %8485 = vmatmul.mubr.f32.vlgmr.msra.gmra.mrb[30].mxu0 %v17070_v3  ;;  %v17087_v20 = vsel %vm3129_vm7, %v8271_v59, %v8272_v29  ;;  %v18327_v59 = vld [vmem:[#allocation79_spill] sm:$0xff]  ;;  %v18328_v29 = vld [vmem:[#allocation80_spill] sm:$0xff] }
 0x991   :  { %13268 = vmatpush1.bf16.msra.mxu1 %v17059_v40  ;;  %13340 = vmatpush1.bf16.msra.mxu0 %v17061_v9 }
 0x992   :  { %13270 = vmatprep.subr.bf16.mxu1 %v17065_v4  ;;  %13342 = vmatprep.subr.bf16.mxu0 %v17067_v12 }
 0x993   :  { %8413 = vmatprep.mubr.f32.mxu1 %v16629_v37  ;;  %8555 = vmatprep.mubr.f32.mxu0 %v16629_v37 }
 0x995   :  { %13272 = vmatpush1.bf16.msra.mxu1 %v17076_v62  ;;  %13344 = vmatpush1.bf16.msra.mxu0 %v17078_v22 }
 0x996   :  { %13346 = vmatprep.subr.bf16.mxu1 %v16386_v57  ;;  %13418 = vmatprep.subr.bf16.mxu0 %v16388_v8  ;;  %v18277_v57 = vld [vmem:[#allocation29_spill] sm:$0xff]  ;;  %v18278_v8 = vld [vmem:[#allocation30_spill] sm:$0xff] }
 0x998   :  { %10617 = vmatmul.mubr.msk.f32.vlgmr.msra.gmra.mrb[28].mxu1 %vm136_vm4, %v17087_v20  ;;  %10618 = vmatmul.mubr.msk.f32.vlgmr.msra.gmra.mrb[30].mxu0 %vm136_vm4, %v17087_v20 }
 0x999   :  { %13348 = vmatpush1.bf16.msra.mxu1 %v16390_v25  ;;  %8656 = vmatprep.mubr.f32.mxu1 %v16875_v27  ;;  %v18279_v25 = vld [vmem:[#allocation31_spill] sm:$0xff] }
 0x99a   :  { %13420 = vmatpush1.bf16.msra.mxu0 %v16393_v1  ;;  %8798 = vmatprep.mubr.f32.mxu0 %v16875_v27  ;;  %v18280_v1 = vld [vmem:[#allocation32_spill] sm:$0xff]  ;;  %v18314_v27 = vld [vmem:[#allocation66_spill] sm:$0xff] }
 0x99b   :  { %13350 = vmatprep.subr.bf16.mxu1 %v16397_v56  ;;  %13422 = vmatprep.subr.bf16.mxu0 %v16399_v41  ;;  %v18281_v56 = vld [vmem:[#allocation33_spill] sm:$0xff]  ;;  %v18282_v41 = vld [vmem:[#allocation34_spill] sm:$0xff] }
 0x99d   :  { %13352 = vmatpush1.bf16.msra.mxu1 %v16402_v32  ;;  %v18283_v32 = vld [vmem:[#allocation35_spill] sm:$0xff] }
 0x99e   :  { %13424 = vmatpush1.bf16.msra.mxu0 %v16406_v5  ;;  %13354 = vmatprep.subr.bf16.mxu1 %v16408_v17  ;;  %v18284_v5 = vld [vmem:[#allocation36_spill] sm:$0xff]  ;;  %v18285_v17 = vld [vmem:[#allocation37_spill] sm:$0xff] }
 0x99f   :  { %13426 = vmatprep.subr.bf16.mxu0 %v16410_v47  ;;  %v18286_v47 = vld [vmem:[#allocation38_spill] sm:$0xff] }
 0x9a1   :  { %13356 = vmatpush1.bf16.msra.mxu1 %v16413_v28  ;;  %v18287_v28 = vld [vmem:[#allocation39_spill] sm:$0xff] }
 0x9a2   :  { %13428 = vmatpush1.bf16.msra.mxu0 %v16417_v61  ;;  %13358 = vmatprep.subr.bf16.mxu1 %v16419_v21  ;;  %v18288_v61 = vld [vmem:[#allocation40_spill] sm:$0xff]  ;;  %v18289_v21 = vld [vmem:[#allocation41_spill] sm:$0xff] }
 0x9a3   :  { %13430 = vmatprep.subr.bf16.mxu0 %v16422_v38  ;;  %v18290_v38 = vld [vmem:[#allocation42_spill] sm:$0xff] }
 0x9a5   :  { %13360 = vmatpush1.bf16.msra.mxu1 %v16425_v26  ;;  %v18291_v26 = vld [vmem:[#allocation43_spill] sm:$0xff] }
 0x9a6   :  { %13432 = vmatpush1.bf16.msra.mxu0 %v16429_v49  ;;  %13362 = vmatprep.subr.bf16.mxu1 %v16431_v46  ;;  %v18292_v49 = vld [vmem:[#allocation44_spill] sm:$0xff]  ;;  %v18293_v46 = vld [vmem:[#allocation45_spill] sm:$0xff] }
 0x9a7   :  { %13434 = vmatprep.subr.bf16.mxu0 %v16434_v31  ;;  %v18294_v31 = vld [vmem:[#allocation46_spill] sm:$0xff] }
 0x9a9   :  { %13364 = vmatpush1.bf16.msra.mxu1 %v16437_v24  ;;  %v18295_v24 = vld [vmem:[#allocation47_spill] sm:$0xff] }
 0x9aa   :  { %13436 = vmatpush1.bf16.msra.mxu0 %v16441_v19  ;;  %13366 = vmatprep.subr.bf16.mxu1 %v16443_v16  ;;  %v18296_v19 = vld [vmem:[#allocation48_spill] sm:$0xff]  ;;  %v18297_v16 = vld [vmem:[#allocation49_spill] sm:$0xff] }
 0x9ab   :  { %13438 = vmatprep.subr.bf16.mxu0 %v16446_v54  ;;  %v18298_v54 = vld [vmem:[#allocation50_spill] sm:$0xff] }
 0x9ad   :  { %13368 = vmatpush1.bf16.msra.mxu1 %v16449_v42  ;;  %v18299_v42 = vld [vmem:[#allocation51_spill] sm:$0xff] }
 0x9ae   :  { %13440 = vmatpush1.bf16.msra.mxu0 %v16453_v6  ;;  %13370 = vmatprep.subr.bf16.mxu1 %v16455_v30  ;;  %v18300_v6 = vld [vmem:[#allocation52_spill] sm:$0xff]  ;;  %v18301_v30 = vld [vmem:[#allocation53_spill] sm:$0xff] }
 0x9af   :  { %13442 = vmatprep.subr.bf16.mxu0 %v16458_v35  ;;  %v18302_v35 = vld [vmem:[#allocation54_spill] sm:$0xff] }
 0x9b1   :  { %13372 = vmatpush1.bf16.msra.mxu1 %v16461_v15  ;;  %v18303_v15 = vld [vmem:[#allocation55_spill] sm:$0xff] }
 0x9b2   :  { %13444 = vmatpush1.bf16.msra.mxu0 %v16465_v48  ;;  %13374 = vmatprep.subr.bf16.mxu1 %v16467_v10  ;;  %v18304_v48 = vld [vmem:[#allocation56_spill] sm:$0xff]  ;;  %v18305_v10 = vld [vmem:[#allocation57_spill] sm:$0xff] }
 0x9b3   :  { %13446 = vmatprep.subr.bf16.mxu0 %v16470_v52  ;;  %v18306_v52 = vld [vmem:[#allocation58_spill] sm:$0xff] }
 0x9b5   :  { %13376 = vmatpush1.bf16.msra.mxu1 %v16473_v14  ;;  %v18307_v14 = vld [vmem:[#allocation59_spill] sm:$0xff] }
 0x9b6   :  { %13448 = vmatpush1.bf16.msra.mxu0 %v16477_v44  ;;  %13378 = vmatprep.subr.bf16.mxu1 %v16479_v55  ;;  %v18308_v44 = vld [vmem:[#allocation60_spill] sm:$0xff]  ;;  %v18309_v55 = vld [vmem:[#allocation61_spill] sm:$0xff] }
 0x9b7   :  { %13450 = vmatprep.subr.bf16.mxu0 %v18277_v57  ;;  %v18330_v57 = vld [vmem:[#allocation82_spill] sm:$0xff] }
 0x9b9   :  { %13380 = vmatpush1.bf16.msra.mxu1 %v18278_v8  ;;  %v18331_v8 = vld [vmem:[#allocation83_spill] sm:$0xff] }
 0x9ba   :  { %13452 = vmatpush1.bf16.msra.mxu0 %v18279_v25  ;;  %13382 = vmatprep.subr.bf16.mxu1 %v18280_v1  ;;  %v18332_v25 = vld [vmem:[#allocation84_spill] sm:$0xff]  ;;  %v18333_v1 = vld [vmem:[#allocation85_spill] sm:$0xff] }
 0x9bb   :  { %13454 = vmatprep.subr.bf16.mxu0 %v18281_v56  ;;  %v18334_v56 = vld [vmem:[#allocation86_spill] sm:$0xff] }
 0x9bd   :  { %13384 = vmatpush1.bf16.msra.mxu1 %v18282_v41  ;;  %v18335_v41 = vld [vmem:[#allocation87_spill] sm:$0xff] }
 0x9be   :  { %13456 = vmatpush1.bf16.msra.mxu0 %v18283_v32  ;;  %13386 = vmatprep.subr.bf16.mxu1 %v18284_v5  ;;  %v18336_v32 = vld [vmem:[#allocation88_spill] sm:$0xff]  ;;  %v18337_v5 = vld [vmem:[#allocation89_spill] sm:$0xff] }
 0x9bf   :  { %13458 = vmatprep.subr.bf16.mxu0 %v18285_v17  ;;  %v18338_v17 = vld [vmem:[#allocation90_spill] sm:$0xff] }
 0x9c1   :  { %13388 = vmatpush1.bf16.msra.mxu1 %v18286_v47  ;;  %v18339_v47 = vld [vmem:[#allocation91_spill] sm:$0xff] }
 0x9c2   :  { %13460 = vmatpush1.bf16.msra.mxu0 %v18287_v28  ;;  %13390 = vmatprep.subr.bf16.mxu1 %v16515_v0  ;;  %v18310_v0 = vld [vmem:[#allocation62_spill] sm:$0xff]  ;;  %v18340_v28 = vld [vmem:[#allocation92_spill] sm:$0xff] }
 0x9c3   :  { %13462 = vmatprep.subr.bf16.mxu0 %v16518_v23  ;;  %v18311_v23 = vld [vmem:[#allocation63_spill] sm:$0xff] }
 0x9c5   :  { %13392 = vmatpush1.bf16.msra.mxu1 %v18288_v61  ;;  %v18341_v61 = vld [vmem:[#allocation93_spill] sm:$0xff] }
 0x9c6   :  { %13464 = vmatpush1.bf16.msra.mxu0 %v18289_v21  ;;  %13394 = vmatprep.subr.bf16.mxu1 %v18290_v38  ;;  %v18342_v21 = vld [vmem:[#allocation94_spill] sm:$0xff]  ;;  %v18343_v38 = vld [vmem:[#allocation95_spill] sm:$0xff] }
 0x9c7   :  { %13466 = vmatprep.subr.bf16.mxu0 %v18291_v26  ;;  %v18344_v26 = vld [vmem:[#allocation96_spill] sm:$0xff] }
 0x9c9   :  { %13396 = vmatpush1.bf16.msra.mxu1 %v18292_v49  ;;  %v18345_v49 = vld [vmem:[#allocation97_spill] sm:$0xff] }
 0x9ca   :  { %13468 = vmatpush1.bf16.msra.mxu0 %v18293_v46  ;;  %13398 = vmatprep.subr.bf16.mxu1 %v18294_v31  ;;  %v18346_v46 = vld [vmem:[#allocation98_spill] sm:$0xff]  ;;  %v18347_v31 = vld [vmem:[#allocation99_spill] sm:$0xff] }
 0x9cb   :  { %13470 = vmatprep.subr.bf16.mxu0 %v18295_v24  ;;  %v18348_v24 = vld [vmem:[#allocation100_spill] sm:$0xff] }
 0x9cd   :  { %13400 = vmatpush1.bf16.msra.mxu1 %v18296_v19  ;;  %v18349_v19 = vld [vmem:[#allocation101_spill] sm:$0xff] }
 0x9ce   :  { %13472 = vmatpush1.bf16.msra.mxu0 %v18297_v16  ;;  %13402 = vmatprep.subr.bf16.mxu1 %v18298_v54  ;;  %v18350_v16 = vld [vmem:[#allocation102_spill] sm:$0xff]  ;;  %v18351_v54 = vld [vmem:[#allocation103_spill] sm:$0xff] }
 0x9cf   :  { %13474 = vmatprep.subr.bf16.mxu0 %v18299_v42  ;;  %v18352_v42 = vld [vmem:[#allocation104_spill] sm:$0xff] }
 0x9d1   :  { %13404 = vmatpush1.bf16.msra.mxu1 %v18300_v6  ;;  %v18353_v6 = vld [vmem:[#allocation105_spill] sm:$0xff] }
 0x9d2   :  { %13476 = vmatpush1.bf16.msra.mxu0 %v16561_v11  ;;  %13406 = vmatprep.subr.bf16.mxu1 %v16567_v50  ;;  %v18313_v11 = vld [vmem:[#allocation65_spill] sm:$0xff] }
 0x9d3   :  { %13478 = vmatprep.subr.bf16.mxu0 %v16573_v63  ;;  %v18312_v63 = vld [vmem:[#allocation64_spill] sm:$0xff]  ;;  %v14225_v50 = vld [vmem:[#allocation2 + $0x98] sm:$0xff] }
 0x9d5   :  { %13408 = vmatpush1.bf16.msra.mxu1 %v18301_v30  ;;  %v18354_v30 = vld [vmem:[#allocation106_spill] sm:$0xff] }
 0x9d6   :  { %13480 = vmatpush1.bf16.msra.mxu0 %v18302_v35  ;;  %13410 = vmatprep.subr.bf16.mxu1 %v18303_v15  ;;  %v18355_v35 = vld [vmem:[#allocation107_spill] sm:$0xff]  ;;  %v18356_v15 = vld [vmem:[#allocation108_spill] sm:$0xff] }
 0x9d7   :  { %13482 = vmatprep.subr.bf16.mxu0 %v18304_v48  ;;  %v18357_v48 = vld [vmem:[#allocation109_spill] sm:$0xff] }
 0x9d8   :  { %8657 = vmatmul.mubr.f32.vlgmr.msra.gmra.mrb[30].mxu1 %v17070_v3 }
 0x9d9   :  { %8799 = vmatmul.mubr.f32.vlgmr.msra.gmra.mrb[32].mxu0 %v17070_v3  ;;  %13412 = vmatpush1.bf16.msra.mxu1 %v18305_v10  ;;  %v18318_v3 = vld [vmem:[#allocation70_spill] sm:$0xff] }
 0x9da   :  { %13484 = vmatpush1.bf16.msra.mxu0 %v18306_v52  ;;  %13414 = vmatprep.subr.bf16.mxu1 %v18307_v14  ;;  %v18358_v10 = vld [vmem:[#allocation110_spill] sm:$0xff]  ;;  %v18359_v52 = vld [vmem:[#allocation111_spill] sm:$0xff]  ;;  %v18360_v14 = vld [vmem:[#allocation112_spill] sm:$0xff] }
 0x9db   :  { %13486 = vmatprep.subr.bf16.mxu0 %v18308_v44  ;;  %8727 = vmatprep.mubr.f32.mxu1 %v16629_v37  ;;  %v18361_v44 = vld [vmem:[#allocation113_spill] sm:$0xff] }
 0x9dc   :  { %8869 = vmatprep.mubr.f32.mxu0 %v16629_v37 }
 0x9dd   :  { %13416 = vmatpush1.bf16.msra.mxu1 %v18309_v55  ;;  %v18362_v55 = vld [vmem:[#allocation114_spill] sm:$0xff] }
 0x9de   :  { %13488 = vmatpush1.bf16.msra.mxu0 %v18310_v0  ;;  %13490 = vmatprep.subr.bf16.mxu1 %v18311_v23  ;;  %v18363_v0 = vld [vmem:[#allocation115_spill] sm:$0xff]  ;;  %v18364_v23 = vld [vmem:[#allocation116_spill] sm:$0xff] }
 0x9df   :  { %13562 = vmatprep.subr.bf16.mxu0 %v18312_v63  ;;  %v18365_v63 = vld [vmem:[#allocation117_spill] sm:$0xff] }
 0x9e0   :  { %10619 = vmatmul.mubr.msk.f32.vlgmr.msra.gmra.mrb[30].mxu1 %vm136_vm4, %v17087_v20 }
 0x9e1   :  { %10620 = vmatmul.mubr.msk.f32.vlgmr.msra.gmra.mrb[32].mxu0 %vm136_vm4, %v17087_v20  ;;  %13492 = vmatpush1.bf16.msra.mxu1 %v18313_v11  ;;  %v18329_v20 = vld [vmem:[#allocation81_spill] sm:$0xff]  ;;  %v18366_v11 = vld [vmem:[#allocation118_spill] sm:$0xff] }
 0x9e2   :  { %8940 = vmatprep.mubr.f32.mxu1 %v14225_v50  ;;  %13564 = vmatpush1.bf16.msra.mxu0 %v18314_v27  ;;  %v18368_v27 = vld [vmem:[#allocation120_spill] sm:$0xff] }
 0x9e3   :  { %9082 = vmatprep.mubr.f32.mxu0 %v14225_v50  ;;  %13494 = vmatprep.subr.bf16.mxu1 %v18315_v45  ;;  %v18367_v50 = vld [vmem:[#allocation119_spill] sm:$0xff]  ;;  %v18369_v45 = vld [vmem:[#allocation121_spill] sm:$0xff] }
 0x9e4   :  { %13566 = vmatprep.subr.bf16.mxu0 %v18316_v7  ;;  %v18370_v7 = vld [vmem:[#allocation122_spill] sm:$0xff] }
 0x9e5   :  { %13496 = vmatpush1.bf16.msra.mxu1 %v18317_v51  ;;  %v18371_v51 = vld [vmem:[#allocation123_spill] sm:$0xff] }
 0x9e6   :  { %13568 = vmatpush1.bf16.msra.mxu0 %v18318_v3  ;;  %13498 = vmatprep.subr.bf16.mxu1 %v18319_v43  ;;  %v18372_v3 = vld [vmem:[#allocation124_spill] sm:$0xff]  ;;  %v18373_v43 = vld [vmem:[#allocation125_spill] sm:$0xff] }
 0x9e7   :  { %13570 = vmatprep.subr.bf16.mxu0 %v18320_v18  ;;  %v18374_v18 = vld [vmem:[#allocation126_spill] sm:$0xff] }
 0x9e9   :  { %13500 = vmatpush1.bf16.msra.mxu1 %v18321_v13  ;;  %v18375_v13 = vld [vmem:[#allocation127_spill] sm:$0xff] }
 0x9ea   :  { %13572 = vmatpush1.bf16.msra.mxu0 %v18322_v36  ;;  %13502 = vmatprep.subr.bf16.mxu1 %v18323_v58  ;;  %v18376_v36 = vld [vmem:[#allocation128_spill] sm:$0xff] }
 0x9eb   :  { %13574 = vmatprep.subr.bf16.mxu0 %v18324_v2  ;;  %v14226_v58 = vld [vmem:[#allocation2 + $0x90] sm:$0xff] }
 0x9ec   :  { %v18377_v2 = vld [vmem:[#allocation129_spill] sm:$0xff] }
 0x9ed   :  { %13504 = vmatpush1.bf16.msra.mxu1 %v18325_v33  ;;  %v18378_v33 = vld [vmem:[#allocation130_spill] sm:$0xff] }
 0x9ee   :  { %13576 = vmatpush1.bf16.msra.mxu0 %v18326_v39  ;;  %13506 = vmatprep.subr.bf16.mxu1 %v18327_v59  ;;  %v18379_v39 = vld [vmem:[#allocation131_spill] sm:$0xff]  ;;  %v9161_v59 = vld [vmem:[#allocation2 + $0x98] sm:$0xfe] }
 0x9ef   :  { %13578 = vmatprep.subr.bf16.mxu0 %v18328_v29  ;;  %v9164_v29 = vld [vmem:[#allocation2 + $0xb0] sm:$0x1] }
 0x9f1   :  { %13508 = vmatpush1.bf16.msra.mxu1 %v18329_v20  ;;  %v18380_v20 = vld [vmem:[#allocation132_spill] sm:$0xff] }
 0x9f2   :  { %13580 = vmatpush1.bf16.msra.mxu0 %v18330_v57  ;;  %13510 = vmatprep.subr.bf16.mxu1 %v18331_v8  ;;  %v18381_v57 = vld [vmem:[#allocation133_spill] sm:$0xff]  ;;  %v9175_v8 = vrot.slane %v9161_v59, 1  ;;  %v18428_v59 = vld [vmem:[#allocation180_spill] sm:$0xff] }
 0x9f3   :  { %13582 = vmatprep.subr.bf16.mxu0 %v18332_v25  ;;  %v9176_v25 = vrot.slane %v9164_v29, 1  ;;  %v18429_v29 = vld [vmem:[#allocation181_spill] sm:$0xff] }
 0x9f5   :  { %13512 = vmatpush1.bf16.msra.mxu1 %v18333_v1  ;;  %v18382_v1 = vld [vmem:[#allocation134_spill] sm:$0xff] }
 0x9f6   :  { %13584 = vmatpush1.bf16.msra.mxu0 %v18334_v56  ;;  %13514 = vmatprep.subr.bf16.mxu1 %v18335_v41  ;;  %v18383_v56 = vld [vmem:[#allocation135_spill] sm:$0xff]  ;;  %v18384_v41 = vld [vmem:[#allocation136_spill] sm:$0xff] }
 0x9f7   :  { %13586 = vmatprep.subr.bf16.mxu0 %v18336_v32  ;;  %v14227_v32 = vld [vmem:[#allocation2 + $0xa0] sm:$0xff] }
 0x9f9   :  { %13516 = vmatpush1.bf16.msra.mxu1 %v18337_v5  ;;  %v18385_v5 = vld [vmem:[#allocation137_spill] sm:$0xff] }
 0x9fa   :  { %13588 = vmatpush1.bf16.msra.mxu0 %v18338_v17  ;;  %13518 = vmatprep.subr.bf16.mxu1 %v18339_v47  ;;  %v9177_v17 = vsel %vm3129_vm7, %v9175_v8, %v9176_v25  ;;  %v18386_v47 = vld [vmem:[#allocation138_spill] sm:$0xff]  ;;  %v18432_v8 = vld [vmem:[#allocation184_spill] sm:$0xff]  ;;  %v18433_v25 = vld [vmem:[#allocation185_spill] sm:$0xff] }
 0x9fb   :  { %13590 = vmatprep.subr.bf16.mxu0 %v18340_v28  ;;  %v18387_v28 = vld [vmem:[#allocation139_spill] sm:$0xff] }
 0x9fd   :  { %13520 = vmatpush1.bf16.msra.mxu1 %v18341_v61  ;;  %v18388_v61 = vld [vmem:[#allocation140_spill] sm:$0xff] }
 0x9fe   :  { %13592 = vmatpush1.bf16.msra.mxu0 %v18342_v21  ;;  %13522 = vmatprep.subr.bf16.mxu1 %v18343_v38  ;;  %v18389_v21 = vld [vmem:[#allocation141_spill] sm:$0xff]  ;;  %v18390_v38 = vld [vmem:[#allocation142_spill] sm:$0xff] }
 0x9ff   :  { %13594 = vmatprep.subr.bf16.mxu0 %v18344_v26  ;;  %v18391_v26 = vld [vmem:[#allocation143_spill] sm:$0xff] }
 0xa01   :  { %13524 = vmatpush1.bf16.msra.mxu1 %v18345_v49  ;;  %v18392_v49 = vld [vmem:[#allocation144_spill] sm:$0xff] }
 0xa02   :  { %13596 = vmatpush1.bf16.msra.mxu0 %v18346_v46  ;;  %13526 = vmatprep.subr.bf16.mxu1 %v18347_v31  ;;  %v18393_v46 = vld [vmem:[#allocation145_spill] sm:$0xff]  ;;  %v18394_v31 = vld [vmem:[#allocation146_spill] sm:$0xff] }
 0xa03   :  { %13598 = vmatprep.subr.bf16.mxu0 %v18348_v24  ;;  %v18395_v24 = vld [vmem:[#allocation147_spill] sm:$0xff] }
 0xa05   :  { %13528 = vmatpush1.bf16.msra.mxu1 %v18349_v19  ;;  %v18396_v19 = vld [vmem:[#allocation148_spill] sm:$0xff] }
 0xa06   :  { %13600 = vmatpush1.bf16.msra.mxu0 %v18350_v16  ;;  %13530 = vmatprep.subr.bf16.mxu1 %v18351_v54  ;;  %v18397_v16 = vld [vmem:[#allocation149_spill] sm:$0xff]  ;;  %v18398_v54 = vld [vmem:[#allocation150_spill] sm:$0xff] }
 0xa07   :  { %13602 = vmatprep.subr.bf16.mxu0 %v18352_v42  ;;  %v18399_v42 = vld [vmem:[#allocation151_spill] sm:$0xff] }
 0xa09   :  { %13532 = vmatpush1.bf16.msra.mxu1 %v18353_v6  ;;  %v18400_v6 = vld [vmem:[#allocation152_spill] sm:$0xff] }
 0xa0a   :  { %13604 = vmatpush1.bf16.msra.mxu0 %v18354_v30  ;;  %13534 = vmatprep.subr.bf16.mxu1 %v18355_v35  ;;  %v18401_v30 = vld [vmem:[#allocation153_spill] sm:$0xff]  ;;  %v18402_v35 = vld [vmem:[#allocation154_spill] sm:$0xff] }
 0xa0b   :  { %13606 = vmatprep.subr.bf16.mxu0 %v18356_v15  ;;  %v18403_v15 = vld [vmem:[#allocation155_spill] sm:$0xff] }
 0xa0d   :  { %13536 = vmatpush1.bf16.msra.mxu1 %v18357_v48  ;;  %v18404_v48 = vld [vmem:[#allocation156_spill] sm:$0xff] }
 0xa0e   :  { %13608 = vmatpush1.bf16.msra.mxu0 %v18358_v10  ;;  %13538 = vmatprep.subr.bf16.mxu1 %v18359_v52  ;;  %v18405_v10 = vld [vmem:[#allocation157_spill] sm:$0xff]  ;;  %v18406_v52 = vld [vmem:[#allocation158_spill] sm:$0xff] }
 0xa0f   :  { %13610 = vmatprep.subr.bf16.mxu0 %v18360_v14  ;;  %v18407_v14 = vld [vmem:[#allocation159_spill] sm:$0xff] }
 0xa11   :  { %13540 = vmatpush1.bf16.msra.mxu1 %v18361_v44  ;;  %v18408_v44 = vld [vmem:[#allocation160_spill] sm:$0xff] }
 0xa12   :  { %13612 = vmatpush1.bf16.msra.mxu0 %v18362_v55  ;;  %13542 = vmatprep.subr.bf16.mxu1 %v18363_v0  ;;  %v18409_v55 = vld [vmem:[#allocation161_spill] sm:$0xff]  ;;  %v18410_v0 = vld [vmem:[#allocation162_spill] sm:$0xff] }
 0xa13   :  { %13614 = vmatprep.subr.bf16.mxu0 %v18364_v23  ;;  %v18411_v23 = vld [vmem:[#allocation163_spill] sm:$0xff] }
 0xa15   :  { %13544 = vmatpush1.bf16.msra.mxu1 %v18365_v63  ;;  %v18412_v63 = vld [vmem:[#allocation164_spill] sm:$0xff] }
 0xa16   :  { %13616 = vmatpush1.bf16.msra.mxu0 %v18366_v11  ;;  %13546 = vmatprep.subr.bf16.mxu1 %v18367_v50  ;;  %v18413_v11 = vld [vmem:[#allocation165_spill] sm:$0xff]  ;;  %v18414_v50 = vld [vmem:[#allocation166_spill] sm:$0xff] }
 0xa17   :  { %13618 = vmatprep.subr.bf16.mxu0 %v18368_v27  ;;  %v18415_v27 = vld [vmem:[#allocation167_spill] sm:$0xff] }
 0xa19   :  { %13548 = vmatpush1.bf16.msra.mxu1 %v18369_v45  ;;  %v18416_v45 = vld [vmem:[#allocation168_spill] sm:$0xff] }
 0xa1a   :  { %13620 = vmatpush1.bf16.msra.mxu0 %v18370_v7  ;;  %13550 = vmatprep.subr.bf16.mxu1 %v18371_v51  ;;  %v18417_v7 = vld [vmem:[#allocation169_spill] sm:$0xff]  ;;  %v18418_v51 = vld [vmem:[#allocation170_spill] sm:$0xff] }
 0xa1b   :  { %13622 = vmatprep.subr.bf16.mxu0 %v18372_v3  ;;  %v18419_v3 = vld [vmem:[#allocation171_spill] sm:$0xff] }
 0xa1d   :  { %13552 = vmatpush1.bf16.msra.mxu1 %v18373_v43  ;;  %v18420_v43 = vld [vmem:[#allocation172_spill] sm:$0xff] }
 0xa1e   :  { %13624 = vmatpush1.bf16.msra.mxu0 %v18374_v18  ;;  %13554 = vmatprep.subr.bf16.mxu1 %v18375_v13  ;;  %v18421_v18 = vld [vmem:[#allocation173_spill] sm:$0xff]  ;;  %v18422_v13 = vld [vmem:[#allocation174_spill] sm:$0xff] }
 0xa1f   :  { %13626 = vmatprep.subr.bf16.mxu0 %v18376_v36  ;;  %v18423_v36 = vld [vmem:[#allocation175_spill] sm:$0xff] }
 0xa20   :  { %8941 = vmatmul.mubr.f32.vlgmr.msra.gmra.mrb[30].mxu1 %v14226_v58 }
 0xa21   :  { %9083 = vmatmul.mubr.f32.vlgmr.msra.gmra.mrb[32].mxu0 %v14226_v58  ;;  %13556 = vmatpush1.bf16.msra.mxu1 %v18377_v2  ;;  %v18424_v58 = vld [vmem:[#allocation176_spill] sm:$0xff]  ;;  %v18425_v2 = vld [vmem:[#allocation177_spill] sm:$0xff] }
 0xa22   :  { %13628 = vmatpush1.bf16.msra.mxu0 %v18378_v33  ;;  %13558 = vmatprep.subr.bf16.mxu1 %v18379_v39  ;;  %v18426_v33 = vld [vmem:[#allocation178_spill] sm:$0xff]  ;;  %v18427_v39 = vld [vmem:[#allocation179_spill] sm:$0xff] }
 0xa23   :  { %13630 = vmatprep.subr.bf16.mxu0 %v18380_v20  ;;  %9011 = vmatprep.mubr.f32.mxu1 %v16629_v37  ;;  %v18430_v20 = vld [vmem:[#allocation182_spill] sm:$0xff] }
 0xa24   :  { %9153 = vmatprep.mubr.f32.mxu0 %v16629_v37 }
 0xa25   :  { %13560 = vmatpush1.bf16.msra.mxu1 %v18381_v57  ;;  %v18431_v57 = vld [vmem:[#allocation183_spill] sm:$0xff] }
 0xa26   :  { %13632 = vmatpush1.bf16.msra.mxu0 %v18382_v1  ;;  %13634 = vmatprep.subr.bf16.mxu1 %v18383_v56  ;;  %v18434_v1 = vld [vmem:[#allocation186_spill] sm:$0xff]  ;;  %v18435_v56 = vld [vmem:[#allocation187_spill] sm:$0xff] }
 0xa27   :  { %13706 = vmatprep.subr.bf16.mxu0 %v18384_v41  ;;  %v18436_v41 = vld [vmem:[#allocation188_spill] sm:$0xff] }
 0xa28   :  { %10621 = vmatmul.mubr.msk.f32.vlgmr.msra.gmra.mrb[30].mxu1 %vm136_vm4, %v14227_v32 }
 0xa29   :  { %10622 = vmatmul.mubr.msk.f32.vlgmr.msra.gmra.mrb[32].mxu0 %vm136_vm4, %v14227_v32  ;;  %13636 = vmatpush1.bf16.msra.mxu1 %v18385_v5  ;;  %v18437_v32 = vld [vmem:[#allocation189_spill] sm:$0xff]  ;;  %v18438_v5 = vld [vmem:[#allocation190_spill] sm:$0xff] }
 0xa2a   :  { %9249 = vmatprep.mubr.f32.mxu1 %v9177_v17  ;;  %13708 = vmatpush1.bf16.msra.mxu0 %v18386_v47  ;;  %v18440_v47 = vld [vmem:[#allocation192_spill] sm:$0xff] }
 0xa2b   :  { %9391 = vmatprep.mubr.f32.mxu0 %v9177_v17  ;;  %13638 = vmatprep.subr.bf16.mxu1 %v18387_v28  ;;  %v18439_v17 = vld [vmem:[#allocation191_spill] sm:$0xff]  ;;  %v9160_v28 = vld [vmem:[#allocation2 + $0x90] sm:$0xfe] }
 0xa2c   :  { %13710 = vmatprep.subr.bf16.mxu0 %v18388_v61  ;;  %v9163_v61 = vld [vmem:[#allocation2 + $0xa8] sm:$0x1] }
 0xa2d   :  { %13640 = vmatpush1.bf16.msra.mxu1 %v18389_v21  ;;  %v18441_v21 = vld [vmem:[#allocation193_spill] sm:$0xff] }
 0xa2e   :  { %13712 = vmatpush1.bf16.msra.mxu0 %v18390_v38  ;;  %13642 = vmatprep.subr.bf16.mxu1 %v18391_v26  ;;  %v18442_v38 = vld [vmem:[#allocation194_spill] sm:$0xff]  ;;  %v18443_v26 = vld [vmem:[#allocation195_spill] sm:$0xff] }
 0xa2f   :  { %13714 = vmatprep.subr.bf16.mxu0 %v18392_v49  ;;  %v9172_v49 = vrot.slane %v9160_v28, 1 }
 0xa31   :  { %13644 = vmatpush1.bf16.msra.mxu1 %v18393_v46  ;;  %v9173_v46 = vrot.slane %v9163_v61, 1  ;;  %v9492_v61 = vld [vmem:[#allocation11 + $0x38] sm:$0xff] }
 0xa32   :  { %13716 = vmatpush1.bf16.msra.mxu0 %v18394_v31  ;;  %13646 = vmatprep.subr.bf16.mxu1 %v18395_v24  ;;  %v18444_v31 = vld [vmem:[#allocation196_spill] sm:$0xff] }
 0xa33   :  { %13718 = vmatprep.subr.bf16.mxu0 %v18396_v19  ;;  %v18445_v24 = vld [vmem:[#allocation24_spill] sm:$0xff]  ;;  %v9162_v19 = vld [vmem:[#allocation2 + $0xa0] sm:$0xfe] }
 0xa35   :  { %13648 = vmatpush1.bf16.msra.mxu1 %v18397_v16  ;;  %v9165_v16 = vld [vmem:[#allocation2 + $0xb8] sm:$0x1] }
 0xa36   :  { %13720 = vmatpush1.bf16.msra.mxu0 %v18398_v54  ;;  %13650 = vmatprep.subr.bf16.mxu1 %v18399_v42  ;;  %v9174_v54 = vsel %vm3129_vm7, %v9172_v49, %v9173_v46  ;;  %v9533_v42 = vld [vmem:[#allocation11 + $0x180] sm:$0xff]  ;;  %v9510_v49 = vld [vmem:[#allocation11 + $0xc8] sm:$0xff] }
 0xa37   :  { %13722 = vmatprep.subr.bf16.mxu0 %v18400_v6  ;;  %v9534_v6 = vld [vmem:[#allocation11 + $0x188] sm:$0xff] }
 0xa39   :  { %13652 = vmatpush1.bf16.msra.mxu1 %v18401_v30  ;;  %v9502_v30 = vld [vmem:[#allocation11 + $0x88] sm:$0xff] }
 0xa3a   :  { %13724 = vmatpush1.bf16.msra.mxu0 %v18402_v35  ;;  %13654 = vmatprep.subr.bf16.mxu1 %v18403_v15  ;;  %v9178_v35 = vrot.slane %v9162_v19, 1  ;;  %v9179_v15 = vrot.slane %v9165_v16, 1  ;;  %v9525_v19 = vld [vmem:[#allocation11 + $0x140] sm:$0xff]  ;;  %v9526_v16 = vld [vmem:[#allocation11 + $0x148] sm:$0xff] }
 0xa3b   :  { %13726 = vmatprep.subr.bf16.mxu0 %v18404_v48  ;;  %v13777_v48 = vpack.c.bf16 %v9534_v6, %v9533_v42  ;;  %v9493_v42 = vld [vmem:[#allocation11 + $0x40] sm:$0xff]  ;;  %v9494_v6 = vld [vmem:[#allocation11 + $0x48] sm:$0xff] }
 0xa3d   :  { %13656 = vmatpush1.bf16.msra.mxu1 %v18405_v10  ;;  %v9517_v10 = vld [vmem:[#allocation11 + $0x100] sm:$0xff] }
 0xa3e   :  { %13728 = vmatpush1.bf16.msra.mxu0 %v18406_v52  ;;  %13658 = vmatprep.subr.bf16.mxu1 %v18407_v14  ;;  %v9518_v52 = vld [vmem:[#allocation11 + $0x108] sm:$0xff] }
 0xa3f   :  { %13730 = vmatprep.subr.bf16.mxu0 %v18408_v44 }
 0xa41   :  { %13660 = vmatpush1.bf16.msra.mxu1 %v18409_v55  ;;  %v9535_v55 = vld [vmem:[#allocation11 + $0x190] sm:$0xff] }
 0xa42   :  { %13732 = vmatpush1.bf16.msra.mxu0 %v18410_v0  ;;  %13662 = vmatprep.subr.bf16.mxu1 %v18411_v23  ;;  %v9536_v0 = vld [vmem:[#allocation11 + $0x198] sm:$0xff] }
 0xa43   :  { %13734 = vmatprep.subr.bf16.mxu0 %v18412_v63  ;;  %v9504_v63 = vld [vmem:[#allocation11 + $0x98] sm:$0xff] }
 0xa45   :  { %13664 = vmatpush1.bf16.msra.mxu1 %v18413_v11  ;;  %v9180_v11 = vsel %vm3129_vm7, %v9178_v35, %v9179_v15  ;;  %v13795_v35 = vpack.c.bf16 %v9526_v16, %v9525_v19  ;;  %v13827_v15 = vpack.c.bf16 %v9494_v6, %v9493_v42 }
 0xa46   :  { %13736 = vmatpush1.bf16.msra.mxu0 %v18414_v50  ;;  %13666 = vmatprep.subr.bf16.mxu1 %v18415_v27  ;;  %v13779_v50 = vpack.c.bf16 %v9518_v52, %v9517_v10  ;;  %v9487_v27 = vld [vmem:[#allocation11 + $0x10] sm:$0xff]  ;;  %v9496_v10 = vld [vmem:[#allocation11 + $0x58] sm:$0xff] }
 0xa47   :  { %13738 = vmatprep.subr.bf16.mxu0 %v18416_v45  ;;  %v13781_v45 = vpack.c.bf16 %v9536_v0, %v9535_v55  ;;  %v9527_v0 = vld [vmem:[#allocation11 + $0x150] sm:$0xff] }
 0xa49   :  { %13668 = vmatpush1.bf16.msra.mxu1 %v18417_v7  ;;  %v9519_v7 = vld [vmem:[#allocation11 + $0x110] sm:$0xff] }
 0xa4a   :  { %13740 = vmatpush1.bf16.msra.mxu0 %v18418_v51  ;;  %13670 = vmatprep.subr.bf16.mxu1 %v18419_v3  ;;  %v9520_v51 = vld [vmem:[#allocation11 + $0x118] sm:$0xff] }
 0xa4b   :  { %13742 = vmatprep.subr.bf16.mxu0 %v18420_v43  ;;  %v9488_v43 = vld [vmem:[#allocation11 + $0x18] sm:$0xff] }
 0xa4d   :  { %13672 = vmatpush1.bf16.msra.mxu1 %v18421_v18  ;;  %v9537_v18 = vld [vmem:[#allocation11 + $0x1a0] sm:$0xff] }
 0xa4e   :  { %13744 = vmatpush1.bf16.msra.mxu0 %v18422_v13  ;;  %13674 = vmatprep.subr.bf16.mxu1 %v18423_v36  ;;  %v9538_v13 = vld [vmem:[#allocation11 + $0x1a8] sm:$0xff]  ;;  %v9505_v36 = vld [vmem:[#allocation11 + $0xa0] sm:$0xff] }
 0xa4f   :  { %13746 = vmatprep.subr.bf16.mxu0 %v18424_v58  ;;  %v13783_v58 = vpack.c.bf16 %v9520_v51, %v9519_v7  ;;  %v9545_v51 = vld [vmem:[#allocation11 + $0x1e0] sm:$0xff] }
 0xa51   :  { %13676 = vmatpush1.bf16.msra.mxu1 %v18425_v2  ;;  %v9489_v2 = vld [vmem:[#allocation11 + $0x20] sm:$0xff] }
 0xa52   :  { %13748 = vmatpush1.bf16.msra.mxu0 %v18426_v33  ;;  %13678 = vmatprep.subr.bf16.mxu1 %v18427_v39  ;;  %v13785_v33 = vpack.c.bf16 %v9538_v13, %v9537_v18  ;;  %v9521_v39 = vld [vmem:[#allocation11 + $0x120] sm:$0xff]  ;;  %v9530_v13 = vld [vmem:[#allocation11 + $0x168] sm:$0xff] }
 0xa53   :  { %13750 = vmatprep.subr.bf16.mxu0 %v18428_v59  ;;  %v9522_v59 = vld [vmem:[#allocation11 + $0x128] sm:$0xff]  ;;  %v9529_v18 = vld [vmem:[#allocation11 + $0x160] sm:$0xff] }
 0xa55   :  { %13680 = vmatpush1.bf16.msra.mxu1 %v18429_v29 }
 0xa56   :  { %13752 = vmatpush1.bf16.msra.mxu0 %v18430_v20  ;;  %13682 = vmatprep.subr.bf16.mxu1 %v18431_v57  ;;  %v9490_v20 = vld [vmem:[#allocation11 + $0x28] sm:$0xff]  ;;  %v9539_v57 = vld [vmem:[#allocation11 + $0x1b0] sm:$0xff] }
 0xa57   :  { %13754 = vmatprep.subr.bf16.mxu0 %v18432_v8  ;;  %v9540_v8 = vld [vmem:[#allocation11 + $0x1b8] sm:$0xff] }
 0xa59   :  { %13684 = vmatpush1.bf16.msra.mxu1 %v18433_v25  ;;  %v9507_v25 = vld [vmem:[#allocation11 + $0xb0] sm:$0xff] }
 0xa5a   :  { %13756 = vmatpush1.bf16.msra.mxu0 %v18434_v1  ;;  %13686 = vmatprep.subr.bf16.mxu1 %v18435_v56  ;;  %v9508_v1 = vld [vmem:[#allocation11 + $0xb8] sm:$0xff]  ;;  %v13787_v56 = vpack.c.bf16 %v9522_v59, %v9521_v39  ;;  %v9547_v59 = vld [vmem:[#allocation11 + $0x1f0] sm:$0xff] }
 0xa5b   :  { %13758 = vmatprep.subr.bf16.mxu0 %v18436_v41  ;;  %v13819_v41 = vpack.c.bf16 %v9490_v20, %v9489_v2  ;;  %v13821_v28 = vpack.c.bf16 %v9508_v1, %v9507_v25  ;;  %v9499_v2 = vld [vmem:[#allocation11 + $0x70] sm:$0xff]  ;;  %v9818_v1 = vld [vmem:[#allocation11 + $0x380] sm:$0xff] }
 0xa5d   :  { %13688 = vmatpush1.bf16.msra.mxu1 %v18437_v32  ;;  %v9491_v32 = vld [vmem:[#allocation11 + $0x30] sm:$0xff] }
 0xa5e   :  { %13760 = vmatpush1.bf16.msra.mxu0 %v18438_v5  ;;  %13690 = vmatprep.subr.bf16.mxu1 %v18439_v17  ;;  %v13789_v5 = vpack.c.bf16 %v9540_v8, %v9539_v57  ;;  %v9523_v17 = vld [vmem:[#allocation11 + $0x130] sm:$0xff]  ;;  %v9532_v8 = vld [vmem:[#allocation11 + $0x178] sm:$0xff] }
 0xa5f   :  { %13762 = vmatprep.subr.bf16.mxu0 %v18440_v47  ;;  %v9524_v47 = vld [vmem:[#allocation11 + $0x138] sm:$0xff]  ;;  %v9531_v57 = vld [vmem:[#allocation11 + $0x170] sm:$0xff] }
 0xa60   :  { %v13791_v46 = vpack.c.bf16 %v9524_v47, %v9523_v17  ;;  %v13807_v25 = vpack.c.bf16 %v9532_v8, %v9531_v57  ;;  %v8566_v47 = vld [vmem:[#allocation9] sm:$0xf]  ;;  %v9806_v8 = vld [vmem:[#allocation11 + $0x320] sm:$0xff] }
 0xa61   :  { %13692 = vmatpush1.bf16.msra.mxu1 %v18441_v21  ;;  %v9541_v21 = vld [vmem:[#allocation11 + $0x1c0] sm:$0xff] }
 0xa62   :  { %13764 = vmatpush1.bf16.msra.mxu0 %v18442_v38  ;;  %13694 = vmatprep.subr.bf16.mxu1 %v17041_v60  ;;  %v9501_v60 = vld [vmem:[#allocation11 + $0x80] sm:$0xff]  ;;  %v9542_v38 = vld [vmem:[#allocation11 + $0x1c8] sm:$0xff] }
 0xa63   :  { %13766 = vmatprep.subr.bf16.mxu0 %v18443_v26  ;;  %v13809_v44 = vpack.c.bf16 %v9502_v30, %v9501_v60  ;;  %v9509_v26 = vld [vmem:[#allocation11 + $0xc0] sm:$0xff]  ;;  %v9511_v60 = vld [vmem:[#allocation11 + $0xd0] sm:$0xff]  ;;  %v9512_v30 = vld [vmem:[#allocation11 + $0xd8] sm:$0xff] }
 0xa65   :  { %13696 = vmatpush1.bf16.msra.mxu1 %v18444_v31  ;;  %v13823_v31 = vpack.c.bf16 %v9492_v61, %v9491_v32  ;;  %v9711_v32 = vld [vmem:[#allocation11 + $0x280] sm:$0xff] }
 0xa66   :  { %13768 = vmatpush1.bf16.msra.mxu0 %v18445_v24  ;;  %13698 = vmatprep.subr.bf16.mxu1 %v17053_v34  ;;  %v9485_v34 = vld [vmem:[#allocation11] sm:$0xff]  ;;  %v13793_v24 = vpack.c.bf16 %v9542_v38, %v9541_v21  ;;  %v18447_v21 = vld [vmem:[#allocation26_spill] sm:$0xff] }
 0xa67   :  { %13770 = vmatprep.subr.bf16.mxu0 %v17055_v53  ;;  %v8579_v38 = vrot.slane %v8566_v47, %v18447_v21 }
 0xa68   :  { %9250 = vmatmul.mubr.f32.vlgmr.msra.gmra.mrb[30].mxu1 %v9174_v54 }
 0xa69   :  { %9392 = vmatmul.mubr.f32.vlgmr.msra.gmra.mrb[32].mxu0 %v9174_v54  ;;  %13700 = vmatpush1.bf16.msra.mxu1 %v17059_v40  ;;  %v9486_v40 = vld [vmem:[#allocation11 + $0x8] sm:$0xff]  ;;  %v13825_v54 = vpack.c.bf16 %v9510_v49, %v9509_v26  ;;  %v18448_v26 = vld [vmem:[#allocation27_spill] sm:$0xff] }
 0xa6a   :  { %13772 = vmatpush1.bf16.msra.mxu0 %v17061_v9  ;;  %13702 = vmatprep.subr.bf16.mxu1 %v17065_v4  ;;  %v9503_v4 = vld [vmem:[#allocation11 + $0x90] sm:$0xff]  ;;  %v8575_v49 = vrot.slane %v8566_v47, %v18448_v26  ;;  %v9809_v26 = vld [vmem:[#allocation11 + $0x338] sm:$0xff] }
 0xa6b   :  { %v17322_v14 = vpop.f32.mrb[28].mxu1  ;;  %v17324_v53 = vpop.f32.mrb[30].mxu0  ;;  %13774 = vmatprep.subr.bf16.mxu0 %v17067_v12  ;;  %9320 = vmatprep.mubr.f32.mxu1 %v16629_v37  ;;  %v13811_v12 = vpack.c.bf16 %v9486_v40, %v9485_v34  ;;  %v13813_v3 = vpack.c.bf16 %v9504_v63, %v9503_v4  ;;  %v13829_v34 = vpack.c.bf16 %v9512_v30, %v9511_v60  ;;  %v9544_v40 = vld [vmem:[#allocation11 + $0x1d8] sm:$0xff] }
 0xa6c   :  { %v17328_v23 = vpop.f32.mrb[29].mxu1  ;;  %v17330_v9 = vpop.f32.mrb[31].mxu0  ;;  %9462 = vmatprep.mubr.f32.mxu0 %v16629_v37  ;;  %v9528_v4 = vld [vmem:[#allocation11 + $0x158] sm:$0xff]  ;;  %v8590_v6 = vadd.f32 %v8579_v38, %v17324_v53  ;;  %v9696_v53 = vld [vmem:[#allocation11 + $0x208] sm:$0xff] }
 0xa6d   :  { %13704 = vmatpush1.bf16.msra.mxu1 %v17076_v62  ;;  %v9506_v62 = vld [vmem:[#allocation11 + $0xa8] sm:$0xff]  ;;  %v13799_v63 = vpack.c.bf16 %v9528_v4, %v9527_v0  ;;  %v8589_v60 = vadd.f32 %v8575_v49, %v17328_v23  ;;  %v9802_v0 = vld [vmem:[#allocation11 + $0x300] sm:$0xff] }
 0xa6e   :  { %13776 = vmatpush1.bf16.msra.mxu0 %v17078_v22  ;;  %13778 = vmatprep.subr.bf16.mxu1 %v13777_v48  ;;  %v13815_v22 = vpack.c.bf16 %v9488_v43, %v9487_v27  ;;  %v13817_v29 = vpack.c.bf16 %v9506_v62, %v9505_v36  ;;  %v9495_v48 = vld [vmem:[#allocation11 + $0x50] sm:$0xff]  ;;  %v9497_v27 = vld [vmem:[#allocation11 + $0x60] sm:$0xff]  ;;  %v13803_v36 = vpack.c.bf16 %v9530_v13, %v9529_v18 }
 0xa6f   :  { %13810 = vmatprep.subr.bf16.mxu0 %v13809_v44  ;;  %v13831_v52 = vpack.c.bf16 %v9496_v10, %v9495_v48  ;;  %v9543_v44 = vld [vmem:[#allocation11 + $0x1d0] sm:$0xff]  ;;  %v9822_v13 = vld [vmem:[#allocation11 + $0x3a0] sm:$0xff] }
 0xa70   :  { %10623 = vmatmul.mubr.msk.f32.vlgmr.msra.gmra.mrb[30].mxu1 %vm136_vm4, %v9180_v11  ;;  %v13797_v55 = vpack.c.bf16 %v9544_v40, %v9543_v44  ;;  %v9515_v62 = vld [vmem:[#allocation11 + $0xf0] sm:$0xff] }
 0xa71   :  { %10624 = vmatmul.mubr.msk.f32.vlgmr.msra.gmra.mrb[32].mxu0 %vm136_vm4, %v9180_v11  ;;  %13780 = vmatpush3.bf16.msra.mxu1 %v13779_v50  ;;  %v9513_v11 = vld [vmem:[#allocation11 + $0xe0] sm:$0xff]  ;;  %v9514_v50 = vld [vmem:[#allocation11 + $0xe8] sm:$0xff] }
 0xa72   :  { %13812 = vmatpush3.bf16.msra.mxu0 %v13811_v12  ;;  %13782 = vmatprep.subr.bf16.mxu1 %v13781_v45  ;;  %v13833_v12 = vpack.c.bf16 %v9514_v50, %v9513_v11  ;;  %v9498_v45 = vld [vmem:[#allocation11 + $0x68] sm:$0xff]  ;;  %v9695_v11 = vld [vmem:[#allocation11 + $0x200] sm:$0xff]  ;;  %v9820_v50 = vld [vmem:[#allocation11 + $0x390] sm:$0xff] }
 0xa73   :  { %13814 = vmatprep.subr.bf16.mxu0 %v13813_v3  ;;  %v13835_v7 = vpack.c.bf16 %v9498_v45, %v9497_v27  ;;  %v9546_v3 = vld [vmem:[#allocation11 + $0x1e8] sm:$0xff]  ;;  %v9821_v27 = vld [vmem:[#allocation11 + $0x398] sm:$0xff]  ;;  %v9713_v45 = vld [vmem:[#allocation11 + $0x290] sm:$0xff]  ;;  %v13843_v18 = vpack.c.bf16 %v9696_v53, %v9695_v11 }
 0xa74   :  { %v13801_v43 = vpack.c.bf16 %v9546_v3, %v9545_v51  ;;  %v9805_v51 = vld [vmem:[#allocation11 + $0x318] sm:$0xff] }
 0xa75   :  { %13784 = vmatpush3.bf16.msra.mxu1 %v13783_v58  ;;  %v9516_v58 = vld [vmem:[#allocation11 + $0xf8] sm:$0xff] }
 0xa76   :  { %13816 = vmatpush3.bf16.msra.mxu0 %v13815_v22  ;;  %13786 = vmatprep.subr.bf16.mxu1 %v13785_v33  ;;  %v13837_v22 = vpack.c.bf16 %v9516_v58, %v9515_v62  ;;  %v9500_v33 = vld [vmem:[#allocation11 + $0x78] sm:$0xff]  ;;  %v13877_v58 = vpack.c.bf16 %v9821_v27, %v9820_v50  ;;  %v9830_v50 = vld [vmem:[#allocation11 + $0x3e0] sm:$0xff] }
 0xa77   :  { %13818 = vmatprep.subr.bf16.mxu0 %v13817_v29  ;;  %v13839_v39 = vpack.c.bf16 %v9500_v33, %v9499_v2  ;;  %v9548_v29 = vld [vmem:[#allocation11 + $0x1f8] sm:$0xff]  ;;  %v9697_v2 = vld [vmem:[#allocation11 + $0x210] sm:$0xff] }
 0xa78   :  { %v13805_v20 = vpack.c.bf16 %v9548_v29, %v9547_v59  ;;  %v9698_v33 = vld [vmem:[#allocation11 + $0x218] sm:$0xff]  ;;  %v9715_v29 = vld [vmem:[#allocation11 + $0x2a0] sm:$0xff] }
 0xa79   :  { %13788 = vmatpush3.bf16.msra.mxu1 %v13787_v56  ;;  %v9819_v56 = vld [vmem:[#allocation11 + $0x388] sm:$0xff]  ;;  %v9813_v11 = vld [vmem:[#allocation11 + $0x358] sm:$0xff] }
 0xa7a   :  { %13820 = vmatpush3.bf16.msra.mxu0 %v13819_v41  ;;  %13790 = vmatprep.subr.bf16.mxu1 %v13789_v5  ;;  %v13873_v41 = vpack.c.bf16 %v9819_v56, %v9818_v1  ;;  %v9712_v5 = vld [vmem:[#allocation11 + $0x288] sm:$0xff]  ;;  %v13847_v1 = vpack.c.bf16 %v9698_v33, %v9697_v2  ;;  %v9824_v56 = vld [vmem:[#allocation11 + $0x3b0] sm:$0xff]  ;;  %v9707_v2 = vld [vmem:[#allocation11 + $0x260] sm:$0xff] }
 0xa7b   :  { %13822 = vmatprep.subr.bf16.mxu0 %v13821_v28  ;;  %v13841_v17 = vpack.c.bf16 %v9712_v5, %v9711_v32  ;;  %v18446_v28 = vld [vmem:[#allocation25_spill] sm:$0xff]  ;;  %v9699_v5 = vld [vmem:[#allocation11 + $0x220] sm:$0xff] }
 0xa7c   :  { %v8571_v61 = vrot.slane %v8566_v47, %v18446_v28  ;;  %v9717_v28 = vld [vmem:[#allocation11 + $0x2b0] sm:$0xff]  ;;  %v9708_v33 = vld [vmem:[#allocation11 + $0x268] sm:$0xff] }
 0xa7d   :  { %13792 = vmatpush3.bf16.msra.mxu1 %v13791_v46  ;;  %v18449_v46 = vld [vmem:[#allocation28_spill] sm:$0xff] }
 0xa7e   :  { %13824 = vmatpush3.bf16.msra.mxu0 %v13823_v31  ;;  %13794 = vmatprep.subr.bf16.mxu1 %v13793_v24  ;;  %v8583_v31 = vrot.slane %v8566_v47, %v18449_v46  ;;  %v8588_v19 = vadd.f32 %v8571_v61, %v17322_v14  ;;  %v9803_v14 = vld [vmem:[#allocation11 + $0x308] sm:$0xff]  ;;  %v9826_v46 = vld [vmem:[#allocation11 + $0x3c0] sm:$0xff] }
 0xa7f   :  { %13826 = vmatprep.subr.bf16.mxu0 %v13825_v54 }
 0xa81   :  { %13796 = vmatpush3.bf16.msra.mxu1 %v13795_v35 }
 0xa82   :  { %13828 = vmatpush3.bf16.msra.mxu0 %v13827_v15  ;;  %13798 = vmatprep.subr.bf16.mxu1 %v13797_v55 }
 0xa83   :  { %13830 = vmatprep.subr.bf16.mxu0 %v13829_v34  ;;  %v8591_v34 = vadd.f32 %v8583_v31, %v17330_v9  ;;  %v9714_v9 = vld [vmem:[#allocation11 + $0x298] sm:$0xff] }
 0xa85   :  { %13800 = vmatpush3.bf16.msra.mxu1 %v13799_v63 }
 0xa86   :  { %13832 = vmatpush3.bf16.msra.mxu0 %v13831_v52  ;;  %13802 = vmatprep.subr.bf16.mxu1 %v13801_v43 }
 0xa87   :  { %13834 = vmatprep.subr.bf16.mxu0 %v13833_v12  ;;  %v13875_v12 = vpack.c.bf16 %v9803_v14, %v9802_v0  ;;  %v9722_v0 = vld [vmem:[#allocation11 + $0x2d8] sm:$0xff] }
 0xa89   :  { %13804 = vmatpush3.bf16.msra.mxu1 %v13803_v36  ;;  %v9823_v36 = vld [vmem:[#allocation11 + $0x3a8] sm:$0xff] }
 0xa8a   :  { %13836 = vmatpush3.bf16.msra.mxu0 %v13835_v7  ;;  %13806 = vmatprep.subr.bf16.mxu1 %v13805_v20  ;;  %v9804_v7 = vld [vmem:[#allocation11 + $0x310] sm:$0xff]  ;;  %v9716_v20 = vld [vmem:[#allocation11 + $0x2a8] sm:$0xff]  ;;  %v13881_v57 = vpack.c.bf16 %v9823_v36, %v9822_v13 }
 0xa8b   :  { %13838 = vmatprep.subr.bf16.mxu0 %v13837_v22  ;;  %v13845_v22 = vpack.c.bf16 %v9714_v9, %v9713_v45  ;;  %v13879_v59 = vpack.c.bf16 %v9805_v51, %v9804_v7  ;;  %v13849_v32 = vpack.c.bf16 %v9716_v20, %v9715_v29  ;;  %v9705_v45 = vld [vmem:[#allocation11 + $0x250] sm:$0xff]  ;;  %v9706_v9 = vld [vmem:[#allocation11 + $0x258] sm:$0xff]  ;;  %v9723_v51 = vld [vmem:[#allocation11 + $0x2e0] sm:$0xff] }
 0xa8c   :  { %v9815_v13 = vld [vmem:[#allocation11 + $0x368] sm:$0xff]  ;;  %v13863_v36 = vpack.c.bf16 %v9706_v9, %v9705_v45  ;;  %v9726_v29 = vld [vmem:[#allocation11 + $0x2f8] sm:$0xff]  ;;  %v10038_v45 = vld [vmem:[#allocation11 + $0x5b0] sm:$0xff] }
 0xa8d   :  { %13808 = vmatpush3.bf16.msra.mxu1 %v13807_v25  ;;  %v9807_v25 = vld [vmem:[#allocation11 + $0x328] sm:$0xff]  ;;  %v10039_v9 = vld [vmem:[#allocation11 + $0x5b8] sm:$0xff] }
 0xa8e   :  { %13840 = vmatpush3.bf16.msra.mxu0 %v13839_v39  ;;  %13842 = vmatprep.subr.bf16.mxu1 %v13841_v17  ;;  %v9700_v17 = vld [vmem:[#allocation11 + $0x228] sm:$0xff]  ;;  %v13883_v47 = vpack.c.bf16 %v9807_v25, %v9806_v8  ;;  %v9817_v8 = vld [vmem:[#allocation11 + $0x378] sm:$0xff]  ;;  %v13867_v25 = vpack.c.bf16 %v9708_v33, %v9707_v2  ;;  %v10040_v2 = vld [vmem:[#allocation11 + $0x5c0] sm:$0xff] }
 0xa8f   :  { %13874 = vmatprep.subr.bf16.mxu0 %v13873_v41  ;;  %v9825_v41 = vld [vmem:[#allocation11 + $0x3b8] sm:$0xff]  ;;  %v10041_v33 = vld [vmem:[#allocation11 + $0x5c8] sm:$0xff] }
 0xa90   :  { %v13885_v21 = vpack.c.bf16 %v9825_v41, %v9824_v56  ;;  %v10033_v56 = vld [vmem:[#allocation11 + $0x588] sm:$0xff] }
 0xb43   :  { %v9322_v24 = vpop.f32.mrb[30].mxu1 }
 0xb44   :  { %v9473_v16 = vadd.f32 %v9322_v24, %v8571_v61  ;;  %v9464_v54 = vpop.f32.mrb[32].mxu0  ;;  %v9324_v42 = vpop.f32.mrb[31].mxu1  ;;  %v9718_v61 = vld [vmem:[#allocation11 + $0x2b8] sm:$0xff] }
 0xb45   :  { %v9475_v30 = vadd.f32 %v9464_v54, %v8579_v38  ;;  %v9474_v35 = vadd.f32 %v9324_v42, %v8575_v49  ;;  %v9466_v15 = vpop.f32.mrb[33].mxu0  ;;  %v9808_v38 = vld [vmem:[#allocation11 + $0x330] sm:$0xff]  ;;  %v13851_v49 = vpack.c.bf16 %v9700_v17, %v9699_v5  ;;  %v13853_v24 = vpack.c.bf16 %v9718_v61, %v9717_v28  ;;  %v9719_v42 = vld [vmem:[#allocation11 + $0x2c0] sm:$0xff]  ;;  %v9710_v5 = vld [vmem:[#allocation11 + $0x278] sm:$0xff] }
 0xb46   :  { %v9477_v48 = vmax.f32 %v8588_v19, %v9473_v16  ;;  %v9476_v10 = vadd.f32 %v9466_v15, %v8583_v31  ;;  %v9827_v31 = vld [vmem:[#allocation11 + $0x3c8] sm:$0xff]  ;;  %v9701_v19 = vld [vmem:[#allocation11 + $0x230] sm:$0xff]  ;;  %v9702_v16 = vld [vmem:[#allocation11 + $0x238] sm:$0xff]  ;;  %v13887_v54 = vpack.c.bf16 %v9809_v26, %v9808_v38 }
 0xb47   :  { %v9479_v52 = vmax.f32 %v8590_v6, %v9475_v30  ;;  %v9478_v44 = vmax.f32 %v8589_v60, %v9474_v35  ;;  %v9720_v6 = vld [vmem:[#allocation11 + $0x2c8] sm:$0xff]  ;;  %v13889_v60 = vpack.c.bf16 %v9827_v31, %v9826_v46  ;;  %v9810_v30 = vld [vmem:[#allocation11 + $0x340] sm:$0xff]  ;;  %v13855_v15 = vpack.c.bf16 %v9702_v16, %v9701_v19  ;;  %v10035_v46 = vld [vmem:[#allocation11 + $0x598] sm:$0xff] }
 0xb48   :  { %v9480_v40 = vmax.f32 %v8591_v34, %v9476_v10  ;;  %v9811_v35 = vld [vmem:[#allocation11 + $0x348] sm:$0xff]  ;;  %v9828_v34 = vld [vmem:[#allocation11 + $0x3d0] sm:$0xff]  ;;  %v13857_v10 = vpack.c.bf16 %v9720_v6, %v9719_v42  ;;  %v9928_v42 = vld [vmem:[#allocation11 + $0x498] sm:$0xff] }
 0xb49   :  { %v9481_v55 = vmax.f32 %v9477_v48, %v9479_v52  ;;  %v9829_v48 = vld [vmem:[#allocation11 + $0x3d8] sm:$0xff]  ;;  %v9703_v52 = vld [vmem:[#allocation11 + $0x240] sm:$0xff]  ;;  %v9926_v28 = vld [vmem:[#allocation11 + $0x488] sm:$0xff] }
 0xb4a   :  { %v9482_v4 = vmax.f32 %v9478_v44, %v9480_v40  ;;  %v9704_v44 = vld [vmem:[#allocation11 + $0x248] sm:$0xff]  ;;  %v13891_v40 = vpack.c.bf16 %v9811_v35, %v9810_v30  ;;  %v13893_v14 = vpack.c.bf16 %v9829_v48, %v9828_v34  ;;  %v10018_v30 = vld [vmem:[#allocation11 + $0x510] sm:$0xff]  ;;  %v10019_v35 = vld [vmem:[#allocation11 + $0x518] sm:$0xff] }
 0xb4b   :  { %v17346_v63 = vmax.f32 %v9481_v55, 0.0  ;;  %v9721_v55 = vld [vmem:[#allocation11 + $0x2d0] sm:$0xff]  ;;  %v13859_v53 = vpack.c.bf16 %v9704_v44, %v9703_v52  ;;  %v10017_v38 = vld [vmem:[#allocation11 + $0x508] sm:$0xff]  ;;  %v10036_v48 = vld [vmem:[#allocation11 + $0x5a0] sm:$0xff] }
 0xb4c   :  { %v17348_v23 = vmax.f32 %v9482_v4, 0.0  ;;  %v9812_v4 = vld [vmem:[#allocation11 + $0x350] sm:$0xff]  ;;  %v13861_v27 = vpack.c.bf16 %v9722_v0, %v9721_v55  ;;  %v9910_v19 = vld [vmem:[#allocation11 + $0x408] sm:$0xff]  ;;  %v9912_v55 = vld [vmem:[#allocation11 + $0x418] sm:$0xff] }
 0xb4d   :  { %v9551_v62 = vrot.slane %v17346_v63, 1  ;;  %v13895_v7 = vpack.c.bf16 %v9813_v11, %v9812_v4  ;;  %v9834_v6 = vrot.slane %v17346_v63, 3  ;;  %v9727_v52 = vrot.slane %v17346_v63, 2  ;;  %v9929_v4 = vld [vmem:[#allocation11 + $0x4a0] sm:$0xff]  ;;  %v9930_v11 = vld [vmem:[#allocation11 + $0x4a8] sm:$0xff] }
 0xb4e   :  { %9689 = vmatprep.mubr.f32.mxu0 %v17348_v23  ;;  %v9552_v3 = vrot.slane %v17348_v23, 1  ;;  %v9835_v43 = vrot.slane %v17348_v23, 3  ;;  %v9728_v39 = vrot.slane %v17348_v23, 2  ;;  %v9942_v0 = vrot.slane %v17348_v23, 4 }
 0xb4f   :  { %9690 = vmatmul.mubr.f32.vlgmr.msra.gmra.mrb[34].mxu0 %v17346_v63 }
 0xb50   :  { %13876 = vmatpush3.bf16.msra.mxu0 %v13875_v12  ;;  %9619 = vmatprep.mubr.f32.mxu1 %v9552_v3  ;;  %v9831_v12 = vld [vmem:[#allocation11 + $0x3e8] sm:$0xff] }
 0xb51   :  { %9902 = vmatprep.mubr.f32.mxu0 %v9835_v43  ;;  %9620 = vmatmul.mubr.f32.vlgmr.msra.gmra.mrb[32].mxu1 %v9551_v62  ;;  %v9724_v3 = vld [vmem:[#allocation11 + $0x2e8] sm:$0xff]  ;;  %v13897_v43 = vpack.c.bf16 %v9831_v12, %v9830_v50  ;;  %v9832_v62 = vld [vmem:[#allocation11 + $0x3f0] sm:$0xff]  ;;  %v10020_v50 = vld [vmem:[#allocation11 + $0x520] sm:$0xff] }
 0xb52   :  { %13844 = vmatpush3.bf16.msra.mxu1 %v13843_v18  ;;  %9795 = vmatprep.mubr.f32.mxu1 %v9728_v39  ;;  %v9814_v18 = vld [vmem:[#allocation11 + $0x360] sm:$0xff]  ;;  %v10021_v12 = vld [vmem:[#allocation11 + $0x528] sm:$0xff] }
 0xb53   :  { %13878 = vmatprep.subr.bf16.mxu0 %v13877_v58  ;;  %13846 = vmatprep.subr.bf16.mxu1 %v13845_v22  ;;  %v9833_v58 = vld [vmem:[#allocation11 + $0x3f8] sm:$0xff]  ;;  %v13865_v22 = vpack.c.bf16 %v9724_v3, %v9723_v51  ;;  %v13899_v39 = vpack.c.bf16 %v9815_v13, %v9814_v18  ;;  %v9913_v51 = vld [vmem:[#allocation11 + $0x420] sm:$0xff]  ;;  %v9914_v3 = vld [vmem:[#allocation11 + $0x428] sm:$0xff] }
 0xb54   :  { %13880 = vmatpush3.bf16.msra.mxu0 %v13879_v59  ;;  %v9725_v59 = vld [vmem:[#allocation11 + $0x2f0] sm:$0xff]  ;;  %v13901_v20 = vpack.c.bf16 %v9833_v58, %v9832_v62  ;;  %v9932_v13 = vld [vmem:[#allocation11 + $0x4b8] sm:$0xff] }
 0xb55   :  { %13882 = vmatprep.subr.bf16.mxu0 %v13881_v57  ;;  %v9816_v57 = vld [vmem:[#allocation11 + $0x370] sm:$0xff]  ;;  %v13869_v41 = vpack.c.bf16 %v9726_v29, %v9725_v59  ;;  %v10023_v58 = vld [vmem:[#allocation11 + $0x538] sm:$0xff] }
 0xb56   :  { %13848 = vmatpush3.bf16.msra.mxu1 %v13847_v1  ;;  %v10032_v1 = vld [vmem:[#allocation11 + $0x580] sm:$0xff]  ;;  %v13903_v17 = vpack.c.bf16 %v9817_v8, %v9816_v57  ;;  %v9931_v18 = vld [vmem:[#allocation11 + $0x4b0] sm:$0xff]  ;;  %v9916_v29 = vld [vmem:[#allocation11 + $0x438] sm:$0xff] }
 0xb57   :  { %13850 = vmatprep.subr.bf16.mxu1 %v13849_v32  ;;  %v9709_v32 = vld [vmem:[#allocation11 + $0x270] sm:$0xff]  ;;  %v13937_v61 = vpack.c.bf16 %v10033_v56, %v10032_v1  ;;  %v9933_v57 = vld [vmem:[#allocation11 + $0x4c0] sm:$0xff]  ;;  %v9934_v8 = vld [vmem:[#allocation11 + $0x4c8] sm:$0xff] }
 0xb58   :  { %13884 = vmatpush3.bf16.msra.mxu0 %v13883_v47  ;;  %v9925_v47 = vld [vmem:[#allocation11 + $0x480] sm:$0xff]  ;;  %v13871_v26 = vpack.c.bf16 %v9710_v5, %v9709_v32  ;;  %v10022_v62 = vld [vmem:[#allocation11 + $0x530] sm:$0xff]  ;;  %v10025_v56 = vld [vmem:[#allocation11 + $0x548] sm:$0xff] }
 0xb59   :  { %13886 = vmatprep.subr.bf16.mxu0 %v13885_v21  ;;  %v10016_v21 = vld [vmem:[#allocation11 + $0x500] sm:$0xff]  ;;  %v13905_v31 = vpack.c.bf16 %v9926_v28, %v9925_v47  ;;  %v9915_v59 = vld [vmem:[#allocation11 + $0x430] sm:$0xff]  ;;  %v10043_v5 = vld [vmem:[#allocation11 + $0x5d8] sm:$0xff] }
 0xb5a   :  { %13852 = vmatpush3.bf16.msra.mxu1 %v13851_v49  ;;  %v10034_v49 = vld [vmem:[#allocation11 + $0x590] sm:$0xff]  ;;  %v13939_v16 = vpack.c.bf16 %v10017_v38, %v10016_v21  ;;  %v10024_v1 = vld [vmem:[#allocation11 + $0x540] sm:$0xff]  ;;  %v9918_v28 = vld [vmem:[#allocation11 + $0x448] sm:$0xff] }
 0xb5b   :  { %13854 = vmatprep.subr.bf16.mxu1 %v13853_v24  ;;  %v9909_v24 = vld [vmem:[#allocation11 + $0x400] sm:$0xff]  ;;  %v10042_v32 = vld [vmem:[#allocation11 + $0x5d0] sm:$0xff]  ;;  %v9936_v38 = vld [vmem:[#allocation11 + $0x4d8] sm:$0xff] }
 0xb5c   :  { %13888 = vmatpush3.bf16.msra.mxu0 %v13887_v54  ;;  %v9927_v54 = vld [vmem:[#allocation11 + $0x490] sm:$0xff]  ;;  %v13907_v34 = vpack.c.bf16 %v9910_v19, %v9909_v24  ;;  %v9917_v47 = vld [vmem:[#allocation11 + $0x440] sm:$0xff]  ;;  %v10045_v19 = vld [vmem:[#allocation11 + $0x5e8] sm:$0xff] }
 0xb5d   :  { %13890 = vmatprep.subr.bf16.mxu0 %v13889_v60  ;;  %v13941_v60 = vpack.c.bf16 %v10035_v46, %v10034_v49  ;;  %v13909_v44 = vpack.c.bf16 %v9928_v42, %v9927_v54  ;;  %v9935_v21 = vld [vmem:[#allocation11 + $0x4d0] sm:$0xff]  ;;  %v10027_v46 = vld [vmem:[#allocation11 + $0x558] sm:$0xff]  ;;  %v10044_v24 = vld [vmem:[#allocation11 + $0x5e0] sm:$0xff] }
 0xb5e   :  { %13856 = vmatpush3.bf16.msra.mxu1 %v13855_v15  ;;  %v10049_v15 = vrot.slane %v17348_v23, 5  ;;  %v10026_v49 = vld [vmem:[#allocation11 + $0x550] sm:$0xff]  ;;  %v9920_v42 = vld [vmem:[#allocation11 + $0x458] sm:$0xff] }
 0xb5f   :  { %13858 = vmatprep.subr.bf16.mxu1 %v13857_v10  ;;  %v10037_v10 = vld [vmem:[#allocation11 + $0x5a8] sm:$0xff]  ;;  %v9919_v54 = vld [vmem:[#allocation11 + $0x450] sm:$0xff] }
 0xb60   :  { %13892 = vmatpush3.bf16.msra.mxu0 %v13891_v40  ;;  %v9911_v40 = vld [vmem:[#allocation11 + $0x410] sm:$0xff] }
 0xb61   :  { %13894 = vmatprep.subr.bf16.mxu0 %v13893_v14  ;;  %v13943_v14 = vpack.c.bf16 %v10019_v35, %v10018_v30  ;;  %v9938_v30 = vld [vmem:[#allocation11 + $0x4e8] sm:$0xff]  ;;  %v13961_v35 = vpack.c.bf16 %v10045_v19, %v10044_v24  ;;  %v10234_v24 = vld [vmem:[#allocation11 + $0x720] sm:$0xff] }
 0xb62   :  { %13860 = vmatpush3.bf16.msra.mxu1 %v13859_v53  ;;  %v13945_v53 = vpack.c.bf16 %v10037_v10, %v10036_v48  ;;  %v13927_v48 = vpack.c.bf16 %v9920_v42, %v9919_v54  ;;  %v10046_v10 = vld [vmem:[#allocation11 + $0x5f0] sm:$0xff]  ;;  %v10235_v19 = vld [vmem:[#allocation11 + $0x728] sm:$0xff]  ;;  %v10253_v42 = vld [vmem:[#allocation11 + $0x7b8] sm:$0xff] }
 0xb63   :  { %13862 = vmatprep.subr.bf16.mxu1 %v13861_v27  ;;  %v13911_v27 = vpack.c.bf16 %v9912_v55, %v9911_v40  ;;  %v9921_v40 = vld [vmem:[#allocation11 + $0x460] sm:$0xff]  ;;  %v9922_v55 = vld [vmem:[#allocation11 + $0x468] sm:$0xff]  ;;  %v10252_v54 = vld [vmem:[#allocation11 + $0x7b0] sm:$0xff] }
 0xb64   :  { %13896 = vmatpush3.bf16.msra.mxu0 %v13895_v7  ;;  %v13913_v7 = vpack.c.bf16 %v9930_v11, %v9929_v4  ;;  %v9940_v4 = vld [vmem:[#allocation11 + $0x4f8] sm:$0xff] }
 0xb65   :  { %13898 = vmatprep.subr.bf16.mxu0 %v13897_v43  ;;  %v13947_v43 = vpack.c.bf16 %v10021_v12, %v10020_v50  ;;  %v10031_v50 = vld [vmem:[#allocation11 + $0x578] sm:$0xff]  ;;  %v13931_v12 = vpack.c.bf16 %v9922_v55, %v9921_v40  ;;  %v10255_v40 = vld [vmem:[#allocation11 + $0x7c8] sm:$0xff] }
 0xb66   :  { %13864 = vmatpush3.bf16.msra.mxu1 %v13863_v36  ;;  %v13949_v36 = vpack.c.bf16 %v10039_v9, %v10038_v45  ;;  %v10247_v45 = vld [vmem:[#allocation11 + $0x788] sm:$0xff] }
 0xb67   :  { %13866 = vmatprep.subr.bf16.mxu1 %v13865_v22  ;;  %v13915_v22 = vpack.c.bf16 %v9914_v3, %v9913_v51  ;;  %v9924_v51 = vld [vmem:[#allocation11 + $0x478] sm:$0xff] }
 0xb68   :  { %13900 = vmatpush3.bf16.msra.mxu0 %v13899_v39  ;;  %v13917_v39 = vpack.c.bf16 %v9932_v13, %v9931_v18  ;;  %v10140_v18 = vld [vmem:[#allocation11 + $0x688] sm:$0xff] }
 0xb69   :  { %13902 = vmatprep.subr.bf16.mxu0 %v13901_v20  ;;  %v13951_v20 = vpack.c.bf16 %v10023_v58, %v10022_v62  ;;  %v10231_v62 = vld [vmem:[#allocation11 + $0x708] sm:$0xff] }
 0xb6a   :  { %13868 = vmatpush3.bf16.msra.mxu1 %v13867_v25  ;;  %v13953_v25 = vpack.c.bf16 %v10041_v33, %v10040_v2  ;;  %v10249_v2 = vld [vmem:[#allocation11 + $0x798] sm:$0xff] }
 0xb6b   :  { %13870 = vmatprep.subr.bf16.mxu1 %v13869_v41  ;;  %v13919_v41 = vpack.c.bf16 %v9916_v29, %v9915_v59  ;;  %v10124_v59 = vld [vmem:[#allocation11 + $0x608] sm:$0xff] }
 0xb6c   :  { %13904 = vmatpush3.bf16.msra.mxu0 %v13903_v17  ;;  %v13921_v17 = vpack.c.bf16 %v9934_v8, %v9933_v57  ;;  %v10142_v57 = vld [vmem:[#allocation11 + $0x698] sm:$0xff]  ;;  %v10048_v8 = vrot.slane %v17346_v63, 5 }
 0xb6d   :  { %13938 = vmatprep.subr.bf16.mxu0 %v13937_v61  ;;  %v13955_v61 = vpack.c.bf16 %v10025_v56, %v10024_v1  ;;  %v10232_v1 = vld [vmem:[#allocation11 + $0x710] sm:$0xff]  ;;  %v10233_v56 = vld [vmem:[#allocation11 + $0x718] sm:$0xff] }
 0xb6e   :  { %13872 = vmatpush3.bf16.msra.mxu1 %v13871_v26  ;;  %v13957_v26 = vpack.c.bf16 %v10043_v5, %v10042_v32  ;;  %v10250_v5 = vld [vmem:[#allocation11 + $0x7a0] sm:$0xff] }
 0xb6f   :  { %9903 = vmatmul.mubr.f32.vlgmr.msra.gmra.mrb[36].mxu0 %v9834_v6  ;;  %13906 = vmatprep.subr.bf16.mxu1 %v13905_v31  ;;  %v13923_v31 = vpack.c.bf16 %v9918_v28, %v9917_v47  ;;  %v13959_v6 = vpack.c.bf16 %v10027_v46, %v10026_v49  ;;  %v9941_v47 = vrot.slane %v17346_v63, 4  ;;  %v10143_v49 = vld [vmem:[#allocation11 + $0x6a0] sm:$0xff]  ;;  %v10144_v46 = vld [vmem:[#allocation11 + $0x6a8] sm:$0xff] }
 0xb70   :  { %13940 = vmatpush3.bf16.msra.mxu0 %v13939_v16  ;;  %10116 = vmatprep.mubr.f32.mxu0 %v10049_v15  ;;  %v13925_v16 = vpack.c.bf16 %v9936_v38, %v9935_v21  ;;  %v10028_v15 = vld [vmem:[#allocation11 + $0x560] sm:$0xff]  ;;  %v10126_v21 = vld [vmem:[#allocation11 + $0x618] sm:$0xff]  ;;  %v10156_v38 = vrot.slane %v17348_v23, 6 }
 0xb71   :  { %9796 = vmatmul.mubr.f32.vlgmr.msra.gmra.mrb[34].mxu1 %v9727_v52  ;;  %13942 = vmatprep.subr.bf16.mxu0 %v13941_v60  ;;  %v9937_v60 = vld [vmem:[#allocation11 + $0x4e0] sm:$0xff]  ;;  %v10047_v52 = vld [vmem:[#allocation11 + $0x5f8] sm:$0xff] }
 0xb72   :  { %13908 = vmatpush3.bf16.msra.mxu1 %v13907_v34  ;;  %10009 = vmatprep.mubr.f32.mxu1 %v9942_v0  ;;  %v10029_v34 = vld [vmem:[#allocation11 + $0x568] sm:$0xff]  ;;  %v13965_v11 = vpack.c.bf16 %v10047_v52, %v10046_v10  ;;  %v10237_v10 = vld [vmem:[#allocation11 + $0x738] sm:$0xff] }
 0xb73   :  { %13910 = vmatprep.subr.bf16.mxu1 %v13909_v44  ;;  %v13929_v44 = vpack.c.bf16 %v9938_v30, %v9937_v60  ;;  %v13963_v0 = vpack.c.bf16 %v10029_v34, %v10028_v15  ;;  %v10127_v60 = vld [vmem:[#allocation11 + $0x620] sm:$0xff]  ;;  %v10128_v30 = vld [vmem:[#allocation11 + $0x628] sm:$0xff]  ;;  %v10146_v15 = vld [vmem:[#allocation11 + $0x6b8] sm:$0xff]  ;;  %v14013_v34 = vpack.c.bf16 %v10253_v42, %v10252_v54 }
 0xb74   :  { %13944 = vmatpush3.bf16.msra.mxu0 %v13943_v14  ;;  %v9939_v14 = vld [vmem:[#allocation11 + $0x4f0] sm:$0xff]  ;;  %v13979_v52 = vpack.c.bf16 %v10128_v30, %v10127_v60  ;;  %v10138_v54 = vld [vmem:[#allocation11 + $0x678] sm:$0xff]  ;;  %v10262_v60 = vrot.slane %v17346_v63, 7  ;;  %v10155_v30 = vrot.slane %v17346_v63, 6 }
 0xb75   :  { %13946 = vmatprep.subr.bf16.mxu0 %v13945_v53  ;;  %v10030_v53 = vld [vmem:[#allocation11 + $0x570] sm:$0xff]  ;;  %v13933_v9 = vpack.c.bf16 %v9940_v4, %v9939_v14  ;;  %v10130_v14 = vld [vmem:[#allocation11 + $0x638] sm:$0xff] }
 0xb76   :  { %13912 = vmatpush3.bf16.msra.mxu1 %v13911_v27  ;;  %v10246_v27 = vld [vmem:[#allocation11 + $0x780] sm:$0xff]  ;;  %v13967_v3 = vpack.c.bf16 %v10031_v50, %v10030_v53  ;;  %v10148_v53 = vld [vmem:[#allocation11 + $0x6c8] sm:$0xff]  ;;  %v10346_v63 = vld [vmem:[#allocation14 + $0x30] sm:$0xff] }
 0xb77   :  { %13914 = vmatprep.subr.bf16.mxu1 %v13913_v7  ;;  %v9923_v7 = vld [vmem:[#allocation11 + $0x470] sm:$0xff]  ;;  %v14001_v13 = vpack.c.bf16 %v10247_v45, %v10246_v27  ;;  %v10239_v27 = vld [vmem:[#allocation11 + $0x748] sm:$0xff] }
 0xb78   :  { %13948 = vmatpush3.bf16.msra.mxu0 %v13947_v43  ;;  %v10139_v43 = vld [vmem:[#allocation11 + $0x680] sm:$0xff]  ;;  %v13935_v58 = vpack.c.bf16 %v9924_v51, %v9923_v7  ;;  %v10257_v7 = vld [vmem:[#allocation11 + $0x7d8] sm:$0xff] }
 0xb79   :  { %13950 = vmatprep.subr.bf16.mxu0 %v13949_v36  ;;  %v10230_v36 = vld [vmem:[#allocation11 + $0x700] sm:$0xff]  ;;  %v13969_v33 = vpack.c.bf16 %v10140_v18, %v10139_v43  ;;  %v10132_v43 = vld [vmem:[#allocation11 + $0x648] sm:$0xff] }
 0xb7a   :  { %13916 = vmatpush3.bf16.msra.mxu1 %v13915_v22  ;;  %v10248_v22 = vld [vmem:[#allocation11 + $0x790] sm:$0xff]  ;;  %v14003_v29 = vpack.c.bf16 %v10231_v62, %v10230_v36  ;;  %v10150_v36 = vld [vmem:[#allocation11 + $0x6d8] sm:$0xff] }
 0xb7b   :  { %13918 = vmatprep.subr.bf16.mxu1 %v13917_v39  ;;  %v10123_v39 = vld [vmem:[#allocation11 + $0x600] sm:$0xff] }
 0xb7c   :  { %13952 = vmatpush3.bf16.msra.mxu0 %v13951_v20  ;;  %v10141_v20 = vld [vmem:[#allocation11 + $0x690] sm:$0xff]  ;;  %v13971_v32 = vpack.c.bf16 %v10124_v59, %v10123_v39  ;;  %v10259_v39 = vld [vmem:[#allocation11 + $0x7e8] sm:$0xff] }
 0xb7d   :  { %13954 = vmatprep.subr.bf16.mxu0 %v13953_v25  ;;  %v14005_v25 = vpack.c.bf16 %v10249_v2, %v10248_v22  ;;  %v13973_v28 = vpack.c.bf16 %v10142_v57, %v10141_v20  ;;  %v10241_v22 = vld [vmem:[#allocation11 + $0x758] sm:$0xff] }
 0xb7e   :  { %13920 = vmatpush3.bf16.msra.mxu1 %v13919_v41  ;;  %v10263_v41 = vrot.slane %v17348_v23, 7  ;;  %v10145_v23 = vld [vmem:[#allocation11 + $0x6b0] sm:$0xff]  ;;  %v10134_v20 = vld [vmem:[#allocation11 + $0x658] sm:$0xff] }
 0xb7f   :  { %13922 = vmatprep.subr.bf16.mxu1 %v13921_v17  ;;  %v10251_v17 = vld [vmem:[#allocation11 + $0x7a8] sm:$0xff]  ;;  %v13981_v55 = vpack.c.bf16 %v10146_v15, %v10145_v23 }
 0xb80   :  { %13956 = vmatpush3.bf16.msra.mxu0 %v13955_v61  ;;  %v10125_v61 = vld [vmem:[#allocation11 + $0x610] sm:$0xff]  ;;  %v10340_v23 = vld [vmem:[#allocation14] sm:$0xff] }
 0xb81   :  { %13958 = vmatprep.subr.bf16.mxu0 %v13957_v26  ;;  %v14007_v26 = vpack.c.bf16 %v10233_v56, %v10232_v1  ;;  %v10242_v56 = vld [vmem:[#allocation11 + $0x760] sm:$0xff]  ;;  %v10341_v15 = vld [vmem:[#allocation14 + $0x8] sm:$0xff] }
 0xb82   :  { %13924 = vmatpush3.bf16.msra.mxu1 %v13923_v31  ;;  %v14009_v31 = vpack.c.bf16 %v10251_v17, %v10250_v5  ;;  %v10260_v5 = vld [vmem:[#allocation11 + $0x7f0] sm:$0xff]  ;;  %v10261_v17 = vld [vmem:[#allocation11 + $0x7f8] sm:$0xff] }
 0xb83   :  { %13926 = vmatprep.subr.bf16.mxu1 %v13925_v16  ;;  %v13975_v16 = vpack.c.bf16 %v10126_v21, %v10125_v61  ;;  %v10136_v61 = vld [vmem:[#allocation11 + $0x668] sm:$0xff] }
 0xb84   :  { %13960 = vmatpush3.bf16.msra.mxu0 %v13959_v6  ;;  %v13977_v6 = vpack.c.bf16 %v10144_v46, %v10143_v49  ;;  %v14029_v49 = vpack.c.bf16 %v10261_v17, %v10260_v5  ;;  %v10244_v46 = vld [vmem:[#allocation11 + $0x770] sm:$0xff] }
 0xb85   :  { %13962 = vmatprep.subr.bf16.mxu0 %v13961_v35  ;;  %v14011_v35 = vpack.c.bf16 %v10235_v19, %v10234_v24 }
 0xb86   :  { %13928 = vmatpush3.bf16.msra.mxu1 %v13927_v48  ;;  %v10236_v48 = vld [vmem:[#allocation11 + $0x730] sm:$0xff] }
 0xb87   :  { %13930 = vmatprep.subr.bf16.mxu1 %v13929_v44  ;;  %v10254_v44 = vld [vmem:[#allocation11 + $0x7c0] sm:$0xff]  ;;  %v14015_v4 = vpack.c.bf16 %v10237_v10, %v10236_v48  ;;  %v14034_v48 = vpack.c.bf16 %v10341_v15, %v10340_v23 }
 0xb88   :  { %13964 = vmatpush3.bf16.msra.mxu0 %v13963_v0  ;;  %v10129_v0 = vld [vmem:[#allocation11 + $0x630] sm:$0xff]  ;;  %v14017_v50 = vpack.c.bf16 %v10255_v40, %v10254_v44  ;;  %v10343_v10 = vld [vmem:[#allocation14 + $0x18] sm:$0xff]  ;;  %v10344_v44 = vld [vmem:[#allocation14 + $0x20] sm:$0xff] }
 0xb89   :  { %13966 = vmatprep.subr.bf16.mxu0 %v13965_v11  ;;  %v10147_v11 = vld [vmem:[#allocation11 + $0x6c0] sm:$0xff]  ;;  %v13983_v45 = vpack.c.bf16 %v10130_v14, %v10129_v0  ;;  %v10345_v40 = vld [vmem:[#allocation14 + $0x28] sm:$0xff] }
 0xb8a   :  { %13932 = vmatpush3.bf16.msra.mxu1 %v13931_v12  ;;  %v10238_v12 = vld [vmem:[#allocation11 + $0x740] sm:$0xff]  ;;  %v13985_v51 = vpack.c.bf16 %v10148_v53, %v10147_v11  ;;  %v10350_v53 = vld [vmem:[#allocation14 + $0x50] sm:$0xff] }
 0xb8b   :  { %13934 = vmatprep.subr.bf16.mxu1 %v13933_v9  ;;  %v10256_v9 = vld [vmem:[#allocation11 + $0x7d0] sm:$0xff]  ;;  %v14019_v18 = vpack.c.bf16 %v10239_v27, %v10238_v12  ;;  %v10347_v0 = vld [vmem:[#allocation14 + $0x38] sm:$0xff]  ;;  %v10352_v27 = vld [vmem:[#allocation14 + $0x60] sm:$0xff] }
 0xb8c   :  { %13968 = vmatpush3.bf16.msra.mxu0 %v13967_v3  ;;  %v10131_v3 = vld [vmem:[#allocation11 + $0x640] sm:$0xff]  ;;  %v14021_v62 = vpack.c.bf16 %v10257_v7, %v10256_v9  ;;  %v14043_v14 = vpack.c.bf16 %v10347_v0, %v10346_v63  ;;  %v10354_v7 = vld [vmem:[#allocation14 + $0x70] sm:$0xff] }
 0xb8d   :  { %14002 = vmatprep.subr.bf16.mxu0 %v14001_v13  ;;  %v10149_v13 = vld [vmem:[#allocation11 + $0x6d0] sm:$0xff]  ;;  %v13987_v2 = vpack.c.bf16 %v10132_v43, %v10131_v3 }
 0xb8e   :  { %13936 = vmatpush3.bf16.msra.mxu1 %v13935_v58  ;;  %v10240_v58 = vld [vmem:[#allocation11 + $0x750] sm:$0xff]  ;;  %v13989_v59 = vpack.c.bf16 %v10150_v36, %v10149_v13 }
 0xb8f   :  { %10117 = vmatmul.mubr.f32.vlgmr.msra.gmra.mrb[38].mxu0 %v10048_v8  ;;  %13970 = vmatprep.subr.bf16.mxu1 %v13969_v33  ;;  %v10258_v33 = vld [vmem:[#allocation11 + $0x7e0] sm:$0xff]  ;;  %v14023_v57 = vpack.c.bf16 %v10241_v22, %v10240_v58 }
 0xb90   :  { %14004 = vmatpush3.bf16.msra.mxu0 %v14003_v29  ;;  %10330 = vmatprep.mubr.f32.mxu0 %v10263_v41  ;;  %v10133_v29 = vld [vmem:[#allocation11 + $0x650] sm:$0xff]  ;;  %v10151_v8 = vld [vmem:[#allocation11 + $0x6e0] sm:$0xff]  ;;  %v14025_v1 = vpack.c.bf16 %v10259_v39, %v10258_v33  ;;  %v10243_v41 = vld [vmem:[#allocation11 + $0x768] sm:$0xff] }
 0xb91   :  { %10010 = vmatmul.mubr.f32.vlgmr.msra.gmra.mrb[36].mxu1 %v9941_v47  ;;  %14006 = vmatprep.subr.bf16.mxu0 %v14005_v25  ;;  %v10152_v25 = vld [vmem:[#allocation11 + $0x6e8] sm:$0xff]  ;;  %v14027_v21 = vpack.c.bf16 %v10243_v41, %v10242_v56 }
 0xb92   :  { %13972 = vmatpush3.bf16.msra.mxu1 %v13971_v32  ;;  %10223 = vmatprep.mubr.f32.mxu1 %v10156_v38  ;;  %v13991_v32 = vpack.c.bf16 %v10134_v20, %v10133_v29  ;;  %v13993_v47 = vpack.c.bf16 %v10152_v25, %v10151_v8  ;;  %v10153_v38 = vld [vmem:[#allocation11 + $0x6f0] sm:$0xff] }
 0xb93   :  { %13974 = vmatprep.subr.bf16.mxu1 %v13973_v28  ;;  %v10135_v28 = vld [vmem:[#allocation11 + $0x660] sm:$0xff] }
 0xb94   :  { %14008 = vmatpush3.bf16.msra.mxu0 %v14007_v26  ;;  %v10154_v26 = vld [vmem:[#allocation11 + $0x6f8] sm:$0xff]  ;;  %v13995_v24 = vpack.c.bf16 %v10136_v61, %v10135_v28 }
 0xb95   :  { %14010 = vmatprep.subr.bf16.mxu0 %v14009_v31  ;;  %v10245_v31 = vld [vmem:[#allocation11 + $0x778] sm:$0xff]  ;;  %v13997_v19 = vpack.c.bf16 %v10154_v26, %v10153_v38 }
 0xb96   :  { %13976 = vmatpush3.bf16.msra.mxu1 %v13975_v16  ;;  %v10137_v16 = vld [vmem:[#allocation11 + $0x670] sm:$0xff]  ;;  %v14031_v42 = vpack.c.bf16 %v10245_v31, %v10244_v46  ;;  %v10337_v31 = vld [vmem:[#allocation12] sm:$0x1] }
 0xb97   :  { %13978 = vmatprep.subr.bf16.mxu1 %v13977_v6  ;;  %v13999_v6 = vpack.c.bf16 %v10138_v54, %v10137_v16  ;;  %v10356_v54 = vld [vmem:[#allocation15] sm:$0x1] }
 0xb98   :  { %14012 = vmatpush3.bf16.msra.mxu0 %v14011_v35  ;;  %v18450_v35 = vmov 0.0|0.0  }
 0xb99   :  { %14014 = vmatprep.subr.bf16.mxu0 %v14013_v34  ;;  %v10342_v34 = vld [vmem:[#allocation14 + $0x10] sm:$0xff] }
 0xb9a   :  { %13980 = vmatpush3.bf16.msra.mxu1 %v13979_v52  ;;  %v14037_v52 = vpack.c.bf16 %v10343_v10, %v10342_v34 }
 0xb9b   :  { %13982 = vmatprep.subr.bf16.mxu1 %v13981_v55  ;;  %v14040_v55 = vpack.c.bf16 %v10345_v40, %v10344_v44 }
 0xb9c   :  { %14016 = vmatpush3.bf16.msra.mxu0 %v14015_v4  ;;  %v10349_v4 = vld [vmem:[#allocation14 + $0x48] sm:$0xff] }
 0xb9d   :  { %14018 = vmatprep.subr.bf16.mxu0 %v14017_v50  ;;  %v10351_v50 = vld [vmem:[#allocation14 + $0x58] sm:$0xff] }
 0xb9e   :  { %13984 = vmatpush3.bf16.msra.mxu1 %v13983_v45  ;;  %v14049_v12 = vpack.c.bf16 %v10351_v50, %v10350_v53  ;;  %v10353_v45 = vld [vmem:[#allocation14 + $0x68] sm:$0xff] }
 0xb9f   :  { %13986 = vmatprep.subr.bf16.mxu1 %v13985_v51  ;;  %v14052_v9 = vpack.c.bf16 %v10353_v45, %v10352_v27  ;;  %v10355_v51 = vld [vmem:[#allocation14 + $0x78] sm:$0xff] }
 0xba0   :  { %14020 = vmatpush3.bf16.msra.mxu0 %v14019_v18  ;;  %v14055_v3 = vpack.c.bf16 %v10355_v51, %v10354_v7 }
 0xba1   :  { %14022 = vmatprep.subr.bf16.mxu0 %v14021_v62 }
 0xba2   :  { %13988 = vmatpush3.bf16.msra.mxu1 %v13987_v2 }
 0xba3   :  { %13990 = vmatprep.subr.bf16.mxu1 %v13989_v59 }
 0xba4   :  { %14024 = vmatpush3.bf16.msra.mxu0 %v14023_v57 }
 0xba5   :  { %14026 = vmatprep.subr.bf16.mxu0 %v14025_v1 }
 0xba6   :  { %13992 = vmatpush3.bf16.msra.mxu1 %v13991_v32 }
 0xba7   :  { %13994 = vmatprep.subr.bf16.mxu1 %v13993_v47 }
 0xba8   :  { %14028 = vmatpush3.bf16.msra.mxu0 %v14027_v21 }
 0xba9   :  { %14030 = vmatprep.subr.bf16.mxu0 %v14029_v49 }
 0xbaa   :  { %13996 = vmatpush3.bf16.msra.mxu1 %v13995_v24 }
 0xbab   :  { %13998 = vmatprep.subr.bf16.mxu1 %v13997_v19 }
 0xbac   :  { %14032 = vmatpush3.bf16.msra.mxu0 %v14031_v42 }
 0xbae   :  { %14000 = vmatpush3.bf16.msra.mxu1 %v13999_v6 }
 0xbaf   :  { %10331 = vmatmul.mubr.f32.vlgmr.msra.gmra.mrb[40].mxu0 %v10262_v60  ;;  %14033 = vmatprep.subr.bf16.mxu1 %v18450_v35 }
 0xbb1   :  { %10224 = vmatmul.mubr.f32.vlgmr.msra.gmra.mrb[38].mxu1 %v10155_v30 }
 0xbb2   :  { %11286 = vmatprep.mubr.msk.f32.mxu1 %vm14453_vm8, %v16629_v37  ;;  %14035 = vmatpush3.bf16.msra.mxu1 %v14034_v48  ;;  %v10348_v37 = vld [vmem:[#allocation14 + $0x40] sm:$0xff] }
 0xbb3   :  { %14036 = vmatprep.subr.bf16.mxu1 %v18450_v35  ;;  %v14046_v11 = vpack.c.bf16 %v10349_v4, %v10348_v37 }
 0xbb6   :  { %14038 = vmatpush3.bf16.msra.mxu1 %v14037_v52 }
 0xbb7   :  { %14039 = vmatprep.subr.bf16.mxu1 %v18450_v35 }
 0xbba   :  { %14041 = vmatpush3.bf16.msra.mxu1 %v14040_v55 }
 0xbbb   :  { %14042 = vmatprep.subr.bf16.mxu1 %v18450_v35 }
 0xbbe   :  { %14044 = vmatpush3.bf16.msra.mxu1 %v14043_v14 }
 0xbbf   :  { %14045 = vmatprep.subr.bf16.mxu1 %v18450_v35 }
 0xbc2   :  { %14047 = vmatpush3.bf16.msra.mxu1 %v14046_v11 }
 0xbc3   :  { %14048 = vmatprep.subr.bf16.mxu1 %v18450_v35 }
 0xbc6   :  { %14050 = vmatpush3.bf16.msra.mxu1 %v14049_v12 }
 0xbc7   :  { %14051 = vmatprep.subr.bf16.mxu1 %v18450_v35 }
 0xbca   :  { %14053 = vmatpush3.bf16.msra.mxu1 %v14052_v9 }
 0xbcb   :  { %14054 = vmatprep.subr.bf16.mxu1 %v18450_v35 }
 0xbce   :  { %14056 = vmatpush3.bf16.msra.mxu1 %v14055_v3 }
 0xc22   :  { %v10989_v43 = vpop.f32.mrb[34].mxu0 }
 0xc23   :  { %v10990_v18 = vpop.f32.mrb[35].mxu0 }
 0xc24   :  { %v10991_v13 = vadd.f32 %v10990_v18, %v10989_v43  ;;  %v10954_v36 = vpop.f32.mrb[32].mxu1 }
 0xc25   :  { %v10955_v62 = vpop.f32.mrb[33].mxu1 }
 0xc26   :  { %v10956_v58 = vadd.f32 %v10955_v62, %v10954_v36 }
 0xc28   :  { %v9692_v22 = vadd.f32 %v10991_v13, %v10956_v58 }
 0xc42   :  { %v11059_v2 = vpop.f32.mrb[36].mxu0 }
 0xc43   :  { %v11060_v33 = vpop.f32.mrb[37].mxu0 }
 0xc44   :  { %v11061_v39 = vadd.f32 %v11060_v33, %v11059_v2  ;;  %v11024_v59 = vpop.f32.mrb[34].mxu1 }
 0xc45   :  { %v11025_v29 = vpop.f32.mrb[35].mxu1 }
 0xc46   :  { %v11026_v20 = vadd.f32 %v11025_v29, %v11024_v59 }
 0xc48   :  { %v9801_v57 = vadd.f32 %v11026_v20, %v9692_v22 }
 0xc4a   :  { %v9908_v8 = vadd.f32 %v11061_v39, %v9801_v57 }
 0xc62   :  { %v11129_v25 = vpop.f32.mrb[38].mxu0 }
 0xc63   :  { %v11130_v1 = vpop.f32.mrb[39].mxu0 }
 0xc64   :  { %v11131_v56 = vadd.f32 %v11130_v1, %v11129_v25  ;;  %v11094_v41 = vpop.f32.mrb[36].mxu1 }
 0xc65   :  { %v11095_v32 = vpop.f32.mrb[37].mxu1 }
 0xc66   :  { %v11096_v5 = vadd.f32 %v11095_v32, %v11094_v41 }
 0xc68   :  { %v10015_v17 = vadd.f32 %v11096_v5, %v9908_v8 }
 0xc6a   :  { %v10122_v47 = vadd.f32 %v11131_v56, %v10015_v17 }
 0xc82   :  { %v11199_v28 = vpop.f32.mrb[40].mxu0 }
 0xc83   :  { %v11200_v61 = vpop.f32.mrb[41].mxu0 }
 0xc84   :  { %v11201_v21 = vadd.f32 %v11200_v61, %v11199_v28  ;;  %v11164_v38 = vpop.f32.mrb[38].mxu1 }
 0xc85   :  { %v11165_v26 = vpop.f32.mrb[39].mxu1 }
 0xc86   :  { %v11166_v49 = vadd.f32 %v11165_v26, %v11164_v38 }
 0xc88   :  { %v10229_v46 = vadd.f32 %v11166_v49, %v10122_v47 }
 0xc8a   :  { %v10336_v24 = vadd.f32 %v11201_v21, %v10229_v46 }
 0xc8c   :  { %v10338_v19 = vadd.f32 %v10337_v31, %v10336_v24 }
 0xc8e   :  { %v10339_v16 = vmax.f32 %v10338_v19, 0.0 }
 0xc90   :  { %11287 = vmatmul.mubr.f32.vlgmr.msra.gmra.mrb[40].mxu1 %v10339_v16 }
 0xd63   :  { %v10423_v42 = vpop.f32.mrb[40].mxu1 }
 0xd64   :  { %v10424_v6 = vadd.f32 %v10423_v42, %v10356_v54  ;;  %v11288_v60 = vpop.f32.mrb[41].mxu1 }
 0xd66   :  { %10427 = vst.msk [vmem:[#allocation17 + $0x1] sm:$0x1] %vm5299_vm9, %v10424_v6 }
 0xd67   :  { %14415 = shalt.err (!%p14412_p12)
}
 0xd68   :  { %s14416_s3 = scalar_lea.hbm %s17398_s9, 32 }
 0xd69   :  { %p14417_p13 = scmp.ne.s32.totalorder %s17398_s9, %s14416_s3  ;;  %p14420_p0 = scmp.lt.u32.totalorder %s14416_s3, %s17398_s9 }
 0xd6b   :  { %p14422_p1 = pnand %p14420_p0, %p14417_p13 }
 0xd6d   :  { %14425 = shalt.err (!%p14422_p1)
}
 0xd6e   :  { %10437 = dma.vmem_to_hbm [thread:$0]  %s10435_s11, 32, %s17398_s9, [#allocation5]  }
 0xd6f   :  { %14436 = dma.done.wait [#allocation5], 32  }
 0xd70   :  { %14437 = vsyncadd [#allocation5], 4294967264 }
 0xd71   :  { %10441 = vsyncpa [#allocation4], 1 }
 0xd72   :  { %10442 = vsyncpa [#allocation7], 1 }
 0xd73   :  { %10443 = vsyncpa [#allocation10], 1 }
 0xd74   :  { %10444 = vsyncpa [#allocation13], 1 }
 0xd75   :  { %10445 = vsyncpa [#allocation16], 1 }
 0xd76   :  { %10446 = vsyncpa [#allocation5], 1 }

</bundles_post_ra>
